<compile_context>
chip_gen: v7x
topology: tpu7x:2x2x1
jax: 0.10.0
libtpu: 0.0.40
codegen_flags: <defaults>
</compile_context>

<pallas_src>
import math

import jax
import jax.numpy as jnp
from jax import lax
from jax.experimental import pallas as pl
from jax.experimental.pallas import tpu as pltpu


def _round_up(x, m):
    return ((x + m - 1) // m) * m


# ----------------------------- tiled GEMM (+bias) kernel ----------------------

def _matmul_bias_kernel(x_ref, w_ref, b_ref, o_ref, acc_ref):
    k = pl.program_id(2)

    @pl.when(k == 0)
    def _():
        acc_ref[...] = jnp.zeros_like(acc_ref)

    acc_ref[...] += jnp.dot(x_ref[...].astype(jnp.bfloat16),
                            w_ref[...].astype(jnp.bfloat16),
                            preferred_element_type=jnp.float32)

    @pl.when(k == pl.num_programs(2) - 1)
    def _():
        o_ref[...] = (acc_ref[...] + b_ref[...]).astype(o_ref.dtype)


def matmul_bias(x, w, b, out_dtype=jnp.float32, tm_cap=512, tn_cap=1024, tk_cap=512):
    """x: (M, K), w: (K, N) [bf16], b: (1, N) f32 -> (M, N) out_dtype.

    Non-tile-friendly M/N/K are zero-padded (zeros contribute nothing to the
    K reduction) and the result is sliced back — no full-extent fallback blocks
    that could blow VMEM (perf-review fix for the old _fit_tile fallback).
    """
    M, K = x.shape
    N = w.shape[1]
    tm = min(tm_cap, _round_up(M, 8))
    tn = min(tn_cap, _round_up(N, 128))
    tk = min(tk_cap, _round_up(K, 128))
    Mp, Np, Kp = _round_up(M, tm), _round_up(N, tn), _round_up(K, tk)
    if (Mp, Kp) != (M, K):
        x = jnp.pad(x, ((0, Mp - M), (0, Kp - K)))
    if (Kp, Np) != (K, N):
        w = jnp.pad(w, ((0, Kp - K), (0, Np - N)))
    if Np != N:
        b = jnp.pad(b, ((0, 0), (0, Np - N)))

    out_bytes = jnp.dtype(out_dtype).itemsize
    est = (2 * tm * tk * x.dtype.itemsize          # x tile, double buffered
           + 2 * tk * tn * w.dtype.itemsize        # w tile, double buffered
           + 2 * tn * b.dtype.itemsize             # bias tile
           + tm * tn * 4                           # f32 accumulator scratch
           + 2 * tm * tn * out_bytes)              # output tile, double buffered
    vmem_limit = int(min(max(est * 1.25 + (2 << 20), 32 << 20), 128 << 20))

    grid = (Mp // tm, Np // tn, Kp // tk)
    out = pl.pallas_call(
        _matmul_bias_kernel,
        out_shape=jax.ShapeDtypeStruct((Mp, Np), out_dtype),
        grid=grid,
        in_specs=[
            pl.BlockSpec((tm, tk), lambda i, j, k: (i, k)),
            pl.BlockSpec((tk, tn), lambda i, j, k: (k, j)),
            pl.BlockSpec((1, tn), lambda i, j, k: (0, j)),
        ],
        out_specs=pl.BlockSpec((tm, tn), lambda i, j, k: (i, j)),
        scratch_shapes=[pltpu.VMEM((tm, tn), jnp.float32)],
        compiler_params=pltpu.CompilerParams(
            dimension_semantics=("parallel", "parallel", "arbitrary"),
            vmem_limit_bytes=vmem_limit),
    )(x, w, b)
    if (Mp, Np) != (M, N):
        out = out[:M, :N]
    return out


# -------------- fused 2-layer LSTM (input projection + recurrence) ------------

def _lstm2_kernel(x_ref, wih1_ref, whh1_ref, w2_ref, b1_ref, b2_ref, out_ref,
                  gx1_sc, h1_sc, c1_sc, h2_sc, c2_sc):
    # Zero the carried state on the first time-block (h0/c0 default to zeros).
    @pl.when(pl.program_id(0) == 0)
    def _():
        h1_sc[...] = jnp.zeros_like(h1_sc)
        c1_sc[...] = jnp.zeros_like(c1_sc)
        h2_sc[...] = jnp.zeros_like(h2_sc)
        c2_sc[...] = jnp.zeros_like(c2_sc)

    B, H = h1_sc.shape
    TS = out_ref.shape[0]

    whh1 = whh1_ref[...]
    w2 = w2_ref[...]            # [W_ih2 ; W_hh2]  -> (2H, 4H)
    b2 = b2_ref[...]

    # Layer-1 input projection for the whole time-block, fused into this kernel:
    # one full-occupancy (TS*B, D) @ (D, 4H) MXU GEMM; gx1 stays in VMEM only.
    gx1_sc[...] = (jnp.dot(x_ref[...], wih1_ref[...],
                           preferred_element_type=jnp.float32) + b1_ref[...])

    def gate_update(gates, c):
        # PyTorch gate order: i, f, g, o — each slice is lane-aligned (H % 128 == 0).
        i = jax.nn.sigmoid(gates[:, 0 * H:1 * H])
        f = jax.nn.sigmoid(gates[:, 1 * H:2 * H])
        g = jnp.tanh(gates[:, 2 * H:3 * H])
        o = jax.nn.sigmoid(gates[:, 3 * H:4 * H])
        c_new = f * c + i * g
        h_new = o * jnp.tanh(c_new)
        return h_new, c_new

    def step(s, carry):
        h1, c1, h2, c2 = carry
        row = pl.multiple_of(s * B, B)
        # Layer 1: only the recurrent matmul remains per step.
        gates1 = gx1_sc[pl.ds(row, B), :] + jnp.dot(
            h1.astype(jnp.bfloat16), whh1, preferred_element_type=jnp.float32)
        h1, c1 = gate_update(gates1, c1)
        # Layer 2: single merged matmul of [h1 | h2] against [W_ih2 ; W_hh2]
        # (one MXU push/pop instead of two matmuls + a (B,4H) add).
        h12 = jnp.concatenate([h1, h2], axis=-1).astype(jnp.bfloat16)
        gates2 = jnp.dot(h12, w2, preferred_element_type=jnp.float32) + b2
        h2, c2 = gate_update(gates2, c2)
        out_ref[s] = h2.astype(out_ref.dtype)
        return (h1, c1, h2, c2)

    carry = (h1_sc[...], c1_sc[...], h2_sc[...], c2_sc[...])
    # Fully unroll only while the carried f32 state fits comfortably in the vreg
    # file; at large B*H keep the rolled loop to avoid spills.
    unroll = (4 * B * H * 4) <= (16 * 4096)
    carry = lax.fori_loop(0, TS, step, carry, unroll=unroll)
    h1_sc[...], c1_sc[...], h2_sc[...], c2_sc[...] = carry


def _pick_ts(T, B, D, H, budget_bytes=8 << 20):
    """Timesteps per grid step: big (amortize ~0.35us/step) but VMEM-bounded."""
    for ts in (32, 16, 8, 4, 2, 1):
        if T % ts:
            continue
        blk = (2 * ts * B * D * 2      # x block, double buffered, bf16
               + 2 * ts * B * H * 2    # out block, double buffered, bf16
               + ts * B * 4 * H * 4)   # gx1 scratch, f32
        if blk <= budget_bytes or ts == 1:
            return ts
    return 1


def lstm2_fused(x, wih1, whh1, w2, b1, b2):
    """x: (T, B, D) bf16 embeddings -> layer-2 hidden sequence (T, B, H) bf16."""
    T, B, D = x.shape
    H = whh1.shape[0]
    assert B % 8 == 0 and D % 128 == 0 and H % 128 == 0, "kernel assumes aligned B/D/H"
    TS = _pick_ts(T, B, D, H)
    x2d = x.reshape(T * B, D)

    # Grid-invariant operands: single-buffer them (index_map is constant, so
    # double buffering would only waste VMEM).
    resident = dict(pipeline_mode=pl.Buffered(buffer_count=1))

    weight_bytes = ((D * 4 * H + H * 4 * H + 2 * H * 4 * H) * 2   # bf16 weights
                    + 2 * (4 * H) * 4)                            # f32 biases
    est = (2 * TS * B * D * 2        # x block, double buffered
           + weight_bytes            # resident (single-buffered) weights
           + 2 * TS * B * H * 2      # out block, double buffered
           + TS * B * 4 * H * 4      # gx1 scratch
           + 4 * B * H * 4)          # h/c state
    vmem_limit = int(min(max(est * 1.25 + (2 << 20), 32 << 20), 128 << 20))

    return pl.pallas_call(
        _lstm2_kernel,
        out_shape=jax.ShapeDtypeStruct((T, B, H), jnp.bfloat16),
        grid=(T // TS,),
        in_specs=[
            pl.BlockSpec((TS * B, D), lambda t: (t, 0)),                # embeddings
            pl.BlockSpec((D, 4 * H), lambda t: (0, 0), **resident),     # W_ih layer 1
            pl.BlockSpec((H, 4 * H), lambda t: (0, 0), **resident),     # W_hh layer 1
            pl.BlockSpec((2 * H, 4 * H), lambda t: (0, 0), **resident),  # [W_ih;W_hh] L2
            pl.BlockSpec((1, 4 * H), lambda t: (0, 0), **resident),     # bias layer 1
            pl.BlockSpec((1, 4 * H), lambda t: (0, 0), **resident),     # bias layer 2
        ],
        out_specs=pl.BlockSpec((TS, B, H), lambda t: (t, 0, 0)),
        scratch_shapes=[
            pltpu.VMEM((TS * B, 4 * H), jnp.float32),   # gx1 (input gates, VMEM-only)
            pltpu.VMEM((B, H), jnp.float32),            # h1
            pltpu.VMEM((B, H), jnp.float32),            # c1
            pltpu.VMEM((B, H), jnp.float32),            # h2
            pltpu.VMEM((B, H), jnp.float32),            # c2
        ],
        compiler_params=pltpu.CompilerParams(
            dimension_semantics=("arbitrary",),         # sequential recurrence
            vmem_limit_bytes=vmem_limit),
    )(x2d, wih1, whh1, w2, b1, b2)


# ----------------------------- parameters & model ------------------------------

def init_params(key, nvoc, dim, hidden, num_layers=2):
    assert num_layers == 2, "fused recurrence kernel is specialized for 2 layers"
    init_u = 0.1
    ks = jax.random.split(key, 2 + 4 * num_layers)
    params = {
        "embed": jax.random.uniform(ks[0], (nvoc, dim), jnp.float32,
                                    -init_u, init_u).astype(jnp.bfloat16),
        "dec_w_t": jax.random.uniform(ks[1], (hidden, nvoc), jnp.float32,
                                      -init_u, init_u).astype(jnp.bfloat16),
        "dec_b": jnp.zeros((1, nvoc), jnp.float32),
        "lstm": [],
    }
    bound = 1.0 / math.sqrt(hidden)
    for l in range(num_layers):
        in_dim = dim if l == 0 else hidden
        k0, k1, k2, k3 = ks[2 + 4 * l: 6 + 4 * l]
        params["lstm"].append({
            "wih": jax.random.uniform(k0, (in_dim, 4 * hidden), jnp.float32,
                                      -bound, bound).astype(jnp.bfloat16),
            "whh": jax.random.uniform(k1, (hidden, 4 * hidden), jnp.float32,
                                      -bound, bound).astype(jnp.bfloat16),
            "bih": jax.random.uniform(k2, (1, 4 * hidden), jnp.float32, -bound, bound),
            "bhh": jax.random.uniform(k3, (1, 4 * hidden), jnp.float32, -bound, bound),
        })
    return params


@jax.jit
def lm_model_forward(params, token_ids):
    """token_ids: (T, B) int32 -> logits (T, B, nvoc) float32."""
    T, B = token_ids.shape
    l1, l2 = params["lstm"]
    H = l1["whh"].shape[0]

    # 1) Embedding gather (plain-JAX glue); activations stream in bf16.
    x = jnp.take(params["embed"], token_ids, axis=0)             # (T, B, D) bf16
    # Dropout: identity (eval mode).

    # 2) Fused LSTM stack: layer-1 input projection + both recurrences in one
    #    kernel; gx1 never touches HBM, h/c state lives in VMEM scratch.
    b1 = l1["bih"] + l1["bhh"]                                   # (1, 4H) f32
    b2 = l2["bih"] + l2["bhh"]                                   # (1, 4H) f32
    w2 = jnp.concatenate([l2["wih"], l2["whh"]], axis=0)         # (2H, 4H) bf16
    h2 = lstm2_fused(x, l1["wih"], l1["whh"], w2, b1, b2)        # (T, B, H) bf16

    # Dropout: identity (eval mode).
    # 3) Decoder GEMM.
    logits = matmul_bias(h2.reshape(T * B, H), params["dec_w_t"], params["dec_b"],
                         out_dtype=jnp.float32)                  # (T*B, V) f32
    return logits.reshape(T, B, -1)


# ----------------------------- pure-JAX reference ------------------------------

def _reference(params, token_ids):
    """Mirrors the kernel's quantization: bf16 matmul inputs, f32 accum/state."""
    T, B = token_ids.shape
    H = params["lstm"][0]["whh"].shape[0]

    def bdot(a, b):
        return jnp.dot(a.astype(jnp.bfloat16), b.astype(jnp.bfloat16),
                       preferred_element_type=jnp.float32)

    x = jnp.take(params["embed"], token_ids, axis=0)             # (T, B, D) bf16
    for layer in params["lstm"]:
        bias = (layer["bih"] + layer["bhh"])[0]
        wih, whh = layer["wih"], layer["whh"]

        def step(carry, xt, wih=wih, whh=whh, bias=bias):
            h, c = carry
            g = bdot(xt, wih) + bdot(h, whh) + bias
            i, f, gg, o = jnp.split(g, 4, axis=-1)
            c = jax.nn.sigmoid(f) * c + jax.nn.sigmoid(i) * jnp.tanh(gg)
            h = jax.nn.sigmoid(o) * jnp.tanh(c)
            return (h, c), h

        (_, _), x = lax.scan(step, (jnp.zeros((B, H), jnp.float32),
                                    jnp.zeros((B, H), jnp.float32)), x)
        x = x.astype(jnp.bfloat16)   # matches bf16 activation hand-off in the kernels

    out = bdot(x.reshape(-1, H), params["dec_w_t"]) + params["dec_b"][0]
    return out.reshape(T, B, -1)


if __name__ == "__main__":
    # Small but representative shapes: B multiple of 8 (sublanes), D=H multiple
    # of 128 (lanes); nvoc deliberately NOT a multiple of 128 to exercise the
    # decoder's pad-and-slice path.
    nvoc, dim, hidden, num_layers = 250, 128, 128, 2
    T, B = 16, 8

    key = jax.random.PRNGKey(0)
    k_param, k_tok = jax.random.split(key)
    params = init_params(k_param, nvoc, dim, hidden, num_layers)
    token_ids = jax.random.randint(k_tok, (T, B), 0, nvoc, dtype=jnp.int32)

    logits = lm_model_forward(params, token_ids)
    jax.block_until_ready(logits)

    ref = _reference(params, token_ids)
    assert logits.shape == (T, B, nvoc)
    max_err = float(jnp.max(jnp.abs(logits - ref)))
    assert jnp.allclose(logits, ref, atol=1e-2, rtol=1e-2), f"max abs err {max_err}"

    print("KERNEL_OK")
</pallas_src>

<mosaic_0001>
module attributes {stable_mosaic.version = 11 : i64} {
  func.func @_matmul_bias_kernel(%arg0: i32, %arg1: i32, %arg2: i32, %arg3: memref<128x128xbf16, #tpu.memory_space<vmem>>, %arg4: memref<128x256xbf16, #tpu.memory_space<vmem>>, %arg5: memref<1x256xf32, #tpu.memory_space<vmem>>, %arg6: memref<128x256xf32, #tpu.memory_space<vmem>>, %arg7: memref<128x256xf32, #tpu.memory_space<vmem>>) attributes {dimension_semantics = [#tpu.dimension_semantics<parallel>, #tpu.dimension_semantics<parallel>, #tpu.dimension_semantics<arbitrary>], iteration_bounds = array<i64: 1, 1, 1>, scalar_prefetch = 0 : i64, scratch_operands = 1 : i64, tpu.core_type = #tpu.core_type<tc>, window_params = [{transform_indices = @transform_0, window_bounds = array<i64: 128, 128>}, {transform_indices = @transform_1, window_bounds = array<i64: 128, 256>}, {transform_indices = @transform_2, window_bounds = array<i64: 1, 256>}, {transform_indices = @transform_3, window_bounds = array<i64: 128, 256>}]} {
    %c0_i32 = arith.constant 0 : i32
    %0 = arith.cmpi eq, %arg2, %c0_i32 : i32
    %1 = arith.extui %0 : i1 to i32
    %c0_i32_0 = arith.constant 0 : i32
    %2 = arith.cmpi ne, %1, %c0_i32_0 : i32
    scf.if %2 {
      %cst_10 = arith.constant 0.000000e+00 : f32
      %12 = vector.broadcast %cst_10 : f32 to vector<128x256xf32>
      %c0_11 = arith.constant 0 : index
      %c0_12 = arith.constant 0 : index
      %13 = vector.load %arg7[%c0_11, %c0_12] : memref<128x256xf32, #tpu.memory_space<vmem>>, vector<128x256xf32>
      tpu.vector_store %arg7[%c0_11, %c0_12], %12 {strides = array<i32>} : memref<128x256xf32, #tpu.memory_space<vmem>>, vector<128x256xf32>,
    } else {
    }
    %c0 = arith.constant 0 : index
    %c0_1 = arith.constant 0 : index
    %3 = vector.load %arg7[%c0, %c0_1] : memref<128x256xf32, #tpu.memory_space<vmem>>, vector<128x256xf32>
    %c0_2 = arith.constant 0 : index
    %c0_3 = arith.constant 0 : index
    %4 = vector.load %arg3[%c0_2, %c0_3] : memref<128x128xbf16, #tpu.memory_space<vmem>>, vector<128x128xbf16>
    %c0_4 = arith.constant 0 : index
    %c0_5 = arith.constant 0 : index
    %5 = vector.load %arg4[%c0_4, %c0_5] : memref<128x256xbf16, #tpu.memory_space<vmem>>, vector<128x256xbf16>
    %cst = arith.constant dense<0.000000e+00> : vector<128x256xf32>
    %6 = tpu.matmul %4, %5, %cst {dimension_numbers = #tpu.dot_dimension_numbers<[1], [0], [0], [1], [0, 0, 1, 1], [], []>} : vector<128x128xbf16>, vector<128x256xbf16>, vector<128x256xf32> -> vector<128x256xf32>
    %7 = arith.addf %3, %6 : vector<128x256xf32>
    %c0_6 = arith.constant 0 : index
    %c0_7 = arith.constant 0 : index
    %8 = vector.load %arg7[%c0_6, %c0_7] : memref<128x256xf32, #tpu.memory_space<vmem>>, vector<128x256xf32>
    tpu.vector_store %arg7[%c0_6, %c0_7], %7 {strides = array<i32>} : memref<128x256xf32, #tpu.memory_space<vmem>>, vector<128x256xf32>,
    %c0_i32_8 = arith.constant 0 : i32
    %9 = arith.cmpi eq, %arg2, %c0_i32_8 : i32
    %10 = arith.extui %9 : i1 to i32
    %c0_i32_9 = arith.constant 0 : i32
    %11 = arith.cmpi ne, %10, %c0_i32_9 : i32
    scf.if %11 {
      %c0_10 = arith.constant 0 : index
      %c0_11 = arith.constant 0 : index
      %12 = vector.load %arg7[%c0_10, %c0_11] : memref<128x256xf32, #tpu.memory_space<vmem>>, vector<128x256xf32>
      %c0_12 = arith.constant 0 : index
      %c0_13 = arith.constant 0 : index
      %13 = vector.load %arg5[%c0_12, %c0_13] : memref<1x256xf32, #tpu.memory_space<vmem>>, vector<1x256xf32>
      %14 = vector.broadcast %13 : vector<1x256xf32> to vector<128x256xf32>
      %15 = arith.addf %12, %14 : vector<128x256xf32>
      %c0_14 = arith.constant 0 : index
      %c0_15 = arith.constant 0 : index
      %16 = vector.load %arg6[%c0_14, %c0_15] : memref<128x256xf32, #tpu.memory_space<vmem>>, vector<128x256xf32>
      tpu.vector_store %arg6[%c0_14, %c0_15], %15 {strides = array<i32>} : memref<128x256xf32, #tpu.memory_space<vmem>>, vector<128x256xf32>,
    } else {
    }
    return
  }
  func.func @transform_0(%arg0: i32, %arg1: i32, %arg2: i32) -> (i32, i32) {
    %c0_i32 = arith.constant 0 : i32
    return %arg0, %arg2 : i32, i32
  }
  func.func @transform_1(%arg0: i32, %arg1: i32, %arg2: i32) -> (i32, i32) {
    %c0_i32 = arith.constant 0 : i32
    return %arg2, %arg1 : i32, i32
  }
  func.func @transform_2(%arg0: i32, %arg1: i32, %arg2: i32) -> (i32, i32) {
    %c0_i32 = arith.constant 0 : i32
    %c0_i32_0 = arith.constant 0 : i32
    return %c0_i32, %arg1 : i32, i32
  }
  func.func @transform_3(%arg0: i32, %arg1: i32, %arg2: i32) -> (i32, i32) {
    %c0_i32 = arith.constant 0 : i32
    return %arg0, %arg1 : i32, i32
  }
}

module attributes {stable_mosaic.version = 11 : i64} {
  func.func @_lstm2_kernel(%arg0: i32, %arg1: memref<128x128xbf16, #tpu.memory_space<vmem>>, %arg2: memref<128x512xbf16, #tpu.memory_space<vmem>>, %arg3: memref<128x512xbf16, #tpu.memory_space<vmem>>, %arg4: memref<256x512xbf16, #tpu.memory_space<vmem>>, %arg5: memref<1x512xf32, #tpu.memory_space<vmem>>, %arg6: memref<1x512xf32, #tpu.memory_space<vmem>>, %arg7: memref<16x8x128xbf16, #tpu.memory_space<vmem>>, %arg8: memref<128x512xf32, #tpu.memory_space<vmem>>, %arg9: memref<8x128xf32, #tpu.memory_space<vmem>>, %arg10: memref<8x128xf32, #tpu.memory_space<vmem>>, %arg11: memref<8x128xf32, #tpu.memory_space<vmem>>, %arg12: memref<8x128xf32, #tpu.memory_space<vmem>>) attributes {dimension_semantics = [#tpu.dimension_semantics<arbitrary>], iteration_bounds = array<i64: 1>, scalar_prefetch = 0 : i64, scratch_operands = 5 : i64, tpu.core_type = #tpu.core_type<tc>, window_params = [{transform_indices = @transform_0, window_bounds = array<i64: 128, 128>}, {pipeline_mode = #tpu.pipeline_mode<synchronous>, transform_indices = @transform_1, window_bounds = array<i64: 128, 512>}, {pipeline_mode = #tpu.pipeline_mode<synchronous>, transform_indices = @transform_2, window_bounds = array<i64: 128, 512>}, {pipeline_mode = #tpu.pipeline_mode<synchronous>, transform_indices = @transform_3, window_bounds = array<i64: 256, 512>}, {pipeline_mode = #tpu.pipeline_mode<synchronous>, transform_indices = @transform_4, window_bounds = array<i64: 1, 512>}, {pipeline_mode = #tpu.pipeline_mode<synchronous>, transform_indices = @transform_5, window_bounds = array<i64: 1, 512>}, {transform_indices = @transform_6, window_bounds = array<i64: 16, 8, 128>}]} {
    %c0_i32 = arith.constant 0 : i32
    %0 = arith.cmpi eq, %arg0, %c0_i32 : i32
    %1 = arith.extui %0 : i1 to i32
    %c0_i32_0 = arith.constant 0 : i32
    %2 = arith.cmpi ne, %1, %c0_i32_0 : i32
    scf.if %2 {
      %cst_223 = arith.constant 0.000000e+00 : f32
      %1093 = vector.broadcast %cst_223 : f32 to vector<8x128xf32>
      %c0_224 = arith.constant 0 : index
      %c0_225 = arith.constant 0 : index
      %1094 = vector.load %arg9[%c0_224, %c0_225] : memref<8x128xf32, #tpu.memory_space<vmem>>, vector<8x128xf32>
      tpu.vector_store %arg9[%c0_224, %c0_225], %1093 {strides = array<i32>} : memref<8x128xf32, #tpu.memory_space<vmem>>, vector<8x128xf32>,
      %cst_226 = arith.constant 0.000000e+00 : f32
      %1095 = vector.broadcast %cst_226 : f32 to vector<8x128xf32>
      %c0_227 = arith.constant 0 : index
      %c0_228 = arith.constant 0 : index
      %1096 = vector.load %arg10[%c0_227, %c0_228] : memref<8x128xf32, #tpu.memory_space<vmem>>, vector<8x128xf32>
      tpu.vector_store %arg10[%c0_227, %c0_228], %1095 {strides = array<i32>} : memref<8x128xf32, #tpu.memory_space<vmem>>, vector<8x128xf32>,
      %cst_229 = arith.constant 0.000000e+00 : f32
      %1097 = vector.broadcast %cst_229 : f32 to vector<8x128xf32>
      %c0_230 = arith.constant 0 : index
      %c0_231 = arith.constant 0 : index
      %1098 = vector.load %arg11[%c0_230, %c0_231] : memref<8x128xf32, #tpu.memory_space<vmem>>, vector<8x128xf32>
      tpu.vector_store %arg11[%c0_230, %c0_231], %1097 {strides = array<i32>} : memref<8x128xf32, #tpu.memory_space<vmem>>, vector<8x128xf32>,
      %cst_232 = arith.constant 0.000000e+00 : f32
      %1099 = vector.broadcast %cst_232 : f32 to vector<8x128xf32>
      %c0_233 = arith.constant 0 : index
      %c0_234 = arith.constant 0 : index
      %1100 = vector.load %arg12[%c0_233, %c0_234] : memref<8x128xf32, #tpu.memory_space<vmem>>, vector<8x128xf32>
      tpu.vector_store %arg12[%c0_233, %c0_234], %1099 {strides = array<i32>} : memref<8x128xf32, #tpu.memory_space<vmem>>, vector<8x128xf32>,
    } else {
    }
    %c0 = arith.constant 0 : index
    %c0_1 = arith.constant 0 : index
    %3 = vector.load %arg3[%c0, %c0_1] : memref<128x512xbf16, #tpu.memory_space<vmem>>, vector<128x512xbf16>
    %c0_2 = arith.constant 0 : index
    %c0_3 = arith.constant 0 : index
    %4 = vector.load %arg4[%c0_2, %c0_3] : memref<256x512xbf16, #tpu.memory_space<vmem>>, vector<256x512xbf16>
    %c0_4 = arith.constant 0 : index
    %c0_5 = arith.constant 0 : index
    %5 = vector.load %arg6[%c0_4, %c0_5] : memref<1x512xf32, #tpu.memory_space<vmem>>, vector<1x512xf32>
    %c0_6 = arith.constant 0 : index
    %c0_7 = arith.constant 0 : index
    %6 = vector.load %arg1[%c0_6, %c0_7] : memref<128x128xbf16, #tpu.memory_space<vmem>>, vector<128x128xbf16>
    %c0_8 = arith.constant 0 : index
    %c0_9 = arith.constant 0 : index
    %7 = vector.load %arg2[%c0_8, %c0_9] : memref<128x512xbf16, #tpu.memory_space<vmem>>, vector<128x512xbf16>
    %cst = arith.constant dense<0.000000e+00> : vector<128x512xf32>
    %8 = tpu.matmul %6, %7, %cst {dimension_numbers = #tpu.dot_dimension_numbers<[1], [0], [0], [1], [0, 0, 1, 1], [], []>} : vector<128x128xbf16>, vector<128x512xbf16>, vector<128x512xf32> -> vector<128x512xf32>
    %c0_10 = arith.constant 0 : index
    %c0_11 = arith.constant 0 : index
    %9 = vector.load %arg5[%c0_10, %c0_11] : memref<1x512xf32, #tpu.memory_space<vmem>>, vector<1x512xf32>
    %10 = vector.broadcast %9 : vector<1x512xf32> to vector<128x512xf32>
    %11 = arith.addf %8, %10 : vector<128x512xf32>
    %c0_12 = arith.constant 0 : index
    %c0_13 = arith.constant 0 : index
    %12 = vector.load %arg8[%c0_12, %c0_13] : memref<128x512xf32, #tpu.memory_space<vmem>>, vector<128x512xf32>
    tpu.vector_store %arg8[%c0_12, %c0_13], %11 {strides = array<i32>} : memref<128x512xf32, #tpu.memory_space<vmem>>, vector<128x512xf32>,
    %c0_14 = arith.constant 0 : index
    %c0_15 = arith.constant 0 : index
    %13 = vector.load %arg9[%c0_14, %c0_15] : memref<8x128xf32, #tpu.memory_space<vmem>>, vector<8x128xf32>
    %c0_16 = arith.constant 0 : index
    %c0_17 = arith.constant 0 : index
    %14 = vector.load %arg10[%c0_16, %c0_17] : memref<8x128xf32, #tpu.memory_space<vmem>>, vector<8x128xf32>
    %c0_18 = arith.constant 0 : index
    %c0_19 = arith.constant 0 : index
    %15 = vector.load %arg11[%c0_18, %c0_19] : memref<8x128xf32, #tpu.memory_space<vmem>>, vector<8x128xf32>
    %c0_20 = arith.constant 0 : index
    %c0_21 = arith.constant 0 : index
    %16 = vector.load %arg12[%c0_20, %c0_21] : memref<8x128xf32, #tpu.memory_space<vmem>>, vector<8x128xf32>
    %c0_i32_22 = arith.constant 0 : i32
    %c8_i32 = arith.constant 8 : i32
    %17 = arith.muli %c0_i32_22, %c8_i32 : i32
    %18 = tpu.assume_multiple %17, 8 : i32
    %19 = arith.index_cast %18 : i32 to index
    %c0_23 = arith.constant 0 : index
    %20 = vector.load %arg8[%19, %c0_23] : memref<128x512xf32, #tpu.memory_space<vmem>>, vector<8x512xf32>
    %21 = arith.truncf %13 : vector<8x128xf32> to vector<8x128xbf16>
    %cst_24 = arith.constant dense<0.000000e+00> : vector<8x512xf32>
    %22 = tpu.matmul %21, %3, %cst_24 {dimension_numbers = #tpu.dot_dimension_numbers<[1], [0], [0], [1], [0, 0, 1, 1], [], []>} : vector<8x128xbf16>, vector<128x512xbf16>, vector<8x512xf32> -> vector<8x512xf32>
    %23 = arith.addf %20, %22 : vector<8x512xf32>
    %24 = vector.extract_strided_slice %23 {offsets = [0, 0], sizes = [8, 128], strides = [1, 1]} : vector<8x512xf32> to vector<8x128xf32>
    %25 = arith.negf %24 : vector<8x128xf32>
    %26 = math.exp %25 : vector<8x128xf32>
    %cst_25 = arith.constant 1.000000e+00 : f32
    %27 = vector.broadcast %cst_25 : f32 to vector<8x128xf32>
    %28 = arith.addf %27, %26 : vector<8x128xf32>
    %29 = arith.divf %27, %28 : vector<8x128xf32>
    %30 = vector.extract_strided_slice %23 {offsets = [0, 128], sizes = [8, 128], strides = [1, 1]} : vector<8x512xf32> to vector<8x128xf32>
    %31 = arith.negf %30 : vector<8x128xf32>
    %32 = math.exp %31 : vector<8x128xf32>
    %cst_26 = arith.constant 1.000000e+00 : f32
    %33 = vector.broadcast %cst_26 : f32 to vector<8x128xf32>
    %34 = arith.addf %33, %32 : vector<8x128xf32>
    %35 = arith.divf %33, %34 : vector<8x128xf32>
    %36 = vector.extract_strided_slice %23 {offsets = [0, 256], sizes = [8, 128], strides = [1, 1]} : vector<8x512xf32> to vector<8x128xf32>
    %37 = math.tanh %36 : vector<8x128xf32>
    %38 = vector.extract_strided_slice %23 {offsets = [0, 384], sizes = [8, 128], strides = [1, 1]} : vector<8x512xf32> to vector<8x128xf32>
    %39 = arith.negf %38 : vector<8x128xf32>
    %40 = math.exp %39 : vector<8x128xf32>
    %cst_27 = arith.constant 1.000000e+00 : f32
    %41 = vector.broadcast %cst_27 : f32 to vector<8x128xf32>
    %42 = arith.addf %41, %40 : vector<8x128xf32>
    %43 = arith.divf %41, %42 : vector<8x128xf32>
    %44 = arith.mulf %35, %14 : vector<8x128xf32>
    %45 = arith.mulf %29, %37 : vector<8x128xf32>
    %46 = arith.addf %44, %45 : vector<8x128xf32>
    %47 = math.tanh %46 : vector<8x128xf32>
    %48 = arith.mulf %43, %47 : vector<8x128xf32>
    %49 = tpu.concatenate %48, %15 in 1 : vector<8x128xf32>, vector<8x128xf32> -> vector<8x256xf32>
    %50 = arith.truncf %49 : vector<8x256xf32> to vector<8x256xbf16>
    %cst_28 = arith.constant dense<0.000000e+00> : vector<8x512xf32>
    %51 = tpu.matmul %50, %4, %cst_28 {dimension_numbers = #tpu.dot_dimension_numbers<[1], [0], [0], [1], [0, 0, 1, 1], [], []>} : vector<8x256xbf16>, vector<256x512xbf16>, vector<8x512xf32> -> vector<8x512xf32>
    %52 = vector.broadcast %5 : vector<1x512xf32> to vector<8x512xf32>
    %53 = arith.addf %51, %52 : vector<8x512xf32>
    %54 = vector.extract_strided_slice %53 {offsets = [0, 0], sizes = [8, 128], strides = [1, 1]} : vector<8x512xf32> to vector<8x128xf32>
    %55 = arith.negf %54 : vector<8x128xf32>
    %56 = math.exp %55 : vector<8x128xf32>
    %cst_29 = arith.constant 1.000000e+00 : f32
    %57 = vector.broadcast %cst_29 : f32 to vector<8x128xf32>
    %58 = arith.addf %57, %56 : vector<8x128xf32>
    %59 = arith.divf %57, %58 : vector<8x128xf32>
    %60 = vector.extract_strided_slice %53 {offsets = [0, 128], sizes = [8, 128], strides = [1, 1]} : vector<8x512xf32> to vector<8x128xf32>
    %61 = arith.negf %60 : vector<8x128xf32>
    %62 = math.exp %61 : vector<8x128xf32>
    %cst_30 = arith.constant 1.000000e+00 : f32
    %63 = vector.broadcast %cst_30 : f32 to vector<8x128xf32>
    %64 = arith.addf %63, %62 : vector<8x128xf32>
    %65 = arith.divf %63, %64 : vector<8x128xf32>
    %66 = vector.extract_strided_slice %53 {offsets = [0, 256], sizes = [8, 128], strides = [1, 1]} : vector<8x512xf32> to vector<8x128xf32>
    %67 = math.tanh %66 : vector<8x128xf32>
    %68 = vector.extract_strided_slice %53 {offsets = [0, 384], sizes = [8, 128], strides = [1, 1]} : vector<8x512xf32> to vector<8x128xf32>
    %69 = arith.negf %68 : vector<8x128xf32>
    %70 = math.exp %69 : vector<8x128xf32>
    %cst_31 = arith.constant 1.000000e+00 : f32
    %71 = vector.broadcast %cst_31 : f32 to vector<8x128xf32>
    %72 = arith.addf %71, %70 : vector<8x128xf32>
    %73 = arith.divf %71, %72 : vector<8x128xf32>
    %74 = arith.mulf %65, %16 : vector<8x128xf32>
    %75 = arith.mulf %59, %67 : vector<8x128xf32>
    %76 = arith.addf %74, %75 : vector<8x128xf32>
    %77 = math.tanh %76 : vector<8x128xf32>
    %78 = arith.mulf %73, %77 : vector<8x128xf32>
    %79 = arith.truncf %78 : vector<8x128xf32> to vector<8x128xbf16>
    %80 = arith.index_cast %c0_i32_22 : i32 to index
    %c0_32 = arith.constant 0 : index
    %c0_33 = arith.constant 0 : index
    %81 = vector.load %arg7[%80, %c0_32, %c0_33] : memref<16x8x128xbf16, #tpu.memory_space<vmem>>, vector<1x8x128xbf16>
    %82 = vector.shape_cast %81 : vector<1x8x128xbf16> to vector<8x128xbf16>
    %83 = vector.shape_cast %79 : vector<8x128xbf16> to vector<1x8x128xbf16>
    tpu.vector_store %arg7[%80, %c0_32, %c0_33], %83 {strides = array<i32>} : memref<16x8x128xbf16, #tpu.memory_space<vmem>>, vector<1x8x128xbf16>,
    %c1_i32 = arith.constant 1 : i32
    %c8_i32_34 = arith.constant 8 : i32
    %84 = arith.muli %c1_i32, %c8_i32_34 : i32
    %85 = tpu.assume_multiple %84, 8 : i32
    %86 = arith.index_cast %85 : i32 to index
    %c0_35 = arith.constant 0 : index
    %87 = vector.load %arg8[%86, %c0_35] : memref<128x512xf32, #tpu.memory_space<vmem>>, vector<8x512xf32>
    %88 = arith.truncf %48 : vector<8x128xf32> to vector<8x128xbf16>
    %cst_36 = arith.constant dense<0.000000e+00> : vector<8x512xf32>
    %89 = tpu.matmul %88, %3, %cst_36 {dimension_numbers = #tpu.dot_dimension_numbers<[1], [0], [0], [1], [0, 0, 1, 1], [], []>} : vector<8x128xbf16>, vector<128x512xbf16>, vector<8x512xf32> -> vector<8x512xf32>
    %90 = arith.addf %87, %89 : vector<8x512xf32>
    %91 = vector.extract_strided_slice %90 {offsets = [0, 0], sizes = [8, 128], strides = [1, 1]} : vector<8x512xf32> to vector<8x128xf32>
    %92 = arith.negf %91 : vector<8x128xf32>
    %93 = math.exp %92 : vector<8x128xf32>
    %cst_37 = arith.constant 1.000000e+00 : f32
    %94 = vector.broadcast %cst_37 : f32 to vector<8x128xf32>
    %95 = arith.addf %94, %93 : vector<8x128xf32>
    %96 = arith.divf %94, %95 : vector<8x128xf32>
    %97 = vector.extract_strided_slice %90 {offsets = [0, 128], sizes = [8, 128], strides = [1, 1]} : vector<8x512xf32> to vector<8x128xf32>
    %98 = arith.negf %97 : vector<8x128xf32>
    %99 = math.exp %98 : vector<8x128xf32>
    %cst_38 = arith.constant 1.000000e+00 : f32
    %100 = vector.broadcast %cst_38 : f32 to vector<8x128xf32>
    %101 = arith.addf %100, %99 : vector<8x128xf32>
    %102 = arith.divf %100, %101 : vector<8x128xf32>
    %103 = vector.extract_strided_slice %90 {offsets = [0, 256], sizes = [8, 128], strides = [1, 1]} : vector<8x512xf32> to vector<8x128xf32>
    %104 = math.tanh %103 : vector<8x128xf32>
    %105 = vector.extract_strided_slice %90 {offsets = [0, 384], sizes = [8, 128], strides = [1, 1]} : vector<8x512xf32> to vector<8x128xf32>
    %106 = arith.negf %105 : vector<8x128xf32>
    %107 = math.exp %106 : vector<8x128xf32>
    %cst_39 = arith.constant 1.000000e+00 : f32
    %108 = vector.broadcast %cst_39 : f32 to vector<8x128xf32>
    %109 = arith.addf %108, %107 : vector<8x128xf32>
    %110 = arith.divf %108, %109 : vector<8x128xf32>
    %111 = arith.mulf %102, %46 : vector<8x128xf32>
    %112 = arith.mulf %96, %104 : vector<8x128xf32>
    %113 = arith.addf %111, %112 : vector<8x128xf32>
    %114 = math.tanh %113 : vector<8x128xf32>
    %115 = arith.mulf %110, %114 : vector<8x128xf32>
    %116 = tpu.concatenate %115, %78 in 1 : vector<8x128xf32>, vector<8x128xf32> -> vector<8x256xf32>
    %117 = arith.truncf %116 : vector<8x256xf32> to vector<8x256xbf16>
    %cst_40 = arith.constant dense<0.000000e+00> : vector<8x512xf32>
    %118 = tpu.matmul %117, %4, %cst_40 {dimension_numbers = #tpu.dot_dimension_numbers<[1], [0], [0], [1], [0, 0, 1, 1], [], []>} : vector<8x256xbf16>, vector<256x512xbf16>, vector<8x512xf32> -> vector<8x512xf32>
    %119 = vector.broadcast %5 : vector<1x512xf32> to vector<8x512xf32>
    %120 = arith.addf %118, %119 : vector<8x512xf32>
    %121 = vector.extract_strided_slice %120 {offsets = [0, 0], sizes = [8, 128], strides = [1, 1]} : vector<8x512xf32> to vector<8x128xf32>
    %122 = arith.negf %121 : vector<8x128xf32>
    %123 = math.exp %122 : vector<8x128xf32>
    %cst_41 = arith.constant 1.000000e+00 : f32
    %124 = vector.broadcast %cst_41 : f32 to vector<8x128xf32>
    %125 = arith.addf %124, %123 : vector<8x128xf32>
    %126 = arith.divf %124, %125 : vector<8x128xf32>
    %127 = vector.extract_strided_slice %120 {offsets = [0, 128], sizes = [8, 128], strides = [1, 1]} : vector<8x512xf32> to vector<8x128xf32>
    %128 = arith.negf %127 : vector<8x128xf32>
    %129 = math.exp %128 : vector<8x128xf32>
    %cst_42 = arith.constant 1.000000e+00 : f32
    %130 = vector.broadcast %cst_42 : f32 to vector<8x128xf32>
    %131 = arith.addf %130, %129 : vector<8x128xf32>
    %132 = arith.divf %130, %131 : vector<8x128xf32>
    %133 = vector.extract_strided_slice %120 {offsets = [0, 256], sizes = [8, 128], strides = [1, 1]} : vector<8x512xf32> to vector<8x128xf32>
    %134 = math.tanh %133 : vector<8x128xf32>
    %135 = vector.extract_strided_slice %120 {offsets = [0, 384], sizes = [8, 128], strides = [1, 1]} : vector<8x512xf32> to vector<8x128xf32>
    %136 = arith.negf %135 : vector<8x128xf32>
    %137 = math.exp %136 : vector<8x128xf32>
    %cst_43 = arith.constant 1.000000e+00 : f32
    %138 = vector.broadcast %cst_43 : f32 to vector<8x128xf32>
    %139 = arith.addf %138, %137 : vector<8x128xf32>
    %140 = arith.divf %138, %139 : vector<8x128xf32>
    %141 = arith.mulf %132, %76 : vector<8x128xf32>
    %142 = arith.mulf %126, %134 : vector<8x128xf32>
    %143 = arith.addf %141, %142 : vector<8x128xf32>
    %144 = math.tanh %143 : vector<8x128xf32>
    %145 = arith.mulf %140, %144 : vector<8x128xf32>
    %146 = arith.truncf %145 : vector<8x128xf32> to vector<8x128xbf16>
    %147 = arith.index_cast %c1_i32 : i32 to index
    %c0_44 = arith.constant 0 : index
    %c0_45 = arith.constant 0 : index
    %148 = vector.load %arg7[%147, %c0_44, %c0_45] : memref<16x8x128xbf16, #tpu.memory_space<vmem>>, vector<1x8x128xbf16>
    %149 = vector.shape_cast %148 : vector<1x8x128xbf16> to vector<8x128xbf16>
    %150 = vector.shape_cast %146 : vector<8x128xbf16> to vector<1x8x128xbf16>
    tpu.vector_store %arg7[%147, %c0_44, %c0_45], %150 {strides = array<i32>} : memref<16x8x128xbf16, #tpu.memory_space<vmem>>, vector<1x8x128xbf16>,
    %c2_i32 = arith.constant 2 : i32
    %c8_i32_46 = arith.constant 8 : i32
    %151 = arith.muli %c2_i32, %c8_i32_46 : i32
    %152 = tpu.assume_multiple %151, 8 : i32
    %153 = arith.index_cast %152 : i32 to index
    %c0_47 = arith.constant 0 : index
    %154 = vector.load %arg8[%153, %c0_47] : memref<128x512xf32, #tpu.memory_space<vmem>>, vector<8x512xf32>
    %155 = arith.truncf %115 : vector<8x128xf32> to vector<8x128xbf16>
    %cst_48 = arith.constant dense<0.000000e+00> : vector<8x512xf32>
    %156 = tpu.matmul %155, %3, %cst_48 {dimension_numbers = #tpu.dot_dimension_numbers<[1], [0], [0], [1], [0, 0, 1, 1], [], []>} : vector<8x128xbf16>, vector<128x512xbf16>, vector<8x512xf32> -> vector<8x512xf32>
    %157 = arith.addf %154, %156 : vector<8x512xf32>
    %158 = vector.extract_strided_slice %157 {offsets = [0, 0], sizes = [8, 128], strides = [1, 1]} : vector<8x512xf32> to vector<8x128xf32>
    %159 = arith.negf %158 : vector<8x128xf32>
    %160 = math.exp %159 : vector<8x128xf32>
    %cst_49 = arith.constant 1.000000e+00 : f32
    %161 = vector.broadcast %cst_49 : f32 to vector<8x128xf32>
    %162 = arith.addf %161, %160 : vector<8x128xf32>
    %163 = arith.divf %161, %162 : vector<8x128xf32>
    %164 = vector.extract_strided_slice %157 {offsets = [0, 128], sizes = [8, 128], strides = [1, 1]} : vector<8x512xf32> to vector<8x128xf32>
    %165 = arith.negf %164 : vector<8x128xf32>
    %166 = math.exp %165 : vector<8x128xf32>
    %cst_50 = arith.constant 1.000000e+00 : f32
    %167 = vector.broadcast %cst_50 : f32 to vector<8x128xf32>
    %168 = arith.addf %167, %166 : vector<8x128xf32>
    %169 = arith.divf %167, %168 : vector<8x128xf32>
    %170 = vector.extract_strided_slice %157 {offsets = [0, 256], sizes = [8, 128], strides = [1, 1]} : vector<8x512xf32> to vector<8x128xf32>
    %171 = math.tanh %170 : vector<8x128xf32>
    %172 = vector.extract_strided_slice %157 {offsets = [0, 384], sizes = [8, 128], strides = [1, 1]} : vector<8x512xf32> to vector<8x128xf32>
    %173 = arith.negf %172 : vector<8x128xf32>
    %174 = math.exp %173 : vector<8x128xf32>
    %cst_51 = arith.constant 1.000000e+00 : f32
    %175 = vector.broadcast %cst_51 : f32 to vector<8x128xf32>
    %176 = arith.addf %175, %174 : vector<8x128xf32>
    %177 = arith.divf %175, %176 : vector<8x128xf32>
    %178 = arith.mulf %169, %113 : vector<8x128xf32>
    %179 = arith.mulf %163, %171 : vector<8x128xf32>
    %180 = arith.addf %178, %179 : vector<8x128xf32>
    %181 = math.tanh %180 : vector<8x128xf32>
    %182 = arith.mulf %177, %181 : vector<8x128xf32>
    %183 = tpu.concatenate %182, %145 in 1 : vector<8x128xf32>, vector<8x128xf32> -> vector<8x256xf32>
    %184 = arith.truncf %183 : vector<8x256xf32> to vector<8x256xbf16>
    %cst_52 = arith.constant dense<0.000000e+00> : vector<8x512xf32>
    %185 = tpu.matmul %184, %4, %cst_52 {dimension_numbers = #tpu.dot_dimension_numbers<[1], [0], [0], [1], [0, 0, 1, 1], [], []>} : vector<8x256xbf16>, vector<256x512xbf16>, vector<8x512xf32> -> vector<8x512xf32>
    %186 = vector.broadcast %5 : vector<1x512xf32> to vector<8x512xf32>
    %187 = arith.addf %185, %186 : vector<8x512xf32>
    %188 = vector.extract_strided_slice %187 {offsets = [0, 0], sizes = [8, 128], strides = [1, 1]} : vector<8x512xf32> to vector<8x128xf32>
    %189 = arith.negf %188 : vector<8x128xf32>
    %190 = math.exp %189 : vector<8x128xf32>
    %cst_53 = arith.constant 1.000000e+00 : f32
    %191 = vector.broadcast %cst_53 : f32 to vector<8x128xf32>
    %192 = arith.addf %191, %190 : vector<8x128xf32>
    %193 = arith.divf %191, %192 : vector<8x128xf32>
    %194 = vector.extract_strided_slice %187 {offsets = [0, 128], sizes = [8, 128], strides = [1, 1]} : vector<8x512xf32> to vector<8x128xf32>
    %195 = arith.negf %194 : vector<8x128xf32>
    %196 = math.exp %195 : vector<8x128xf32>
    %cst_54 = arith.constant 1.000000e+00 : f32
    %197 = vector.broadcast %cst_54 : f32 to vector<8x128xf32>
    %198 = arith.addf %197, %196 : vector<8x128xf32>
    %199 = arith.divf %197, %198 : vector<8x128xf32>
    %200 = vector.extract_strided_slice %187 {offsets = [0, 256], sizes = [8, 128], strides = [1, 1]} : vector<8x512xf32> to vector<8x128xf32>
    %201 = math.tanh %200 : vector<8x128xf32>
    %202 = vector.extract_strided_slice %187 {offsets = [0, 384], sizes = [8, 128], strides = [1, 1]} : vector<8x512xf32> to vector<8x128xf32>
    %203 = arith.negf %202 : vector<8x128xf32>
    %204 = math.exp %203 : vector<8x128xf32>
    %cst_55 = arith.constant 1.000000e+00 : f32
    %205 = vector.broadcast %cst_55 : f32 to vector<8x128xf32>
    %206 = arith.addf %205, %204 : vector<8x128xf32>
    %207 = arith.divf %205, %206 : vector<8x128xf32>
    %208 = arith.mulf %199, %143 : vector<8x128xf32>
    %209 = arith.mulf %193, %201 : vector<8x128xf32>
    %210 = arith.addf %208, %209 : vector<8x128xf32>
    %211 = math.tanh %210 : vector<8x128xf32>
    %212 = arith.mulf %207, %211 : vector<8x128xf32>
    %213 = arith.truncf %212 : vector<8x128xf32> to vector<8x128xbf16>
    %214 = arith.index_cast %c2_i32 : i32 to index
    %c0_56 = arith.constant 0 : index
    %c0_57 = arith.constant 0 : index
    %215 = vector.load %arg7[%214, %c0_56, %c0_57] : memref<16x8x128xbf16, #tpu.memory_space<vmem>>, vector<1x8x128xbf16>
    %216 = vector.shape_cast %215 : vector<1x8x128xbf16> to vector<8x128xbf16>
    %217 = vector.shape_cast %213 : vector<8x128xbf16> to vector<1x8x128xbf16>
    tpu.vector_store %arg7[%214, %c0_56, %c0_57], %217 {strides = array<i32>} : memref<16x8x128xbf16, #tpu.memory_space<vmem>>, vector<1x8x128xbf16>,
    %c3_i32 = arith.constant 3 : i32
    %c8_i32_58 = arith.constant 8 : i32
    %218 = arith.muli %c3_i32, %c8_i32_58 : i32
    %219 = tpu.assume_multiple %218, 8 : i32
    %220 = arith.index_cast %219 : i32 to index
    %c0_59 = arith.constant 0 : index
    %221 = vector.load %arg8[%220, %c0_59] : memref<128x512xf32, #tpu.memory_space<vmem>>, vector<8x512xf32>
    %222 = arith.truncf %182 : vector<8x128xf32> to vector<8x128xbf16>
    %cst_60 = arith.constant dense<0.000000e+00> : vector<8x512xf32>
    %223 = tpu.matmul %222, %3, %cst_60 {dimension_numbers = #tpu.dot_dimension_numbers<[1], [0], [0], [1], [0, 0, 1, 1], [], []>} : vector<8x128xbf16>, vector<128x512xbf16>, vector<8x512xf32> -> vector<8x512xf32>
    %224 = arith.addf %221, %223 : vector<8x512xf32>
    %225 = vector.extract_strided_slice %224 {offsets = [0, 0], sizes = [8, 128], strides = [1, 1]} : vector<8x512xf32> to vector<8x128xf32>
    %226 = arith.negf %225 : vector<8x128xf32>
    %227 = math.exp %226 : vector<8x128xf32>
    %cst_61 = arith.constant 1.000000e+00 : f32
    %228 = vector.broadcast %cst_61 : f32 to vector<8x128xf32>
    %229 = arith.addf %228, %227 : vector<8x128xf32>
    %230 = arith.divf %228, %229 : vector<8x128xf32>
    %231 = vector.extract_strided_slice %224 {offsets = [0, 128], sizes = [8, 128], strides = [1, 1]} : vector<8x512xf32> to vector<8x128xf32>
    %232 = arith.negf %231 : vector<8x128xf32>
    %233 = math.exp %232 : vector<8x128xf32>
    %cst_62 = arith.constant 1.000000e+00 : f32
    %234 = vector.broadcast %cst_62 : f32 to vector<8x128xf32>
    %235 = arith.addf %234, %233 : vector<8x128xf32>
    %236 = arith.divf %234, %235 : vector<8x128xf32>
    %237 = vector.extract_strided_slice %224 {offsets = [0, 256], sizes = [8, 128], strides = [1, 1]} : vector<8x512xf32> to vector<8x128xf32>
    %238 = math.tanh %237 : vector<8x128xf32>
    %239 = vector.extract_strided_slice %224 {offsets = [0, 384], sizes = [8, 128], strides = [1, 1]} : vector<8x512xf32> to vector<8x128xf32>
    %240 = arith.negf %239 : vector<8x128xf32>
    %241 = math.exp %240 : vector<8x128xf32>
    %cst_63 = arith.constant 1.000000e+00 : f32
    %242 = vector.broadcast %cst_63 : f32 to vector<8x128xf32>
    %243 = arith.addf %242, %241 : vector<8x128xf32>
    %244 = arith.divf %242, %243 : vector<8x128xf32>
    %245 = arith.mulf %236, %180 : vector<8x128xf32>
    %246 = arith.mulf %230, %238 : vector<8x128xf32>
    %247 = arith.addf %245, %246 : vector<8x128xf32>
    %248 = math.tanh %247 : vector<8x128xf32>
    %249 = arith.mulf %244, %248 : vector<8x128xf32>
    %250 = tpu.concatenate %249, %212 in 1 : vector<8x128xf32>, vector<8x128xf32> -> vector<8x256xf32>
    %251 = arith.truncf %250 : vector<8x256xf32> to vector<8x256xbf16>
    %cst_64 = arith.constant dense<0.000000e+00> : vector<8x512xf32>
    %252 = tpu.matmul %251, %4, %cst_64 {dimension_numbers = #tpu.dot_dimension_numbers<[1], [0], [0], [1], [0, 0, 1, 1], [], []>} : vector<8x256xbf16>, vector<256x512xbf16>, vector<8x512xf32> -> vector<8x512xf32>
    %253 = vector.broadcast %5 : vector<1x512xf32> to vector<8x512xf32>
    %254 = arith.addf %252, %253 : vector<8x512xf32>
    %255 = vector.extract_strided_slice %254 {offsets = [0, 0], sizes = [8, 128], strides = [1, 1]} : vector<8x512xf32> to vector<8x128xf32>
    %256 = arith.negf %255 : vector<8x128xf32>
    %257 = math.exp %256 : vector<8x128xf32>
    %cst_65 = arith.constant 1.000000e+00 : f32
    %258 = vector.broadcast %cst_65 : f32 to vector<8x128xf32>
    %259 = arith.addf %258, %257 : vector<8x128xf32>
    %260 = arith.divf %258, %259 : vector<8x128xf32>
    %261 = vector.extract_strided_slice %254 {offsets = [0, 128], sizes = [8, 128], strides = [1, 1]} : vector<8x512xf32> to vector<8x128xf32>
    %262 = arith.negf %261 : vector<8x128xf32>
    %263 = math.exp %262 : vector<8x128xf32>
    %cst_66 = arith.constant 1.000000e+00 : f32
    %264 = vector.broadcast %cst_66 : f32 to vector<8x128xf32>
    %265 = arith.addf %264, %263 : vector<8x128xf32>
    %266 = arith.divf %264, %265 : vector<8x128xf32>
    %267 = vector.extract_strided_slice %254 {offsets = [0, 256], sizes = [8, 128], strides = [1, 1]} : vector<8x512xf32> to vector<8x128xf32>
    %268 = math.tanh %267 : vector<8x128xf32>
    %269 = vector.extract_strided_slice %254 {offsets = [0, 384], sizes = [8, 128], strides = [1, 1]} : vector<8x512xf32> to vector<8x128xf32>
    %270 = arith.negf %269 : vector<8x128xf32>
    %271 = math.exp %270 : vector<8x128xf32>
    %cst_67 = arith.constant 1.000000e+00 : f32
    %272 = vector.broadcast %cst_67 : f32 to vector<8x128xf32>
    %273 = arith.addf %272, %271 : vector<8x128xf32>
    %274 = arith.divf %272, %273 : vector<8x128xf32>
    %275 = arith.mulf %266, %210 : vector<8x128xf32>
    %276 = arith.mulf %260, %268 : vector<8x128xf32>
    %277 = arith.addf %275, %276 : vector<8x128xf32>
    %278 = math.tanh %277 : vector<8x128xf32>
    %279 = arith.mulf %274, %278 : vector<8x128xf32>
    %280 = arith.truncf %279 : vector<8x128xf32> to vector<8x128xbf16>
    %281 = arith.index_cast %c3_i32 : i32 to index
    %c0_68 = arith.constant 0 : index
    %c0_69 = arith.constant 0 : index
    %282 = vector.load %arg7[%281, %c0_68, %c0_69] : memref<16x8x128xbf16, #tpu.memory_space<vmem>>, vector<1x8x128xbf16>
    %283 = vector.shape_cast %282 : vector<1x8x128xbf16> to vector<8x128xbf16>
    %284 = vector.shape_cast %280 : vector<8x128xbf16> to vector<1x8x128xbf16>
    tpu.vector_store %arg7[%281, %c0_68, %c0_69], %284 {strides = array<i32>} : memref<16x8x128xbf16, #tpu.memory_space<vmem>>, vector<1x8x128xbf16>,
    %c4_i32 = arith.constant 4 : i32
    %c8_i32_70 = arith.constant 8 : i32
    %285 = arith.muli %c4_i32, %c8_i32_70 : i32
    %286 = tpu.assume_multiple %285, 8 : i32
    %287 = arith.index_cast %286 : i32 to index
    %c0_71 = arith.constant 0 : index
    %288 = vector.load %arg8[%287, %c0_71] : memref<128x512xf32, #tpu.memory_space<vmem>>, vector<8x512xf32>
    %289 = arith.truncf %249 : vector<8x128xf32> to vector<8x128xbf16>
    %cst_72 = arith.constant dense<0.000000e+00> : vector<8x512xf32>
    %290 = tpu.matmul %289, %3, %cst_72 {dimension_numbers = #tpu.dot_dimension_numbers<[1], [0], [0], [1], [0, 0, 1, 1], [], []>} : vector<8x128xbf16>, vector<128x512xbf16>, vector<8x512xf32> -> vector<8x512xf32>
    %291 = arith.addf %288, %290 : vector<8x512xf32>
    %292 = vector.extract_strided_slice %291 {offsets = [0, 0], sizes = [8, 128], strides = [1, 1]} : vector<8x512xf32> to vector<8x128xf32>
    %293 = arith.negf %292 : vector<8x128xf32>
    %294 = math.exp %293 : vector<8x128xf32>
    %cst_73 = arith.constant 1.000000e+00 : f32
    %295 = vector.broadcast %cst_73 : f32 to vector<8x128xf32>
    %296 = arith.addf %295, %294 : vector<8x128xf32>
    %297 = arith.divf %295, %296 : vector<8x128xf32>
    %298 = vector.extract_strided_slice %291 {offsets = [0, 128], sizes = [8, 128], strides = [1, 1]} : vector<8x512xf32> to vector<8x128xf32>
    %299 = arith.negf %298 : vector<8x128xf32>
    %300 = math.exp %299 : vector<8x128xf32>
    %cst_74 = arith.constant 1.000000e+00 : f32
    %301 = vector.broadcast %cst_74 : f32 to vector<8x128xf32>
    %302 = arith.addf %301, %300 : vector<8x128xf32>
    %303 = arith.divf %301, %302 : vector<8x128xf32>
    %304 = vector.extract_strided_slice %291 {offsets = [0, 256], sizes = [8, 128], strides = [1, 1]} : vector<8x512xf32> to vector<8x128xf32>
    %305 = math.tanh %304 : vector<8x128xf32>
    %306 = vector.extract_strided_slice %291 {offsets = [0, 384], sizes = [8, 128], strides = [1, 1]} : vector<8x512xf32> to vector<8x128xf32>
    %307 = arith.negf %306 : vector<8x128xf32>
    %308 = math.exp %307 : vector<8x128xf32>
    %cst_75 = arith.constant 1.000000e+00 : f32
    %309 = vector.broadcast %cst_75 : f32 to vector<8x128xf32>
    %310 = arith.addf %309, %308 : vector<8x128xf32>
    %311 = arith.divf %309, %310 : vector<8x128xf32>
    %312 = arith.mulf %303, %247 : vector<8x128xf32>
    %313 = arith.mulf %297, %305 : vector<8x128xf32>
    %314 = arith.addf %312, %313 : vector<8x128xf32>
    %315 = math.tanh %314 : vector<8x128xf32>
    %316 = arith.mulf %311, %315 : vector<8x128xf32>
    %317 = tpu.concatenate %316, %279 in 1 : vector<8x128xf32>, vector<8x128xf32> -> vector<8x256xf32>
    %318 = arith.truncf %317 : vector<8x256xf32> to vector<8x256xbf16>
    %cst_76 = arith.constant dense<0.000000e+00> : vector<8x512xf32>
    %319 = tpu.matmul %318, %4, %cst_76 {dimension_numbers = #tpu.dot_dimension_numbers<[1], [0], [0], [1], [0, 0, 1, 1], [], []>} : vector<8x256xbf16>, vector<256x512xbf16>, vector<8x512xf32> -> vector<8x512xf32>
    %320 = vector.broadcast %5 : vector<1x512xf32> to vector<8x512xf32>
    %321 = arith.addf %319, %320 : vector<8x512xf32>
    %322 = vector.extract_strided_slice %321 {offsets = [0, 0], sizes = [8, 128], strides = [1, 1]} : vector<8x512xf32> to vector<8x128xf32>
    %323 = arith.negf %322 : vector<8x128xf32>
    %324 = math.exp %323 : vector<8x128xf32>
    %cst_77 = arith.constant 1.000000e+00 : f32
    %325 = vector.broadcast %cst_77 : f32 to vector<8x128xf32>
    %326 = arith.addf %325, %324 : vector<8x128xf32>
    %327 = arith.divf %325, %326 : vector<8x128xf32>
    %328 = vector.extract_strided_slice %321 {offsets = [0, 128], sizes = [8, 128], strides = [1, 1]} : vector<8x512xf32> to vector<8x128xf32>
    %329 = arith.negf %328 : vector<8x128xf32>
    %330 = math.exp %329 : vector<8x128xf32>
    %cst_78 = arith.constant 1.000000e+00 : f32
    %331 = vector.broadcast %cst_78 : f32 to vector<8x128xf32>
    %332 = arith.addf %331, %330 : vector<8x128xf32>
    %333 = arith.divf %331, %332 : vector<8x128xf32>
    %334 = vector.extract_strided_slice %321 {offsets = [0, 256], sizes = [8, 128], strides = [1, 1]} : vector<8x512xf32> to vector<8x128xf32>
    %335 = math.tanh %334 : vector<8x128xf32>
    %336 = vector.extract_strided_slice %321 {offsets = [0, 384], sizes = [8, 128], strides = [1, 1]} : vector<8x512xf32> to vector<8x128xf32>
    %337 = arith.negf %336 : vector<8x128xf32>
    %338 = math.exp %337 : vector<8x128xf32>
    %cst_79 = arith.constant 1.000000e+00 : f32
    %339 = vector.broadcast %cst_79 : f32 to vector<8x128xf32>
    %340 = arith.addf %339, %338 : vector<8x128xf32>
    %341 = arith.divf %339, %340 : vector<8x128xf32>
    %342 = arith.mulf %333, %277 : vector<8x128xf32>
    %343 = arith.mulf %327, %335 : vector<8x128xf32>
    %344 = arith.addf %342, %343 : vector<8x128xf32>
    %345 = math.tanh %344 : vector<8x128xf32>
    %346 = arith.mulf %341, %345 : vector<8x128xf32>
    %347 = arith.truncf %346 : vector<8x128xf32> to vector<8x128xbf16>
    %348 = arith.index_cast %c4_i32 : i32 to index
    %c0_80 = arith.constant 0 : index
    %c0_81 = arith.constant 0 : index
    %349 = vector.load %arg7[%348, %c0_80, %c0_81] : memref<16x8x128xbf16, #tpu.memory_space<vmem>>, vector<1x8x128xbf16>
    %350 = vector.shape_cast %349 : vector<1x8x128xbf16> to vector<8x128xbf16>
    %351 = vector.shape_cast %347 : vector<8x128xbf16> to vector<1x8x128xbf16>
    tpu.vector_store %arg7[%348, %c0_80, %c0_81], %351 {strides = array<i32>} : memref<16x8x128xbf16, #tpu.memory_space<vmem>>, vector<1x8x128xbf16>,
    %c5_i32 = arith.constant 5 : i32
    %c8_i32_82 = arith.constant 8 : i32
    %352 = arith.muli %c5_i32, %c8_i32_82 : i32
    %353 = tpu.assume_multiple %352, 8 : i32
    %354 = arith.index_cast %353 : i32 to index
    %c0_83 = arith.constant 0 : index
    %355 = vector.load %arg8[%354, %c0_83] : memref<128x512xf32, #tpu.memory_space<vmem>>, vector<8x512xf32>
    %356 = arith.truncf %316 : vector<8x128xf32> to vector<8x128xbf16>
    %cst_84 = arith.constant dense<0.000000e+00> : vector<8x512xf32>
    %357 = tpu.matmul %356, %3, %cst_84 {dimension_numbers = #tpu.dot_dimension_numbers<[1], [0], [0], [1], [0, 0, 1, 1], [], []>} : vector<8x128xbf16>, vector<128x512xbf16>, vector<8x512xf32> -> vector<8x512xf32>
    %358 = arith.addf %355, %357 : vector<8x512xf32>
    %359 = vector.extract_strided_slice %358 {offsets = [0, 0], sizes = [8, 128], strides = [1, 1]} : vector<8x512xf32> to vector<8x128xf32>
    %360 = arith.negf %359 : vector<8x128xf32>
    %361 = math.exp %360 : vector<8x128xf32>
    %cst_85 = arith.constant 1.000000e+00 : f32
    %362 = vector.broadcast %cst_85 : f32 to vector<8x128xf32>
    %363 = arith.addf %362, %361 : vector<8x128xf32>
    %364 = arith.divf %362, %363 : vector<8x128xf32>
    %365 = vector.extract_strided_slice %358 {offsets = [0, 128], sizes = [8, 128], strides = [1, 1]} : vector<8x512xf32> to vector<8x128xf32>
    %366 = arith.negf %365 : vector<8x128xf32>
    %367 = math.exp %366 : vector<8x128xf32>
    %cst_86 = arith.constant 1.000000e+00 : f32
    %368 = vector.broadcast %cst_86 : f32 to vector<8x128xf32>
    %369 = arith.addf %368, %367 : vector<8x128xf32>
    %370 = arith.divf %368, %369 : vector<8x128xf32>
    %371 = vector.extract_strided_slice %358 {offsets = [0, 256], sizes = [8, 128], strides = [1, 1]} : vector<8x512xf32> to vector<8x128xf32>
    %372 = math.tanh %371 : vector<8x128xf32>
    %373 = vector.extract_strided_slice %358 {offsets = [0, 384], sizes = [8, 128], strides = [1, 1]} : vector<8x512xf32> to vector<8x128xf32>
    %374 = arith.negf %373 : vector<8x128xf32>
    %375 = math.exp %374 : vector<8x128xf32>
    %cst_87 = arith.constant 1.000000e+00 : f32
    %376 = vector.broadcast %cst_87 : f32 to vector<8x128xf32>
    %377 = arith.addf %376, %375 : vector<8x128xf32>
    %378 = arith.divf %376, %377 : vector<8x128xf32>
    %379 = arith.mulf %370, %314 : vector<8x128xf32>
    %380 = arith.mulf %364, %372 : vector<8x128xf32>
    %381 = arith.addf %379, %380 : vector<8x128xf32>
    %382 = math.tanh %381 : vector<8x128xf32>
    %383 = arith.mulf %378, %382 : vector<8x128xf32>
    %384 = tpu.concatenate %383, %346 in 1 : vector<8x128xf32>, vector<8x128xf32> -> vector<8x256xf32>
    %385 = arith.truncf %384 : vector<8x256xf32> to vector<8x256xbf16>
    %cst_88 = arith.constant dense<0.000000e+00> : vector<8x512xf32>
    %386 = tpu.matmul %385, %4, %cst_88 {dimension_numbers = #tpu.dot_dimension_numbers<[1], [0], [0], [1], [0, 0, 1, 1], [], []>} : vector<8x256xbf16>, vector<256x512xbf16>, vector<8x512xf32> -> vector<8x512xf32>
    %387 = vector.broadcast %5 : vector<1x512xf32> to vector<8x512xf32>
    %388 = arith.addf %386, %387 : vector<8x512xf32>
    %389 = vector.extract_strided_slice %388 {offsets = [0, 0], sizes = [8, 128], strides = [1, 1]} : vector<8x512xf32> to vector<8x128xf32>
    %390 = arith.negf %389 : vector<8x128xf32>
    %391 = math.exp %390 : vector<8x128xf32>
    %cst_89 = arith.constant 1.000000e+00 : f32
    %392 = vector.broadcast %cst_89 : f32 to vector<8x128xf32>
    %393 = arith.addf %392, %391 : vector<8x128xf32>
    %394 = arith.divf %392, %393 : vector<8x128xf32>
    %395 = vector.extract_strided_slice %388 {offsets = [0, 128], sizes = [8, 128], strides = [1, 1]} : vector<8x512xf32> to vector<8x128xf32>
    %396 = arith.negf %395 : vector<8x128xf32>
    %397 = math.exp %396 : vector<8x128xf32>
    %cst_90 = arith.constant 1.000000e+00 : f32
    %398 = vector.broadcast %cst_90 : f32 to vector<8x128xf32>
    %399 = arith.addf %398, %397 : vector<8x128xf32>
    %400 = arith.divf %398, %399 : vector<8x128xf32>
    %401 = vector.extract_strided_slice %388 {offsets = [0, 256], sizes = [8, 128], strides = [1, 1]} : vector<8x512xf32> to vector<8x128xf32>
    %402 = math.tanh %401 : vector<8x128xf32>
    %403 = vector.extract_strided_slice %388 {offsets = [0, 384], sizes = [8, 128], strides = [1, 1]} : vector<8x512xf32> to vector<8x128xf32>
    %404 = arith.negf %403 : vector<8x128xf32>
    %405 = math.exp %404 : vector<8x128xf32>
    %cst_91 = arith.constant 1.000000e+00 : f32
    %406 = vector.broadcast %cst_91 : f32 to vector<8x128xf32>
    %407 = arith.addf %406, %405 : vector<8x128xf32>
    %408 = arith.divf %406, %407 : vector<8x128xf32>
    %409 = arith.mulf %400, %344 : vector<8x128xf32>
    %410 = arith.mulf %394, %402 : vector<8x128xf32>
    %411 = arith.addf %409, %410 : vector<8x128xf32>
    %412 = math.tanh %411 : vector<8x128xf32>
    %413 = arith.mulf %408, %412 : vector<8x128xf32>
    %414 = arith.truncf %413 : vector<8x128xf32> to vector<8x128xbf16>
    %415 = arith.index_cast %c5_i32 : i32 to index
    %c0_92 = arith.constant 0 : index
    %c0_93 = arith.constant 0 : index
    %416 = vector.load %arg7[%415, %c0_92, %c0_93] : memref<16x8x128xbf16, #tpu.memory_space<vmem>>, vector<1x8x128xbf16>
    %417 = vector.shape_cast %416 : vector<1x8x128xbf16> to vector<8x128xbf16>
    %418 = vector.shape_cast %414 : vector<8x128xbf16> to vector<1x8x128xbf16>
    tpu.vector_store %arg7[%415, %c0_92, %c0_93], %418 {strides = array<i32>} : memref<16x8x128xbf16, #tpu.memory_space<vmem>>, vector<1x8x128xbf16>,
    %c6_i32 = arith.constant 6 : i32
    %c8_i32_94 = arith.constant 8 : i32
    %419 = arith.muli %c6_i32, %c8_i32_94 : i32
    %420 = tpu.assume_multiple %419, 8 : i32
    %421 = arith.index_cast %420 : i32 to index
    %c0_95 = arith.constant 0 : index
    %422 = vector.load %arg8[%421, %c0_95] : memref<128x512xf32, #tpu.memory_space<vmem>>, vector<8x512xf32>
    %423 = arith.truncf %383 : vector<8x128xf32> to vector<8x128xbf16>
    %cst_96 = arith.constant dense<0.000000e+00> : vector<8x512xf32>
    %424 = tpu.matmul %423, %3, %cst_96 {dimension_numbers = #tpu.dot_dimension_numbers<[1], [0], [0], [1], [0, 0, 1, 1], [], []>} : vector<8x128xbf16>, vector<128x512xbf16>, vector<8x512xf32> -> vector<8x512xf32>
    %425 = arith.addf %422, %424 : vector<8x512xf32>
    %426 = vector.extract_strided_slice %425 {offsets = [0, 0], sizes = [8, 128], strides = [1, 1]} : vector<8x512xf32> to vector<8x128xf32>
    %427 = arith.negf %426 : vector<8x128xf32>
    %428 = math.exp %427 : vector<8x128xf32>
    %cst_97 = arith.constant 1.000000e+00 : f32
    %429 = vector.broadcast %cst_97 : f32 to vector<8x128xf32>
    %430 = arith.addf %429, %428 : vector<8x128xf32>
    %431 = arith.divf %429, %430 : vector<8x128xf32>
    %432 = vector.extract_strided_slice %425 {offsets = [0, 128], sizes = [8, 128], strides = [1, 1]} : vector<8x512xf32> to vector<8x128xf32>
    %433 = arith.negf %432 : vector<8x128xf32>
    %434 = math.exp %433 : vector<8x128xf32>
    %cst_98 = arith.constant 1.000000e+00 : f32
    %435 = vector.broadcast %cst_98 : f32 to vector<8x128xf32>
    %436 = arith.addf %435, %434 : vector<8x128xf32>
    %437 = arith.divf %435, %436 : vector<8x128xf32>
    %438 = vector.extract_strided_slice %425 {offsets = [0, 256], sizes = [8, 128], strides = [1, 1]} : vector<8x512xf32> to vector<8x128xf32>
    %439 = math.tanh %438 : vector<8x128xf32>
    %440 = vector.extract_strided_slice %425 {offsets = [0, 384], sizes = [8, 128], strides = [1, 1]} : vector<8x512xf32> to vector<8x128xf32>
    %441 = arith.negf %440 : vector<8x128xf32>
    %442 = math.exp %441 : vector<8x128xf32>
    %cst_99 = arith.constant 1.000000e+00 : f32
    %443 = vector.broadcast %cst_99 : f32 to vector<8x128xf32>
    %444 = arith.addf %443, %442 : vector<8x128xf32>
    %445 = arith.divf %443, %444 : vector<8x128xf32>
    %446 = arith.mulf %437, %381 : vector<8x128xf32>
    %447 = arith.mulf %431, %439 : vector<8x128xf32>
    %448 = arith.addf %446, %447 : vector<8x128xf32>
    %449 = math.tanh %448 : vector<8x128xf32>
    %450 = arith.mulf %445, %449 : vector<8x128xf32>
    %451 = tpu.concatenate %450, %413 in 1 : vector<8x128xf32>, vector<8x128xf32> -> vector<8x256xf32>
    %452 = arith.truncf %451 : vector<8x256xf32> to vector<8x256xbf16>
    %cst_100 = arith.constant dense<0.000000e+00> : vector<8x512xf32>
    %453 = tpu.matmul %452, %4, %cst_100 {dimension_numbers = #tpu.dot_dimension_numbers<[1], [0], [0], [1], [0, 0, 1, 1], [], []>} : vector<8x256xbf16>, vector<256x512xbf16>, vector<8x512xf32> -> vector<8x512xf32>
    %454 = vector.broadcast %5 : vector<1x512xf32> to vector<8x512xf32>
    %455 = arith.addf %453, %454 : vector<8x512xf32>
    %456 = vector.extract_strided_slice %455 {offsets = [0, 0], sizes = [8, 128], strides = [1, 1]} : vector<8x512xf32> to vector<8x128xf32>
    %457 = arith.negf %456 : vector<8x128xf32>
    %458 = math.exp %457 : vector<8x128xf32>
    %cst_101 = arith.constant 1.000000e+00 : f32
    %459 = vector.broadcast %cst_101 : f32 to vector<8x128xf32>
    %460 = arith.addf %459, %458 : vector<8x128xf32>
    %461 = arith.divf %459, %460 : vector<8x128xf32>
    %462 = vector.extract_strided_slice %455 {offsets = [0, 128], sizes = [8, 128], strides = [1, 1]} : vector<8x512xf32> to vector<8x128xf32>
    %463 = arith.negf %462 : vector<8x128xf32>
    %464 = math.exp %463 : vector<8x128xf32>
    %cst_102 = arith.constant 1.000000e+00 : f32
    %465 = vector.broadcast %cst_102 : f32 to vector<8x128xf32>
    %466 = arith.addf %465, %464 : vector<8x128xf32>
    %467 = arith.divf %465, %466 : vector<8x128xf32>
    %468 = vector.extract_strided_slice %455 {offsets = [0, 256], sizes = [8, 128], strides = [1, 1]} : vector<8x512xf32> to vector<8x128xf32>
    %469 = math.tanh %468 : vector<8x128xf32>
    %470 = vector.extract_strided_slice %455 {offsets = [0, 384], sizes = [8, 128], strides = [1, 1]} : vector<8x512xf32> to vector<8x128xf32>
    %471 = arith.negf %470 : vector<8x128xf32>
    %472 = math.exp %471 : vector<8x128xf32>
    %cst_103 = arith.constant 1.000000e+00 : f32
    %473 = vector.broadcast %cst_103 : f32 to vector<8x128xf32>
    %474 = arith.addf %473, %472 : vector<8x128xf32>
    %475 = arith.divf %473, %474 : vector<8x128xf32>
    %476 = arith.mulf %467, %411 : vector<8x128xf32>
    %477 = arith.mulf %461, %469 : vector<8x128xf32>
    %478 = arith.addf %476, %477 : vector<8x128xf32>
    %479 = math.tanh %478 : vector<8x128xf32>
    %480 = arith.mulf %475, %479 : vector<8x128xf32>
    %481 = arith.truncf %480 : vector<8x128xf32> to vector<8x128xbf16>
    %482 = arith.index_cast %c6_i32 : i32 to index
    %c0_104 = arith.constant 0 : index
    %c0_105 = arith.constant 0 : index
    %483 = vector.load %arg7[%482, %c0_104, %c0_105] : memref<16x8x128xbf16, #tpu.memory_space<vmem>>, vector<1x8x128xbf16>
    %484 = vector.shape_cast %483 : vector<1x8x128xbf16> to vector<8x128xbf16>
    %485 = vector.shape_cast %481 : vector<8x128xbf16> to vector<1x8x128xbf16>
    tpu.vector_store %arg7[%482, %c0_104, %c0_105], %485 {strides = array<i32>} : memref<16x8x128xbf16, #tpu.memory_space<vmem>>, vector<1x8x128xbf16>,
    %c7_i32 = arith.constant 7 : i32
    %c8_i32_106 = arith.constant 8 : i32
    %486 = arith.muli %c7_i32, %c8_i32_106 : i32
    %487 = tpu.assume_multiple %486, 8 : i32
    %488 = arith.index_cast %487 : i32 to index
    %c0_107 = arith.constant 0 : index
    %489 = vector.load %arg8[%488, %c0_107] : memref<128x512xf32, #tpu.memory_space<vmem>>, vector<8x512xf32>
    %490 = arith.truncf %450 : vector<8x128xf32> to vector<8x128xbf16>
    %cst_108 = arith.constant dense<0.000000e+00> : vector<8x512xf32>
    %491 = tpu.matmul %490, %3, %cst_108 {dimension_numbers = #tpu.dot_dimension_numbers<[1], [0], [0], [1], [0, 0, 1, 1], [], []>} : vector<8x128xbf16>, vector<128x512xbf16>, vector<8x512xf32> -> vector<8x512xf32>
    %492 = arith.addf %489, %491 : vector<8x512xf32>
    %493 = vector.extract_strided_slice %492 {offsets = [0, 0], sizes = [8, 128], strides = [1, 1]} : vector<8x512xf32> to vector<8x128xf32>
    %494 = arith.negf %493 : vector<8x128xf32>
    %495 = math.exp %494 : vector<8x128xf32>
    %cst_109 = arith.constant 1.000000e+00 : f32
    %496 = vector.broadcast %cst_109 : f32 to vector<8x128xf32>
    %497 = arith.addf %496, %495 : vector<8x128xf32>
    %498 = arith.divf %496, %497 : vector<8x128xf32>
    %499 = vector.extract_strided_slice %492 {offsets = [0, 128], sizes = [8, 128], strides = [1, 1]} : vector<8x512xf32> to vector<8x128xf32>
    %500 = arith.negf %499 : vector<8x128xf32>
    %501 = math.exp %500 : vector<8x128xf32>
    %cst_110 = arith.constant 1.000000e+00 : f32
    %502 = vector.broadcast %cst_110 : f32 to vector<8x128xf32>
    %503 = arith.addf %502, %501 : vector<8x128xf32>
    %504 = arith.divf %502, %503 : vector<8x128xf32>
    %505 = vector.extract_strided_slice %492 {offsets = [0, 256], sizes = [8, 128], strides = [1, 1]} : vector<8x512xf32> to vector<8x128xf32>
    %506 = math.tanh %505 : vector<8x128xf32>
    %507 = vector.extract_strided_slice %492 {offsets = [0, 384], sizes = [8, 128], strides = [1, 1]} : vector<8x512xf32> to vector<8x128xf32>
    %508 = arith.negf %507 : vector<8x128xf32>
    %509 = math.exp %508 : vector<8x128xf32>
    %cst_111 = arith.constant 1.000000e+00 : f32
    %510 = vector.broadcast %cst_111 : f32 to vector<8x128xf32>
    %511 = arith.addf %510, %509 : vector<8x128xf32>
    %512 = arith.divf %510, %511 : vector<8x128xf32>
    %513 = arith.mulf %504, %448 : vector<8x128xf32>
    %514 = arith.mulf %498, %506 : vector<8x128xf32>
    %515 = arith.addf %513, %514 : vector<8x128xf32>
    %516 = math.tanh %515 : vector<8x128xf32>
    %517 = arith.mulf %512, %516 : vector<8x128xf32>
    %518 = tpu.concatenate %517, %480 in 1 : vector<8x128xf32>, vector<8x128xf32> -> vector<8x256xf32>
    %519 = arith.truncf %518 : vector<8x256xf32> to vector<8x256xbf16>
    %cst_112 = arith.constant dense<0.000000e+00> : vector<8x512xf32>
    %520 = tpu.matmul %519, %4, %cst_112 {dimension_numbers = #tpu.dot_dimension_numbers<[1], [0], [0], [1], [0, 0, 1, 1], [], []>} : vector<8x256xbf16>, vector<256x512xbf16>, vector<8x512xf32> -> vector<8x512xf32>
    %521 = vector.broadcast %5 : vector<1x512xf32> to vector<8x512xf32>
    %522 = arith.addf %520, %521 : vector<8x512xf32>
    %523 = vector.extract_strided_slice %522 {offsets = [0, 0], sizes = [8, 128], strides = [1, 1]} : vector<8x512xf32> to vector<8x128xf32>
    %524 = arith.negf %523 : vector<8x128xf32>
    %525 = math.exp %524 : vector<8x128xf32>
    %cst_113 = arith.constant 1.000000e+00 : f32
    %526 = vector.broadcast %cst_113 : f32 to vector<8x128xf32>
    %527 = arith.addf %526, %525 : vector<8x128xf32>
    %528 = arith.divf %526, %527 : vector<8x128xf32>
    %529 = vector.extract_strided_slice %522 {offsets = [0, 128], sizes = [8, 128], strides = [1, 1]} : vector<8x512xf32> to vector<8x128xf32>
    %530 = arith.negf %529 : vector<8x128xf32>
    %531 = math.exp %530 : vector<8x128xf32>
    %cst_114 = arith.constant 1.000000e+00 : f32
    %532 = vector.broadcast %cst_114 : f32 to vector<8x128xf32>
    %533 = arith.addf %532, %531 : vector<8x128xf32>
    %534 = arith.divf %532, %533 : vector<8x128xf32>
    %535 = vector.extract_strided_slice %522 {offsets = [0, 256], sizes = [8, 128], strides = [1, 1]} : vector<8x512xf32> to vector<8x128xf32>
    %536 = math.tanh %535 : vector<8x128xf32>
    %537 = vector.extract_strided_slice %522 {offsets = [0, 384], sizes = [8, 128], strides = [1, 1]} : vector<8x512xf32> to vector<8x128xf32>
    %538 = arith.negf %537 : vector<8x128xf32>
    %539 = math.exp %538 : vector<8x128xf32>
    %cst_115 = arith.constant 1.000000e+00 : f32
    %540 = vector.broadcast %cst_115 : f32 to vector<8x128xf32>
    %541 = arith.addf %540, %539 : vector<8x128xf32>
    %542 = arith.divf %540, %541 : vector<8x128xf32>
    %543 = arith.mulf %534, %478 : vector<8x128xf32>
    %544 = arith.mulf %528, %536 : vector<8x128xf32>
    %545 = arith.addf %543, %544 : vector<8x128xf32>
    %546 = math.tanh %545 : vector<8x128xf32>
    %547 = arith.mulf %542, %546 : vector<8x128xf32>
    %548 = arith.truncf %547 : vector<8x128xf32> to vector<8x128xbf16>
    %549 = arith.index_cast %c7_i32 : i32 to index
    %c0_116 = arith.constant 0 : index
    %c0_117 = arith.constant 0 : index
    %550 = vector.load %arg7[%549, %c0_116, %c0_117] : memref<16x8x128xbf16, #tpu.memory_space<vmem>>, vector<1x8x128xbf16>
    %551 = vector.shape_cast %550 : vector<1x8x128xbf16> to vector<8x128xbf16>
    %552 = vector.shape_cast %548 : vector<8x128xbf16> to vector<1x8x128xbf16>
    tpu.vector_store %arg7[%549, %c0_116, %c0_117], %552 {strides = array<i32>} : memref<16x8x128xbf16, #tpu.memory_space<vmem>>, vector<1x8x128xbf16>,
    %c8_i32_118 = arith.constant 8 : i32
    %c8_i32_119 = arith.constant 8 : i32
    %553 = arith.muli %c8_i32_118, %c8_i32_119 : i32
    %554 = tpu.assume_multiple %553, 8 : i32
    %555 = arith.index_cast %554 : i32 to index
    %c0_120 = arith.constant 0 : index
    %556 = vector.load %arg8[%555, %c0_120] : memref<128x512xf32, #tpu.memory_space<vmem>>, vector<8x512xf32>
    %557 = arith.truncf %517 : vector<8x128xf32> to vector<8x128xbf16>
    %cst_121 = arith.constant dense<0.000000e+00> : vector<8x512xf32>
    %558 = tpu.matmul %557, %3, %cst_121 {dimension_numbers = #tpu.dot_dimension_numbers<[1], [0], [0], [1], [0, 0, 1, 1], [], []>} : vector<8x128xbf16>, vector<128x512xbf16>, vector<8x512xf32> -> vector<8x512xf32>
    %559 = arith.addf %556, %558 : vector<8x512xf32>
    %560 = vector.extract_strided_slice %559 {offsets = [0, 0], sizes = [8, 128], strides = [1, 1]} : vector<8x512xf32> to vector<8x128xf32>
    %561 = arith.negf %560 : vector<8x128xf32>
    %562 = math.exp %561 : vector<8x128xf32>
    %cst_122 = arith.constant 1.000000e+00 : f32
    %563 = vector.broadcast %cst_122 : f32 to vector<8x128xf32>
    %564 = arith.addf %563, %562 : vector<8x128xf32>
    %565 = arith.divf %563, %564 : vector<8x128xf32>
    %566 = vector.extract_strided_slice %559 {offsets = [0, 128], sizes = [8, 128], strides = [1, 1]} : vector<8x512xf32> to vector<8x128xf32>
    %567 = arith.negf %566 : vector<8x128xf32>
    %568 = math.exp %567 : vector<8x128xf32>
    %cst_123 = arith.constant 1.000000e+00 : f32
    %569 = vector.broadcast %cst_123 : f32 to vector<8x128xf32>
    %570 = arith.addf %569, %568 : vector<8x128xf32>
    %571 = arith.divf %569, %570 : vector<8x128xf32>
    %572 = vector.extract_strided_slice %559 {offsets = [0, 256], sizes = [8, 128], strides = [1, 1]} : vector<8x512xf32> to vector<8x128xf32>
    %573 = math.tanh %572 : vector<8x128xf32>
    %574 = vector.extract_strided_slice %559 {offsets = [0, 384], sizes = [8, 128], strides = [1, 1]} : vector<8x512xf32> to vector<8x128xf32>
    %575 = arith.negf %574 : vector<8x128xf32>
    %576 = math.exp %575 : vector<8x128xf32>
    %cst_124 = arith.constant 1.000000e+00 : f32
    %577 = vector.broadcast %cst_124 : f32 to vector<8x128xf32>
    %578 = arith.addf %577, %576 : vector<8x128xf32>
    %579 = arith.divf %577, %578 : vector<8x128xf32>
    %580 = arith.mulf %571, %515 : vector<8x128xf32>
    %581 = arith.mulf %565, %573 : vector<8x128xf32>
    %582 = arith.addf %580, %581 : vector<8x128xf32>
    %583 = math.tanh %582 : vector<8x128xf32>
    %584 = arith.mulf %579, %583 : vector<8x128xf32>
    %585 = tpu.concatenate %584, %547 in 1 : vector<8x128xf32>, vector<8x128xf32> -> vector<8x256xf32>
    %586 = arith.truncf %585 : vector<8x256xf32> to vector<8x256xbf16>
    %cst_125 = arith.constant dense<0.000000e+00> : vector<8x512xf32>
    %587 = tpu.matmul %586, %4, %cst_125 {dimension_numbers = #tpu.dot_dimension_numbers<[1], [0], [0], [1], [0, 0, 1, 1], [], []>} : vector<8x256xbf16>, vector<256x512xbf16>, vector<8x512xf32> -> vector<8x512xf32>
    %588 = vector.broadcast %5 : vector<1x512xf32> to vector<8x512xf32>
    %589 = arith.addf %587, %588 : vector<8x512xf32>
    %590 = vector.extract_strided_slice %589 {offsets = [0, 0], sizes = [8, 128], strides = [1, 1]} : vector<8x512xf32> to vector<8x128xf32>
    %591 = arith.negf %590 : vector<8x128xf32>
    %592 = math.exp %591 : vector<8x128xf32>
    %cst_126 = arith.constant 1.000000e+00 : f32
    %593 = vector.broadcast %cst_126 : f32 to vector<8x128xf32>
    %594 = arith.addf %593, %592 : vector<8x128xf32>
    %595 = arith.divf %593, %594 : vector<8x128xf32>
    %596 = vector.extract_strided_slice %589 {offsets = [0, 128], sizes = [8, 128], strides = [1, 1]} : vector<8x512xf32> to vector<8x128xf32>
    %597 = arith.negf %596 : vector<8x128xf32>
    %598 = math.exp %597 : vector<8x128xf32>
    %cst_127 = arith.constant 1.000000e+00 : f32
    %599 = vector.broadcast %cst_127 : f32 to vector<8x128xf32>
    %600 = arith.addf %599, %598 : vector<8x128xf32>
    %601 = arith.divf %599, %600 : vector<8x128xf32>
    %602 = vector.extract_strided_slice %589 {offsets = [0, 256], sizes = [8, 128], strides = [1, 1]} : vector<8x512xf32> to vector<8x128xf32>
    %603 = math.tanh %602 : vector<8x128xf32>
    %604 = vector.extract_strided_slice %589 {offsets = [0, 384], sizes = [8, 128], strides = [1, 1]} : vector<8x512xf32> to vector<8x128xf32>
    %605 = arith.negf %604 : vector<8x128xf32>
    %606 = math.exp %605 : vector<8x128xf32>
    %cst_128 = arith.constant 1.000000e+00 : f32
    %607 = vector.broadcast %cst_128 : f32 to vector<8x128xf32>
    %608 = arith.addf %607, %606 : vector<8x128xf32>
    %609 = arith.divf %607, %608 : vector<8x128xf32>
    %610 = arith.mulf %601, %545 : vector<8x128xf32>
    %611 = arith.mulf %595, %603 : vector<8x128xf32>
    %612 = arith.addf %610, %611 : vector<8x128xf32>
    %613 = math.tanh %612 : vector<8x128xf32>
    %614 = arith.mulf %609, %613 : vector<8x128xf32>
    %615 = arith.truncf %614 : vector<8x128xf32> to vector<8x128xbf16>
    %616 = arith.index_cast %c8_i32_118 : i32 to index
    %c0_129 = arith.constant 0 : index
    %c0_130 = arith.constant 0 : index
    %617 = vector.load %arg7[%616, %c0_129, %c0_130] : memref<16x8x128xbf16, #tpu.memory_space<vmem>>, vector<1x8x128xbf16>
    %618 = vector.shape_cast %617 : vector<1x8x128xbf16> to vector<8x128xbf16>
    %619 = vector.shape_cast %615 : vector<8x128xbf16> to vector<1x8x128xbf16>
    tpu.vector_store %arg7[%616, %c0_129, %c0_130], %619 {strides = array<i32>} : memref<16x8x128xbf16, #tpu.memory_space<vmem>>, vector<1x8x128xbf16>,
    %c9_i32 = arith.constant 9 : i32
    %c8_i32_131 = arith.constant 8 : i32
    %620 = arith.muli %c9_i32, %c8_i32_131 : i32
    %621 = tpu.assume_multiple %620, 8 : i32
    %622 = arith.index_cast %621 : i32 to index
    %c0_132 = arith.constant 0 : index
    %623 = vector.load %arg8[%622, %c0_132] : memref<128x512xf32, #tpu.memory_space<vmem>>, vector<8x512xf32>
    %624 = arith.truncf %584 : vector<8x128xf32> to vector<8x128xbf16>
    %cst_133 = arith.constant dense<0.000000e+00> : vector<8x512xf32>
    %625 = tpu.matmul %624, %3, %cst_133 {dimension_numbers = #tpu.dot_dimension_numbers<[1], [0], [0], [1], [0, 0, 1, 1], [], []>} : vector<8x128xbf16>, vector<128x512xbf16>, vector<8x512xf32> -> vector<8x512xf32>
    %626 = arith.addf %623, %625 : vector<8x512xf32>
    %627 = vector.extract_strided_slice %626 {offsets = [0, 0], sizes = [8, 128], strides = [1, 1]} : vector<8x512xf32> to vector<8x128xf32>
    %628 = arith.negf %627 : vector<8x128xf32>
    %629 = math.exp %628 : vector<8x128xf32>
    %cst_134 = arith.constant 1.000000e+00 : f32
    %630 = vector.broadcast %cst_134 : f32 to vector<8x128xf32>
    %631 = arith.addf %630, %629 : vector<8x128xf32>
    %632 = arith.divf %630, %631 : vector<8x128xf32>
    %633 = vector.extract_strided_slice %626 {offsets = [0, 128], sizes = [8, 128], strides = [1, 1]} : vector<8x512xf32> to vector<8x128xf32>
    %634 = arith.negf %633 : vector<8x128xf32>
    %635 = math.exp %634 : vector<8x128xf32>
    %cst_135 = arith.constant 1.000000e+00 : f32
    %636 = vector.broadcast %cst_135 : f32 to vector<8x128xf32>
    %637 = arith.addf %636, %635 : vector<8x128xf32>
    %638 = arith.divf %636, %637 : vector<8x128xf32>
    %639 = vector.extract_strided_slice %626 {offsets = [0, 256], sizes = [8, 128], strides = [1, 1]} : vector<8x512xf32> to vector<8x128xf32>
    %640 = math.tanh %639 : vector<8x128xf32>
    %641 = vector.extract_strided_slice %626 {offsets = [0, 384], sizes = [8, 128], strides = [1, 1]} : vector<8x512xf32> to vector<8x128xf32>
    %642 = arith.negf %641 : vector<8x128xf32>
    %643 = math.exp %642 : vector<8x128xf32>
    %cst_136 = arith.constant 1.000000e+00 : f32
    %644 = vector.broadcast %cst_136 : f32 to vector<8x128xf32>
    %645 = arith.addf %644, %643 : vector<8x128xf32>
    %646 = arith.divf %644, %645 : vector<8x128xf32>
    %647 = arith.mulf %638, %582 : vector<8x128xf32>
    %648 = arith.mulf %632, %640 : vector<8x128xf32>
    %649 = arith.addf %647, %648 : vector<8x128xf32>
    %650 = math.tanh %649 : vector<8x128xf32>
    %651 = arith.mulf %646, %650 : vector<8x128xf32>
    %652 = tpu.concatenate %651, %614 in 1 : vector<8x128xf32>, vector<8x128xf32> -> vector<8x256xf32>
    %653 = arith.truncf %652 : vector<8x256xf32> to vector<8x256xbf16>
    %cst_137 = arith.constant dense<0.000000e+00> : vector<8x512xf32>
    %654 = tpu.matmul %653, %4, %cst_137 {dimension_numbers = #tpu.dot_dimension_numbers<[1], [0], [0], [1], [0, 0, 1, 1], [], []>} : vector<8x256xbf16>, vector<256x512xbf16>, vector<8x512xf32> -> vector<8x512xf32>
    %655 = vector.broadcast %5 : vector<1x512xf32> to vector<8x512xf32>
    %656 = arith.addf %654, %655 : vector<8x512xf32>
    %657 = vector.extract_strided_slice %656 {offsets = [0, 0], sizes = [8, 128], strides = [1, 1]} : vector<8x512xf32> to vector<8x128xf32>
    %658 = arith.negf %657 : vector<8x128xf32>
    %659 = math.exp %658 : vector<8x128xf32>
    %cst_138 = arith.constant 1.000000e+00 : f32
    %660 = vector.broadcast %cst_138 : f32 to vector<8x128xf32>
    %661 = arith.addf %660, %659 : vector<8x128xf32>
    %662 = arith.divf %660, %661 : vector<8x128xf32>
    %663 = vector.extract_strided_slice %656 {offsets = [0, 128], sizes = [8, 128], strides = [1, 1]} : vector<8x512xf32> to vector<8x128xf32>
    %664 = arith.negf %663 : vector<8x128xf32>
    %665 = math.exp %664 : vector<8x128xf32>
    %cst_139 = arith.constant 1.000000e+00 : f32
    %666 = vector.broadcast %cst_139 : f32 to vector<8x128xf32>
    %667 = arith.addf %666, %665 : vector<8x128xf32>
    %668 = arith.divf %666, %667 : vector<8x128xf32>
    %669 = vector.extract_strided_slice %656 {offsets = [0, 256], sizes = [8, 128], strides = [1, 1]} : vector<8x512xf32> to vector<8x128xf32>
    %670 = math.tanh %669 : vector<8x128xf32>
    %671 = vector.extract_strided_slice %656 {offsets = [0, 384], sizes = [8, 128], strides = [1, 1]} : vector<8x512xf32> to vector<8x128xf32>
    %672 = arith.negf %671 : vector<8x128xf32>
    %673 = math.exp %672 : vector<8x128xf32>
    %cst_140 = arith.constant 1.000000e+00 : f32
    %674 = vector.broadcast %cst_140 : f32 to vector<8x128xf32>
    %675 = arith.addf %674, %673 : vector<8x128xf32>
    %676 = arith.divf %674, %675 : vector<8x128xf32>
    %677 = arith.mulf %668, %612 : vector<8x128xf32>
    %678 = arith.mulf %662, %670 : vector<8x128xf32>
    %679 = arith.addf %677, %678 : vector<8x128xf32>
    %680 = math.tanh %679 : vector<8x128xf32>
    %681 = arith.mulf %676, %680 : vector<8x128xf32>
    %682 = arith.truncf %681 : vector<8x128xf32> to vector<8x128xbf16>
    %683 = arith.index_cast %c9_i32 : i32 to index
    %c0_141 = arith.constant 0 : index
    %c0_142 = arith.constant 0 : index
    %684 = vector.load %arg7[%683, %c0_141, %c0_142] : memref<16x8x128xbf16, #tpu.memory_space<vmem>>, vector<1x8x128xbf16>
    %685 = vector.shape_cast %684 : vector<1x8x128xbf16> to vector<8x128xbf16>
    %686 = vector.shape_cast %682 : vector<8x128xbf16> to vector<1x8x128xbf16>
    tpu.vector_store %arg7[%683, %c0_141, %c0_142], %686 {strides = array<i32>} : memref<16x8x128xbf16, #tpu.memory_space<vmem>>, vector<1x8x128xbf16>,
    %c10_i32 = arith.constant 10 : i32
    %c8_i32_143 = arith.constant 8 : i32
    %687 = arith.muli %c10_i32, %c8_i32_143 : i32
    %688 = tpu.assume_multiple %687, 8 : i32
    %689 = arith.index_cast %688 : i32 to index
    %c0_144 = arith.constant 0 : index
    %690 = vector.load %arg8[%689, %c0_144] : memref<128x512xf32, #tpu.memory_space<vmem>>, vector<8x512xf32>
    %691 = arith.truncf %651 : vector<8x128xf32> to vector<8x128xbf16>
    %cst_145 = arith.constant dense<0.000000e+00> : vector<8x512xf32>
    %692 = tpu.matmul %691, %3, %cst_145 {dimension_numbers = #tpu.dot_dimension_numbers<[1], [0], [0], [1], [0, 0, 1, 1], [], []>} : vector<8x128xbf16>, vector<128x512xbf16>, vector<8x512xf32> -> vector<8x512xf32>
    %693 = arith.addf %690, %692 : vector<8x512xf32>
    %694 = vector.extract_strided_slice %693 {offsets = [0, 0], sizes = [8, 128], strides = [1, 1]} : vector<8x512xf32> to vector<8x128xf32>
    %695 = arith.negf %694 : vector<8x128xf32>
    %696 = math.exp %695 : vector<8x128xf32>
    %cst_146 = arith.constant 1.000000e+00 : f32
    %697 = vector.broadcast %cst_146 : f32 to vector<8x128xf32>
    %698 = arith.addf %697, %696 : vector<8x128xf32>
    %699 = arith.divf %697, %698 : vector<8x128xf32>
    %700 = vector.extract_strided_slice %693 {offsets = [0, 128], sizes = [8, 128], strides = [1, 1]} : vector<8x512xf32> to vector<8x128xf32>
    %701 = arith.negf %700 : vector<8x128xf32>
    %702 = math.exp %701 : vector<8x128xf32>
    %cst_147 = arith.constant 1.000000e+00 : f32
    %703 = vector.broadcast %cst_147 : f32 to vector<8x128xf32>
    %704 = arith.addf %703, %702 : vector<8x128xf32>
    %705 = arith.divf %703, %704 : vector<8x128xf32>
    %706 = vector.extract_strided_slice %693 {offsets = [0, 256], sizes = [8, 128], strides = [1, 1]} : vector<8x512xf32> to vector<8x128xf32>
    %707 = math.tanh %706 : vector<8x128xf32>
    %708 = vector.extract_strided_slice %693 {offsets = [0, 384], sizes = [8, 128], strides = [1, 1]} : vector<8x512xf32> to vector<8x128xf32>
    %709 = arith.negf %708 : vector<8x128xf32>
    %710 = math.exp %709 : vector<8x128xf32>
    %cst_148 = arith.constant 1.000000e+00 : f32
    %711 = vector.broadcast %cst_148 : f32 to vector<8x128xf32>
    %712 = arith.addf %711, %710 : vector<8x128xf32>
    %713 = arith.divf %711, %712 : vector<8x128xf32>
    %714 = arith.mulf %705, %649 : vector<8x128xf32>
    %715 = arith.mulf %699, %707 : vector<8x128xf32>
    %716 = arith.addf %714, %715 : vector<8x128xf32>
    %717 = math.tanh %716 : vector<8x128xf32>
    %718 = arith.mulf %713, %717 : vector<8x128xf32>
    %719 = tpu.concatenate %718, %681 in 1 : vector<8x128xf32>, vector<8x128xf32> -> vector<8x256xf32>
    %720 = arith.truncf %719 : vector<8x256xf32> to vector<8x256xbf16>
    %cst_149 = arith.constant dense<0.000000e+00> : vector<8x512xf32>
    %721 = tpu.matmul %720, %4, %cst_149 {dimension_numbers = #tpu.dot_dimension_numbers<[1], [0], [0], [1], [0, 0, 1, 1], [], []>} : vector<8x256xbf16>, vector<256x512xbf16>, vector<8x512xf32> -> vector<8x512xf32>
    %722 = vector.broadcast %5 : vector<1x512xf32> to vector<8x512xf32>
    %723 = arith.addf %721, %722 : vector<8x512xf32>
    %724 = vector.extract_strided_slice %723 {offsets = [0, 0], sizes = [8, 128], strides = [1, 1]} : vector<8x512xf32> to vector<8x128xf32>
    %725 = arith.negf %724 : vector<8x128xf32>
    %726 = math.exp %725 : vector<8x128xf32>
    %cst_150 = arith.constant 1.000000e+00 : f32
    %727 = vector.broadcast %cst_150 : f32 to vector<8x128xf32>
    %728 = arith.addf %727, %726 : vector<8x128xf32>
    %729 = arith.divf %727, %728 : vector<8x128xf32>
    %730 = vector.extract_strided_slice %723 {offsets = [0, 128], sizes = [8, 128], strides = [1, 1]} : vector<8x512xf32> to vector<8x128xf32>
    %731 = arith.negf %730 : vector<8x128xf32>
    %732 = math.exp %731 : vector<8x128xf32>
    %cst_151 = arith.constant 1.000000e+00 : f32
    %733 = vector.broadcast %cst_151 : f32 to vector<8x128xf32>
    %734 = arith.addf %733, %732 : vector<8x128xf32>
    %735 = arith.divf %733, %734 : vector<8x128xf32>
    %736 = vector.extract_strided_slice %723 {offsets = [0, 256], sizes = [8, 128], strides = [1, 1]} : vector<8x512xf32> to vector<8x128xf32>
    %737 = math.tanh %736 : vector<8x128xf32>
    %738 = vector.extract_strided_slice %723 {offsets = [0, 384], sizes = [8, 128], strides = [1, 1]} : vector<8x512xf32> to vector<8x128xf32>
    %739 = arith.negf %738 : vector<8x128xf32>
    %740 = math.exp %739 : vector<8x128xf32>
    %cst_152 = arith.constant 1.000000e+00 : f32
    %741 = vector.broadcast %cst_152 : f32 to vector<8x128xf32>
    %742 = arith.addf %741, %740 : vector<8x128xf32>
    %743 = arith.divf %741, %742 : vector<8x128xf32>
    %744 = arith.mulf %735, %679 : vector<8x128xf32>
    %745 = arith.mulf %729, %737 : vector<8x128xf32>
    %746 = arith.addf %744, %745 : vector<8x128xf32>
    %747 = math.tanh %746 : vector<8x128xf32>
    %748 = arith.mulf %743, %747 : vector<8x128xf32>
    %749 = arith.truncf %748 : vector<8x128xf32> to vector<8x128xbf16>
    %750 = arith.index_cast %c10_i32 : i32 to index
    %c0_153 = arith.constant 0 : index
    %c0_154 = arith.constant 0 : index
    %751 = vector.load %arg7[%750, %c0_153, %c0_154] : memref<16x8x128xbf16, #tpu.memory_space<vmem>>, vector<1x8x128xbf16>
    %752 = vector.shape_cast %751 : vector<1x8x128xbf16> to vector<8x128xbf16>
    %753 = vector.shape_cast %749 : vector<8x128xbf16> to vector<1x8x128xbf16>
    tpu.vector_store %arg7[%750, %c0_153, %c0_154], %753 {strides = array<i32>} : memref<16x8x128xbf16, #tpu.memory_space<vmem>>, vector<1x8x128xbf16>,
    %c11_i32 = arith.constant 11 : i32
    %c8_i32_155 = arith.constant 8 : i32
    %754 = arith.muli %c11_i32, %c8_i32_155 : i32
    %755 = tpu.assume_multiple %754, 8 : i32
    %756 = arith.index_cast %755 : i32 to index
    %c0_156 = arith.constant 0 : index
    %757 = vector.load %arg8[%756, %c0_156] : memref<128x512xf32, #tpu.memory_space<vmem>>, vector<8x512xf32>
    %758 = arith.truncf %718 : vector<8x128xf32> to vector<8x128xbf16>
    %cst_157 = arith.constant dense<0.000000e+00> : vector<8x512xf32>
    %759 = tpu.matmul %758, %3, %cst_157 {dimension_numbers = #tpu.dot_dimension_numbers<[1], [0], [0], [1], [0, 0, 1, 1], [], []>} : vector<8x128xbf16>, vector<128x512xbf16>, vector<8x512xf32> -> vector<8x512xf32>
    %760 = arith.addf %757, %759 : vector<8x512xf32>
    %761 = vector.extract_strided_slice %760 {offsets = [0, 0], sizes = [8, 128], strides = [1, 1]} : vector<8x512xf32> to vector<8x128xf32>
    %762 = arith.negf %761 : vector<8x128xf32>
    %763 = math.exp %762 : vector<8x128xf32>
    %cst_158 = arith.constant 1.000000e+00 : f32
    %764 = vector.broadcast %cst_158 : f32 to vector<8x128xf32>
    %765 = arith.addf %764, %763 : vector<8x128xf32>
    %766 = arith.divf %764, %765 : vector<8x128xf32>
    %767 = vector.extract_strided_slice %760 {offsets = [0, 128], sizes = [8, 128], strides = [1, 1]} : vector<8x512xf32> to vector<8x128xf32>
    %768 = arith.negf %767 : vector<8x128xf32>
    %769 = math.exp %768 : vector<8x128xf32>
    %cst_159 = arith.constant 1.000000e+00 : f32
    %770 = vector.broadcast %cst_159 : f32 to vector<8x128xf32>
    %771 = arith.addf %770, %769 : vector<8x128xf32>
    %772 = arith.divf %770, %771 : vector<8x128xf32>
    %773 = vector.extract_strided_slice %760 {offsets = [0, 256], sizes = [8, 128], strides = [1, 1]} : vector<8x512xf32> to vector<8x128xf32>
    %774 = math.tanh %773 : vector<8x128xf32>
    %775 = vector.extract_strided_slice %760 {offsets = [0, 384], sizes = [8, 128], strides = [1, 1]} : vector<8x512xf32> to vector<8x128xf32>
    %776 = arith.negf %775 : vector<8x128xf32>
    %777 = math.exp %776 : vector<8x128xf32>
    %cst_160 = arith.constant 1.000000e+00 : f32
    %778 = vector.broadcast %cst_160 : f32 to vector<8x128xf32>
    %779 = arith.addf %778, %777 : vector<8x128xf32>
    %780 = arith.divf %778, %779 : vector<8x128xf32>
    %781 = arith.mulf %772, %716 : vector<8x128xf32>
    %782 = arith.mulf %766, %774 : vector<8x128xf32>
    %783 = arith.addf %781, %782 : vector<8x128xf32>
    %784 = math.tanh %783 : vector<8x128xf32>
    %785 = arith.mulf %780, %784 : vector<8x128xf32>
    %786 = tpu.concatenate %785, %748 in 1 : vector<8x128xf32>, vector<8x128xf32> -> vector<8x256xf32>
    %787 = arith.truncf %786 : vector<8x256xf32> to vector<8x256xbf16>
    %cst_161 = arith.constant dense<0.000000e+00> : vector<8x512xf32>
    %788 = tpu.matmul %787, %4, %cst_161 {dimension_numbers = #tpu.dot_dimension_numbers<[1], [0], [0], [1], [0, 0, 1, 1], [], []>} : vector<8x256xbf16>, vector<256x512xbf16>, vector<8x512xf32> -> vector<8x512xf32>
    %789 = vector.broadcast %5 : vector<1x512xf32> to vector<8x512xf32>
    %790 = arith.addf %788, %789 : vector<8x512xf32>
    %791 = vector.extract_strided_slice %790 {offsets = [0, 0], sizes = [8, 128], strides = [1, 1]} : vector<8x512xf32> to vector<8x128xf32>
    %792 = arith.negf %791 : vector<8x128xf32>
    %793 = math.exp %792 : vector<8x128xf32>
    %cst_162 = arith.constant 1.000000e+00 : f32
    %794 = vector.broadcast %cst_162 : f32 to vector<8x128xf32>
    %795 = arith.addf %794, %793 : vector<8x128xf32>
    %796 = arith.divf %794, %795 : vector<8x128xf32>
    %797 = vector.extract_strided_slice %790 {offsets = [0, 128], sizes = [8, 128], strides = [1, 1]} : vector<8x512xf32> to vector<8x128xf32>
    %798 = arith.negf %797 : vector<8x128xf32>
    %799 = math.exp %798 : vector<8x128xf32>
    %cst_163 = arith.constant 1.000000e+00 : f32
    %800 = vector.broadcast %cst_163 : f32 to vector<8x128xf32>
    %801 = arith.addf %800, %799 : vector<8x128xf32>
    %802 = arith.divf %800, %801 : vector<8x128xf32>
    %803 = vector.extract_strided_slice %790 {offsets = [0, 256], sizes = [8, 128], strides = [1, 1]} : vector<8x512xf32> to vector<8x128xf32>
    %804 = math.tanh %803 : vector<8x128xf32>
    %805 = vector.extract_strided_slice %790 {offsets = [0, 384], sizes = [8, 128], strides = [1, 1]} : vector<8x512xf32> to vector<8x128xf32>
    %806 = arith.negf %805 : vector<8x128xf32>
    %807 = math.exp %806 : vector<8x128xf32>
    %cst_164 = arith.constant 1.000000e+00 : f32
    %808 = vector.broadcast %cst_164 : f32 to vector<8x128xf32>
    %809 = arith.addf %808, %807 : vector<8x128xf32>
    %810 = arith.divf %808, %809 : vector<8x128xf32>
    %811 = arith.mulf %802, %746 : vector<8x128xf32>
    %812 = arith.mulf %796, %804 : vector<8x128xf32>
    %813 = arith.addf %811, %812 : vector<8x128xf32>
    %814 = math.tanh %813 : vector<8x128xf32>
    %815 = arith.mulf %810, %814 : vector<8x128xf32>
    %816 = arith.truncf %815 : vector<8x128xf32> to vector<8x128xbf16>
    %817 = arith.index_cast %c11_i32 : i32 to index
    %c0_165 = arith.constant 0 : index
    %c0_166 = arith.constant 0 : index
    %818 = vector.load %arg7[%817, %c0_165, %c0_166] : memref<16x8x128xbf16, #tpu.memory_space<vmem>>, vector<1x8x128xbf16>
    %819 = vector.shape_cast %818 : vector<1x8x128xbf16> to vector<8x128xbf16>
    %820 = vector.shape_cast %816 : vector<8x128xbf16> to vector<1x8x128xbf16>
    tpu.vector_store %arg7[%817, %c0_165, %c0_166], %820 {strides = array<i32>} : memref<16x8x128xbf16, #tpu.memory_space<vmem>>, vector<1x8x128xbf16>,
    %c12_i32 = arith.constant 12 : i32
    %c8_i32_167 = arith.constant 8 : i32
    %821 = arith.muli %c12_i32, %c8_i32_167 : i32
    %822 = tpu.assume_multiple %821, 8 : i32
    %823 = arith.index_cast %822 : i32 to index
    %c0_168 = arith.constant 0 : index
    %824 = vector.load %arg8[%823, %c0_168] : memref<128x512xf32, #tpu.memory_space<vmem>>, vector<8x512xf32>
    %825 = arith.truncf %785 : vector<8x128xf32> to vector<8x128xbf16>
    %cst_169 = arith.constant dense<0.000000e+00> : vector<8x512xf32>
    %826 = tpu.matmul %825, %3, %cst_169 {dimension_numbers = #tpu.dot_dimension_numbers<[1], [0], [0], [1], [0, 0, 1, 1], [], []>} : vector<8x128xbf16>, vector<128x512xbf16>, vector<8x512xf32> -> vector<8x512xf32>
    %827 = arith.addf %824, %826 : vector<8x512xf32>
    %828 = vector.extract_strided_slice %827 {offsets = [0, 0], sizes = [8, 128], strides = [1, 1]} : vector<8x512xf32> to vector<8x128xf32>
    %829 = arith.negf %828 : vector<8x128xf32>
    %830 = math.exp %829 : vector<8x128xf32>
    %cst_170 = arith.constant 1.000000e+00 : f32
    %831 = vector.broadcast %cst_170 : f32 to vector<8x128xf32>
    %832 = arith.addf %831, %830 : vector<8x128xf32>
    %833 = arith.divf %831, %832 : vector<8x128xf32>
    %834 = vector.extract_strided_slice %827 {offsets = [0, 128], sizes = [8, 128], strides = [1, 1]} : vector<8x512xf32> to vector<8x128xf32>
    %835 = arith.negf %834 : vector<8x128xf32>
    %836 = math.exp %835 : vector<8x128xf32>
    %cst_171 = arith.constant 1.000000e+00 : f32
    %837 = vector.broadcast %cst_171 : f32 to vector<8x128xf32>
    %838 = arith.addf %837, %836 : vector<8x128xf32>
    %839 = arith.divf %837, %838 : vector<8x128xf32>
    %840 = vector.extract_strided_slice %827 {offsets = [0, 256], sizes = [8, 128], strides = [1, 1]} : vector<8x512xf32> to vector<8x128xf32>
    %841 = math.tanh %840 : vector<8x128xf32>
    %842 = vector.extract_strided_slice %827 {offsets = [0, 384], sizes = [8, 128], strides = [1, 1]} : vector<8x512xf32> to vector<8x128xf32>
    %843 = arith.negf %842 : vector<8x128xf32>
    %844 = math.exp %843 : vector<8x128xf32>
    %cst_172 = arith.constant 1.000000e+00 : f32
    %845 = vector.broadcast %cst_172 : f32 to vector<8x128xf32>
    %846 = arith.addf %845, %844 : vector<8x128xf32>
    %847 = arith.divf %845, %846 : vector<8x128xf32>
    %848 = arith.mulf %839, %783 : vector<8x128xf32>
    %849 = arith.mulf %833, %841 : vector<8x128xf32>
    %850 = arith.addf %848, %849 : vector<8x128xf32>
    %851 = math.tanh %850 : vector<8x128xf32>
    %852 = arith.mulf %847, %851 : vector<8x128xf32>
    %853 = tpu.concatenate %852, %815 in 1 : vector<8x128xf32>, vector<8x128xf32> -> vector<8x256xf32>
    %854 = arith.truncf %853 : vector<8x256xf32> to vector<8x256xbf16>
    %cst_173 = arith.constant dense<0.000000e+00> : vector<8x512xf32>
    %855 = tpu.matmul %854, %4, %cst_173 {dimension_numbers = #tpu.dot_dimension_numbers<[1], [0], [0], [1], [0, 0, 1, 1], [], []>} : vector<8x256xbf16>, vector<256x512xbf16>, vector<8x512xf32> -> vector<8x512xf32>
    %856 = vector.broadcast %5 : vector<1x512xf32> to vector<8x512xf32>
    %857 = arith.addf %855, %856 : vector<8x512xf32>
    %858 = vector.extract_strided_slice %857 {offsets = [0, 0], sizes = [8, 128], strides = [1, 1]} : vector<8x512xf32> to vector<8x128xf32>
    %859 = arith.negf %858 : vector<8x128xf32>
    %860 = math.exp %859 : vector<8x128xf32>
    %cst_174 = arith.constant 1.000000e+00 : f32
    %861 = vector.broadcast %cst_174 : f32 to vector<8x128xf32>
    %862 = arith.addf %861, %860 : vector<8x128xf32>
    %863 = arith.divf %861, %862 : vector<8x128xf32>
    %864 = vector.extract_strided_slice %857 {offsets = [0, 128], sizes = [8, 128], strides = [1, 1]} : vector<8x512xf32> to vector<8x128xf32>
    %865 = arith.negf %864 : vector<8x128xf32>
    %866 = math.exp %865 : vector<8x128xf32>
    %cst_175 = arith.constant 1.000000e+00 : f32
    %867 = vector.broadcast %cst_175 : f32 to vector<8x128xf32>
    %868 = arith.addf %867, %866 : vector<8x128xf32>
    %869 = arith.divf %867, %868 : vector<8x128xf32>
    %870 = vector.extract_strided_slice %857 {offsets = [0, 256], sizes = [8, 128], strides = [1, 1]} : vector<8x512xf32> to vector<8x128xf32>
    %871 = math.tanh %870 : vector<8x128xf32>
    %872 = vector.extract_strided_slice %857 {offsets = [0, 384], sizes = [8, 128], strides = [1, 1]} : vector<8x512xf32> to vector<8x128xf32>
    %873 = arith.negf %872 : vector<8x128xf32>
    %874 = math.exp %873 : vector<8x128xf32>
    %cst_176 = arith.constant 1.000000e+00 : f32
    %875 = vector.broadcast %cst_176 : f32 to vector<8x128xf32>
    %876 = arith.addf %875, %874 : vector<8x128xf32>
    %877 = arith.divf %875, %876 : vector<8x128xf32>
    %878 = arith.mulf %869, %813 : vector<8x128xf32>
    %879 = arith.mulf %863, %871 : vector<8x128xf32>
    %880 = arith.addf %878, %879 : vector<8x128xf32>
    %881 = math.tanh %880 : vector<8x128xf32>
    %882 = arith.mulf %877, %881 : vector<8x128xf32>
    %883 = arith.truncf %882 : vector<8x128xf32> to vector<8x128xbf16>
    %884 = arith.index_cast %c12_i32 : i32 to index
    %c0_177 = arith.constant 0 : index
    %c0_178 = arith.constant 0 : index
    %885 = vector.load %arg7[%884, %c0_177, %c0_178] : memref<16x8x128xbf16, #tpu.memory_space<vmem>>, vector<1x8x128xbf16>
    %886 = vector.shape_cast %885 : vector<1x8x128xbf16> to vector<8x128xbf16>
    %887 = vector.shape_cast %883 : vector<8x128xbf16> to vector<1x8x128xbf16>
    tpu.vector_store %arg7[%884, %c0_177, %c0_178], %887 {strides = array<i32>} : memref<16x8x128xbf16, #tpu.memory_space<vmem>>, vector<1x8x128xbf16>,
    %c13_i32 = arith.constant 13 : i32
    %c8_i32_179 = arith.constant 8 : i32
    %888 = arith.muli %c13_i32, %c8_i32_179 : i32
    %889 = tpu.assume_multiple %888, 8 : i32
    %890 = arith.index_cast %889 : i32 to index
    %c0_180 = arith.constant 0 : index
    %891 = vector.load %arg8[%890, %c0_180] : memref<128x512xf32, #tpu.memory_space<vmem>>, vector<8x512xf32>
    %892 = arith.truncf %852 : vector<8x128xf32> to vector<8x128xbf16>
    %cst_181 = arith.constant dense<0.000000e+00> : vector<8x512xf32>
    %893 = tpu.matmul %892, %3, %cst_181 {dimension_numbers = #tpu.dot_dimension_numbers<[1], [0], [0], [1], [0, 0, 1, 1], [], []>} : vector<8x128xbf16>, vector<128x512xbf16>, vector<8x512xf32> -> vector<8x512xf32>
    %894 = arith.addf %891, %893 : vector<8x512xf32>
    %895 = vector.extract_strided_slice %894 {offsets = [0, 0], sizes = [8, 128], strides = [1, 1]} : vector<8x512xf32> to vector<8x128xf32>
    %896 = arith.negf %895 : vector<8x128xf32>
    %897 = math.exp %896 : vector<8x128xf32>
    %cst_182 = arith.constant 1.000000e+00 : f32
    %898 = vector.broadcast %cst_182 : f32 to vector<8x128xf32>
    %899 = arith.addf %898, %897 : vector<8x128xf32>
    %900 = arith.divf %898, %899 : vector<8x128xf32>
    %901 = vector.extract_strided_slice %894 {offsets = [0, 128], sizes = [8, 128], strides = [1, 1]} : vector<8x512xf32> to vector<8x128xf32>
    %902 = arith.negf %901 : vector<8x128xf32>
    %903 = math.exp %902 : vector<8x128xf32>
    %cst_183 = arith.constant 1.000000e+00 : f32
    %904 = vector.broadcast %cst_183 : f32 to vector<8x128xf32>
    %905 = arith.addf %904, %903 : vector<8x128xf32>
    %906 = arith.divf %904, %905 : vector<8x128xf32>
    %907 = vector.extract_strided_slice %894 {offsets = [0, 256], sizes = [8, 128], strides = [1, 1]} : vector<8x512xf32> to vector<8x128xf32>
    %908 = math.tanh %907 : vector<8x128xf32>
    %909 = vector.extract_strided_slice %894 {offsets = [0, 384], sizes = [8, 128], strides = [1, 1]} : vector<8x512xf32> to vector<8x128xf32>
    %910 = arith.negf %909 : vector<8x128xf32>
    %911 = math.exp %910 : vector<8x128xf32>
    %cst_184 = arith.constant 1.000000e+00 : f32
    %912 = vector.broadcast %cst_184 : f32 to vector<8x128xf32>
    %913 = arith.addf %912, %911 : vector<8x128xf32>
    %914 = arith.divf %912, %913 : vector<8x128xf32>
    %915 = arith.mulf %906, %850 : vector<8x128xf32>
    %916 = arith.mulf %900, %908 : vector<8x128xf32>
    %917 = arith.addf %915, %916 : vector<8x128xf32>
    %918 = math.tanh %917 : vector<8x128xf32>
    %919 = arith.mulf %914, %918 : vector<8x128xf32>
    %920 = tpu.concatenate %919, %882 in 1 : vector<8x128xf32>, vector<8x128xf32> -> vector<8x256xf32>
    %921 = arith.truncf %920 : vector<8x256xf32> to vector<8x256xbf16>
    %cst_185 = arith.constant dense<0.000000e+00> : vector<8x512xf32>
    %922 = tpu.matmul %921, %4, %cst_185 {dimension_numbers = #tpu.dot_dimension_numbers<[1], [0], [0], [1], [0, 0, 1, 1], [], []>} : vector<8x256xbf16>, vector<256x512xbf16>, vector<8x512xf32> -> vector<8x512xf32>
    %923 = vector.broadcast %5 : vector<1x512xf32> to vector<8x512xf32>
    %924 = arith.addf %922, %923 : vector<8x512xf32>
    %925 = vector.extract_strided_slice %924 {offsets = [0, 0], sizes = [8, 128], strides = [1, 1]} : vector<8x512xf32> to vector<8x128xf32>
    %926 = arith.negf %925 : vector<8x128xf32>
    %927 = math.exp %926 : vector<8x128xf32>
    %cst_186 = arith.constant 1.000000e+00 : f32
    %928 = vector.broadcast %cst_186 : f32 to vector<8x128xf32>
    %929 = arith.addf %928, %927 : vector<8x128xf32>
    %930 = arith.divf %928, %929 : vector<8x128xf32>
    %931 = vector.extract_strided_slice %924 {offsets = [0, 128], sizes = [8, 128], strides = [1, 1]} : vector<8x512xf32> to vector<8x128xf32>
    %932 = arith.negf %931 : vector<8x128xf32>
    %933 = math.exp %932 : vector<8x128xf32>
    %cst_187 = arith.constant 1.000000e+00 : f32
    %934 = vector.broadcast %cst_187 : f32 to vector<8x128xf32>
    %935 = arith.addf %934, %933 : vector<8x128xf32>
    %936 = arith.divf %934, %935 : vector<8x128xf32>
    %937 = vector.extract_strided_slice %924 {offsets = [0, 256], sizes = [8, 128], strides = [1, 1]} : vector<8x512xf32> to vector<8x128xf32>
    %938 = math.tanh %937 : vector<8x128xf32>
    %939 = vector.extract_strided_slice %924 {offsets = [0, 384], sizes = [8, 128], strides = [1, 1]} : vector<8x512xf32> to vector<8x128xf32>
    %940 = arith.negf %939 : vector<8x128xf32>
    %941 = math.exp %940 : vector<8x128xf32>
    %cst_188 = arith.constant 1.000000e+00 : f32
    %942 = vector.broadcast %cst_188 : f32 to vector<8x128xf32>
    %943 = arith.addf %942, %941 : vector<8x128xf32>
    %944 = arith.divf %942, %943 : vector<8x128xf32>
    %945 = arith.mulf %936, %880 : vector<8x128xf32>
    %946 = arith.mulf %930, %938 : vector<8x128xf32>
    %947 = arith.addf %945, %946 : vector<8x128xf32>
    %948 = math.tanh %947 : vector<8x128xf32>
    %949 = arith.mulf %944, %948 : vector<8x128xf32>
    %950 = arith.truncf %949 : vector<8x128xf32> to vector<8x128xbf16>
    %951 = arith.index_cast %c13_i32 : i32 to index
    %c0_189 = arith.constant 0 : index
    %c0_190 = arith.constant 0 : index
    %952 = vector.load %arg7[%951, %c0_189, %c0_190] : memref<16x8x128xbf16, #tpu.memory_space<vmem>>, vector<1x8x128xbf16>
    %953 = vector.shape_cast %952 : vector<1x8x128xbf16> to vector<8x128xbf16>
    %954 = vector.shape_cast %950 : vector<8x128xbf16> to vector<1x8x128xbf16>
    tpu.vector_store %arg7[%951, %c0_189, %c0_190], %954 {strides = array<i32>} : memref<16x8x128xbf16, #tpu.memory_space<vmem>>, vector<1x8x128xbf16>,
    %c14_i32 = arith.constant 14 : i32
    %c8_i32_191 = arith.constant 8 : i32
    %955 = arith.muli %c14_i32, %c8_i32_191 : i32
    %956 = tpu.assume_multiple %955, 8 : i32
    %957 = arith.index_cast %956 : i32 to index
    %c0_192 = arith.constant 0 : index
    %958 = vector.load %arg8[%957, %c0_192] : memref<128x512xf32, #tpu.memory_space<vmem>>, vector<8x512xf32>
    %959 = arith.truncf %919 : vector<8x128xf32> to vector<8x128xbf16>
    %cst_193 = arith.constant dense<0.000000e+00> : vector<8x512xf32>
    %960 = tpu.matmul %959, %3, %cst_193 {dimension_numbers = #tpu.dot_dimension_numbers<[1], [0], [0], [1], [0, 0, 1, 1], [], []>} : vector<8x128xbf16>, vector<128x512xbf16>, vector<8x512xf32> -> vector<8x512xf32>
    %961 = arith.addf %958, %960 : vector<8x512xf32>
    %962 = vector.extract_strided_slice %961 {offsets = [0, 0], sizes = [8, 128], strides = [1, 1]} : vector<8x512xf32> to vector<8x128xf32>
    %963 = arith.negf %962 : vector<8x128xf32>
    %964 = math.exp %963 : vector<8x128xf32>
    %cst_194 = arith.constant 1.000000e+00 : f32
    %965 = vector.broadcast %cst_194 : f32 to vector<8x128xf32>
    %966 = arith.addf %965, %964 : vector<8x128xf32>
    %967 = arith.divf %965, %966 : vector<8x128xf32>
    %968 = vector.extract_strided_slice %961 {offsets = [0, 128], sizes = [8, 128], strides = [1, 1]} : vector<8x512xf32> to vector<8x128xf32>
    %969 = arith.negf %968 : vector<8x128xf32>
    %970 = math.exp %969 : vector<8x128xf32>
    %cst_195 = arith.constant 1.000000e+00 : f32
    %971 = vector.broadcast %cst_195 : f32 to vector<8x128xf32>
    %972 = arith.addf %971, %970 : vector<8x128xf32>
    %973 = arith.divf %971, %972 : vector<8x128xf32>
    %974 = vector.extract_strided_slice %961 {offsets = [0, 256], sizes = [8, 128], strides = [1, 1]} : vector<8x512xf32> to vector<8x128xf32>
    %975 = math.tanh %974 : vector<8x128xf32>
    %976 = vector.extract_strided_slice %961 {offsets = [0, 384], sizes = [8, 128], strides = [1, 1]} : vector<8x512xf32> to vector<8x128xf32>
    %977 = arith.negf %976 : vector<8x128xf32>
    %978 = math.exp %977 : vector<8x128xf32>
    %cst_196 = arith.constant 1.000000e+00 : f32
    %979 = vector.broadcast %cst_196 : f32 to vector<8x128xf32>
    %980 = arith.addf %979, %978 : vector<8x128xf32>
    %981 = arith.divf %979, %980 : vector<8x128xf32>
    %982 = arith.mulf %973, %917 : vector<8x128xf32>
    %983 = arith.mulf %967, %975 : vector<8x128xf32>
    %984 = arith.addf %982, %983 : vector<8x128xf32>
    %985 = math.tanh %984 : vector<8x128xf32>
    %986 = arith.mulf %981, %985 : vector<8x128xf32>
    %987 = tpu.concatenate %986, %949 in 1 : vector<8x128xf32>, vector<8x128xf32> -> vector<8x256xf32>
    %988 = arith.truncf %987 : vector<8x256xf32> to vector<8x256xbf16>
    %cst_197 = arith.constant dense<0.000000e+00> : vector<8x512xf32>
    %989 = tpu.matmul %988, %4, %cst_197 {dimension_numbers = #tpu.dot_dimension_numbers<[1], [0], [0], [1], [0, 0, 1, 1], [], []>} : vector<8x256xbf16>, vector<256x512xbf16>, vector<8x512xf32> -> vector<8x512xf32>
    %990 = vector.broadcast %5 : vector<1x512xf32> to vector<8x512xf32>
    %991 = arith.addf %989, %990 : vector<8x512xf32>
    %992 = vector.extract_strided_slice %991 {offsets = [0, 0], sizes = [8, 128], strides = [1, 1]} : vector<8x512xf32> to vector<8x128xf32>
    %993 = arith.negf %992 : vector<8x128xf32>
    %994 = math.exp %993 : vector<8x128xf32>
    %cst_198 = arith.constant 1.000000e+00 : f32
    %995 = vector.broadcast %cst_198 : f32 to vector<8x128xf32>
    %996 = arith.addf %995, %994 : vector<8x128xf32>
    %997 = arith.divf %995, %996 : vector<8x128xf32>
    %998 = vector.extract_strided_slice %991 {offsets = [0, 128], sizes = [8, 128], strides = [1, 1]} : vector<8x512xf32> to vector<8x128xf32>
    %999 = arith.negf %998 : vector<8x128xf32>
    %1000 = math.exp %999 : vector<8x128xf32>
    %cst_199 = arith.constant 1.000000e+00 : f32
    %1001 = vector.broadcast %cst_199 : f32 to vector<8x128xf32>
    %1002 = arith.addf %1001, %1000 : vector<8x128xf32>
    %1003 = arith.divf %1001, %1002 : vector<8x128xf32>
    %1004 = vector.extract_strided_slice %991 {offsets = [0, 256], sizes = [8, 128], strides = [1, 1]} : vector<8x512xf32> to vector<8x128xf32>
    %1005 = math.tanh %1004 : vector<8x128xf32>
    %1006 = vector.extract_strided_slice %991 {offsets = [0, 384], sizes = [8, 128], strides = [1, 1]} : vector<8x512xf32> to vector<8x128xf32>
    %1007 = arith.negf %1006 : vector<8x128xf32>
    %1008 = math.exp %1007 : vector<8x128xf32>
    %cst_200 = arith.constant 1.000000e+00 : f32
    %1009 = vector.broadcast %cst_200 : f32 to vector<8x128xf32>
    %1010 = arith.addf %1009, %1008 : vector<8x128xf32>
    %1011 = arith.divf %1009, %1010 : vector<8x128xf32>
    %1012 = arith.mulf %1003, %947 : vector<8x128xf32>
    %1013 = arith.mulf %997, %1005 : vector<8x128xf32>
    %1014 = arith.addf %1012, %1013 : vector<8x128xf32>
    %1015 = math.tanh %1014 : vector<8x128xf32>
    %1016 = arith.mulf %1011, %1015 : vector<8x128xf32>
    %1017 = arith.truncf %1016 : vector<8x128xf32> to vector<8x128xbf16>
    %1018 = arith.index_cast %c14_i32 : i32 to index
    %c0_201 = arith.constant 0 : index
    %c0_202 = arith.constant 0 : index
    %1019 = vector.load %arg7[%1018, %c0_201, %c0_202] : memref<16x8x128xbf16, #tpu.memory_space<vmem>>, vector<1x8x128xbf16>
    %1020 = vector.shape_cast %1019 : vector<1x8x128xbf16> to vector<8x128xbf16>
    %1021 = vector.shape_cast %1017 : vector<8x128xbf16> to vector<1x8x128xbf16>
    tpu.vector_store %arg7[%1018, %c0_201, %c0_202], %1021 {strides = array<i32>} : memref<16x8x128xbf16, #tpu.memory_space<vmem>>, vector<1x8x128xbf16>,
    %c15_i32 = arith.constant 15 : i32
    %c8_i32_203 = arith.constant 8 : i32
    %1022 = arith.muli %c15_i32, %c8_i32_203 : i32
    %1023 = tpu.assume_multiple %1022, 8 : i32
    %1024 = arith.index_cast %1023 : i32 to index
    %c0_204 = arith.constant 0 : index
    %1025 = vector.load %arg8[%1024, %c0_204] : memref<128x512xf32, #tpu.memory_space<vmem>>, vector<8x512xf32>
    %1026 = arith.truncf %986 : vector<8x128xf32> to vector<8x128xbf16>
    %cst_205 = arith.constant dense<0.000000e+00> : vector<8x512xf32>
    %1027 = tpu.matmul %1026, %3, %cst_205 {dimension_numbers = #tpu.dot_dimension_numbers<[1], [0], [0], [1], [0, 0, 1, 1], [], []>} : vector<8x128xbf16>, vector<128x512xbf16>, vector<8x512xf32> -> vector<8x512xf32>
    %1028 = arith.addf %1025, %1027 : vector<8x512xf32>
    %1029 = vector.extract_strided_slice %1028 {offsets = [0, 0], sizes = [8, 128], strides = [1, 1]} : vector<8x512xf32> to vector<8x128xf32>
    %1030 = arith.negf %1029 : vector<8x128xf32>
    %1031 = math.exp %1030 : vector<8x128xf32>
    %cst_206 = arith.constant 1.000000e+00 : f32
    %1032 = vector.broadcast %cst_206 : f32 to vector<8x128xf32>
    %1033 = arith.addf %1032, %1031 : vector<8x128xf32>
    %1034 = arith.divf %1032, %1033 : vector<8x128xf32>
    %1035 = vector.extract_strided_slice %1028 {offsets = [0, 128], sizes = [8, 128], strides = [1, 1]} : vector<8x512xf32> to vector<8x128xf32>
    %1036 = arith.negf %1035 : vector<8x128xf32>
    %1037 = math.exp %1036 : vector<8x128xf32>
    %cst_207 = arith.constant 1.000000e+00 : f32
    %1038 = vector.broadcast %cst_207 : f32 to vector<8x128xf32>
    %1039 = arith.addf %1038, %1037 : vector<8x128xf32>
    %1040 = arith.divf %1038, %1039 : vector<8x128xf32>
    %1041 = vector.extract_strided_slice %1028 {offsets = [0, 256], sizes = [8, 128], strides = [1, 1]} : vector<8x512xf32> to vector<8x128xf32>
    %1042 = math.tanh %1041 : vector<8x128xf32>
    %1043 = vector.extract_strided_slice %1028 {offsets = [0, 384], sizes = [8, 128], strides = [1, 1]} : vector<8x512xf32> to vector<8x128xf32>
    %1044 = arith.negf %1043 : vector<8x128xf32>
    %1045 = math.exp %1044 : vector<8x128xf32>
    %cst_208 = arith.constant 1.000000e+00 : f32
    %1046 = vector.broadcast %cst_208 : f32 to vector<8x128xf32>
    %1047 = arith.addf %1046, %1045 : vector<8x128xf32>
    %1048 = arith.divf %1046, %1047 : vector<8x128xf32>
    %1049 = arith.mulf %1040, %984 : vector<8x128xf32>
    %1050 = arith.mulf %1034, %1042 : vector<8x128xf32>
    %1051 = arith.addf %1049, %1050 : vector<8x128xf32>
    %1052 = math.tanh %1051 : vector<8x128xf32>
    %1053 = arith.mulf %1048, %1052 : vector<8x128xf32>
    %1054 = tpu.concatenate %1053, %1016 in 1 : vector<8x128xf32>, vector<8x128xf32> -> vector<8x256xf32>
    %1055 = arith.truncf %1054 : vector<8x256xf32> to vector<8x256xbf16>
    %cst_209 = arith.constant dense<0.000000e+00> : vector<8x512xf32>
    %1056 = tpu.matmul %1055, %4, %cst_209 {dimension_numbers = #tpu.dot_dimension_numbers<[1], [0], [0], [1], [0, 0, 1, 1], [], []>} : vector<8x256xbf16>, vector<256x512xbf16>, vector<8x512xf32> -> vector<8x512xf32>
    %1057 = vector.broadcast %5 : vector<1x512xf32> to vector<8x512xf32>
    %1058 = arith.addf %1056, %1057 : vector<8x512xf32>
    %1059 = vector.extract_strided_slice %1058 {offsets = [0, 0], sizes = [8, 128], strides = [1, 1]} : vector<8x512xf32> to vector<8x128xf32>
    %1060 = arith.negf %1059 : vector<8x128xf32>
    %1061 = math.exp %1060 : vector<8x128xf32>
    %cst_210 = arith.constant 1.000000e+00 : f32
    %1062 = vector.broadcast %cst_210 : f32 to vector<8x128xf32>
    %1063 = arith.addf %1062, %1061 : vector<8x128xf32>
    %1064 = arith.divf %1062, %1063 : vector<8x128xf32>
    %1065 = vector.extract_strided_slice %1058 {offsets = [0, 128], sizes = [8, 128], strides = [1, 1]} : vector<8x512xf32> to vector<8x128xf32>
    %1066 = arith.negf %1065 : vector<8x128xf32>
    %1067 = math.exp %1066 : vector<8x128xf32>
    %cst_211 = arith.constant 1.000000e+00 : f32
    %1068 = vector.broadcast %cst_211 : f32 to vector<8x128xf32>
    %1069 = arith.addf %1068, %1067 : vector<8x128xf32>
    %1070 = arith.divf %1068, %1069 : vector<8x128xf32>
    %1071 = vector.extract_strided_slice %1058 {offsets = [0, 256], sizes = [8, 128], strides = [1, 1]} : vector<8x512xf32> to vector<8x128xf32>
    %1072 = math.tanh %1071 : vector<8x128xf32>
    %1073 = vector.extract_strided_slice %1058 {offsets = [0, 384], sizes = [8, 128], strides = [1, 1]} : vector<8x512xf32> to vector<8x128xf32>
    %1074 = arith.negf %1073 : vector<8x128xf32>
    %1075 = math.exp %1074 : vector<8x128xf32>
    %cst_212 = arith.constant 1.000000e+00 : f32
    %1076 = vector.broadcast %cst_212 : f32 to vector<8x128xf32>
    %1077 = arith.addf %1076, %1075 : vector<8x128xf32>
    %1078 = arith.divf %1076, %1077 : vector<8x128xf32>
    %1079 = arith.mulf %1070, %1014 : vector<8x128xf32>
    %1080 = arith.mulf %1064, %1072 : vector<8x128xf32>
    %1081 = arith.addf %1079, %1080 : vector<8x128xf32>
    %1082 = math.tanh %1081 : vector<8x128xf32>
    %1083 = arith.mulf %1078, %1082 : vector<8x128xf32>
    %1084 = arith.truncf %1083 : vector<8x128xf32> to vector<8x128xbf16>
    %1085 = arith.index_cast %c15_i32 : i32 to index
    %c0_213 = arith.constant 0 : index
    %c0_214 = arith.constant 0 : index
    %1086 = vector.load %arg7[%1085, %c0_213, %c0_214] : memref<16x8x128xbf16, #tpu.memory_space<vmem>>, vector<1x8x128xbf16>
    %1087 = vector.shape_cast %1086 : vector<1x8x128xbf16> to vector<8x128xbf16>
    %1088 = vector.shape_cast %1084 : vector<8x128xbf16> to vector<1x8x128xbf16>
    tpu.vector_store %arg7[%1085, %c0_213, %c0_214], %1088 {strides = array<i32>} : memref<16x8x128xbf16, #tpu.memory_space<vmem>>, vector<1x8x128xbf16>,
    %c16_i32 = arith.constant 16 : i32
    %c0_215 = arith.constant 0 : index
    %c0_216 = arith.constant 0 : index
    %1089 = vector.load %arg9[%c0_215, %c0_216] : memref<8x128xf32, #tpu.memory_space<vmem>>, vector<8x128xf32>
    tpu.vector_store %arg9[%c0_215, %c0_216], %1053 {strides = array<i32>} : memref<8x128xf32, #tpu.memory_space<vmem>>, vector<8x128xf32>,
    %c0_217 = arith.constant 0 : index
    %c0_218 = arith.constant 0 : index
    %1090 = vector.load %arg10[%c0_217, %c0_218] : memref<8x128xf32, #tpu.memory_space<vmem>>, vector<8x128xf32>
    tpu.vector_store %arg10[%c0_217, %c0_218], %1051 {strides = array<i32>} : memref<8x128xf32, #tpu.memory_space<vmem>>, vector<8x128xf32>,
    %c0_219 = arith.constant 0 : index
    %c0_220 = arith.constant 0 : index
    %1091 = vector.load %arg11[%c0_219, %c0_220] : memref<8x128xf32, #tpu.memory_space<vmem>>, vector<8x128xf32>
    tpu.vector_store %arg11[%c0_219, %c0_220], %1083 {strides = array<i32>} : memref<8x128xf32, #tpu.memory_space<vmem>>, vector<8x128xf32>,
    %c0_221 = arith.constant 0 : index
    %c0_222 = arith.constant 0 : index
    %1092 = vector.load %arg12[%c0_221, %c0_222] : memref<8x128xf32, #tpu.memory_space<vmem>>, vector<8x128xf32>
    tpu.vector_store %arg12[%c0_221, %c0_222], %1081 {strides = array<i32>} : memref<8x128xf32, #tpu.memory_space<vmem>>, vector<8x128xf32>,
    return
  }
  func.func @transform_0(%arg0: i32) -> (i32, i32) {
    %c0_i32 = arith.constant 0 : i32
    %c0_i32_0 = arith.constant 0 : i32
    return %arg0, %c0_i32 : i32, i32
  }
  func.func @transform_1(%arg0: i32) -> (i32, i32) {
    %c0_i32 = arith.constant 0 : i32
    %c0_i32_0 = arith.constant 0 : i32
    %c0_i32_1 = arith.constant 0 : i32
    return %c0_i32, %c0_i32_0 : i32, i32
  }
  func.func @transform_2(%arg0: i32) -> (i32, i32) {
    %c0_i32 = arith.constant 0 : i32
    %c0_i32_0 = arith.constant 0 : i32
    %c0_i32_1 = arith.constant 0 : i32
    return %c0_i32, %c0_i32_0 : i32, i32
  }
  func.func @transform_3(%arg0: i32) -> (i32, i32) {
    %c0_i32 = arith.constant 0 : i32
    %c0_i32_0 = arith.constant 0 : i32
    %c0_i32_1 = arith.constant 0 : i32
    return %c0_i32, %c0_i32_0 : i32, i32
  }
  func.func @transform_4(%arg0: i32) -> (i32, i32) {
    %c0_i32 = arith.constant 0 : i32
    %c0_i32_0 = arith.constant 0 : i32
    %c0_i32_1 = arith.constant 0 : i32
    return %c0_i32, %c0_i32_0 : i32, i32
  }
  func.func @transform_5(%arg0: i32) -> (i32, i32) {
    %c0_i32 = arith.constant 0 : i32
    %c0_i32_0 = arith.constant 0 : i32
    %c0_i32_1 = arith.constant 0 : i32
    return %c0_i32, %c0_i32_0 : i32, i32
  }
  func.func @transform_6(%arg0: i32) -> (i32, i32, i32) {
    %c0_i32 = arith.constant 0 : i32
    %c0_i32_0 = arith.constant 0 : i32
    %c0_i32_1 = arith.constant 0 : i32
    return %arg0, %c0_i32, %c0_i32_0 : i32, i32, i32
  }
}

</mosaic_0001>

<bundles_post_ra>
// kernel: lm_model_forward.3
= control target key start
LH: loop header
LB: loop body
LE: loop exit
PB: predicated region body
PF: predicated region fallthrough
CT: control target
= control target key end

     0   :  { %v608_v1 = vmov 0   ;;  %v457_v25 = vlaneseq  ;;  %s844_s1 = inlined_call_operand.vmem [shape: bf16[128,256], index: 1, kind: input, shape index: {}]   ;;  %s845_s0 = inlined_call_operand.vmem [shape: bf16[128,128], index: 0, kind: input, shape index: {}]   ;;  %s846_s2 = inlined_call_operand.vmem [shape: f32[1,256], index: 2, kind: input, shape index: {}]   ;;  %s847_s3 = inlined_call_operand.vmem [shape: f32[128,256], index: 3, kind: output, shape index: {}]  }
   0x1   :  { %v576_v0 = vld [vmem:[%s844_s1 + $0x4] ss:$8 sps:$4 sm:$0xff]   ;;  %275 = vmatprep.mubr.bf16.mxu0 %v608_v1  ;;  %315 = vmatprep.mubr.bf16.mxu1 %v608_v1  ;;  %v578_v2 = vld [vmem:[%s844_s1] ss:$8 sps:$4 sm:$0xff]   ;;  %v579_v3 = vld [vmem:[%s844_s1 + $0x14] ss:$8 sps:$4 sm:$0xff]  }
   0x2   :  { %243 = vmatprep.subr.bf16.mxu0 %v576_v0  ;;  %559 = vmatprep.subr.bf16.mxu1 %v576_v0  ;;  %v581_v4 = vld [vmem:[%s844_s1 + $0x10] ss:$8 sps:$4 sm:$0xff]   ;;  %v582_v5 = vld [vmem:[%s844_s1 + $0x24] ss:$8 sps:$4 sm:$0xff]   ;;  %v584_v6 = vld [vmem:[%s844_s1 + $0x20] ss:$8 sps:$4 sm:$0xff]  }
   0x3   :  { %244 = vmatpush1.bf16.msra.mxu0 %v578_v2  ;;  %567 = vmatpush1.bf16.msra.mxu1 %v578_v2  ;;  %v585_v7 = vld [vmem:[%s844_s1 + $0x34] ss:$8 sps:$4 sm:$0xff]   ;;  %v587_v8 = vld [vmem:[%s844_s1 + $0x30] ss:$8 sps:$4 sm:$0xff]   ;;  %v588_v9 = vld [vmem:[%s844_s1 + $0x44] ss:$8 sps:$4 sm:$0xff]  }
   0x4   :  { %245 = vmatprep.subr.bf16.mxu0 %v579_v3  ;;  %560 = vmatprep.subr.bf16.mxu1 %v579_v3  ;;  %v590_v10 = vld [vmem:[%s844_s1 + $0x40] ss:$8 sps:$4 sm:$0xff]   ;;  %v591_v11 = vld [vmem:[%s844_s1 + $0x54] ss:$8 sps:$4 sm:$0xff]   ;;  %v593_v12 = vld [vmem:[%s844_s1 + $0x50] ss:$8 sps:$4 sm:$0xff]  }
   0x5   :  { %v594_v13 = vld [vmem:[%s844_s1 + $0x64] ss:$8 sps:$4 sm:$0xff]   ;;  %v596_v14 = vld [vmem:[%s844_s1 + $0x60] ss:$8 sps:$4 sm:$0xff]   ;;  %v597_v15 = vld [vmem:[%s844_s1 + $0x74] ss:$8 sps:$4 sm:$0xff]  }
   0x6   :  { %v599_v16 = vld [vmem:[%s844_s1 + $0x70] ss:$8 sps:$4 sm:$0xff]   ;;  %v600_v17 = vld [vmem:[%s845_s0] sm:$0xff]   ;;  %v602_v19 = vld [vmem:[%s845_s0 + $0x8] sm:$0xff]   ;;  %v458_v26 = vshrl.u32 %v457_v25, 7 }
   0x7   :  { %246 = vmatpush1.bf16.msra.mxu0 %v581_v4  ;;  %568 = vmatpush1.bf16.msra.mxu1 %v581_v4  ;;  %v601_v18 = vld [vmem:[%s845_s0 + $0x20] sm:$0xff]   ;;  %v603_v20 = vld [vmem:[%s845_s0 + $0x28] sm:$0xff]   ;;  %v604_v21 = vld [vmem:[%s845_s0 + $0x10] sm:$0xff]  }
   0x8   :  { %247 = vmatprep.subr.bf16.mxu0 %v582_v5  ;;  %561 = vmatprep.subr.bf16.mxu1 %v582_v5  ;;  %v605_v22 = vld [vmem:[%s845_s0 + $0x30] sm:$0xff]   ;;  %v606_v23 = vld [vmem:[%s845_s0 + $0x18] sm:$0xff]   ;;  %v459_v27 = vsub.s32 0, %v458_v26  ;;  %v455_v28 = vld [vmem:[%s846_s2] sm:$0x3]  ;;  %v463_v29 = vsub.s32 1, %v458_v26 }
   0x9   :  { %v607_v24 = vld [vmem:[%s845_s0 + $0x38] sm:$0xff]  }
   0xa   :  { %v712_v30 = vrot.slane %v455_v28, %v459_v27  ;;  %v714_v31 = vrot.slane %v455_v28, %v463_v29 }
   0xb   :  { %248 = vmatpush1.bf16.msra.mxu0 %v584_v6  ;;  %569 = vmatpush1.bf16.msra.mxu1 %v584_v6 }
   0xc   :  { %249 = vmatprep.subr.bf16.mxu0 %v585_v7  ;;  %562 = vmatprep.subr.bf16.mxu1 %v585_v7 }
   0xf   :  { %250 = vmatpush1.bf16.msra.mxu0 %v587_v8  ;;  %570 = vmatpush1.bf16.msra.mxu1 %v587_v8 }
  0x10   :  { %251 = vmatprep.subr.bf16.mxu0 %v588_v9  ;;  %563 = vmatprep.subr.bf16.mxu1 %v588_v9 }
  0x13   :  { %252 = vmatpush1.bf16.msra.mxu0 %v590_v10  ;;  %571 = vmatpush1.bf16.msra.mxu1 %v590_v10 }
  0x14   :  { %253 = vmatprep.subr.bf16.mxu0 %v591_v11  ;;  %564 = vmatprep.subr.bf16.mxu1 %v591_v11 }
  0x17   :  { %254 = vmatpush1.bf16.msra.mxu0 %v593_v12  ;;  %572 = vmatpush1.bf16.msra.mxu1 %v593_v12 }
  0x18   :  { %255 = vmatprep.subr.bf16.mxu0 %v594_v13  ;;  %565 = vmatprep.subr.bf16.mxu1 %v594_v13 }
  0x1b   :  { %256 = vmatpush1.bf16.msra.mxu0 %v596_v14  ;;  %573 = vmatpush1.bf16.msra.mxu1 %v596_v14 }
  0x1c   :  { %257 = vmatprep.subr.bf16.mxu0 %v597_v15  ;;  %566 = vmatprep.subr.bf16.mxu1 %v597_v15 }
  0x1f   :  { %258 = vmatpush1.bf16.msra.mxu0 %v599_v16  ;;  %574 = vmatpush1.bf16.msra.mxu1 %v599_v16 }
  0x22   :  { %276 = vmatmul.mubr.bf16.vlgmr.msra.gmra.mrb[0].mxu0 %v600_v17  ;;  %316 = vmatmul.mubr.bf16.vlgmr.msra.gmra.mrb[0].mxu1 %v601_v18 }
  0x23   :  { %285 = vmatprep.mubr.bf16.mxu0 %v608_v1  ;;  %325 = vmatprep.mubr.bf16.mxu1 %v608_v1 }
  0x2a   :  { %286 = vmatmul.mubr.bf16.gmra.mrb[4].mxu0 %v602_v19  ;;  %326 = vmatmul.mubr.bf16.gmra.mrb[4].mxu1 %v603_v20 }
  0x2b   :  { %295 = vmatprep.mubr.bf16.mxu0 %v608_v1  ;;  %335 = vmatprep.mubr.bf16.mxu1 %v608_v1 }
  0x32   :  { %296 = vmatmul.mubr.bf16.gmra.mrb[8].mxu0 %v604_v21  ;;  %336 = vmatmul.mubr.bf16.gmra.mrb[8].mxu1 %v605_v22 }
  0x33   :  { %305 = vmatprep.mubr.bf16.mxu0 %v608_v1  ;;  %345 = vmatprep.mubr.bf16.mxu1 %v608_v1 }
  0x3a   :  { %306 = vmatmul.mubr.bf16.gmra.mrb[12].mxu0 %v606_v23  ;;  %346 = vmatmul.mubr.bf16.gmra.mrb[12].mxu1 %v607_v24 }
  0xf5   :  { %v277_v32 = vpop.f32.mrb[0].mxu0  ;;  %v317_v33 = vpop.f32.mrb[0].mxu1 }
  0xf6   :  { %v467_v34 = vadd.f32 %v712_v30, %v277_v32  ;;  %v483_v35 = vadd.f32 %v712_v30, %v317_v33  ;;  %v279_v36 = vpop.f32.mrb[1].mxu0  ;;  %v319_v37 = vpop.f32.mrb[1].mxu1 }
  0xf7   :  { %v468_v38 = vadd.f32 %v714_v31, %v279_v36  ;;  %v484_v39 = vadd.f32 %v714_v31, %v319_v37  ;;  %v281_v40 = vpop.f32.mrb[2].mxu0  ;;  %v321_v41 = vpop.f32.mrb[2].mxu1 }
  0xf8   :  { %499 = vst [vmem:[%s847_s3] sm:$0xff] %v467_v34  ;;  %515 = vst [vmem:[%s847_s3 + $0x80] sm:$0xff] %v483_v35  ;;  %v469_v42 = vadd.f32 %v712_v30, %v281_v40  ;;  %v485_v43 = vadd.f32 %v712_v30, %v321_v41  ;;  %v283_v44 = vpop.f32.mrb[3].mxu0  ;;  %v323_v45 = vpop.f32.mrb[3].mxu1 }
  0xf9   :  { %500 = vst [vmem:[%s847_s3 + $0x8] sm:$0xff] %v468_v38  ;;  %516 = vst [vmem:[%s847_s3 + $0x88] sm:$0xff] %v484_v39  ;;  %v470_v46 = vadd.f32 %v714_v31, %v283_v44  ;;  %v486_v47 = vadd.f32 %v714_v31, %v323_v45 }
  0xfa   :  { %501 = vst [vmem:[%s847_s3 + $0x10] sm:$0xff] %v469_v42  ;;  %517 = vst [vmem:[%s847_s3 + $0x90] sm:$0xff] %v485_v43 }
  0xfb   :  { %502 = vst [vmem:[%s847_s3 + $0x18] sm:$0xff] %v470_v46  ;;  %518 = vst [vmem:[%s847_s3 + $0x98] sm:$0xff] %v486_v47 }
  0xfd   :  { %v287_v48 = vpop.f32.mrb[4].mxu0  ;;  %v327_v49 = vpop.f32.mrb[4].mxu1 }
  0xfe   :  { %v471_v50 = vadd.f32 %v712_v30, %v287_v48  ;;  %v487_v51 = vadd.f32 %v712_v30, %v327_v49  ;;  %v289_v52 = vpop.f32.mrb[5].mxu0  ;;  %v329_v53 = vpop.f32.mrb[5].mxu1 }
  0xff   :  { %v472_v54 = vadd.f32 %v714_v31, %v289_v52  ;;  %v488_v55 = vadd.f32 %v714_v31, %v329_v53  ;;  %v291_v56 = vpop.f32.mrb[6].mxu0  ;;  %v331_v57 = vpop.f32.mrb[6].mxu1 }
 0x100   :  { %503 = vst [vmem:[%s847_s3 + $0x20] sm:$0xff] %v471_v50  ;;  %519 = vst [vmem:[%s847_s3 + $0xa0] sm:$0xff] %v487_v51  ;;  %v473_v58 = vadd.f32 %v712_v30, %v291_v56  ;;  %v489_v59 = vadd.f32 %v712_v30, %v331_v57  ;;  %v293_v60 = vpop.f32.mrb[7].mxu0  ;;  %v333_v61 = vpop.f32.mrb[7].mxu1 }
 0x101   :  { %504 = vst [vmem:[%s847_s3 + $0x28] sm:$0xff] %v472_v54  ;;  %520 = vst [vmem:[%s847_s3 + $0xa8] sm:$0xff] %v488_v55  ;;  %v474_v62 = vadd.f32 %v714_v31, %v293_v60  ;;  %v490_v63 = vadd.f32 %v714_v31, %v333_v61 }
 0x102   :  { %505 = vst [vmem:[%s847_s3 + $0x30] sm:$0xff] %v473_v58  ;;  %521 = vst [vmem:[%s847_s3 + $0xb0] sm:$0xff] %v489_v59 }
 0x103   :  { %506 = vst [vmem:[%s847_s3 + $0x38] sm:$0xff] %v474_v62  ;;  %522 = vst [vmem:[%s847_s3 + $0xb8] sm:$0xff] %v490_v63 }
 0x105   :  { %v297_v0 = vpop.f32.mrb[8].mxu0  ;;  %v337_v1 = vpop.f32.mrb[8].mxu1 }
 0x106   :  { %v475_v2 = vadd.f32 %v712_v30, %v297_v0  ;;  %v491_v3 = vadd.f32 %v712_v30, %v337_v1  ;;  %v299_v4 = vpop.f32.mrb[9].mxu0  ;;  %v339_v5 = vpop.f32.mrb[9].mxu1 }
 0x107   :  { %v476_v6 = vadd.f32 %v714_v31, %v299_v4  ;;  %v492_v7 = vadd.f32 %v714_v31, %v339_v5  ;;  %v301_v8 = vpop.f32.mrb[10].mxu0  ;;  %v341_v9 = vpop.f32.mrb[10].mxu1 }
 0x108   :  { %507 = vst [vmem:[%s847_s3 + $0x40] sm:$0xff] %v475_v2  ;;  %523 = vst [vmem:[%s847_s3 + $0xc0] sm:$0xff] %v491_v3  ;;  %v477_v10 = vadd.f32 %v712_v30, %v301_v8  ;;  %v493_v11 = vadd.f32 %v712_v30, %v341_v9  ;;  %v303_v12 = vpop.f32.mrb[11].mxu0  ;;  %v343_v13 = vpop.f32.mrb[11].mxu1 }
 0x109   :  { %508 = vst [vmem:[%s847_s3 + $0x48] sm:$0xff] %v476_v6  ;;  %524 = vst [vmem:[%s847_s3 + $0xc8] sm:$0xff] %v492_v7  ;;  %v478_v14 = vadd.f32 %v714_v31, %v303_v12  ;;  %v494_v15 = vadd.f32 %v714_v31, %v343_v13 }
 0x10a   :  { %509 = vst [vmem:[%s847_s3 + $0x50] sm:$0xff] %v477_v10  ;;  %525 = vst [vmem:[%s847_s3 + $0xd0] sm:$0xff] %v493_v11 }
 0x10b   :  { %510 = vst [vmem:[%s847_s3 + $0x58] sm:$0xff] %v478_v14  ;;  %526 = vst [vmem:[%s847_s3 + $0xd8] sm:$0xff] %v494_v15 }
 0x10d   :  { %v307_v16 = vpop.f32.mrb[12].mxu0  ;;  %v347_v17 = vpop.f32.mrb[12].mxu1 }
 0x10e   :  { %v479_v18 = vadd.f32 %v712_v30, %v307_v16  ;;  %v495_v19 = vadd.f32 %v712_v30, %v347_v17  ;;  %v309_v20 = vpop.f32.mrb[13].mxu0  ;;  %v349_v21 = vpop.f32.mrb[13].mxu1 }
 0x10f   :  { %v480_v22 = vadd.f32 %v714_v31, %v309_v20  ;;  %v496_v23 = vadd.f32 %v714_v31, %v349_v21  ;;  %v311_v24 = vpop.f32.mrb[14].mxu0  ;;  %v351_v25 = vpop.f32.mrb[14].mxu1 }
 0x110   :  { %511 = vst [vmem:[%s847_s3 + $0x60] sm:$0xff] %v479_v18  ;;  %527 = vst [vmem:[%s847_s3 + $0xe0] sm:$0xff] %v495_v19  ;;  %v481_v26 = vadd.f32 %v712_v30, %v311_v24  ;;  %v497_v27 = vadd.f32 %v712_v30, %v351_v25  ;;  %v313_v28 = vpop.f32.mrb[15].mxu0  ;;  %v353_v29 = vpop.f32.mrb[15].mxu1 }
 0x111   :  { %512 = vst [vmem:[%s847_s3 + $0x68] sm:$0xff] %v480_v22  ;;  %528 = vst [vmem:[%s847_s3 + $0xe8] sm:$0xff] %v496_v23  ;;  %v482_v32 = vadd.f32 %v714_v31, %v313_v28  ;;  %v498_v33 = vadd.f32 %v714_v31, %v353_v29 }
 0x112   :  { %513 = vst [vmem:[%s847_s3 + $0x70] sm:$0xff] %v481_v26  ;;  %529 = vst [vmem:[%s847_s3 + $0xf0] sm:$0xff] %v497_v27 }
 0x113   :  { %514 = vst [vmem:[%s847_s3 + $0x78] sm:$0xff] %v482_v32  ;;  %530 = vst [vmem:[%s847_s3 + $0xf8] sm:$0xff] %v498_v33 }

// kernel: lm_model_forward.2
= control target key start
LH: loop header
LB: loop body
LE: loop exit
PB: predicated region body
PF: predicated region fallthrough
CT: control target
= control target key end

     0   :  { %v11387_v1 = vmov 0   ;;  %s11380_s1 = inlined_call_operand.vmem [shape: bf16[128,512], index: 1, kind: input, shape index: {}]   ;;  %s11381_s0 = inlined_call_operand.vmem [shape: bf16[128,128], index: 0, kind: input, shape index: {}]   ;;  %s11382_s2 = inlined_call_operand.vmem [shape: bf16[128,512], index: 2, kind: input, shape index: {}]   ;;  %s11383_s3 = inlined_call_operand.vmem [shape: bf16[256,512], index: 3, kind: input, shape index: {}]   ;;  %s11384_s4 = inlined_call_operand.vmem [shape: f32[1,512], index: 4, kind: input, shape index: {}]   ;;  %s11385_s5 = inlined_call_operand.vmem [shape: f32[1,512], index: 5, kind: input, shape index: {}]   ;;  %s11386_s6 = inlined_call_operand.vmem [shape: bf16[16,8,128], index: 6, kind: output, shape index: {}]  }
   0x1   :  { %v5107_v0 = vld [vmem:[%s11380_s1 + $0x4] ss:$16 sps:$4 sm:$0xff]   ;;  %439 = vmatprep.mubr.bf16.mxu0 %v11387_v1  ;;  %552 = vmatprep.mubr.bf16.mxu1 %v11387_v1  ;;  %v5109_v2 = vld [vmem:[%s11380_s1 + $0xc] ss:$16 sps:$4 sm:$0xff]   ;;  %v5111_v3 = vld [vmem:[%s11380_s1] ss:$16 sps:$4 sm:$0xff]  }
   0x2   :  { %407 = vmatprep.subr.bf16.mxu0 %v5107_v0  ;;  %v5112_v4 = vld [vmem:[%s11380_s1 + $0x8] ss:$16 sps:$4 sm:$0xff]   ;;  %520 = vmatprep.subr.bf16.mxu1 %v5109_v2  ;;  %v5113_v5 = vld [vmem:[%s11380_s1 + $0x24] ss:$16 sps:$4 sm:$0xff]   ;;  %v5115_v6 = vld [vmem:[%s11380_s1 + $0x2c] ss:$16 sps:$4 sm:$0xff]  }
   0x3   :  { %408 = vmatpush1.bf16.msra.mxu0 %v5111_v3  ;;  %521 = vmatpush1.bf16.msra.mxu1 %v5112_v4  ;;  %v5117_v7 = vld [vmem:[%s11380_s1 + $0x20] ss:$16 sps:$4 sm:$0xff]   ;;  %v5118_v8 = vld [vmem:[%s11380_s1 + $0x28] ss:$16 sps:$4 sm:$0xff]   ;;  %v5119_v9 = vld [vmem:[%s11380_s1 + $0x44] ss:$16 sps:$4 sm:$0xff]  }
   0x4   :  { %409 = vmatprep.subr.bf16.mxu0 %v5113_v5  ;;  %522 = vmatprep.subr.bf16.mxu1 %v5115_v6  ;;  %v5121_v10 = vld [vmem:[%s11380_s1 + $0x4c] ss:$16 sps:$4 sm:$0xff]   ;;  %v5123_v11 = vld [vmem:[%s11380_s1 + $0x40] ss:$16 sps:$4 sm:$0xff]   ;;  %v5124_v12 = vld [vmem:[%s11380_s1 + $0x48] ss:$16 sps:$4 sm:$0xff]  }
   0x5   :  { %v5125_v13 = vld [vmem:[%s11380_s1 + $0x64] ss:$16 sps:$4 sm:$0xff]   ;;  %v5127_v14 = vld [vmem:[%s11380_s1 + $0x6c] ss:$16 sps:$4 sm:$0xff]   ;;  %v5129_v15 = vld [vmem:[%s11380_s1 + $0x60] ss:$16 sps:$4 sm:$0xff]  }
   0x6   :  { %v5130_v16 = vld [vmem:[%s11380_s1 + $0x68] ss:$16 sps:$4 sm:$0xff]   ;;  %v5131_v17 = vld [vmem:[%s11380_s1 + $0x84] ss:$16 sps:$4 sm:$0xff]   ;;  %v5133_v18 = vld [vmem:[%s11380_s1 + $0x8c] ss:$16 sps:$4 sm:$0xff]  }
   0x7   :  { %410 = vmatpush1.bf16.msra.mxu0 %v5117_v7  ;;  %523 = vmatpush1.bf16.msra.mxu1 %v5118_v8  ;;  %v5135_v19 = vld [vmem:[%s11380_s1 + $0x80] ss:$16 sps:$4 sm:$0xff]   ;;  %v5136_v20 = vld [vmem:[%s11380_s1 + $0x88] ss:$16 sps:$4 sm:$0xff]   ;;  %v5137_v21 = vld [vmem:[%s11380_s1 + $0xa4] ss:$16 sps:$4 sm:$0xff]  }
   0x8   :  { %411 = vmatprep.subr.bf16.mxu0 %v5119_v9  ;;  %524 = vmatprep.subr.bf16.mxu1 %v5121_v10  ;;  %v5139_v22 = vld [vmem:[%s11380_s1 + $0xac] ss:$16 sps:$4 sm:$0xff]   ;;  %v5141_v23 = vld [vmem:[%s11380_s1 + $0xa0] ss:$16 sps:$4 sm:$0xff]   ;;  %v5142_v24 = vld [vmem:[%s11380_s1 + $0xa8] ss:$16 sps:$4 sm:$0xff]  }
   0x9   :  { %v5143_v25 = vld [vmem:[%s11380_s1 + $0xc4] ss:$16 sps:$4 sm:$0xff]   ;;  %v5145_v26 = vld [vmem:[%s11380_s1 + $0xcc] ss:$16 sps:$4 sm:$0xff]   ;;  %v5147_v27 = vld [vmem:[%s11380_s1 + $0xc0] ss:$16 sps:$4 sm:$0xff]  }
   0xa   :  { %v5148_v28 = vld [vmem:[%s11380_s1 + $0xc8] ss:$16 sps:$4 sm:$0xff]   ;;  %v5149_v29 = vld [vmem:[%s11380_s1 + $0xe4] ss:$16 sps:$4 sm:$0xff]   ;;  %v5151_v30 = vld [vmem:[%s11380_s1 + $0xec] ss:$16 sps:$4 sm:$0xff]  }
   0xb   :  { %412 = vmatpush1.bf16.msra.mxu0 %v5123_v11  ;;  %525 = vmatpush1.bf16.msra.mxu1 %v5124_v12  ;;  %v5153_v31 = vld [vmem:[%s11380_s1 + $0xe0] ss:$16 sps:$4 sm:$0xff]   ;;  %v5154_v32 = vld [vmem:[%s11380_s1 + $0xe8] ss:$16 sps:$4 sm:$0xff]   ;;  %v6437_v33 = vld [vmem:[%s11382_s2 + $0x4] ss:$16 sps:$4 sm:$0xff]  }
   0xc   :  { %413 = vmatprep.subr.bf16.mxu0 %v5125_v13  ;;  %526 = vmatprep.subr.bf16.mxu1 %v5127_v14  ;;  %v6442_v34 = vld [vmem:[%s11382_s2 + $0xc] ss:$16 sps:$4 sm:$0xff]   ;;  %v5155_v35 = vld [vmem:[%s11381_s0] sm:$0xff]   ;;  %v6462_v38 = vld [vmem:[%s11382_s2 + $0x8] ss:$16 sps:$4 sm:$0xff]   ;;  %v6300_v10 = vmov 0.0|0.0  }
   0xd   :  { %v6450_v36 = vld [vmem:[%s11382_s2] ss:$16 sps:$4 sm:$0xff]   ;;  %v6456_v37 = vld [vmem:[%s11382_s2 + $0x24] ss:$16 sps:$4 sm:$0xff]   ;;  %v6467_v39 = vld [vmem:[%s11382_s2 + $0x2c] ss:$16 sps:$4 sm:$0xff]  }
   0xe   :  { %v6474_v40 = vld [vmem:[%s11382_s2 + $0x20] ss:$16 sps:$4 sm:$0xff]   ;;  %v6481_v41 = vld [vmem:[%s11382_s2 + $0x44] ss:$16 sps:$4 sm:$0xff]   ;;  %v6487_v42 = vld [vmem:[%s11382_s2 + $0x28] ss:$16 sps:$4 sm:$0xff]  }
   0xf   :  { %414 = vmatpush1.bf16.msra.mxu0 %v5129_v15  ;;  %527 = vmatpush1.bf16.msra.mxu1 %v5130_v16  ;;  %v5159_v43 = vld [vmem:[%s11381_s0 + $0x8] sm:$0xff]   ;;  %v6497_v44 = vld [vmem:[%s11382_s2 + $0x40] ss:$16 sps:$4 sm:$0xff]   ;;  %v6502_v45 = vld [vmem:[%s11382_s2 + $0x64] ss:$16 sps:$4 sm:$0xff]  }
  0x10   :  { %415 = vmatprep.subr.bf16.mxu0 %v5131_v17  ;;  %528 = vmatprep.subr.bf16.mxu1 %v5133_v18  ;;  %v6508_v46 = vld [vmem:[%s11382_s2 + $0x4c] ss:$16 sps:$4 sm:$0xff]   ;;  %v6514_v47 = vld [vmem:[%s11382_s2 + $0x48] ss:$16 sps:$4 sm:$0xff]   ;;  %v6527_v49 = vld [vmem:[%s11382_s2 + $0x60] ss:$16 sps:$4 sm:$0xff]  }
  0x11   :  { %v6519_v48 = vld [vmem:[%s11382_s2 + $0x6c] ss:$16 sps:$4 sm:$0xff]   ;;  %v6533_v50 = vld [vmem:[%s11382_s2 + $0x84] ss:$16 sps:$4 sm:$0xff]   ;;  %v6540_v51 = vld [vmem:[%s11382_s2 + $0x68] ss:$16 sps:$4 sm:$0xff]  }
  0x12   :  { %v5165_v52 = vld [vmem:[%s11381_s0 + $0x10] sm:$0xff]   ;;  %v6555_v54 = vld [vmem:[%s11382_s2 + $0x8c] ss:$16 sps:$4 sm:$0xff]   ;;  %v6567_v56 = vld [vmem:[%s11382_s2 + $0x88] ss:$16 sps:$4 sm:$0xff]  }
  0x13   :  { %416 = vmatpush1.bf16.msra.mxu0 %v5135_v19  ;;  %529 = vmatpush1.bf16.msra.mxu1 %v5136_v20  ;;  %v6549_v53 = vld [vmem:[%s11382_s2 + $0x80] ss:$16 sps:$4 sm:$0xff]   ;;  %v6561_v55 = vld [vmem:[%s11382_s2 + $0xa4] ss:$16 sps:$4 sm:$0xff]   ;;  %v6572_v57 = vld [vmem:[%s11382_s2 + $0xac] ss:$16 sps:$4 sm:$0xff]  }
  0x14   :  { %417 = vmatprep.subr.bf16.mxu0 %v5137_v21  ;;  %530 = vmatprep.subr.bf16.mxu1 %v5139_v22  ;;  %v6580_v58 = vld [vmem:[%s11382_s2 + $0xa0] ss:$16 sps:$4 sm:$0xff]   ;;  %v6587_v59 = vld [vmem:[%s11382_s2 + $0xc4] ss:$16 sps:$4 sm:$0xff]   ;;  %v6593_v60 = vld [vmem:[%s11382_s2 + $0xa8] ss:$16 sps:$4 sm:$0xff]  }
  0x15   :  { %v5172_v61 = vld [vmem:[%s11381_s0 + $0x18] sm:$0xff]   ;;  %v6603_v62 = vld [vmem:[%s11382_s2 + $0xc0] ss:$16 sps:$4 sm:$0xff]   ;;  %v6615_v0 = vld [vmem:[%s11382_s2 + $0xe4] ss:$16 sps:$4 sm:$0xff]  }
  0x16   :  { %v6608_v63 = vld [vmem:[%s11382_s2 + $0xcc] ss:$16 sps:$4 sm:$0xff]   ;;  %v6620_v2 = vld [vmem:[%s11382_s2 + $0xc8] ss:$16 sps:$4 sm:$0xff]   ;;  %v6634_v4 = vld [vmem:[%s11382_s2 + $0xe0] ss:$16 sps:$4 sm:$0xff]  }
  0x17   :  { %418 = vmatpush1.bf16.msra.mxu0 %v5141_v23  ;;  %531 = vmatpush1.bf16.msra.mxu1 %v5142_v24  ;;  %v6625_v3 = vld [vmem:[%s11382_s2 + $0xec] ss:$16 sps:$4 sm:$0xff]   ;;  %v6641_v5 = vld [vmem:[%s11382_s2 + $0xe8] ss:$16 sps:$4 sm:$0xff]   ;;  %v5179_v6 = vld [vmem:[%s11381_s0 + $0x20] sm:$0xff]  }
  0x18   :  { %419 = vmatprep.subr.bf16.mxu0 %v5143_v25  ;;  %532 = vmatprep.subr.bf16.mxu1 %v5145_v26  ;;  %v5186_v7 = vld [vmem:[%s11381_s0 + $0x28] sm:$0xff]   ;;  %v5193_v8 = vld [vmem:[%s11381_s0 + $0x30] sm:$0xff]   ;;  %v5201_v9 = vld [vmem:[%s11381_s0 + $0x38] sm:$0xff]  }
  0x19   :  { %v6669_v11 = vld [vmem:[%s11383_s3 + $0x4] ss:$16 sps:$4 sm:$0xff]   ;;  %v6674_v12 = vld [vmem:[%s11383_s3 + $0xc] ss:$16 sps:$4 sm:$0xff]   ;;  %v6680_v13 = vld [vmem:[%s11383_s3] ss:$16 sps:$4 sm:$0xff]  }
  0x1a   :  { %v6685_v14 = vld [vmem:[%s11383_s3 + $0x8] ss:$16 sps:$4 sm:$0xff]   ;;  %v6693_v15 = vld [vmem:[%s11383_s3 + $0x24] ss:$16 sps:$4 sm:$0xff]   ;;  %v6698_v16 = vld [vmem:[%s11383_s3 + $0x2c] ss:$16 sps:$4 sm:$0xff]  }
  0x1b   :  { %420 = vmatpush1.bf16.msra.mxu0 %v5147_v27  ;;  %533 = vmatpush1.bf16.msra.mxu1 %v5148_v28  ;;  %v6703_v17 = vld [vmem:[%s11383_s3 + $0x20] ss:$16 sps:$4 sm:$0xff]   ;;  %v6708_v18 = vld [vmem:[%s11383_s3 + $0x28] ss:$16 sps:$4 sm:$0xff]   ;;  %v6717_v19 = vld [vmem:[%s11383_s3 + $0x44] ss:$16 sps:$4 sm:$0xff]  }
  0x1c   :  { %421 = vmatprep.subr.bf16.mxu0 %v5149_v29  ;;  %534 = vmatprep.subr.bf16.mxu1 %v5151_v30  ;;  %v6722_v20 = vld [vmem:[%s11383_s3 + $0x4c] ss:$16 sps:$4 sm:$0xff]   ;;  %v6727_v21 = vld [vmem:[%s11383_s3 + $0x40] ss:$16 sps:$4 sm:$0xff]   ;;  %v6732_v22 = vld [vmem:[%s11383_s3 + $0x48] ss:$16 sps:$4 sm:$0xff]  }
  0x1d   :  { %12140 = vst [vmem:[#allocation7_spill] sm:$0xff] %v6732_v22  ;;  %v6741_v23 = vld [vmem:[%s11383_s3 + $0x64] ss:$16 sps:$4 sm:$0xff]   ;;  %v6746_v24 = vld [vmem:[%s11383_s3 + $0x6c] ss:$16 sps:$4 sm:$0xff]  }
  0x1e   :  { %12141 = vst [vmem:[#allocation8_spill] sm:$0xff] %v6741_v23  ;;  %12142 = vst [vmem:[#allocation9_spill] sm:$0xff] %v6746_v24  ;;  %v6751_v25 = vld [vmem:[%s11383_s3 + $0x60] ss:$16 sps:$4 sm:$0xff]   ;;  %v6756_v26 = vld [vmem:[%s11383_s3 + $0x68] ss:$16 sps:$4 sm:$0xff]  }
  0x1f   :  { %422 = vmatpush1.bf16.msra.mxu0 %v5153_v31  ;;  %535 = vmatpush1.bf16.msra.mxu1 %v5154_v32  ;;  %12143 = vst [vmem:[#allocation10_spill] sm:$0xff] %v6751_v25  ;;  %12144 = vst [vmem:[#allocation11_spill] sm:$0xff] %v6756_v26  ;;  %v6765_v27 = vld [vmem:[%s11383_s3 + $0x84] ss:$16 sps:$4 sm:$0xff]   ;;  %v6770_v28 = vld [vmem:[%s11383_s3 + $0x8c] ss:$16 sps:$4 sm:$0xff]  }
  0x20   :  { %869 = vmatprep.subr.bf16.mxu0 %v6437_v33  ;;  %910 = vmatprep.subr.bf16.mxu1 %v6442_v34  ;;  %12145 = vst [vmem:[#allocation12_spill] sm:$0xff] %v6765_v27  ;;  %12146 = vst [vmem:[#allocation13_spill] sm:$0xff] %v6770_v28  ;;  %v6777_v29 = vld [vmem:[%s11383_s3 + $0x80] ss:$16 sps:$4 sm:$0xff]   ;;  %v6782_v30 = vld [vmem:[%s11383_s3 + $0x88] ss:$16 sps:$4 sm:$0xff]  }
  0x21   :  { %12147 = vst [vmem:[#allocation14_spill] sm:$0xff] %v6777_v29  ;;  %12148 = vst [vmem:[#allocation15_spill] sm:$0xff] %v6782_v30  ;;  %v6789_v31 = vld [vmem:[%s11383_s3 + $0xa4] ss:$16 sps:$4 sm:$0xff]   ;;  %v6794_v32 = vld [vmem:[%s11383_s3 + $0xac] ss:$16 sps:$4 sm:$0xff]  }
  0x22   :  { %440 = vmatmul.mubr.bf16.vlgmr.msra.gmra.mrb[0].mxu0 %v5155_v35  ;;  %553 = vmatmul.mubr.bf16.vlgmr.msra.gmra.mrb[0].mxu1 %v5155_v35  ;;  %12149 = vst [vmem:[#allocation16_spill] sm:$0xff] %v6789_v31  ;;  %12150 = vst [vmem:[#allocation17_spill] sm:$0xff] %v6794_v32  ;;  %v6799_v35 = vld [vmem:[%s11383_s3 + $0xa0] ss:$16 sps:$4 sm:$0xff]  }
  0x23   :  { %870 = vmatpush1.bf16.msra.mxu0 %v6450_v36  ;;  %449 = vmatprep.mubr.bf16.mxu0 %v11387_v1  ;;  %12151 = vst [vmem:[#allocation18_spill] sm:$0xff] %v6799_v35 }
  0x24   :  { %562 = vmatprep.mubr.bf16.mxu1 %v11387_v1  ;;  %871 = vmatprep.subr.bf16.mxu0 %v6456_v37 }
  0x25   :  { %911 = vmatpush1.bf16.msra.mxu1 %v6462_v38 }
  0x26   :  { %912 = vmatprep.subr.bf16.mxu1 %v6467_v39 }
  0x27   :  { %872 = vmatpush1.bf16.msra.mxu0 %v6474_v40 }
  0x28   :  { %873 = vmatprep.subr.bf16.mxu0 %v6481_v41 }
  0x29   :  { %913 = vmatpush1.bf16.msra.mxu1 %v6487_v42 }
  0x2a   :  { %450 = vmatmul.mubr.bf16.gmra.mrb[4].mxu0 %v5159_v43  ;;  %563 = vmatmul.mubr.bf16.gmra.mrb[4].mxu1 %v5159_v43  ;;  %v6804_v43 = vld [vmem:[%s11383_s3 + $0xa8] ss:$16 sps:$4 sm:$0xff]  }
  0x2b   :  { %459 = vmatprep.mubr.bf16.mxu0 %v11387_v1  ;;  %572 = vmatprep.mubr.bf16.mxu1 %v11387_v1  ;;  %12152 = vst [vmem:[#allocation19_spill] sm:$0xff] %v6804_v43 }
  0x2c   :  { %874 = vmatpush1.bf16.msra.mxu0 %v6497_v44  ;;  %914 = vmatprep.subr.bf16.mxu1 %v6508_v46 }
  0x2d   :  { %875 = vmatprep.subr.bf16.mxu0 %v6502_v45  ;;  %915 = vmatpush1.bf16.msra.mxu1 %v6514_v47 }
  0x2e   :  { %916 = vmatprep.subr.bf16.mxu1 %v6519_v48 }
  0x30   :  { %876 = vmatpush1.bf16.msra.mxu0 %v6527_v49 }
  0x31   :  { %877 = vmatprep.subr.bf16.mxu0 %v6533_v50  ;;  %917 = vmatpush1.bf16.msra.mxu1 %v6540_v51 }
  0x32   :  { %460 = vmatmul.mubr.bf16.gmra.mrb[8].mxu0 %v5165_v52  ;;  %573 = vmatmul.mubr.bf16.gmra.mrb[8].mxu1 %v5165_v52  ;;  %v6813_v52 = vld [vmem:[%s11383_s3 + $0xc4] ss:$16 sps:$4 sm:$0xff]  }
  0x33   :  { %469 = vmatprep.mubr.bf16.mxu0 %v11387_v1  ;;  %582 = vmatprep.mubr.bf16.mxu1 %v11387_v1  ;;  %12153 = vst [vmem:[#allocation20_spill] sm:$0xff] %v6813_v52 }
  0x34   :  { %878 = vmatpush1.bf16.msra.mxu0 %v6549_v53  ;;  %918 = vmatprep.subr.bf16.mxu1 %v6555_v54 }
  0x35   :  { %879 = vmatprep.subr.bf16.mxu0 %v6561_v55  ;;  %919 = vmatpush1.bf16.msra.mxu1 %v6567_v56 }
  0x36   :  { %920 = vmatprep.subr.bf16.mxu1 %v6572_v57 }
  0x38   :  { %880 = vmatpush1.bf16.msra.mxu0 %v6580_v58 }
  0x39   :  { %881 = vmatprep.subr.bf16.mxu0 %v6587_v59  ;;  %921 = vmatpush1.bf16.msra.mxu1 %v6593_v60 }
  0x3a   :  { %470 = vmatmul.mubr.bf16.gmra.mrb[12].mxu0 %v5172_v61  ;;  %583 = vmatmul.mubr.bf16.gmra.mrb[12].mxu1 %v5172_v61  ;;  %v6818_v61 = vld [vmem:[%s11383_s3 + $0xcc] ss:$16 sps:$4 sm:$0xff]  }
  0x3b   :  { %479 = vmatprep.mubr.bf16.mxu0 %v11387_v1  ;;  %592 = vmatprep.mubr.bf16.mxu1 %v11387_v1  ;;  %12154 = vst [vmem:[#allocation21_spill] sm:$0xff] %v6818_v61 }
  0x3c   :  { %882 = vmatpush1.bf16.msra.mxu0 %v6603_v62  ;;  %922 = vmatprep.subr.bf16.mxu1 %v6608_v63 }
  0x3d   :  { %883 = vmatprep.subr.bf16.mxu0 %v6615_v0  ;;  %923 = vmatpush1.bf16.msra.mxu1 %v6620_v2 }
  0x3e   :  { %924 = vmatprep.subr.bf16.mxu1 %v6625_v3 }
  0x40   :  { %884 = vmatpush1.bf16.msra.mxu0 %v6634_v4 }
  0x41   :  { %925 = vmatpush1.bf16.msra.mxu1 %v6641_v5  ;;  %1322 = vmatprep.subr.bf16.mxu0 %v6669_v11 }
  0x42   :  { %480 = vmatmul.mubr.bf16.gmra.mrb[16].mxu0 %v5179_v6  ;;  %593 = vmatmul.mubr.bf16.gmra.mrb[16].mxu1 %v5179_v6  ;;  %v6823_v6 = vld [vmem:[%s11383_s3 + $0xc0] ss:$16 sps:$4 sm:$0xff]  }
  0x43   :  { %489 = vmatprep.mubr.bf16.mxu0 %v11387_v1  ;;  %602 = vmatprep.mubr.bf16.mxu1 %v11387_v1  ;;  %12155 = vst [vmem:[#allocation22_spill] sm:$0xff] %v6823_v6 }
  0x44   :  { %1363 = vmatprep.subr.bf16.mxu1 %v6674_v12 }
  0x4a   :  { %490 = vmatmul.mubr.bf16.gmra.mrb[20].mxu0 %v5186_v7  ;;  %603 = vmatmul.mubr.bf16.gmra.mrb[20].mxu1 %v5186_v7  ;;  %v6828_v7 = vld [vmem:[%s11383_s3 + $0xc8] ss:$16 sps:$4 sm:$0xff]  }
  0x4b   :  { %499 = vmatprep.mubr.bf16.mxu0 %v11387_v1  ;;  %612 = vmatprep.mubr.bf16.mxu1 %v11387_v1  ;;  %12156 = vst [vmem:[#allocation23_spill] sm:$0xff] %v6828_v7 }
  0x52   :  { %500 = vmatmul.mubr.bf16.gmra.mrb[24].mxu0 %v5193_v8  ;;  %613 = vmatmul.mubr.bf16.gmra.mrb[24].mxu1 %v5193_v8  ;;  %v6837_v8 = vld [vmem:[%s11383_s3 + $0xe4] ss:$16 sps:$4 sm:$0xff]  }
  0x53   :  { %509 = vmatprep.mubr.bf16.mxu0 %v11387_v1  ;;  %622 = vmatprep.mubr.bf16.mxu1 %v11387_v1  ;;  %12157 = vst [vmem:[#allocation24_spill] sm:$0xff] %v6837_v8 }
  0x5a   :  { %510 = vmatmul.mubr.bf16.gmra.mrb[28].mxu0 %v5201_v9  ;;  %623 = vmatmul.mubr.bf16.gmra.mrb[28].mxu1 %v5201_v9  ;;  %v6842_v9 = vld [vmem:[%s11383_s3 + $0xec] ss:$16 sps:$4 sm:$0xff]  }
  0x5b   :  { %901 = vmatprep.mubr.bf16.mxu0 %v11387_v1  ;;  %942 = vmatprep.mubr.bf16.mxu1 %v11387_v1  ;;  %12158 = vst [vmem:[#allocation25_spill] sm:$0xff] %v6842_v9  ;;  %v6852_v1 = vld [vmem:[%s11383_s3 + $0xe8] ss:$16 sps:$4 sm:$0xff]  }
  0x5c   :  { %12160 = vst [vmem:[#allocation27_spill] sm:$0xff] %v6852_v1 }
  0x62   :  { %902 = vmatmul.mubr.bf16.vlgmr.msra.gmra.mrb[32].mxu0 %v6300_v10  ;;  %943 = vmatmul.mubr.bf16.vlgmr.msra.gmra.mrb[32].mxu1 %v6300_v10 }
  0x63   :  { %1354 = vmatprep.mubr.bf16.mxu0 %v6300_v10  ;;  %1395 = vmatprep.mubr.bf16.mxu1 %v6300_v10  ;;  %v6847_v10 = vld [vmem:[%s11383_s3 + $0xe0] ss:$16 sps:$4 sm:$0xff]  }
  0x64   :  { %1323 = vmatpush1.bf16.msra.mxu0 %v6680_v13  ;;  %1364 = vmatpush1.bf16.msra.mxu1 %v6685_v14  ;;  %12159 = vst [vmem:[#allocation26_spill] sm:$0xff] %v6847_v10 }
  0x65   :  { %1324 = vmatprep.subr.bf16.mxu0 %v6693_v15  ;;  %1365 = vmatprep.subr.bf16.mxu1 %v6698_v16 }
  0x68   :  { %1325 = vmatpush1.bf16.msra.mxu0 %v6703_v17  ;;  %1366 = vmatpush1.bf16.msra.mxu1 %v6708_v18 }
  0x69   :  { %1326 = vmatprep.subr.bf16.mxu0 %v6717_v19  ;;  %1367 = vmatprep.subr.bf16.mxu1 %v6722_v20 }
  0x6c   :  { %1327 = vmatpush1.bf16.msra.mxu0 %v6727_v21  ;;  %1368 = vmatpush1.bf16.msra.mxu1 %v6732_v22 }
  0x6d   :  { %1328 = vmatprep.subr.bf16.mxu0 %v6741_v23  ;;  %1369 = vmatprep.subr.bf16.mxu1 %v6746_v24 }
  0x70   :  { %1329 = vmatpush1.bf16.msra.mxu0 %v6751_v25  ;;  %1370 = vmatpush1.bf16.msra.mxu1 %v6756_v26 }
  0x71   :  { %1330 = vmatprep.subr.bf16.mxu0 %v6765_v27  ;;  %1371 = vmatprep.subr.bf16.mxu1 %v6770_v28 }
  0x74   :  { %1331 = vmatpush1.bf16.msra.mxu0 %v6777_v29  ;;  %1372 = vmatpush1.bf16.msra.mxu1 %v6782_v30 }
  0x75   :  { %1332 = vmatprep.subr.bf16.mxu0 %v6789_v31  ;;  %1373 = vmatprep.subr.bf16.mxu1 %v6794_v32 }
  0x78   :  { %1333 = vmatpush1.bf16.msra.mxu0 %v6799_v35  ;;  %1374 = vmatpush1.bf16.msra.mxu1 %v6804_v43 }
  0x79   :  { %1334 = vmatprep.subr.bf16.mxu0 %v6813_v52  ;;  %1375 = vmatprep.subr.bf16.mxu1 %v6818_v61  ;;  %v7015_v61 = vld [vmem:[%s11383_s3 + $0x1c0] ss:$16 sps:$4 sm:$0xff]   ;;  %v7020_v52 = vld [vmem:[%s11383_s3 + $0x1c8] ss:$16 sps:$4 sm:$0xff]  }
  0x7a   :  { %12187 = vst [vmem:[#allocation54_spill] sm:$0xff] %v7015_v61  ;;  %12188 = vst [vmem:[#allocation55_spill] sm:$0xff] %v7020_v52 }
  0x7c   :  { %1335 = vmatpush1.bf16.msra.mxu0 %v6823_v6  ;;  %1376 = vmatpush1.bf16.msra.mxu1 %v6828_v7  ;;  %v6861_v7 = vld [vmem:[%s11383_s3 + $0x104] ss:$16 sps:$4 sm:$0xff]   ;;  %v6866_v6 = vld [vmem:[%s11383_s3 + $0x10c] ss:$16 sps:$4 sm:$0xff]  }
  0x7d   :  { %1336 = vmatprep.subr.bf16.mxu0 %v6837_v8  ;;  %1377 = vmatprep.subr.bf16.mxu1 %v6842_v9  ;;  %12161 = vst [vmem:[#allocation28_spill] sm:$0xff] %v6861_v7  ;;  %12162 = vst [vmem:[#allocation29_spill] sm:$0xff] %v6866_v6  ;;  %v6871_v8 = vld [vmem:[%s11383_s3 + $0x100] ss:$16 sps:$4 sm:$0xff]   ;;  %v6890_v9 = vld [vmem:[%s11383_s3 + $0x12c] ss:$16 sps:$4 sm:$0xff]  }
  0x7e   :  { %12163 = vst [vmem:[#allocation30_spill] sm:$0xff] %v6871_v8  ;;  %12166 = vst [vmem:[#allocation33_spill] sm:$0xff] %v6890_v9 }
  0x80   :  { %1337 = vmatpush1.bf16.msra.mxu0 %v6847_v10  ;;  %1378 = vmatpush1.bf16.msra.mxu1 %v6852_v1  ;;  %v6876_v10 = vld [vmem:[%s11383_s3 + $0x108] ss:$16 sps:$4 sm:$0xff]   ;;  %v6885_v1 = vld [vmem:[%s11383_s3 + $0x124] ss:$16 sps:$4 sm:$0xff]  }
  0x81   :  { %12164 = vst [vmem:[#allocation31_spill] sm:$0xff] %v6876_v10  ;;  %1338 = vmatprep.subr.bf16.mxu0 %v6861_v7  ;;  %1379 = vmatprep.subr.bf16.mxu1 %v6866_v6  ;;  %12165 = vst [vmem:[#allocation32_spill] sm:$0xff] %v6885_v1  ;;  %v6895_v7 = vld [vmem:[%s11383_s3 + $0x120] ss:$16 sps:$4 sm:$0xff]   ;;  %v6914_v6 = vld [vmem:[%s11383_s3 + $0x14c] ss:$16 sps:$4 sm:$0xff]  }
  0x82   :  { %12167 = vst [vmem:[#allocation34_spill] sm:$0xff] %v6895_v7  ;;  %12170 = vst [vmem:[#allocation37_spill] sm:$0xff] %v6914_v6 }
  0x84   :  { %1339 = vmatpush1.bf16.msra.mxu0 %v6871_v8  ;;  %1380 = vmatpush1.bf16.msra.mxu1 %v6876_v10  ;;  %v6900_v8 = vld [vmem:[%s11383_s3 + $0x128] ss:$16 sps:$4 sm:$0xff]   ;;  %v6909_v10 = vld [vmem:[%s11383_s3 + $0x144] ss:$16 sps:$4 sm:$0xff]  }
  0x85   :  { %12168 = vst [vmem:[#allocation35_spill] sm:$0xff] %v6900_v8  ;;  %1340 = vmatprep.subr.bf16.mxu0 %v6885_v1  ;;  %1381 = vmatprep.subr.bf16.mxu1 %v6890_v9  ;;  %12169 = vst [vmem:[#allocation36_spill] sm:$0xff] %v6909_v10  ;;  %v6919_v1 = vld [vmem:[%s11383_s3 + $0x140] ss:$16 sps:$4 sm:$0xff]   ;;  %v6938_v9 = vld [vmem:[%s11383_s3 + $0x16c] ss:$16 sps:$4 sm:$0xff]  }
  0x86   :  { %12171 = vst [vmem:[#allocation38_spill] sm:$0xff] %v6919_v1  ;;  %12174 = vst [vmem:[#allocation41_spill] sm:$0xff] %v6938_v9 }
  0x88   :  { %1341 = vmatpush1.bf16.msra.mxu0 %v6895_v7  ;;  %1382 = vmatpush1.bf16.msra.mxu1 %v6900_v8  ;;  %v6924_v7 = vld [vmem:[%s11383_s3 + $0x148] ss:$16 sps:$4 sm:$0xff]   ;;  %v6933_v8 = vld [vmem:[%s11383_s3 + $0x164] ss:$16 sps:$4 sm:$0xff]  }
  0x89   :  { %12172 = vst [vmem:[#allocation39_spill] sm:$0xff] %v6924_v7  ;;  %1342 = vmatprep.subr.bf16.mxu0 %v6909_v10  ;;  %1383 = vmatprep.subr.bf16.mxu1 %v6914_v6  ;;  %12173 = vst [vmem:[#allocation40_spill] sm:$0xff] %v6933_v8  ;;  %v6943_v10 = vld [vmem:[%s11383_s3 + $0x160] ss:$16 sps:$4 sm:$0xff]   ;;  %v6962_v6 = vld [vmem:[%s11383_s3 + $0x18c] ss:$16 sps:$4 sm:$0xff]  }
  0x8a   :  { %12175 = vst [vmem:[#allocation42_spill] sm:$0xff] %v6943_v10  ;;  %12178 = vst [vmem:[#allocation45_spill] sm:$0xff] %v6962_v6 }
  0x8c   :  { %1343 = vmatpush1.bf16.msra.mxu0 %v6919_v1  ;;  %1384 = vmatpush1.bf16.msra.mxu1 %v6924_v7  ;;  %v6948_v1 = vld [vmem:[%s11383_s3 + $0x168] ss:$16 sps:$4 sm:$0xff]   ;;  %v6957_v7 = vld [vmem:[%s11383_s3 + $0x184] ss:$16 sps:$4 sm:$0xff]  }
  0x8d   :  { %12176 = vst [vmem:[#allocation43_spill] sm:$0xff] %v6948_v1  ;;  %1344 = vmatprep.subr.bf16.mxu0 %v6933_v8  ;;  %1385 = vmatprep.subr.bf16.mxu1 %v6938_v9  ;;  %12177 = vst [vmem:[#allocation44_spill] sm:$0xff] %v6957_v7  ;;  %v6967_v8 = vld [vmem:[%s11383_s3 + $0x180] ss:$16 sps:$4 sm:$0xff]   ;;  %v6986_v9 = vld [vmem:[%s11383_s3 + $0x1ac] ss:$16 sps:$4 sm:$0xff]  }
  0x8e   :  { %12179 = vst [vmem:[#allocation46_spill] sm:$0xff] %v6967_v8  ;;  %12182 = vst [vmem:[#allocation49_spill] sm:$0xff] %v6986_v9 }
  0x90   :  { %1345 = vmatpush1.bf16.msra.mxu0 %v6943_v10  ;;  %1386 = vmatpush1.bf16.msra.mxu1 %v6948_v1  ;;  %v6972_v10 = vld [vmem:[%s11383_s3 + $0x188] ss:$16 sps:$4 sm:$0xff]   ;;  %v6981_v1 = vld [vmem:[%s11383_s3 + $0x1a4] ss:$16 sps:$4 sm:$0xff]  }
  0x91   :  { %12180 = vst [vmem:[#allocation47_spill] sm:$0xff] %v6972_v10  ;;  %1346 = vmatprep.subr.bf16.mxu0 %v6957_v7  ;;  %1387 = vmatprep.subr.bf16.mxu1 %v6962_v6  ;;  %12181 = vst [vmem:[#allocation48_spill] sm:$0xff] %v6981_v1  ;;  %v6991_v7 = vld [vmem:[%s11383_s3 + $0x1a0] ss:$16 sps:$4 sm:$0xff]   ;;  %v7006_v6 = vld [vmem:[%s11383_s3 + $0x1cc] ss:$16 sps:$4 sm:$0xff]  }
  0x92   :  { %12183 = vst [vmem:[#allocation50_spill] sm:$0xff] %v6991_v7  ;;  %12186 = vst [vmem:[#allocation53_spill] sm:$0xff] %v7006_v6 }
  0x94   :  { %1347 = vmatpush1.bf16.msra.mxu0 %v6967_v8  ;;  %1388 = vmatpush1.bf16.msra.mxu1 %v6972_v10  ;;  %v6996_v8 = vld [vmem:[%s11383_s3 + $0x1a8] ss:$16 sps:$4 sm:$0xff]   ;;  %v7001_v10 = vld [vmem:[%s11383_s3 + $0x1c4] ss:$16 sps:$4 sm:$0xff]  }
  0x95   :  { %12184 = vst [vmem:[#allocation51_spill] sm:$0xff] %v6996_v8  ;;  %12185 = vst [vmem:[#allocation52_spill] sm:$0xff] %v7001_v10  ;;  %1348 = vmatprep.subr.bf16.mxu0 %v6981_v1  ;;  %1389 = vmatprep.subr.bf16.mxu1 %v6986_v9 }
  0x98   :  { %1349 = vmatpush1.bf16.msra.mxu0 %v6991_v7  ;;  %1390 = vmatpush1.bf16.msra.mxu1 %v6996_v8  ;;  %v7027_v7 = vld [vmem:[%s11383_s3 + $0x1e4] ss:$16 sps:$4 sm:$0xff]   ;;  %v7032_v8 = vld [vmem:[%s11383_s3 + $0x1ec] ss:$16 sps:$4 sm:$0xff]  }
  0x99   :  { %1350 = vmatprep.subr.bf16.mxu0 %v7001_v10  ;;  %1391 = vmatprep.subr.bf16.mxu1 %v7006_v6  ;;  %12189 = vst [vmem:[#allocation56_spill] sm:$0xff] %v7027_v7  ;;  %12190 = vst [vmem:[#allocation57_spill] sm:$0xff] %v7032_v8  ;;  %v7039_v10 = vld [vmem:[%s11383_s3 + $0x1e0] ss:$16 sps:$4 sm:$0xff]   ;;  %v7044_v6 = vld [vmem:[%s11383_s3 + $0x1e8] ss:$16 sps:$4 sm:$0xff]  }
  0x9a   :  { %12191 = vst [vmem:[#allocation58_spill] sm:$0xff] %v7039_v10  ;;  %12192 = vst [vmem:[#allocation59_spill] sm:$0xff] %v7044_v6 }
  0x9c   :  { %1351 = vmatpush1.bf16.msra.mxu0 %v7015_v61  ;;  %1392 = vmatpush1.bf16.msra.mxu1 %v7020_v52  ;;  %v179_v52 = vlaneseq }
  0x9d   :  { %1352 = vmatprep.subr.bf16.mxu0 %v7027_v7  ;;  %1393 = vmatprep.subr.bf16.mxu1 %v7032_v8  ;;  %v177_v8 = vld [vmem:[%s11384_s4] sm:$0xf] }
  0x9e   :  { %v7052_v61 = vshrl.u32 %v179_v52, 7 }
  0xa0   :  { %1353 = vmatpush1.bf16.msra.mxu0 %v7039_v10  ;;  %1394 = vmatpush1.bf16.msra.mxu1 %v7044_v6  ;;  %12193 = vst [vmem:[#allocation60_spill] sm:$0xff] %v7052_v61  ;;  %v11466_v9 = vsub.s32 2, %v7052_v61  ;;  %v11471_v1 = vsub.s32 3, %v7052_v61  ;;  %v11473_v43 = vsub.s32 0, %v7052_v61  ;;  %v11478_v10 = vsub.s32 1, %v7052_v61 }
  0xa1   :  { %1437 = vmatprep.subr.bf16.mxu0 %v6437_v33  ;;  %1478 = vmatprep.subr.bf16.mxu1 %v6442_v34 }
  0xa2   :  { %v7063_v33 = vrot.slane %v177_v8, %v11466_v9  ;;  %v7071_v6 = vrot.slane %v177_v8, %v11471_v1  ;;  %v7075_v7 = vrot.slane %v177_v8, %v11473_v43  ;;  %v7083_v9 = vrot.slane %v177_v8, %v11478_v10 }
  0xf5   :  { %v7065_v34 = vpop.f32.mrb[0].mxu0  ;;  %v7067_v52 = vpop.f32.mrb[0].mxu1 }
  0xf6   :  { %v7077_v35 = vpop.f32.mrb[1].mxu0  ;;  %v7079_v32 = vpop.f32.mrb[1].mxu1 }
  0xf7   :  { %v445_v31 = vpop.f32.mrb[2].mxu0  ;;  %v558_v30 = vpop.f32.mrb[2].mxu1 }
  0xf8   :  { %v7086_v29 = vadd.f32 %v445_v31, %v7075_v7  ;;  %v447_v28 = vpop.f32.mrb[3].mxu0  ;;  %v7089_v1 = vadd.f32 %v558_v30, %v7063_v33  ;;  %v560_v27 = vpop.f32.mrb[3].mxu1 }
  0xf9   :  { %v7092_v43 = vadd.f32 %v447_v28, %v7083_v9  ;;  %v7095_v26 = vadd.f32 %v560_v27, %v7071_v6 }
  0xfa   :  { %12194 = vst [vmem:[#allocation61_spill] sm:$0xff] %v7086_v29  ;;  %12195 = vst [vmem:[#allocation62_spill] sm:$0xff] %v7089_v1 }
  0xfb   :  { %12196 = vst [vmem:[#allocation63_spill] sm:$0xff] %v7092_v43  ;;  %12197 = vst [vmem:[#allocation64_spill] sm:$0xff] %v7095_v26 }
  0xfd   :  { %v451_v25 = vpop.f32.mrb[4].mxu0  ;;  %v564_v61 = vpop.f32.mrb[4].mxu1 }
  0xfe   :  { %v7098_v8 = vadd.f32 %v451_v25, %v7075_v7  ;;  %v453_v10 = vpop.f32.mrb[5].mxu0  ;;  %v7101_v31 = vadd.f32 %v564_v61, %v7063_v33  ;;  %v566_v29 = vpop.f32.mrb[5].mxu1 }
  0xff   :  { %v7104_v30 = vadd.f32 %v453_v10, %v7083_v9  ;;  %v455_v1 = vpop.f32.mrb[6].mxu0  ;;  %v7107_v28 = vadd.f32 %v566_v29, %v7071_v6  ;;  %v568_v43 = vpop.f32.mrb[6].mxu1 }
 0x100   :  { %12198 = vst [vmem:[#allocation65_spill] sm:$0xff] %v7098_v8  ;;  %12199 = vst [vmem:[#allocation66_spill] sm:$0xff] %v7101_v31  ;;  %v7110_v27 = vadd.f32 %v455_v1, %v7075_v7  ;;  %v457_v26 = vpop.f32.mrb[7].mxu0  ;;  %v7113_v25 = vadd.f32 %v568_v43, %v7063_v33  ;;  %v570_v8 = vpop.f32.mrb[7].mxu1 }
 0x101   :  { %12200 = vst [vmem:[#allocation67_spill] sm:$0xff] %v7104_v30  ;;  %12201 = vst [vmem:[#allocation68_spill] sm:$0xff] %v7107_v28  ;;  %v7116_v61 = vadd.f32 %v457_v26, %v7083_v9  ;;  %v7119_v31 = vadd.f32 %v570_v8, %v7071_v6 }
 0x102   :  { %12202 = vst [vmem:[#allocation69_spill] sm:$0xff] %v7110_v27  ;;  %12203 = vst [vmem:[#allocation70_spill] sm:$0xff] %v7113_v25 }
 0x103   :  { %12204 = vst [vmem:[#allocation71_spill] sm:$0xff] %v7116_v61  ;;  %12205 = vst [vmem:[#allocation72_spill] sm:$0xff] %v7119_v31 }
 0x105   :  { %v461_v10 = vpop.f32.mrb[8].mxu0  ;;  %v574_v30 = vpop.f32.mrb[8].mxu1 }
 0x106   :  { %v7122_v29 = vadd.f32 %v461_v10, %v7075_v7  ;;  %v463_v28 = vpop.f32.mrb[9].mxu0  ;;  %v7125_v1 = vadd.f32 %v574_v30, %v7063_v33  ;;  %v576_v27 = vpop.f32.mrb[9].mxu1 }
 0x107   :  { %v7128_v43 = vadd.f32 %v463_v28, %v7083_v9  ;;  %v465_v25 = vpop.f32.mrb[10].mxu0  ;;  %v7131_v26 = vadd.f32 %v576_v27, %v7071_v6  ;;  %v578_v61 = vpop.f32.mrb[10].mxu1 }
 0x108   :  { %12206 = vst [vmem:[#allocation73_spill] sm:$0xff] %v7122_v29  ;;  %12207 = vst [vmem:[#allocation74_spill] sm:$0xff] %v7125_v1  ;;  %v7134_v8 = vadd.f32 %v465_v25, %v7075_v7  ;;  %v467_v31 = vpop.f32.mrb[11].mxu0  ;;  %v7137_v10 = vadd.f32 %v578_v61, %v7063_v33  ;;  %v580_v29 = vpop.f32.mrb[11].mxu1 }
 0x109   :  { %12208 = vst [vmem:[#allocation75_spill] sm:$0xff] %v7128_v43  ;;  %12209 = vst [vmem:[#allocation76_spill] sm:$0xff] %v7131_v26  ;;  %v7140_v30 = vadd.f32 %v467_v31, %v7083_v9  ;;  %v7143_v1 = vadd.f32 %v580_v29, %v7071_v6 }
 0x10a   :  { %12210 = vst [vmem:[#allocation77_spill] sm:$0xff] %v7134_v8  ;;  %12211 = vst [vmem:[#allocation78_spill] sm:$0xff] %v7137_v10 }
 0x10b   :  { %12212 = vst [vmem:[#allocation79_spill] sm:$0xff] %v7140_v30  ;;  %12213 = vst [vmem:[#allocation80_spill] sm:$0xff] %v7143_v1 }
 0x10d   :  { %v471_v28 = vpop.f32.mrb[12].mxu0  ;;  %v584_v43 = vpop.f32.mrb[12].mxu1 }
 0x10e   :  { %v7146_v27 = vadd.f32 %v471_v28, %v7075_v7  ;;  %v473_v26 = vpop.f32.mrb[13].mxu0  ;;  %v7149_v25 = vadd.f32 %v584_v43, %v7063_v33  ;;  %v586_v8 = vpop.f32.mrb[13].mxu1 }
 0x10f   :  { %v7152_v61 = vadd.f32 %v473_v26, %v7083_v9  ;;  %v475_v10 = vpop.f32.mrb[14].mxu0  ;;  %v7155_v31 = vadd.f32 %v586_v8, %v7071_v6  ;;  %v588_v30 = vpop.f32.mrb[14].mxu1 }
 0x110   :  { %12214 = vst [vmem:[#allocation81_spill] sm:$0xff] %v7146_v27  ;;  %12215 = vst [vmem:[#allocation82_spill] sm:$0xff] %v7149_v25  ;;  %v7158_v29 = vadd.f32 %v475_v10, %v7075_v7  ;;  %v477_v1 = vpop.f32.mrb[15].mxu0  ;;  %v7161_v28 = vadd.f32 %v588_v30, %v7063_v33  ;;  %v590_v27 = vpop.f32.mrb[15].mxu1 }
 0x111   :  { %12216 = vst [vmem:[#allocation83_spill] sm:$0xff] %v7152_v61  ;;  %12217 = vst [vmem:[#allocation84_spill] sm:$0xff] %v7155_v31  ;;  %v7164_v43 = vadd.f32 %v477_v1, %v7083_v9  ;;  %v7167_v25 = vadd.f32 %v590_v27, %v7071_v6 }
 0x112   :  { %12218 = vst [vmem:[#allocation85_spill] sm:$0xff] %v7158_v29  ;;  %12219 = vst [vmem:[#allocation86_spill] sm:$0xff] %v7161_v28 }
 0x113   :  { %12220 = vst [vmem:[#allocation87_spill] sm:$0xff] %v7164_v43  ;;  %12221 = vst [vmem:[#allocation88_spill] sm:$0xff] %v7167_v25 }
 0x115   :  { %v481_v26 = vpop.f32.mrb[16].mxu0  ;;  %v594_v61 = vpop.f32.mrb[16].mxu1 }
 0x116   :  { %v7170_v8 = vadd.f32 %v481_v26, %v7075_v7  ;;  %v483_v31 = vpop.f32.mrb[17].mxu0  ;;  %v7173_v10 = vadd.f32 %v594_v61, %v7063_v33  ;;  %v596_v29 = vpop.f32.mrb[17].mxu1 }
 0x117   :  { %v7176_v30 = vadd.f32 %v483_v31, %v7083_v9  ;;  %v485_v28 = vpop.f32.mrb[18].mxu0  ;;  %v7179_v1 = vadd.f32 %v596_v29, %v7071_v6  ;;  %v598_v43 = vpop.f32.mrb[18].mxu1 }
 0x118   :  { %12222 = vst [vmem:[#allocation89_spill] sm:$0xff] %v7170_v8  ;;  %12223 = vst [vmem:[#allocation90_spill] sm:$0xff] %v7173_v10  ;;  %v7182_v27 = vadd.f32 %v485_v28, %v7075_v7  ;;  %v487_v25 = vpop.f32.mrb[19].mxu0  ;;  %v7185_v26 = vadd.f32 %v598_v43, %v7063_v33  ;;  %v600_v8 = vpop.f32.mrb[19].mxu1 }
 0x119   :  { %12224 = vst [vmem:[#allocation91_spill] sm:$0xff] %v7176_v30  ;;  %12225 = vst [vmem:[#allocation92_spill] sm:$0xff] %v7179_v1  ;;  %v7188_v61 = vadd.f32 %v487_v25, %v7083_v9  ;;  %v7191_v10 = vadd.f32 %v600_v8, %v7071_v6 }
 0x11a   :  { %12226 = vst [vmem:[#allocation93_spill] sm:$0xff] %v7182_v27  ;;  %12227 = vst [vmem:[#allocation94_spill] sm:$0xff] %v7185_v26 }
 0x11b   :  { %12228 = vst [vmem:[#allocation95_spill] sm:$0xff] %v7188_v61  ;;  %12229 = vst [vmem:[#allocation96_spill] sm:$0xff] %v7191_v10 }
 0x11d   :  { %v491_v31 = vpop.f32.mrb[20].mxu0  ;;  %v604_v30 = vpop.f32.mrb[20].mxu1 }
 0x11e   :  { %v7194_v29 = vadd.f32 %v491_v31, %v7075_v7  ;;  %v493_v1 = vpop.f32.mrb[21].mxu0  ;;  %v7197_v28 = vadd.f32 %v604_v30, %v7063_v33  ;;  %v606_v27 = vpop.f32.mrb[21].mxu1 }
 0x11f   :  { %v7200_v43 = vadd.f32 %v493_v1, %v7083_v9  ;;  %v495_v26 = vpop.f32.mrb[22].mxu0  ;;  %v7203_v25 = vadd.f32 %v606_v27, %v7071_v6  ;;  %v608_v61 = vpop.f32.mrb[22].mxu1 }
 0x120   :  { %12230 = vst [vmem:[#allocation97_spill] sm:$0xff] %v7194_v29  ;;  %12231 = vst [vmem:[#allocation98_spill] sm:$0xff] %v7197_v28  ;;  %v7206_v8 = vadd.f32 %v495_v26, %v7075_v7  ;;  %v497_v10 = vpop.f32.mrb[23].mxu0  ;;  %v7209_v31 = vadd.f32 %v608_v61, %v7063_v33  ;;  %v610_v29 = vpop.f32.mrb[23].mxu1 }
 0x121   :  { %12232 = vst [vmem:[#allocation99_spill] sm:$0xff] %v7200_v43  ;;  %12233 = vst [vmem:[#allocation100_spill] sm:$0xff] %v7203_v25  ;;  %v7212_v30 = vadd.f32 %v497_v10, %v7083_v9  ;;  %v7215_v28 = vadd.f32 %v610_v29, %v7071_v6 }
 0x122   :  { %12234 = vst [vmem:[#allocation101_spill] sm:$0xff] %v7206_v8  ;;  %12235 = vst [vmem:[#allocation102_spill] sm:$0xff] %v7209_v31 }
 0x123   :  { %12236 = vst [vmem:[#allocation103_spill] sm:$0xff] %v7212_v30  ;;  %12237 = vst [vmem:[#allocation104_spill] sm:$0xff] %v7215_v28 }
 0x125   :  { %v501_v1 = vpop.f32.mrb[24].mxu0  ;;  %v614_v43 = vpop.f32.mrb[24].mxu1 }
 0x126   :  { %v7218_v27 = vadd.f32 %v501_v1, %v7075_v7  ;;  %v503_v25 = vpop.f32.mrb[25].mxu0  ;;  %v7221_v26 = vadd.f32 %v614_v43, %v7063_v33  ;;  %v616_v8 = vpop.f32.mrb[25].mxu1 }
 0x127   :  { %v7224_v61 = vadd.f32 %v503_v25, %v7083_v9  ;;  %v505_v31 = vpop.f32.mrb[26].mxu0  ;;  %v7227_v10 = vadd.f32 %v616_v8, %v7071_v6  ;;  %v618_v30 = vpop.f32.mrb[26].mxu1 }
 0x128   :  { %12238 = vst [vmem:[#allocation105_spill] sm:$0xff] %v7218_v27  ;;  %12239 = vst [vmem:[#allocation106_spill] sm:$0xff] %v7221_v26  ;;  %v7230_v29 = vadd.f32 %v505_v31, %v7075_v7  ;;  %v507_v28 = vpop.f32.mrb[27].mxu0  ;;  %v7233_v1 = vadd.f32 %v618_v30, %v7063_v33  ;;  %v620_v27 = vpop.f32.mrb[27].mxu1 }
 0x129   :  { %12240 = vst [vmem:[#allocation107_spill] sm:$0xff] %v7224_v61  ;;  %12241 = vst [vmem:[#allocation108_spill] sm:$0xff] %v7227_v10  ;;  %v7236_v43 = vadd.f32 %v507_v28, %v7083_v9  ;;  %v7239_v26 = vadd.f32 %v620_v27, %v7071_v6 }
 0x12a   :  { %12242 = vst [vmem:[#allocation109_spill] sm:$0xff] %v7230_v29  ;;  %12243 = vst [vmem:[#allocation110_spill] sm:$0xff] %v7233_v1 }
 0x12b   :  { %12244 = vst [vmem:[#allocation111_spill] sm:$0xff] %v7236_v43  ;;  %12245 = vst [vmem:[#allocation112_spill] sm:$0xff] %v7239_v26 }
 0x12d   :  { %v511_v25 = vpop.f32.mrb[28].mxu0  ;;  %v624_v61 = vpop.f32.mrb[28].mxu1 }
 0x12e   :  { %v7242_v8 = vadd.f32 %v511_v25, %v7075_v7  ;;  %v513_v10 = vpop.f32.mrb[29].mxu0  ;;  %v7245_v31 = vadd.f32 %v624_v61, %v7063_v33  ;;  %v626_v29 = vpop.f32.mrb[29].mxu1 }
 0x12f   :  { %v7248_v30 = vadd.f32 %v513_v10, %v7083_v9  ;;  %v515_v1 = vpop.f32.mrb[30].mxu0  ;;  %v7251_v28 = vadd.f32 %v626_v29, %v7071_v6  ;;  %v628_v43 = vpop.f32.mrb[30].mxu1  ;;  %v442_v10 = vadd.f32 %v7065_v34, %v7075_v7  ;;  %v555_v29 = vadd.f32 %v7067_v52, %v7063_v33 }
 0x130   :  { %12246 = vst [vmem:[#allocation113_spill] sm:$0xff] %v7242_v8  ;;  %12247 = vst [vmem:[#allocation114_spill] sm:$0xff] %v7245_v31  ;;  %v7254_v27 = vadd.f32 %v515_v1, %v7075_v7  ;;  %v517_v26 = vpop.f32.mrb[31].mxu0  ;;  %v7257_v25 = vadd.f32 %v628_v43, %v7063_v33  ;;  %v630_v8 = vpop.f32.mrb[31].mxu1  ;;  %v444_v1 = vadd.f32 %v7077_v35, %v7083_v9 }
 0x131   :  { %12248 = vst [vmem:[#allocation115_spill] sm:$0xff] %v7248_v30  ;;  %12249 = vst [vmem:[#allocation116_spill] sm:$0xff] %v7251_v28  ;;  %v7260_v61 = vadd.f32 %v517_v26, %v7083_v9  ;;  %v7263_v31 = vadd.f32 %v630_v8, %v7071_v6  ;;  %v557_v43 = vadd.f32 %v7079_v32, %v7071_v6 }
 0x132   :  { %12250 = vst [vmem:[#allocation117_spill] sm:$0xff] %v7254_v27  ;;  %12251 = vst [vmem:[#allocation118_spill] sm:$0xff] %v7257_v25 }
 0x133   :  { %12252 = vst [vmem:[#allocation119_spill] sm:$0xff] %v7260_v61  ;;  %12253 = vst [vmem:[#allocation120_spill] sm:$0xff] %v7263_v31 }
 0x135   :  { %v903_v25 = vpop.f32.mrb[32].mxu0  ;;  %v944_v27 = vpop.f32.mrb[32].mxu1 }
 0x136   :  { %v951_v28 = vadd.f32 %v903_v25, %v442_v10  ;;  %v953_v26 = vadd.f32 %v944_v27, %v555_v29  ;;  %v905_v61 = vpop.f32.mrb[33].mxu0  ;;  %v946_v30 = vpop.f32.mrb[33].mxu1 }
 0x137   :  { %v952_v8 = vadd.f32 %v905_v61, %v444_v1  ;;  %v954_v31 = vadd.f32 %v946_v30, %v557_v43  ;;  %v907_v24 = vpop.f32.mrb[34].mxu0  ;;  %v948_v23 = vpop.f32.mrb[34].mxu1  ;;  %v12254_v43 = vmov 0  }
 0x138   :  { %v4930_v7 = vmul.f32 -1.442695, %v951_v28  ;;  %v908_v34 = vpop.f32.mrb[35].mxu0  ;;  %v949_v22 = vpop.f32.mrb[35].mxu1 }
 0x139   :  { %v4931_v33 = vmul.f32 -1.442695, %v952_v8  ;;  %v4932_v35 = vmul.f32 -1.442695, %v954_v31  ;;  %v12297_v8 = vld [vmem:[#allocation49_spill] sm:$0xff]  ;;  %v12299_v34 = vld [vmem:[#allocation51_spill] sm:$0xff] }
 0x13a   :  { %5307 = vpow2.f32 %v4930_v7  ;;  %v12298_v7 = vld [vmem:[#allocation50_spill] sm:$0xff] }
 0x13b   :  { %5309 = vpow2.f32 %v4931_v33  ;;  %v12300_v33 = vld [vmem:[#allocation52_spill] sm:$0xff] }
 0x13c   :  { %5311 = vpow2.f32 %v4932_v35  ;;  %v12301_v35 = vld [vmem:[#allocation53_spill] sm:$0xff] }
 0x13d   :  { %5313 = vtanh.f32 %v953_v26  ;;  %v12296_v26 = vld [vmem:[#allocation48_spill] sm:$0xff] }
 0x144   :  { %v5308_v9 = vpop.eup %5307 }
 0x145   :  { %v5310_v52 = vpop.eup %5309  ;;  %v958_v32 = vadd.f32 1.0, %v5308_v9  ;;  %v12302_v9 = vld [vmem:[#allocation54_spill] sm:$0xff] }
 0x146   :  { %v964_v6 = vadd.f32 1.0, %v5310_v52  ;;  %v5312_v27 = vpop.eup %5311  ;;  %v12303_v52 = vld [vmem:[#allocation55_spill] sm:$0xff] }
 0x147   :  { %5315 = vrcp.f32 %v958_v32  ;;  %v5314_v25 = vpop.eup %5313  ;;  %v971_v28 = vadd.f32 1.0, %v5312_v27  ;;  %v12304_v32 = vld [vmem:[#allocation56_spill] sm:$0xff]  ;;  %v12306_v27 = vld [vmem:[#allocation58_spill] sm:$0xff] }
 0x148   :  { %5317 = vrcp.f32 %v964_v6  ;;  %v12305_v6 = vld [vmem:[#allocation57_spill] sm:$0xff] }
 0x149   :  { %5319 = vrcp.f32 %v971_v28  ;;  %v12308_v28 = vld [vmem:[#allocation60_spill] sm:$0xff] }
 0x151   :  { %v5316_v30 = vpop.eup %5315 }
 0x152   :  { %v5318_v24 = vpop.eup %5317  ;;  %v975_v23 = vmul.f32 %v5316_v30, %v5314_v25  ;;  %v12307_v25 = vld [vmem:[#allocation59_spill] sm:$0xff] }
 0x153   :  { %v974_v61 = vmul.f32 0.0, %v5318_v24  ;;  %v5320_v31 = vpop.eup %5319  ;;  %v7375_v30 = vld [vmem:[%s11382_s2 + $0x4] ss:$16 sps:$4 sm:$0xff]   ;;  %v7381_v24 = vld [vmem:[%s11382_s2 + $0xc] ss:$16 sps:$4 sm:$0xff]  }
 0x155   :  { %v7273_v22 = vadd.f32 %v975_v23, %v974_v61  ;;  %v128_v23 = vld [vmem:[%s11385_s5] sm:$0xf]  ;;  %v12309_v61 = vsub.s32 0, %v12308_v28 }
 0x157   :  { %5321 = vtanh.f32 %v7273_v22 }
 0x161   :  { %v5322_v10 = vpop.eup %5321 }
 0x162   :  { %v978_v29 = vmul.f32 %v5322_v10, %v5320_v31  ;;  %v7389_v31 = vrot.slane %v128_v23, %v12309_v61  ;;  %v12311_v10 = vsub.s32 1, %v12308_v28 }
 0x164   :  { %v979_v1 = vpack.c.bf16 %v978_v29, %v978_v29  ;;  %v7393_v29 = vrot.slane %v128_v23, %v12311_v10 }
 0x166   :  { %1355 = vmatmul.mubr.bf16.vlgmr.msra.gmra.mrb[36].mxu0 %v979_v1  ;;  %1396 = vmatmul.mubr.bf16.vlgmr.msra.gmra.mrb[36].mxu1 %v979_v1 }
 0x167   :  { %1438 = vmatpush1.bf16.msra.mxu0 %v6450_v36  ;;  %1479 = vmatpush1.bf16.msra.mxu1 %v6462_v38  ;;  %v12255_v36 = vld [vmem:[#allocation7_spill] sm:$0xff]  ;;  %v12257_v38 = vld [vmem:[#allocation9_spill] sm:$0xff] }
 0x168   :  { %1439 = vmatprep.subr.bf16.mxu0 %v6456_v37  ;;  %1480 = vmatprep.subr.bf16.mxu1 %v6467_v39  ;;  %v12256_v37 = vld [vmem:[#allocation8_spill] sm:$0xff]  ;;  %v12258_v39 = vld [vmem:[#allocation10_spill] sm:$0xff]  ;;  %12310 = vst [vmem:[#allocation7_spill] sm:$0xff] %v7389_v31 }
 0x169   :  { %1469 = vmatprep.mubr.bf16.mxu0 %v12254_v43  ;;  %1510 = vmatprep.mubr.bf16.mxu1 %v12254_v43  ;;  %12312 = vst [vmem:[#allocation8_spill] sm:$0xff] %v7393_v29 }
 0x16b   :  { %1440 = vmatpush1.bf16.msra.mxu0 %v6474_v40  ;;  %1481 = vmatpush1.bf16.msra.mxu1 %v6487_v42  ;;  %v12259_v40 = vld [vmem:[#allocation11_spill] sm:$0xff]  ;;  %v12261_v42 = vld [vmem:[#allocation13_spill] sm:$0xff] }
 0x16c   :  { %1441 = vmatprep.subr.bf16.mxu0 %v6481_v41  ;;  %1482 = vmatprep.subr.bf16.mxu1 %v6508_v46  ;;  %v12260_v41 = vld [vmem:[#allocation12_spill] sm:$0xff] }
 0x16d   :  { %v12264_v46 = vld [vmem:[#allocation16_spill] sm:$0xff] }
 0x16f   :  { %1442 = vmatpush1.bf16.msra.mxu0 %v6497_v44  ;;  %1483 = vmatpush1.bf16.msra.mxu1 %v6514_v47  ;;  %v12262_v44 = vld [vmem:[#allocation14_spill] sm:$0xff]  ;;  %v12265_v47 = vld [vmem:[#allocation17_spill] sm:$0xff] }
 0x170   :  { %1443 = vmatprep.subr.bf16.mxu0 %v6502_v45  ;;  %1484 = vmatprep.subr.bf16.mxu1 %v6519_v48  ;;  %v12263_v45 = vld [vmem:[#allocation15_spill] sm:$0xff]  ;;  %v12266_v48 = vld [vmem:[#allocation18_spill] sm:$0xff] }
 0x173   :  { %1444 = vmatpush1.bf16.msra.mxu0 %v6527_v49  ;;  %1485 = vmatpush1.bf16.msra.mxu1 %v6540_v51  ;;  %v12267_v49 = vld [vmem:[#allocation19_spill] sm:$0xff]  ;;  %v12269_v51 = vld [vmem:[#allocation21_spill] sm:$0xff] }
 0x174   :  { %1445 = vmatprep.subr.bf16.mxu0 %v6533_v50  ;;  %1486 = vmatprep.subr.bf16.mxu1 %v6555_v54  ;;  %v12268_v50 = vld [vmem:[#allocation20_spill] sm:$0xff]  ;;  %v12271_v54 = vld [vmem:[#allocation23_spill] sm:$0xff] }
 0x177   :  { %1446 = vmatpush1.bf16.msra.mxu0 %v6549_v53  ;;  %1487 = vmatpush1.bf16.msra.mxu1 %v6567_v56  ;;  %v12270_v53 = vld [vmem:[#allocation22_spill] sm:$0xff]  ;;  %v12273_v56 = vld [vmem:[#allocation25_spill] sm:$0xff] }
 0x178   :  { %1447 = vmatprep.subr.bf16.mxu0 %v6561_v55  ;;  %1488 = vmatprep.subr.bf16.mxu1 %v6572_v57  ;;  %v12272_v55 = vld [vmem:[#allocation24_spill] sm:$0xff]  ;;  %v12274_v57 = vld [vmem:[#allocation26_spill] sm:$0xff] }
 0x17b   :  { %1448 = vmatpush1.bf16.msra.mxu0 %v6580_v58  ;;  %1489 = vmatpush1.bf16.msra.mxu1 %v6593_v60  ;;  %v12275_v58 = vld [vmem:[#allocation27_spill] sm:$0xff]  ;;  %v12277_v60 = vld [vmem:[#allocation29_spill] sm:$0xff] }
 0x17c   :  { %1449 = vmatprep.subr.bf16.mxu0 %v6587_v59  ;;  %1490 = vmatprep.subr.bf16.mxu1 %v6608_v63  ;;  %v12276_v59 = vld [vmem:[#allocation28_spill] sm:$0xff]  ;;  %v12279_v63 = vld [vmem:[#allocation31_spill] sm:$0xff] }
 0x17f   :  { %1450 = vmatpush1.bf16.msra.mxu0 %v6603_v62  ;;  %1491 = vmatpush1.bf16.msra.mxu1 %v6620_v2  ;;  %v12278_v62 = vld [vmem:[#allocation30_spill] sm:$0xff]  ;;  %v12281_v2 = vld [vmem:[#allocation33_spill] sm:$0xff] }
 0x180   :  { %1451 = vmatprep.subr.bf16.mxu0 %v6615_v0  ;;  %1492 = vmatprep.subr.bf16.mxu1 %v6625_v3  ;;  %v12280_v0 = vld [vmem:[#allocation32_spill] sm:$0xff]  ;;  %v12282_v3 = vld [vmem:[#allocation34_spill] sm:$0xff] }
 0x183   :  { %1452 = vmatpush1.bf16.msra.mxu0 %v6634_v4  ;;  %1493 = vmatpush1.bf16.msra.mxu1 %v6641_v5  ;;  %v12283_v4 = vld [vmem:[#allocation35_spill] sm:$0xff]  ;;  %v12284_v5 = vld [vmem:[#allocation36_spill] sm:$0xff] }
 0x184   :  { %1548 = vmatprep.subr.bf16.mxu0 %v6669_v11  ;;  %1589 = vmatprep.subr.bf16.mxu1 %v6674_v12  ;;  %v12285_v11 = vld [vmem:[#allocation37_spill] sm:$0xff]  ;;  %v12286_v12 = vld [vmem:[#allocation38_spill] sm:$0xff] }
 0x186   :  { %1470 = vmatmul.mubr.bf16.vlgmr.msra.gmra.mrb[40].mxu0 %v979_v1  ;;  %1511 = vmatmul.mubr.bf16.vlgmr.msra.gmra.mrb[40].mxu1 %v979_v1 }
 0x187   :  { %1549 = vmatpush1.bf16.msra.mxu0 %v6680_v13  ;;  %1590 = vmatpush1.bf16.msra.mxu1 %v6685_v14  ;;  %v12287_v13 = vld [vmem:[#allocation39_spill] sm:$0xff]  ;;  %v12288_v14 = vld [vmem:[#allocation40_spill] sm:$0xff] }
 0x188   :  { %1550 = vmatprep.subr.bf16.mxu0 %v6693_v15  ;;  %1591 = vmatprep.subr.bf16.mxu1 %v6698_v16  ;;  %v12289_v15 = vld [vmem:[#allocation41_spill] sm:$0xff]  ;;  %v12290_v16 = vld [vmem:[#allocation42_spill] sm:$0xff] }
 0x18b   :  { %1551 = vmatpush1.bf16.msra.mxu0 %v6703_v17  ;;  %1592 = vmatpush1.bf16.msra.mxu1 %v6708_v18  ;;  %v12291_v17 = vld [vmem:[#allocation43_spill] sm:$0xff]  ;;  %v12292_v18 = vld [vmem:[#allocation44_spill] sm:$0xff] }
 0x18c   :  { %1552 = vmatprep.subr.bf16.mxu0 %v6717_v19  ;;  %1593 = vmatprep.subr.bf16.mxu1 %v6722_v20  ;;  %v12293_v19 = vld [vmem:[#allocation45_spill] sm:$0xff]  ;;  %v12294_v20 = vld [vmem:[#allocation46_spill] sm:$0xff] }
 0x18f   :  { %1553 = vmatpush1.bf16.msra.mxu0 %v6727_v21  ;;  %1594 = vmatpush1.bf16.msra.mxu1 %v12255_v36  ;;  %v12295_v21 = vld [vmem:[#allocation47_spill] sm:$0xff] }
 0x190   :  { %1554 = vmatprep.subr.bf16.mxu0 %v12256_v37  ;;  %1595 = vmatprep.subr.bf16.mxu1 %v12257_v38 }
 0x193   :  { %1555 = vmatpush1.bf16.msra.mxu0 %v12258_v39  ;;  %1596 = vmatpush1.bf16.msra.mxu1 %v12259_v40 }
 0x194   :  { %1556 = vmatprep.subr.bf16.mxu0 %v12260_v41  ;;  %1597 = vmatprep.subr.bf16.mxu1 %v12261_v42 }
 0x197   :  { %1557 = vmatpush1.bf16.msra.mxu0 %v12262_v44  ;;  %1598 = vmatpush1.bf16.msra.mxu1 %v12263_v45 }
 0x198   :  { %1558 = vmatprep.subr.bf16.mxu0 %v12264_v46  ;;  %1599 = vmatprep.subr.bf16.mxu1 %v12265_v47 }
 0x19b   :  { %1559 = vmatpush1.bf16.msra.mxu0 %v12266_v48  ;;  %1600 = vmatpush1.bf16.msra.mxu1 %v12267_v49  ;;  %v12313_v48 = vsub.s32 3, %v12308_v28 }
 0x19c   :  { %1560 = vmatprep.subr.bf16.mxu0 %v12268_v50  ;;  %1601 = vmatprep.subr.bf16.mxu1 %v12269_v51  ;;  %v12315_v51 = vsub.s32 2, %v12308_v28 }
 0x19d   :  { %v7399_v49 = vrot.slane %v128_v23, %v12313_v48 }
 0x19f   :  { %1561 = vmatpush1.bf16.msra.mxu0 %v12270_v53  ;;  %1602 = vmatpush1.bf16.msra.mxu1 %v12271_v54  ;;  %12314 = vst [vmem:[#allocation9_spill] sm:$0xff] %v7399_v49  ;;  %v7404_v53 = vrot.slane %v128_v23, %v12315_v51 }
 0x1a0   :  { %1562 = vmatprep.subr.bf16.mxu0 %v12272_v55  ;;  %1603 = vmatprep.subr.bf16.mxu1 %v12273_v56 }
 0x1a1   :  { %12316 = vst [vmem:[#allocation10_spill] sm:$0xff] %v7404_v53 }
 0x1a3   :  { %1563 = vmatpush1.bf16.msra.mxu0 %v12274_v57  ;;  %1604 = vmatpush1.bf16.msra.mxu1 %v12275_v58 }
 0x1a4   :  { %1564 = vmatprep.subr.bf16.mxu0 %v12276_v59  ;;  %1605 = vmatprep.subr.bf16.mxu1 %v12277_v60 }
 0x1a7   :  { %1565 = vmatpush1.bf16.msra.mxu0 %v12278_v62  ;;  %1606 = vmatpush1.bf16.msra.mxu1 %v12279_v63 }
 0x1a8   :  { %1566 = vmatprep.subr.bf16.mxu0 %v12280_v0  ;;  %1607 = vmatprep.subr.bf16.mxu1 %v12281_v2 }
 0x1ab   :  { %1567 = vmatpush1.bf16.msra.mxu0 %v12282_v3  ;;  %1608 = vmatpush1.bf16.msra.mxu1 %v12283_v4 }
 0x1ac   :  { %1568 = vmatprep.subr.bf16.mxu0 %v12284_v5  ;;  %1609 = vmatprep.subr.bf16.mxu1 %v12285_v11 }
 0x1af   :  { %1569 = vmatpush1.bf16.msra.mxu0 %v12286_v12  ;;  %1610 = vmatpush1.bf16.msra.mxu1 %v12287_v13 }
 0x1b0   :  { %1570 = vmatprep.subr.bf16.mxu0 %v12288_v14  ;;  %1611 = vmatprep.subr.bf16.mxu1 %v12289_v15 }
 0x1b3   :  { %1571 = vmatpush1.bf16.msra.mxu0 %v12290_v16  ;;  %1612 = vmatpush1.bf16.msra.mxu1 %v12291_v17 }
 0x1b4   :  { %1572 = vmatprep.subr.bf16.mxu0 %v12292_v18  ;;  %1613 = vmatprep.subr.bf16.mxu1 %v12293_v19 }
 0x1b7   :  { %1573 = vmatpush1.bf16.msra.mxu0 %v12294_v20  ;;  %1614 = vmatpush1.bf16.msra.mxu1 %v12295_v21 }
 0x1b8   :  { %1574 = vmatprep.subr.bf16.mxu0 %v12296_v26  ;;  %1615 = vmatprep.subr.bf16.mxu1 %v12297_v8 }
 0x1bb   :  { %1575 = vmatpush1.bf16.msra.mxu0 %v12298_v7  ;;  %1616 = vmatpush1.bf16.msra.mxu1 %v12299_v34 }
 0x1bc   :  { %1576 = vmatprep.subr.bf16.mxu0 %v12300_v33  ;;  %1617 = vmatprep.subr.bf16.mxu1 %v12301_v35 }
 0x1bf   :  { %1577 = vmatpush1.bf16.msra.mxu0 %v12302_v9  ;;  %1618 = vmatpush1.bf16.msra.mxu1 %v12303_v52 }
 0x1c0   :  { %1578 = vmatprep.subr.bf16.mxu0 %v12304_v32  ;;  %1619 = vmatprep.subr.bf16.mxu1 %v12305_v6 }
 0x1c3   :  { %1579 = vmatpush1.bf16.msra.mxu0 %v12306_v27  ;;  %1620 = vmatpush1.bf16.msra.mxu1 %v12307_v25 }
 0x1c4   :  { %1664 = vmatprep.subr.bf16.mxu0 %v7375_v30  ;;  %1705 = vmatprep.subr.bf16.mxu1 %v7381_v24 }
 0x239   :  { %v1356_v1 = vpop.f32.mrb[36].mxu0  ;;  %v1397_v36 = vpop.f32.mrb[36].mxu1 }
 0x23a   :  { %v1357_v37 = vadd.f32 %v1356_v1, %v7389_v31  ;;  %v1358_v38 = vpop.f32.mrb[37].mxu0  ;;  %v1399_v39 = vpop.f32.mrb[37].mxu1  ;;  %v1398_v55 = vadd.f32 %v1397_v36, %v7404_v53  ;;  %v12318_v36 = vld [vmem:[#allocation61_spill] sm:$0xff] }
 0x23b   :  { %v1359_v40 = vadd.f32 %v1358_v38, %v7393_v29  ;;  %v1360_v41 = vpop.f32.mrb[38].mxu0  ;;  %v1401_v42 = vpop.f32.mrb[38].mxu1  ;;  %v1400_v50 = vadd.f32 %v1399_v39, %v7399_v49 }
 0x23c   :  { %v4997_v44 = vmul.f32 -1.442695, %v1357_v37  ;;  %v1361_v45 = vpop.f32.mrb[39].mxu0  ;;  %v1402_v46 = vpop.f32.mrb[39].mxu1 }
 0x23d   :  { %v4998_v47 = vmul.f32 -1.442695, %v1359_v40  ;;  %v4999_v54 = vmul.f32 -1.442695, %v1400_v50 }
 0x23e   :  { %5323 = vpow2.f32 %v4997_v44 }
 0x23f   :  { %5325 = vpow2.f32 %v4998_v47  ;;  %v12319_v47 = vld [vmem:[#allocation62_spill] sm:$0xff] }
 0x240   :  { %5327 = vpow2.f32 %v4999_v54  ;;  %v12320_v54 = vld [vmem:[#allocation63_spill] sm:$0xff] }
 0x241   :  { %5329 = vtanh.f32 %v1398_v55 }
 0x248   :  { %v5324_v56 = vpop.eup %5323 }
 0x249   :  { %v5326_v61 = vpop.eup %5325  ;;  %v1407_v10 = vadd.f32 1.0, %v5324_v56  ;;  %v12321_v56 = vld [vmem:[#allocation64_spill] sm:$0xff] }
 0x24a   :  { %v1413_v1 = vadd.f32 1.0, %v5326_v61  ;;  %v5328_v37 = vpop.eup %5327 }
 0x24b   :  { %5331 = vrcp.f32 %v1407_v10  ;;  %v5330_v38 = vpop.eup %5329  ;;  %v1420_v42 = vadd.f32 1.0, %v5328_v37 }
 0x24c   :  { %5333 = vrcp.f32 %v1413_v1 }
 0x24d   :  { %5335 = vrcp.f32 %v1420_v42 }
 0x255   :  { %v5332_v40 = vpop.eup %5331 }
 0x256   :  { %v5334_v41 = vpop.eup %5333  ;;  %v1424_v39 = vmul.f32 %v5332_v40, %v5330_v38 }
 0x257   :  { %v1423_v28 = vmul.f32 0.0, %v5334_v41 }
 0x259   :  { %v7407_v23 = vadd.f32 %v1424_v39, %v1423_v28  ;;  %v1471_v44 = vpop.f32.mrb[40].mxu0  ;;  %v1512_v45 = vpop.f32.mrb[40].mxu1 }
 0x25a   :  { %v1519_v46 = vadd.f32 %v1471_v44, %v12318_v36  ;;  %v1521_v48 = vadd.f32 %v1512_v45, %v12319_v47  ;;  %v1473_v50 = vpop.f32.mrb[41].mxu0  ;;  %v1514_v51 = vpop.f32.mrb[41].mxu1 }
 0x25b   :  { %12317 = vst [vmem:[#allocation11_spill] sm:$0xff] %v7407_v23  ;;  %5337 = vtanh.f32 %v7407_v23  ;;  %v1520_v55 = vadd.f32 %v1473_v50, %v12320_v54  ;;  %v1522_v61 = vadd.f32 %v1514_v51, %v12321_v56  ;;  %v1475_v10 = vpop.f32.mrb[42].mxu0  ;;  %v1516_v1 = vpop.f32.mrb[42].mxu1 }
 0x25c   :  { %v5000_v37 = vmul.f32 -1.442695, %v1519_v46  ;;  %v1476_v38 = vpop.f32.mrb[43].mxu0  ;;  %v1517_v40 = vpop.f32.mrb[43].mxu1 }
 0x25d   :  { %v5001_v41 = vmul.f32 -1.442695, %v1520_v55  ;;  %v5336_v39 = vpop.eup %5335  ;;  %v5002_v28 = vmul.f32 -1.442695, %v1522_v61 }
 0x25e   :  { %5339 = vpow2.f32 %v5000_v37 }
 0x25f   :  { %5341 = vpow2.f32 %v5001_v41  ;;  %v7440_v41 = vld [vmem:[%s11382_s2 + $0x24] ss:$16 sps:$4 sm:$0xff]  }
 0x260   :  { %5343 = vpow2.f32 %v5002_v28  ;;  %v7460_v28 = vld [vmem:[%s11382_s2 + $0x28] ss:$16 sps:$4 sm:$0xff]  }
 0x261   :  { %5345 = vtanh.f32 %v1521_v48 }
 0x265   :  { %v5338_v42 = vpop.eup %5337 }
 0x266   :  { %v1427_v44 = vmul.f32 %v5338_v42, %v5336_v39  ;;  %v7446_v39 = vld [vmem:[%s11382_s2 + $0x2c] ss:$16 sps:$4 sm:$0xff]   ;;  %v7454_v42 = vld [vmem:[%s11382_s2 + $0x20] ss:$16 sps:$4 sm:$0xff]  }
 0x268   :  { %v5340_v45 = vpop.eup %5339  ;;  %v1428_v36 = vpack.c.bf16 %v1427_v44, %v1427_v44  ;;  %v7466_v44 = vld [vmem:[%s11382_s2 + $0x44] ss:$16 sps:$4 sm:$0xff]  }
 0x269   :  { %v5342_v47 = vpop.eup %5341  ;;  %v1526_v23 = vadd.f32 1.0, %v5340_v45  ;;  %v7472_v45 = vld [vmem:[%s11382_s2 + $0x4c] ss:$16 sps:$4 sm:$0xff]  }
 0x26a   :  { %v1532_v50 = vadd.f32 1.0, %v5342_v47  ;;  %1429 = vst [vmem:[%s11386_s6] sm:$0xf] %v1428_v36  ;;  %1580 = vmatprep.mubr.bf16.mxu0 %v1428_v36  ;;  %1621 = vmatprep.mubr.bf16.mxu1 %v1428_v36  ;;  %v5344_v46 = vpop.eup %5343  ;;  %v7478_v36 = vld [vmem:[%s11382_s2 + $0x40] ss:$16 sps:$4 sm:$0xff]   ;;  %v7484_v47 = vld [vmem:[%s11382_s2 + $0x48] ss:$16 sps:$4 sm:$0xff]  }
 0x26b   :  { %5347 = vrcp.f32 %v1526_v23  ;;  %v5346_v51 = vpop.eup %5345  ;;  %v1539_v61 = vadd.f32 1.0, %v5344_v46  ;;  %v7428_v23 = vld [vmem:[%s11382_s2] ss:$16 sps:$4 sm:$0xff]   ;;  %v7496_v46 = vld [vmem:[%s11382_s2 + $0x6c] ss:$16 sps:$4 sm:$0xff]  }
 0x26c   :  { %5349 = vrcp.f32 %v1532_v50  ;;  %v7490_v50 = vld [vmem:[%s11382_s2 + $0x64] ss:$16 sps:$4 sm:$0xff]  }
 0x26d   :  { %5351 = vrcp.f32 %v1539_v61  ;;  %v7526_v61 = vld [vmem:[%s11382_s2 + $0x80] ss:$16 sps:$4 sm:$0xff]  }
 0x275   :  { %v5348_v54 = vpop.eup %5347 }
 0x276   :  { %v5350_v55 = vpop.eup %5349  ;;  %v1543_v56 = vmul.f32 %v5348_v54, %v5346_v51  ;;  %v7502_v51 = vld [vmem:[%s11382_s2 + $0x60] ss:$16 sps:$4 sm:$0xff]   ;;  %v7508_v54 = vld [vmem:[%s11382_s2 + $0x68] ss:$16 sps:$4 sm:$0xff]  }
 0x277   :  { %v1542_v10 = vmul.f32 %v5350_v55, %v7273_v22  ;;  %v5352_v48 = vpop.eup %5351  ;;  %v7434_v22 = vld [vmem:[%s11382_s2 + $0x8] ss:$16 sps:$4 sm:$0xff]   ;;  %v7514_v55 = vld [vmem:[%s11382_s2 + $0x84] ss:$16 sps:$4 sm:$0xff]  }
 0x279   :  { %v7418_v1 = vadd.f32 %v1543_v56, %v1542_v10  ;;  %v7520_v56 = vld [vmem:[%s11382_s2 + $0x8c] ss:$16 sps:$4 sm:$0xff]   ;;  %v7532_v10 = vld [vmem:[%s11382_s2 + $0x88] ss:$16 sps:$4 sm:$0xff]  }
 0x27a   :  { %12322 = vst [vmem:[#allocation12_spill] sm:$0xff] %v7532_v10 }
 0x27b   :  { %5353 = vtanh.f32 %v7418_v1 }
 0x285   :  { %v5354_v37 = vpop.eup %5353 }
 0x286   :  { %v1546_v38 = vmul.f32 %v5354_v37, %v5352_v48  ;;  %v7538_v48 = vld [vmem:[%s11382_s2 + $0xa4] ss:$16 sps:$4 sm:$0xff]   ;;  %v7544_v37 = vld [vmem:[%s11382_s2 + $0xac] ss:$16 sps:$4 sm:$0xff]  }
 0x287   :  { %12323 = vst [vmem:[#allocation13_spill] sm:$0xff] %v7538_v48  ;;  %12324 = vst [vmem:[#allocation14_spill] sm:$0xff] %v7544_v37 }
 0x288   :  { %v7421_v40 = vpack.c.bf16 %v1546_v38, %v1546_v38  ;;  %v7550_v38 = vld [vmem:[%s11382_s2 + $0xa0] ss:$16 sps:$4 sm:$0xff]  }
 0x289   :  { %12325 = vst [vmem:[#allocation15_spill] sm:$0xff] %v7550_v38 }
 0x28a   :  { %1581 = vmatmul.mubr.bf16.vlgmr.msra.gmra.mrb[44].mxu0 %v7421_v40  ;;  %1622 = vmatmul.mubr.bf16.vlgmr.msra.gmra.mrb[44].mxu1 %v7421_v40 }
 0x28b   :  { %1665 = vmatpush1.bf16.msra.mxu0 %v7428_v23  ;;  %1706 = vmatpush1.bf16.msra.mxu1 %v7434_v22 }
 0x28c   :  { %1666 = vmatprep.subr.bf16.mxu0 %v7440_v41  ;;  %1707 = vmatprep.subr.bf16.mxu1 %v7446_v39 }
 0x28d   :  { %1696 = vmatprep.mubr.bf16.mxu0 %v12254_v43  ;;  %1737 = vmatprep.mubr.bf16.mxu1 %v12254_v43 }
 0x28f   :  { %1667 = vmatpush1.bf16.msra.mxu0 %v7454_v42  ;;  %1708 = vmatpush1.bf16.msra.mxu1 %v7460_v28 }
 0x290   :  { %1668 = vmatprep.subr.bf16.mxu0 %v7466_v44  ;;  %1709 = vmatprep.subr.bf16.mxu1 %v7472_v45 }
 0x293   :  { %1669 = vmatpush1.bf16.msra.mxu0 %v7478_v36  ;;  %1710 = vmatpush1.bf16.msra.mxu1 %v7484_v47 }
 0x294   :  { %1670 = vmatprep.subr.bf16.mxu0 %v7490_v50  ;;  %1711 = vmatprep.subr.bf16.mxu1 %v7496_v46 }
 0x297   :  { %1671 = vmatpush1.bf16.msra.mxu0 %v7502_v51  ;;  %1712 = vmatpush1.bf16.msra.mxu1 %v7508_v54 }
 0x298   :  { %1672 = vmatprep.subr.bf16.mxu0 %v7514_v55  ;;  %1713 = vmatprep.subr.bf16.mxu1 %v7520_v56 }
 0x29b   :  { %1673 = vmatpush1.bf16.msra.mxu0 %v7526_v61  ;;  %1714 = vmatpush1.bf16.msra.mxu1 %v7532_v10  ;;  %v7556_v10 = vld [vmem:[%s11382_s2 + $0xa8] ss:$16 sps:$4 sm:$0xff]  }
 0x29c   :  { %1674 = vmatprep.subr.bf16.mxu0 %v7538_v48  ;;  %1715 = vmatprep.subr.bf16.mxu1 %v7544_v37  ;;  %12326 = vst [vmem:[#allocation16_spill] sm:$0xff] %v7556_v10  ;;  %v7562_v48 = vld [vmem:[%s11382_s2 + $0xc4] ss:$16 sps:$4 sm:$0xff]   ;;  %v7568_v37 = vld [vmem:[%s11382_s2 + $0xcc] ss:$16 sps:$4 sm:$0xff]  }
 0x29d   :  { %12327 = vst [vmem:[#allocation17_spill] sm:$0xff] %v7562_v48  ;;  %12328 = vst [vmem:[#allocation18_spill] sm:$0xff] %v7568_v37 }
 0x29f   :  { %1675 = vmatpush1.bf16.msra.mxu0 %v7550_v38  ;;  %1716 = vmatpush1.bf16.msra.mxu1 %v7556_v10  ;;  %v7574_v38 = vld [vmem:[%s11382_s2 + $0xc0] ss:$16 sps:$4 sm:$0xff]   ;;  %v7580_v10 = vld [vmem:[%s11382_s2 + $0xc8] ss:$16 sps:$4 sm:$0xff]  }
 0x2a0   :  { %1676 = vmatprep.subr.bf16.mxu0 %v7562_v48  ;;  %1717 = vmatprep.subr.bf16.mxu1 %v7568_v37  ;;  %12329 = vst [vmem:[#allocation19_spill] sm:$0xff] %v7574_v38  ;;  %12330 = vst [vmem:[#allocation20_spill] sm:$0xff] %v7580_v10  ;;  %v7586_v48 = vld [vmem:[%s11382_s2 + $0xe4] ss:$16 sps:$4 sm:$0xff]   ;;  %v7592_v37 = vld [vmem:[%s11382_s2 + $0xec] ss:$16 sps:$4 sm:$0xff]  }
 0x2a1   :  { %12331 = vst [vmem:[#allocation21_spill] sm:$0xff] %v7586_v48  ;;  %12332 = vst [vmem:[#allocation22_spill] sm:$0xff] %v7592_v37 }
 0x2a3   :  { %1677 = vmatpush1.bf16.msra.mxu0 %v7574_v38  ;;  %1718 = vmatpush1.bf16.msra.mxu1 %v7580_v10  ;;  %v7598_v38 = vld [vmem:[%s11382_s2 + $0xe0] ss:$16 sps:$4 sm:$0xff]   ;;  %v7604_v10 = vld [vmem:[%s11382_s2 + $0xe8] ss:$16 sps:$4 sm:$0xff]  }
 0x2a4   :  { %1678 = vmatprep.subr.bf16.mxu0 %v7586_v48  ;;  %1719 = vmatprep.subr.bf16.mxu1 %v7592_v37  ;;  %12333 = vst [vmem:[#allocation23_spill] sm:$0xff] %v7604_v10  ;;  %v7610_v48 = vld [vmem:[%s11383_s3 + $0x4] ss:$16 sps:$4 sm:$0xff]   ;;  %v7616_v37 = vld [vmem:[%s11383_s3 + $0xc] ss:$16 sps:$4 sm:$0xff]  }
 0x2a5   :  { %12334 = vst [vmem:[#allocation24_spill] sm:$0xff] %v7610_v48  ;;  %12335 = vst [vmem:[#allocation25_spill] sm:$0xff] %v7616_v37 }
 0x2a7   :  { %1679 = vmatpush1.bf16.msra.mxu0 %v7598_v38  ;;  %1720 = vmatpush1.bf16.msra.mxu1 %v7604_v10  ;;  %v7624_v10 = vld [vmem:[%s11383_s3] ss:$16 sps:$4 sm:$0xff]  }
 0x2a8   :  { %1775 = vmatprep.subr.bf16.mxu0 %v7610_v48  ;;  %1816 = vmatprep.subr.bf16.mxu1 %v7616_v37  ;;  %12336 = vst [vmem:[#allocation26_spill] sm:$0xff] %v7624_v10  ;;  %v7630_v48 = vld [vmem:[%s11383_s3 + $0x8] ss:$16 sps:$4 sm:$0xff]   ;;  %v7636_v37 = vld [vmem:[%s11383_s3 + $0x24] ss:$16 sps:$4 sm:$0xff]  }
 0x2a9   :  { %12337 = vst [vmem:[#allocation27_spill] sm:$0xff] %v7630_v48  ;;  %12338 = vst [vmem:[#allocation28_spill] sm:$0xff] %v7636_v37 }
 0x2aa   :  { %1697 = vmatmul.mubr.bf16.vlgmr.msra.gmra.mrb[48].mxu0 %v7421_v40  ;;  %1738 = vmatmul.mubr.bf16.vlgmr.msra.gmra.mrb[48].mxu1 %v7421_v40  ;;  %v7642_v40 = vld [vmem:[%s11383_s3 + $0x2c] ss:$16 sps:$4 sm:$0xff]  }
 0x2ab   :  { %1776 = vmatpush1.bf16.msra.mxu0 %v7624_v10  ;;  %1817 = vmatpush1.bf16.msra.mxu1 %v7630_v48  ;;  %12339 = vst [vmem:[#allocation29_spill] sm:$0xff] %v7642_v40  ;;  %v7648_v10 = vld [vmem:[%s11383_s3 + $0x20] ss:$16 sps:$4 sm:$0xff]   ;;  %v7654_v48 = vld [vmem:[%s11383_s3 + $0x28] ss:$16 sps:$4 sm:$0xff]  }
 0x2ac   :  { %1777 = vmatprep.subr.bf16.mxu0 %v7636_v37  ;;  %1818 = vmatprep.subr.bf16.mxu1 %v7642_v40  ;;  %12340 = vst [vmem:[#allocation30_spill] sm:$0xff] %v7648_v10  ;;  %12341 = vst [vmem:[#allocation31_spill] sm:$0xff] %v7654_v48  ;;  %v7660_v37 = vld [vmem:[%s11383_s3 + $0x44] ss:$16 sps:$4 sm:$0xff]   ;;  %v7666_v40 = vld [vmem:[%s11383_s3 + $0x4c] ss:$16 sps:$4 sm:$0xff]  }
 0x2ad   :  { %12342 = vst [vmem:[#allocation32_spill] sm:$0xff] %v7660_v37  ;;  %12343 = vst [vmem:[#allocation33_spill] sm:$0xff] %v7666_v40 }
 0x2af   :  { %1778 = vmatpush1.bf16.msra.mxu0 %v7648_v10  ;;  %1819 = vmatpush1.bf16.msra.mxu1 %v7654_v48  ;;  %v7672_v10 = vld [vmem:[%s11383_s3 + $0x40] ss:$16 sps:$4 sm:$0xff]   ;;  %v7678_v48 = vld [vmem:[%s11383_s3 + $0x48] ss:$16 sps:$4 sm:$0xff]  }
 0x2b0   :  { %1779 = vmatprep.subr.bf16.mxu0 %v7660_v37  ;;  %1820 = vmatprep.subr.bf16.mxu1 %v7666_v40  ;;  %12344 = vst [vmem:[#allocation34_spill] sm:$0xff] %v7672_v10  ;;  %12345 = vst [vmem:[#allocation35_spill] sm:$0xff] %v7678_v48  ;;  %v7684_v37 = vld [vmem:[%s11383_s3 + $0x64] ss:$16 sps:$4 sm:$0xff]   ;;  %v7690_v40 = vld [vmem:[%s11383_s3 + $0x6c] ss:$16 sps:$4 sm:$0xff]  }
 0x2b1   :  { %12346 = vst [vmem:[#allocation36_spill] sm:$0xff] %v7684_v37  ;;  %12347 = vst [vmem:[#allocation37_spill] sm:$0xff] %v7690_v40 }
 0x2b3   :  { %1780 = vmatpush1.bf16.msra.mxu0 %v7672_v10  ;;  %1821 = vmatpush1.bf16.msra.mxu1 %v7678_v48  ;;  %v7696_v10 = vld [vmem:[%s11383_s3 + $0x60] ss:$16 sps:$4 sm:$0xff]   ;;  %v7702_v48 = vld [vmem:[%s11383_s3 + $0x68] ss:$16 sps:$4 sm:$0xff]  }
 0x2b4   :  { %1781 = vmatprep.subr.bf16.mxu0 %v7684_v37  ;;  %1822 = vmatprep.subr.bf16.mxu1 %v7690_v40  ;;  %12348 = vst [vmem:[#allocation38_spill] sm:$0xff] %v7696_v10  ;;  %12349 = vst [vmem:[#allocation39_spill] sm:$0xff] %v7702_v48  ;;  %v7708_v37 = vld [vmem:[%s11383_s3 + $0x84] ss:$16 sps:$4 sm:$0xff]   ;;  %v7714_v40 = vld [vmem:[%s11383_s3 + $0x8c] ss:$16 sps:$4 sm:$0xff]  }
 0x2b5   :  { %12350 = vst [vmem:[#allocation40_spill] sm:$0xff] %v7708_v37  ;;  %12351 = vst [vmem:[#allocation41_spill] sm:$0xff] %v7714_v40 }
 0x2b7   :  { %1782 = vmatpush1.bf16.msra.mxu0 %v7696_v10  ;;  %1823 = vmatpush1.bf16.msra.mxu1 %v7702_v48  ;;  %v7720_v10 = vld [vmem:[%s11383_s3 + $0x80] ss:$16 sps:$4 sm:$0xff]   ;;  %v7726_v48 = vld [vmem:[%s11383_s3 + $0x88] ss:$16 sps:$4 sm:$0xff]  }
 0x2b8   :  { %1783 = vmatprep.subr.bf16.mxu0 %v7708_v37  ;;  %1824 = vmatprep.subr.bf16.mxu1 %v7714_v40  ;;  %12352 = vst [vmem:[#allocation42_spill] sm:$0xff] %v7720_v10  ;;  %12353 = vst [vmem:[#allocation43_spill] sm:$0xff] %v7726_v48  ;;  %v7732_v37 = vld [vmem:[%s11383_s3 + $0xa4] ss:$16 sps:$4 sm:$0xff]   ;;  %v7738_v40 = vld [vmem:[%s11383_s3 + $0xac] ss:$16 sps:$4 sm:$0xff]  }
 0x2b9   :  { %12354 = vst [vmem:[#allocation44_spill] sm:$0xff] %v7732_v37  ;;  %12355 = vst [vmem:[#allocation45_spill] sm:$0xff] %v7738_v40 }
 0x2bb   :  { %1784 = vmatpush1.bf16.msra.mxu0 %v7720_v10  ;;  %1825 = vmatpush1.bf16.msra.mxu1 %v7726_v48  ;;  %v7744_v10 = vld [vmem:[%s11383_s3 + $0xa0] ss:$16 sps:$4 sm:$0xff]   ;;  %v7750_v48 = vld [vmem:[%s11383_s3 + $0xa8] ss:$16 sps:$4 sm:$0xff]  }
 0x2bc   :  { %1785 = vmatprep.subr.bf16.mxu0 %v7732_v37  ;;  %1826 = vmatprep.subr.bf16.mxu1 %v7738_v40  ;;  %12356 = vst [vmem:[#allocation46_spill] sm:$0xff] %v7744_v10  ;;  %12357 = vst [vmem:[#allocation47_spill] sm:$0xff] %v7750_v48  ;;  %v7756_v37 = vld [vmem:[%s11383_s3 + $0xc4] ss:$16 sps:$4 sm:$0xff]   ;;  %v7762_v40 = vld [vmem:[%s11383_s3 + $0xcc] ss:$16 sps:$4 sm:$0xff]  }
 0x2bd   :  { %12358 = vst [vmem:[#allocation48_spill] sm:$0xff] %v7756_v37  ;;  %12359 = vst [vmem:[#allocation49_spill] sm:$0xff] %v7762_v40 }
 0x2bf   :  { %1786 = vmatpush1.bf16.msra.mxu0 %v7744_v10  ;;  %1827 = vmatpush1.bf16.msra.mxu1 %v7750_v48  ;;  %v7768_v10 = vld [vmem:[%s11383_s3 + $0xc0] ss:$16 sps:$4 sm:$0xff]   ;;  %v7774_v48 = vld [vmem:[%s11383_s3 + $0xc8] ss:$16 sps:$4 sm:$0xff]  }
 0x2c0   :  { %1787 = vmatprep.subr.bf16.mxu0 %v7756_v37  ;;  %1828 = vmatprep.subr.bf16.mxu1 %v7762_v40  ;;  %12360 = vst [vmem:[#allocation50_spill] sm:$0xff] %v7768_v10  ;;  %12361 = vst [vmem:[#allocation51_spill] sm:$0xff] %v7774_v48  ;;  %v7780_v37 = vld [vmem:[%s11383_s3 + $0xe4] ss:$16 sps:$4 sm:$0xff]   ;;  %v7786_v40 = vld [vmem:[%s11383_s3 + $0xec] ss:$16 sps:$4 sm:$0xff]  }
 0x2c1   :  { %12362 = vst [vmem:[#allocation52_spill] sm:$0xff] %v7780_v37  ;;  %12363 = vst [vmem:[#allocation53_spill] sm:$0xff] %v7786_v40 }
 0x2c3   :  { %1788 = vmatpush1.bf16.msra.mxu0 %v7768_v10  ;;  %1829 = vmatpush1.bf16.msra.mxu1 %v7774_v48 }
 0x2c4   :  { %1789 = vmatprep.subr.bf16.mxu0 %v7780_v37  ;;  %1830 = vmatprep.subr.bf16.mxu1 %v7786_v40 }
 0x2c7   :  { %1790 = vmatpush1.bf16.msra.mxu0 %v12274_v57  ;;  %1831 = vmatpush1.bf16.msra.mxu1 %v12275_v58 }
 0x2c8   :  { %1791 = vmatprep.subr.bf16.mxu0 %v12276_v59  ;;  %1832 = vmatprep.subr.bf16.mxu1 %v12277_v60 }
 0x2cb   :  { %1792 = vmatpush1.bf16.msra.mxu0 %v12278_v62  ;;  %1833 = vmatpush1.bf16.msra.mxu1 %v12279_v63 }
 0x2cc   :  { %1793 = vmatprep.subr.bf16.mxu0 %v12280_v0  ;;  %1834 = vmatprep.subr.bf16.mxu1 %v12281_v2 }
 0x2cf   :  { %1794 = vmatpush1.bf16.msra.mxu0 %v12282_v3  ;;  %1835 = vmatpush1.bf16.msra.mxu1 %v12283_v4 }
 0x2d0   :  { %1795 = vmatprep.subr.bf16.mxu0 %v12284_v5  ;;  %1836 = vmatprep.subr.bf16.mxu1 %v12285_v11 }
 0x2d3   :  { %1796 = vmatpush1.bf16.msra.mxu0 %v12286_v12  ;;  %1837 = vmatpush1.bf16.msra.mxu1 %v12287_v13 }
 0x2d4   :  { %1797 = vmatprep.subr.bf16.mxu0 %v12288_v14  ;;  %1838 = vmatprep.subr.bf16.mxu1 %v12289_v15 }
 0x2d7   :  { %1798 = vmatpush1.bf16.msra.mxu0 %v12290_v16  ;;  %1839 = vmatpush1.bf16.msra.mxu1 %v12291_v17 }
 0x2d8   :  { %1799 = vmatprep.subr.bf16.mxu0 %v12292_v18  ;;  %1840 = vmatprep.subr.bf16.mxu1 %v12293_v19 }
 0x2db   :  { %1800 = vmatpush1.bf16.msra.mxu0 %v12294_v20  ;;  %1841 = vmatpush1.bf16.msra.mxu1 %v12295_v21 }
 0x2dc   :  { %1801 = vmatprep.subr.bf16.mxu0 %v12296_v26  ;;  %1842 = vmatprep.subr.bf16.mxu1 %v12297_v8 }
 0x2df   :  { %1802 = vmatpush1.bf16.msra.mxu0 %v12298_v7  ;;  %1843 = vmatpush1.bf16.msra.mxu1 %v12299_v34  ;;  %v12364_v34 = vld [vmem:[#allocation11_spill] sm:$0xff] }
 0x2e0   :  { %1803 = vmatprep.subr.bf16.mxu0 %v12300_v33  ;;  %1844 = vmatprep.subr.bf16.mxu1 %v12301_v35 }
 0x2e3   :  { %1804 = vmatpush1.bf16.msra.mxu0 %v12302_v9  ;;  %1845 = vmatpush1.bf16.msra.mxu1 %v12303_v52 }
 0x2e4   :  { %1805 = vmatprep.subr.bf16.mxu0 %v12304_v32  ;;  %1846 = vmatprep.subr.bf16.mxu1 %v12305_v6  ;;  %v12365_v32 = vld [vmem:[#allocation65_spill] sm:$0xff] }
 0x2e7   :  { %1806 = vmatpush1.bf16.msra.mxu0 %v12306_v27  ;;  %1847 = vmatpush1.bf16.msra.mxu1 %v12307_v25  ;;  %v12366_v27 = vld [vmem:[#allocation66_spill] sm:$0xff] }
 0x2e8   :  { %1891 = vmatprep.subr.bf16.mxu0 %v7375_v30  ;;  %1932 = vmatprep.subr.bf16.mxu1 %v7381_v24 }
 0x35d   :  { %v1582_v57 = vpop.f32.mrb[44].mxu0  ;;  %v1623_v58 = vpop.f32.mrb[44].mxu1 }
 0x35e   :  { %v1583_v59 = vadd.f32 %v1582_v57, %v7389_v31  ;;  %v1584_v60 = vpop.f32.mrb[45].mxu0  ;;  %v1625_v62 = vpop.f32.mrb[45].mxu1  ;;  %v1624_v14 = vadd.f32 %v1623_v58, %v7404_v53 }
 0x35f   :  { %v1585_v63 = vadd.f32 %v1584_v60, %v7393_v29  ;;  %v1586_v0 = vpop.f32.mrb[46].mxu0  ;;  %v1627_v2 = vpop.f32.mrb[46].mxu1  ;;  %v1626_v12 = vadd.f32 %v1625_v62, %v7399_v49  ;;  %v12368_v62 = vld [vmem:[#allocation68_spill] sm:$0xff] }
 0x360   :  { %v5003_v3 = vmul.f32 -1.442695, %v1583_v59  ;;  %v1587_v4 = vpop.f32.mrb[47].mxu0  ;;  %v1628_v5 = vpop.f32.mrb[47].mxu1  ;;  %v12367_v59 = vld [vmem:[#allocation67_spill] sm:$0xff] }
 0x361   :  { %v5004_v11 = vmul.f32 -1.442695, %v1585_v63  ;;  %v5005_v13 = vmul.f32 -1.442695, %v1626_v12 }
 0x362   :  { %5355 = vpow2.f32 %v5003_v3 }
 0x363   :  { %5357 = vpow2.f32 %v5004_v11 }
 0x364   :  { %5359 = vpow2.f32 %v5005_v13 }
 0x365   :  { %5361 = vtanh.f32 %v1624_v14 }
 0x36c   :  { %v5356_v15 = vpop.eup %5355 }
 0x36d   :  { %v5358_v16 = vpop.eup %5357  ;;  %v1633_v17 = vadd.f32 1.0, %v5356_v15 }
 0x36e   :  { %v1639_v18 = vadd.f32 1.0, %v5358_v16  ;;  %v5360_v19 = vpop.eup %5359 }
 0x36f   :  { %5363 = vrcp.f32 %v1633_v17  ;;  %v5362_v20 = vpop.eup %5361  ;;  %v1646_v7 = vadd.f32 1.0, %v5360_v19 }
 0x370   :  { %5365 = vrcp.f32 %v1639_v18 }
 0x371   :  { %5367 = vrcp.f32 %v1646_v7 }
 0x379   :  { %v5364_v21 = vpop.eup %5363 }
 0x37a   :  { %v5366_v26 = vpop.eup %5365  ;;  %v1650_v8 = vmul.f32 %v5364_v21, %v5362_v20 }
 0x37b   :  { %v1649_v33 = vmul.f32 %v5366_v26, %v12364_v34  ;;  %v5368_v12 = vpop.eup %5367 }
 0x37d   :  { %v1698_v35 = vpop.f32.mrb[48].mxu0  ;;  %v1739_v9 = vpop.f32.mrb[48].mxu1  ;;  %v7830_v52 = vadd.f32 %v1650_v8, %v1649_v33 }
 0x37e   :  { %v1746_v6 = vadd.f32 %v1698_v35, %v12365_v32  ;;  %v1748_v25 = vadd.f32 %v1739_v9, %v12366_v27  ;;  %v1700_v57 = vpop.f32.mrb[49].mxu0  ;;  %v1741_v58 = vpop.f32.mrb[49].mxu1 }
 0x37f   :  { %v1747_v60 = vadd.f32 %v1700_v57, %v12367_v59  ;;  %v1749_v63 = vadd.f32 %v1741_v58, %v12368_v62  ;;  %v1702_v0 = vpop.f32.mrb[50].mxu0  ;;  %v1743_v2 = vpop.f32.mrb[50].mxu1  ;;  %5369 = vtanh.f32 %v7830_v52  ;;  %v12370_v57 = vld [vmem:[#allocation13_spill] sm:$0xff]  ;;  %v12371_v58 = vld [vmem:[#allocation14_spill] sm:$0xff]  ;;  %v12372_v59 = vld [vmem:[#allocation15_spill] sm:$0xff] }
 0x380   :  { %v5007_v3 = vmul.f32 -1.442695, %v1746_v6  ;;  %v1703_v4 = vpop.f32.mrb[51].mxu0  ;;  %v1744_v5 = vpop.f32.mrb[51].mxu1  ;;  %v12374_v62 = vld [vmem:[#allocation17_spill] sm:$0xff]  ;;  %v12376_v0 = vld [vmem:[#allocation19_spill] sm:$0xff] }
 0x381   :  { %v5008_v11 = vmul.f32 -1.442695, %v1747_v60  ;;  %v5009_v14 = vmul.f32 -1.442695, %v1749_v63  ;;  %v12373_v60 = vld [vmem:[#allocation16_spill] sm:$0xff]  ;;  %v12375_v63 = vld [vmem:[#allocation18_spill] sm:$0xff] }
 0x382   :  { %5371 = vpow2.f32 %v5007_v3  ;;  %v12377_v2 = vld [vmem:[#allocation20_spill] sm:$0xff]  ;;  %v12378_v3 = vld [vmem:[#allocation21_spill] sm:$0xff]  ;;  %v12379_v4 = vld [vmem:[#allocation22_spill] sm:$0xff] }
 0x383   :  { %5373 = vpow2.f32 %v5008_v11  ;;  %v12380_v5 = vld [vmem:[#allocation23_spill] sm:$0xff]  ;;  %v12381_v11 = vld [vmem:[#allocation24_spill] sm:$0xff] }
 0x384   :  { %5375 = vpow2.f32 %v5009_v14  ;;  %v12384_v14 = vld [vmem:[#allocation27_spill] sm:$0xff] }
 0x385   :  { %5377 = vtanh.f32 %v1748_v25 }
 0x389   :  { %v5370_v13 = vpop.eup %5369 }
 0x38a   :  { %v1653_v15 = vmul.f32 %v5370_v13, %v5368_v12  ;;  %v12382_v12 = vld [vmem:[#allocation25_spill] sm:$0xff]  ;;  %v12383_v13 = vld [vmem:[#allocation26_spill] sm:$0xff] }
 0x38c   :  { %v5372_v16 = vpop.eup %5371  ;;  %v1654_v17 = vpack.c.bf16 %v1653_v15, %v1653_v15  ;;  %v12385_v15 = vld [vmem:[#allocation28_spill] sm:$0xff] }
 0x38d   :  { %v5374_v18 = vpop.eup %5373  ;;  %v1753_v19 = vadd.f32 1.0, %v5372_v16  ;;  %v12386_v16 = vld [vmem:[#allocation29_spill] sm:$0xff] }
 0x38e   :  { %v1759_v20 = vadd.f32 1.0, %v5374_v18  ;;  %5006 = vst [vmem:[%s11386_s6 + $0x4] sm:$0xf] %v1654_v17  ;;  %1807 = vmatprep.mubr.bf16.mxu0 %v1654_v17  ;;  %1848 = vmatprep.mubr.bf16.mxu1 %v1654_v17  ;;  %v5376_v21 = vpop.eup %5375  ;;  %v12387_v17 = vld [vmem:[#allocation30_spill] sm:$0xff]  ;;  %v12388_v18 = vld [vmem:[#allocation31_spill] sm:$0xff] }
 0x38f   :  { %5379 = vrcp.f32 %v1753_v19  ;;  %v5378_v26 = vpop.eup %5377  ;;  %v1766_v33 = vadd.f32 1.0, %v5376_v21  ;;  %v12389_v19 = vld [vmem:[#allocation32_spill] sm:$0xff]  ;;  %v12391_v21 = vld [vmem:[#allocation34_spill] sm:$0xff] }
 0x390   :  { %5381 = vrcp.f32 %v1759_v20  ;;  %v12390_v20 = vld [vmem:[#allocation33_spill] sm:$0xff] }
 0x391   :  { %5383 = vrcp.f32 %v1766_v33  ;;  %v12396_v33 = vld [vmem:[#allocation39_spill] sm:$0xff] }
 0x399   :  { %v5380_v8 = vpop.eup %5379 }
 0x39a   :  { %v5382_v7 = vpop.eup %5381  ;;  %v1770_v34 = vmul.f32 %v5380_v8, %v5378_v26  ;;  %v12392_v26 = vld [vmem:[#allocation35_spill] sm:$0xff]  ;;  %v12393_v8 = vld [vmem:[#allocation36_spill] sm:$0xff] }
 0x39b   :  { %v1769_v35 = vmul.f32 %v5382_v7, %v7418_v1  ;;  %v5384_v32 = vpop.eup %5383  ;;  %v12369_v1 = vld [vmem:[#allocation12_spill] sm:$0xff]  ;;  %v12394_v7 = vld [vmem:[#allocation37_spill] sm:$0xff] }
 0x39d   :  { %v7841_v9 = vadd.f32 %v1770_v34, %v1769_v35  ;;  %v12395_v34 = vld [vmem:[#allocation38_spill] sm:$0xff]  ;;  %v12397_v35 = vld [vmem:[#allocation40_spill] sm:$0xff] }
 0x39f   :  { %5385 = vtanh.f32 %v7841_v9 }
 0x3a9   :  { %v5386_v6 = vpop.eup %5385 }
 0x3aa   :  { %v1773_v27 = vmul.f32 %v5386_v6, %v5384_v32  ;;  %v12398_v32 = vld [vmem:[#allocation41_spill] sm:$0xff]  ;;  %v12399_v6 = vld [vmem:[#allocation42_spill] sm:$0xff] }
 0x3ac   :  { %v1774_v25 = vpack.c.bf16 %v1773_v27, %v1773_v27  ;;  %v12400_v27 = vld [vmem:[#allocation43_spill] sm:$0xff] }
 0x3ae   :  { %1808 = vmatmul.mubr.bf16.vlgmr.msra.gmra.mrb[52].mxu0 %v1774_v25  ;;  %1849 = vmatmul.mubr.bf16.vlgmr.msra.gmra.mrb[52].mxu1 %v1774_v25 }
 0x3af   :  { %1892 = vmatpush1.bf16.msra.mxu0 %v7428_v23  ;;  %1933 = vmatpush1.bf16.msra.mxu1 %v7434_v22 }
 0x3b0   :  { %1893 = vmatprep.subr.bf16.mxu0 %v7440_v41  ;;  %1934 = vmatprep.subr.bf16.mxu1 %v7446_v39 }
 0x3b1   :  { %1923 = vmatprep.mubr.bf16.mxu0 %v12254_v43  ;;  %1964 = vmatprep.mubr.bf16.mxu1 %v12254_v43 }
 0x3b3   :  { %1894 = vmatpush1.bf16.msra.mxu0 %v7454_v42  ;;  %1935 = vmatpush1.bf16.msra.mxu1 %v7460_v28 }
 0x3b4   :  { %1895 = vmatprep.subr.bf16.mxu0 %v7466_v44  ;;  %1936 = vmatprep.subr.bf16.mxu1 %v7472_v45 }
 0x3b7   :  { %1896 = vmatpush1.bf16.msra.mxu0 %v7478_v36  ;;  %1937 = vmatpush1.bf16.msra.mxu1 %v7484_v47 }
 0x3b8   :  { %1897 = vmatprep.subr.bf16.mxu0 %v7490_v50  ;;  %1938 = vmatprep.subr.bf16.mxu1 %v7496_v46 }
 0x3bb   :  { %1898 = vmatpush1.bf16.msra.mxu0 %v7502_v51  ;;  %1939 = vmatpush1.bf16.msra.mxu1 %v7508_v54 }
 0x3bc   :  { %1899 = vmatprep.subr.bf16.mxu0 %v7514_v55  ;;  %1940 = vmatprep.subr.bf16.mxu1 %v7520_v56 }
 0x3bf   :  { %1900 = vmatpush1.bf16.msra.mxu0 %v7526_v61  ;;  %1941 = vmatpush1.bf16.msra.mxu1 %v12369_v1 }
 0x3c0   :  { %1901 = vmatprep.subr.bf16.mxu0 %v12370_v57  ;;  %1942 = vmatprep.subr.bf16.mxu1 %v12371_v58 }
 0x3c3   :  { %1902 = vmatpush1.bf16.msra.mxu0 %v12372_v59  ;;  %1943 = vmatpush1.bf16.msra.mxu1 %v12373_v60 }
 0x3c4   :  { %1903 = vmatprep.subr.bf16.mxu0 %v12374_v62  ;;  %1944 = vmatprep.subr.bf16.mxu1 %v12375_v63 }
 0x3c7   :  { %1904 = vmatpush1.bf16.msra.mxu0 %v12376_v0  ;;  %1945 = vmatpush1.bf16.msra.mxu1 %v12377_v2 }
 0x3c8   :  { %1905 = vmatprep.subr.bf16.mxu0 %v12378_v3  ;;  %1946 = vmatprep.subr.bf16.mxu1 %v12379_v4 }
 0x3cb   :  { %1906 = vmatpush1.bf16.msra.mxu0 %v7598_v38  ;;  %1947 = vmatpush1.bf16.msra.mxu1 %v12380_v5 }
 0x3cc   :  { %2002 = vmatprep.subr.bf16.mxu0 %v12381_v11  ;;  %2043 = vmatprep.subr.bf16.mxu1 %v12382_v12 }
 0x3ce   :  { %1924 = vmatmul.mubr.bf16.vlgmr.msra.gmra.mrb[56].mxu0 %v1774_v25  ;;  %1965 = vmatmul.mubr.bf16.vlgmr.msra.gmra.mrb[56].mxu1 %v1774_v25  ;;  %v12401_v25 = vld [vmem:[#allocation44_spill] sm:$0xff] }
 0x3cf   :  { %2003 = vmatpush1.bf16.msra.mxu0 %v12383_v13  ;;  %2044 = vmatpush1.bf16.msra.mxu1 %v12384_v14 }
 0x3d0   :  { %2004 = vmatprep.subr.bf16.mxu0 %v12385_v15  ;;  %2045 = vmatprep.subr.bf16.mxu1 %v12386_v16 }
 0x3d3   :  { %2005 = vmatpush1.bf16.msra.mxu0 %v12387_v17  ;;  %2046 = vmatpush1.bf16.msra.mxu1 %v12388_v18 }
 0x3d4   :  { %2006 = vmatprep.subr.bf16.mxu0 %v12389_v19  ;;  %2047 = vmatprep.subr.bf16.mxu1 %v12390_v20 }
 0x3d7   :  { %2007 = vmatpush1.bf16.msra.mxu0 %v12391_v21  ;;  %2048 = vmatpush1.bf16.msra.mxu1 %v12392_v26  ;;  %v12402_v21 = vld [vmem:[#allocation45_spill] sm:$0xff]  ;;  %v12403_v26 = vld [vmem:[#allocation46_spill] sm:$0xff] }
 0x3d8   :  { %2008 = vmatprep.subr.bf16.mxu0 %v12393_v8  ;;  %2049 = vmatprep.subr.bf16.mxu1 %v12394_v7  ;;  %v12404_v8 = vld [vmem:[#allocation47_spill] sm:$0xff]  ;;  %v12405_v7 = vld [vmem:[#allocation48_spill] sm:$0xff] }
 0x3db   :  { %2009 = vmatpush1.bf16.msra.mxu0 %v12395_v34  ;;  %2050 = vmatpush1.bf16.msra.mxu1 %v12396_v33  ;;  %v12406_v34 = vld [vmem:[#allocation49_spill] sm:$0xff] }
 0x3dc   :  { %2010 = vmatprep.subr.bf16.mxu0 %v12397_v35  ;;  %2051 = vmatprep.subr.bf16.mxu1 %v12398_v32 }
 0x3df   :  { %2011 = vmatpush1.bf16.msra.mxu0 %v12399_v6  ;;  %2052 = vmatpush1.bf16.msra.mxu1 %v12400_v27 }
 0x3e0   :  { %2012 = vmatprep.subr.bf16.mxu0 %v12401_v25  ;;  %2053 = vmatprep.subr.bf16.mxu1 %v12402_v21  ;;  %v7909_v21 = vld [vmem:[%s11383_s3 + $0xe0] ss:$16 sps:$4 sm:$0xff]  }
 0x3e1   :  { %12407 = vst [vmem:[#allocation54_spill] sm:$0xff] %v7909_v21 }
 0x3e3   :  { %2013 = vmatpush1.bf16.msra.mxu0 %v12403_v26  ;;  %2054 = vmatpush1.bf16.msra.mxu1 %v12404_v8 }
 0x3e4   :  { %2014 = vmatprep.subr.bf16.mxu0 %v12405_v7  ;;  %2055 = vmatprep.subr.bf16.mxu1 %v12406_v34  ;;  %v7915_v7 = vld [vmem:[%s11383_s3 + $0xe8] ss:$16 sps:$4 sm:$0xff]  }
 0x3e5   :  { %12408 = vst [vmem:[#allocation55_spill] sm:$0xff] %v7915_v7 }
 0x3e7   :  { %2015 = vmatpush1.bf16.msra.mxu0 %v7768_v10  ;;  %2056 = vmatpush1.bf16.msra.mxu1 %v7774_v48 }
 0x3e8   :  { %2016 = vmatprep.subr.bf16.mxu0 %v7780_v37  ;;  %2057 = vmatprep.subr.bf16.mxu1 %v7786_v40  ;;  %v7921_v37 = vld [vmem:[%s11383_s3 + $0x104] ss:$16 sps:$4 sm:$0xff]   ;;  %v7927_v40 = vld [vmem:[%s11383_s3 + $0x10c] ss:$16 sps:$4 sm:$0xff]  }
 0x3e9   :  { %12409 = vst [vmem:[#allocation56_spill] sm:$0xff] %v7921_v37  ;;  %12410 = vst [vmem:[#allocation57_spill] sm:$0xff] %v7927_v40 }
 0x3eb   :  { %2017 = vmatpush1.bf16.msra.mxu0 %v7909_v21  ;;  %2058 = vmatpush1.bf16.msra.mxu1 %v7915_v7  ;;  %v7933_v21 = vld [vmem:[%s11383_s3 + $0x100] ss:$16 sps:$4 sm:$0xff]   ;;  %v7939_v7 = vld [vmem:[%s11383_s3 + $0x108] ss:$16 sps:$4 sm:$0xff]  }
 0x3ec   :  { %2018 = vmatprep.subr.bf16.mxu0 %v7921_v37  ;;  %2059 = vmatprep.subr.bf16.mxu1 %v7927_v40  ;;  %12411 = vst [vmem:[#allocation58_spill] sm:$0xff] %v7933_v21  ;;  %12412 = vst [vmem:[#allocation59_spill] sm:$0xff] %v7939_v7  ;;  %v7945_v37 = vld [vmem:[%s11383_s3 + $0x124] ss:$16 sps:$4 sm:$0xff]   ;;  %v7951_v40 = vld [vmem:[%s11383_s3 + $0x12c] ss:$16 sps:$4 sm:$0xff]  }
 0x3ed   :  { %12413 = vst [vmem:[#allocation60_spill] sm:$0xff] %v7945_v37  ;;  %12414 = vst [vmem:[#allocation61_spill] sm:$0xff] %v7951_v40 }
 0x3ef   :  { %2019 = vmatpush1.bf16.msra.mxu0 %v7933_v21  ;;  %2060 = vmatpush1.bf16.msra.mxu1 %v7939_v7  ;;  %v7957_v21 = vld [vmem:[%s11383_s3 + $0x120] ss:$16 sps:$4 sm:$0xff]   ;;  %v7963_v7 = vld [vmem:[%s11383_s3 + $0x128] ss:$16 sps:$4 sm:$0xff]  }
 0x3f0   :  { %2020 = vmatprep.subr.bf16.mxu0 %v7945_v37  ;;  %2061 = vmatprep.subr.bf16.mxu1 %v7951_v40  ;;  %12415 = vst [vmem:[#allocation62_spill] sm:$0xff] %v7957_v21  ;;  %12416 = vst [vmem:[#allocation63_spill] sm:$0xff] %v7963_v7  ;;  %v7969_v37 = vld [vmem:[%s11383_s3 + $0x144] ss:$16 sps:$4 sm:$0xff]   ;;  %v7975_v40 = vld [vmem:[%s11383_s3 + $0x14c] ss:$16 sps:$4 sm:$0xff]  }
 0x3f1   :  { %12417 = vst [vmem:[#allocation64_spill] sm:$0xff] %v7969_v37  ;;  %12418 = vst [vmem:[#allocation11_spill] sm:$0xff] %v7975_v40 }
 0x3f3   :  { %2021 = vmatpush1.bf16.msra.mxu0 %v7957_v21  ;;  %2062 = vmatpush1.bf16.msra.mxu1 %v7963_v7  ;;  %v7981_v21 = vld [vmem:[%s11383_s3 + $0x140] ss:$16 sps:$4 sm:$0xff]   ;;  %v7987_v7 = vld [vmem:[%s11383_s3 + $0x148] ss:$16 sps:$4 sm:$0xff]  }
 0x3f4   :  { %2022 = vmatprep.subr.bf16.mxu0 %v7969_v37  ;;  %2063 = vmatprep.subr.bf16.mxu1 %v7975_v40  ;;  %12419 = vst [vmem:[#allocation65_spill] sm:$0xff] %v7981_v21  ;;  %12420 = vst [vmem:[#allocation66_spill] sm:$0xff] %v7987_v7  ;;  %v7993_v37 = vld [vmem:[%s11383_s3 + $0x164] ss:$16 sps:$4 sm:$0xff]   ;;  %v7999_v40 = vld [vmem:[%s11383_s3 + $0x16c] ss:$16 sps:$4 sm:$0xff]  }
 0x3f5   :  { %12421 = vst [vmem:[#allocation67_spill] sm:$0xff] %v7993_v37  ;;  %12422 = vst [vmem:[#allocation68_spill] sm:$0xff] %v7999_v40 }
 0x3f7   :  { %2023 = vmatpush1.bf16.msra.mxu0 %v7981_v21  ;;  %2064 = vmatpush1.bf16.msra.mxu1 %v7987_v7  ;;  %v8005_v21 = vld [vmem:[%s11383_s3 + $0x160] ss:$16 sps:$4 sm:$0xff]   ;;  %v8011_v7 = vld [vmem:[%s11383_s3 + $0x168] ss:$16 sps:$4 sm:$0xff]  }
 0x3f8   :  { %2024 = vmatprep.subr.bf16.mxu0 %v7993_v37  ;;  %2065 = vmatprep.subr.bf16.mxu1 %v7999_v40  ;;  %12423 = vst [vmem:[#allocation12_spill] sm:$0xff] %v8005_v21  ;;  %12424 = vst [vmem:[#allocation13_spill] sm:$0xff] %v8011_v7  ;;  %v8017_v37 = vld [vmem:[%s11383_s3 + $0x184] ss:$16 sps:$4 sm:$0xff]   ;;  %v8023_v40 = vld [vmem:[%s11383_s3 + $0x18c] ss:$16 sps:$4 sm:$0xff]  }
 0x3f9   :  { %12425 = vst [vmem:[#allocation14_spill] sm:$0xff] %v8017_v37  ;;  %12426 = vst [vmem:[#allocation15_spill] sm:$0xff] %v8023_v40 }
 0x3fb   :  { %2025 = vmatpush1.bf16.msra.mxu0 %v8005_v21  ;;  %2066 = vmatpush1.bf16.msra.mxu1 %v8011_v7  ;;  %v8029_v21 = vld [vmem:[%s11383_s3 + $0x180] ss:$16 sps:$4 sm:$0xff]   ;;  %v8035_v7 = vld [vmem:[%s11383_s3 + $0x188] ss:$16 sps:$4 sm:$0xff]  }
 0x3fc   :  { %2026 = vmatprep.subr.bf16.mxu0 %v8017_v37  ;;  %2067 = vmatprep.subr.bf16.mxu1 %v8023_v40  ;;  %12427 = vst [vmem:[#allocation16_spill] sm:$0xff] %v8029_v21  ;;  %12428 = vst [vmem:[#allocation17_spill] sm:$0xff] %v8035_v7  ;;  %v8041_v37 = vld [vmem:[%s11383_s3 + $0x1a4] ss:$16 sps:$4 sm:$0xff]   ;;  %v8047_v40 = vld [vmem:[%s11383_s3 + $0x1ac] ss:$16 sps:$4 sm:$0xff]  }
 0x3fd   :  { %12429 = vst [vmem:[#allocation18_spill] sm:$0xff] %v8041_v37  ;;  %12430 = vst [vmem:[#allocation19_spill] sm:$0xff] %v8047_v40 }
 0x3ff   :  { %2027 = vmatpush1.bf16.msra.mxu0 %v8029_v21  ;;  %2068 = vmatpush1.bf16.msra.mxu1 %v8035_v7  ;;  %v8053_v21 = vld [vmem:[%s11383_s3 + $0x1a0] ss:$16 sps:$4 sm:$0xff]   ;;  %v8059_v7 = vld [vmem:[%s11383_s3 + $0x1a8] ss:$16 sps:$4 sm:$0xff]  }
 0x400   :  { %2028 = vmatprep.subr.bf16.mxu0 %v8041_v37  ;;  %2069 = vmatprep.subr.bf16.mxu1 %v8047_v40  ;;  %12431 = vst [vmem:[#allocation20_spill] sm:$0xff] %v8053_v21  ;;  %12432 = vst [vmem:[#allocation21_spill] sm:$0xff] %v8059_v7  ;;  %v8065_v37 = vld [vmem:[%s11383_s3 + $0x1c4] ss:$16 sps:$4 sm:$0xff]   ;;  %v8071_v40 = vld [vmem:[%s11383_s3 + $0x1cc] ss:$16 sps:$4 sm:$0xff]  }
 0x401   :  { %12433 = vst [vmem:[#allocation22_spill] sm:$0xff] %v8065_v37  ;;  %12434 = vst [vmem:[#allocation23_spill] sm:$0xff] %v8071_v40 }
 0x403   :  { %2029 = vmatpush1.bf16.msra.mxu0 %v8053_v21  ;;  %2070 = vmatpush1.bf16.msra.mxu1 %v8059_v7  ;;  %v8077_v21 = vld [vmem:[%s11383_s3 + $0x1c0] ss:$16 sps:$4 sm:$0xff]   ;;  %v8083_v7 = vld [vmem:[%s11383_s3 + $0x1c8] ss:$16 sps:$4 sm:$0xff]  }
 0x404   :  { %2030 = vmatprep.subr.bf16.mxu0 %v8065_v37  ;;  %2071 = vmatprep.subr.bf16.mxu1 %v8071_v40  ;;  %12435 = vst [vmem:[#allocation24_spill] sm:$0xff] %v8077_v21  ;;  %12436 = vst [vmem:[#allocation25_spill] sm:$0xff] %v8083_v7  ;;  %v8089_v37 = vld [vmem:[%s11383_s3 + $0x1e4] ss:$16 sps:$4 sm:$0xff]   ;;  %v8095_v40 = vld [vmem:[%s11383_s3 + $0x1ec] ss:$16 sps:$4 sm:$0xff]  }
 0x405   :  { %12437 = vst [vmem:[#allocation26_spill] sm:$0xff] %v8089_v37  ;;  %12438 = vst [vmem:[#allocation27_spill] sm:$0xff] %v8095_v40 }
 0x407   :  { %2031 = vmatpush1.bf16.msra.mxu0 %v8077_v21  ;;  %2072 = vmatpush1.bf16.msra.mxu1 %v8083_v7  ;;  %v8101_v21 = vld [vmem:[%s11383_s3 + $0x1e0] ss:$16 sps:$4 sm:$0xff]   ;;  %v8107_v7 = vld [vmem:[%s11383_s3 + $0x1e8] ss:$16 sps:$4 sm:$0xff]  }
 0x408   :  { %2032 = vmatprep.subr.bf16.mxu0 %v8089_v37  ;;  %2073 = vmatprep.subr.bf16.mxu1 %v8095_v40  ;;  %12439 = vst [vmem:[#allocation28_spill] sm:$0xff] %v8101_v21  ;;  %12440 = vst [vmem:[#allocation29_spill] sm:$0xff] %v8107_v7 }
 0x40b   :  { %2033 = vmatpush1.bf16.msra.mxu0 %v8101_v21  ;;  %2074 = vmatpush1.bf16.msra.mxu1 %v8107_v7 }
 0x40c   :  { %2118 = vmatprep.subr.bf16.mxu0 %v7375_v30  ;;  %2159 = vmatprep.subr.bf16.mxu1 %v7381_v24 }
 0x481   :  { %v1809_v37 = vpop.f32.mrb[52].mxu0  ;;  %v1850_v40 = vpop.f32.mrb[52].mxu1 }
 0x482   :  { %v1810_v48 = vadd.f32 %v1809_v37, %v7389_v31  ;;  %v1811_v10 = vpop.f32.mrb[53].mxu0  ;;  %v1852_v34 = vpop.f32.mrb[53].mxu1  ;;  %v1851_v24 = vadd.f32 %v1850_v40, %v7404_v53  ;;  %v12441_v40 = vld [vmem:[#allocation69_spill] sm:$0xff]  ;;  %v12444_v53 = vld [vmem:[#allocation72_spill] sm:$0xff] }
 0x483   :  { %v1812_v8 = vadd.f32 %v1811_v10, %v7393_v29  ;;  %v1813_v21 = vpop.f32.mrb[54].mxu0  ;;  %v1854_v26 = vpop.f32.mrb[54].mxu1  ;;  %v1853_v30 = vadd.f32 %v1852_v34, %v7399_v49 }
 0x484   :  { %v5010_v25 = vmul.f32 -1.442695, %v1810_v48  ;;  %v1814_v27 = vpop.f32.mrb[55].mxu0  ;;  %v1855_v6 = vpop.f32.mrb[55].mxu1 }
 0x485   :  { %v5011_v32 = vmul.f32 -1.442695, %v1812_v8  ;;  %v5012_v7 = vmul.f32 -1.442695, %v1853_v30 }
 0x486   :  { %5387 = vpow2.f32 %v5010_v25 }
 0x487   :  { %5389 = vpow2.f32 %v5011_v32 }
 0x488   :  { %5391 = vpow2.f32 %v5012_v7  ;;  %v12442_v7 = vld [vmem:[#allocation70_spill] sm:$0xff] }
 0x489   :  { %5393 = vtanh.f32 %v1851_v24 }
 0x490   :  { %v5388_v35 = vpop.eup %5387 }
 0x491   :  { %v5390_v33 = vpop.eup %5389  ;;  %v1860_v37 = vadd.f32 1.0, %v5388_v35 }
 0x492   :  { %v1866_v31 = vadd.f32 1.0, %v5390_v33  ;;  %v5392_v10 = vpop.eup %5391 }
 0x493   :  { %5395 = vrcp.f32 %v1860_v37  ;;  %v5394_v48 = vpop.eup %5393  ;;  %v1873_v6 = vadd.f32 1.0, %v5392_v10 }
 0x494   :  { %5397 = vrcp.f32 %v1866_v31  ;;  %v12443_v31 = vld [vmem:[#allocation71_spill] sm:$0xff] }
 0x495   :  { %5399 = vrcp.f32 %v1873_v6 }
 0x49d   :  { %v5396_v21 = vpop.eup %5395 }
 0x49e   :  { %v5398_v26 = vpop.eup %5397  ;;  %v1877_v8 = vmul.f32 %v5396_v21, %v5394_v48 }
 0x49f   :  { %v1876_v32 = vmul.f32 %v5398_v26, %v7830_v52 }
 0x4a1   :  { %v1925_v34 = vpop.f32.mrb[56].mxu0  ;;  %v1966_v27 = vpop.f32.mrb[56].mxu1  ;;  %v8117_v25 = vadd.f32 %v1877_v8, %v1876_v32 }
 0x4a2   :  { %v1973_v35 = vadd.f32 %v1925_v34, %v12441_v40  ;;  %v1975_v30 = vadd.f32 %v1966_v27, %v12442_v7  ;;  %v1927_v33 = vpop.f32.mrb[57].mxu0  ;;  %v1968_v24 = vpop.f32.mrb[57].mxu1 }
 0x4a3   :  { %v1974_v37 = vadd.f32 %v1927_v33, %v12443_v31  ;;  %v1976_v49 = vadd.f32 %v1968_v24, %v12444_v53  ;;  %v1929_v29 = vpop.f32.mrb[58].mxu0  ;;  %v1970_v48 = vpop.f32.mrb[58].mxu1  ;;  %5401 = vtanh.f32 %v8117_v25 }
 0x4a4   :  { %v5014_v52 = vmul.f32 -1.442695, %v1973_v35  ;;  %v1930_v10 = vpop.f32.mrb[59].mxu0  ;;  %v1971_v21 = vpop.f32.mrb[59].mxu1 }
 0x4a5   :  { %v5015_v26 = vmul.f32 -1.442695, %v1974_v37  ;;  %v5400_v8 = vpop.eup %5399  ;;  %v5016_v32 = vmul.f32 -1.442695, %v1976_v49 }
 0x4a6   :  { %5403 = vpow2.f32 %v5014_v52 }
 0x4a7   :  { %5405 = vpow2.f32 %v5015_v26 }
 0x4a8   :  { %5407 = vpow2.f32 %v5016_v32  ;;  %v12488_v32 = vld [vmem:[#allocation19_spill] sm:$0xff] }
 0x4a9   :  { %5409 = vtanh.f32 %v1975_v30 }
 0x4ad   :  { %v5402_v6 = vpop.eup %5401 }
 0x4ae   :  { %v1880_v34 = vmul.f32 %v5402_v6, %v5400_v8  ;;  %v12486_v8 = vld [vmem:[#allocation17_spill] sm:$0xff]  ;;  %v12487_v6 = vld [vmem:[#allocation18_spill] sm:$0xff] }
 0x4b0   :  { %v5404_v27 = vpop.eup %5403  ;;  %v1881_v40 = vpack.c.bf16 %v1880_v34, %v1880_v34  ;;  %v12489_v34 = vld [vmem:[#allocation20_spill] sm:$0xff] }
 0x4b1   :  { %v5406_v7 = vpop.eup %5405  ;;  %v1980_v33 = vadd.f32 1.0, %v5404_v27  ;;  %v12490_v27 = vld [vmem:[#allocation21_spill] sm:$0xff] }
 0x4b2   :  { %v1986_v29 = vadd.f32 1.0, %v5406_v7  ;;  %5013 = vst [vmem:[%s11386_s6 + $0x8] sm:$0xf] %v1881_v40  ;;  %2034 = vmatprep.mubr.bf16.mxu0 %v1881_v40  ;;  %2075 = vmatprep.mubr.bf16.mxu1 %v1881_v40  ;;  %v5408_v53 = vpop.eup %5407  ;;  %v12491_v40 = vld [vmem:[#allocation22_spill] sm:$0xff]  ;;  %v12492_v7 = vld [vmem:[#allocation23_spill] sm:$0xff] }
 0x4b3   :  { %5411 = vrcp.f32 %v1980_v33  ;;  %v5410_v35 = vpop.eup %5409  ;;  %v1993_v37 = vadd.f32 1.0, %v5408_v53  ;;  %v12493_v33 = vld [vmem:[#allocation24_spill] sm:$0xff]  ;;  %v12495_v53 = vld [vmem:[#allocation26_spill] sm:$0xff] }
 0x4b4   :  { %5413 = vrcp.f32 %v1986_v29  ;;  %v12494_v29 = vld [vmem:[#allocation25_spill] sm:$0xff] }
 0x4b5   :  { %5415 = vrcp.f32 %v1993_v37  ;;  %v8236_v37 = vld [vmem:[%s11382_s2 + $0xc] ss:$16 sps:$4 sm:$0xff]  }
 0x4bd   :  { %v5412_v24 = vpop.eup %5411 }
 0x4be   :  { %v5414_v49 = vpop.eup %5413  ;;  %v1997_v31 = vmul.f32 %v5412_v24, %v5410_v35  ;;  %v12496_v35 = vld [vmem:[#allocation27_spill] sm:$0xff]  ;;  %v12497_v24 = vld [vmem:[#allocation28_spill] sm:$0xff] }
 0x4bf   :  { %v1996_v48 = vmul.f32 %v5414_v49, %v7841_v9  ;;  %v5416_v30 = vpop.eup %5415  ;;  %v12463_v9 = vld [vmem:[#allocation52_spill] sm:$0xff]  ;;  %v12498_v49 = vld [vmem:[#allocation29_spill] sm:$0xff] }
 0x4c1   :  { %v8128_v52 = vadd.f32 %v1997_v31, %v1996_v48  ;;  %v8230_v31 = vld [vmem:[%s11382_s2 + $0x4] ss:$16 sps:$4 sm:$0xff]  }
 0x4c3   :  { %5417 = vtanh.f32 %v8128_v52 }
 0x4cd   :  { %v5418_v10 = vpop.eup %5417 }
 0x4ce   :  { %v2000_v21 = vmul.f32 %v5418_v10, %v5416_v30  ;;  %v12499_v10 = vld [vmem:[#allocation7_spill] sm:$0xff] }
 0x4d0   :  { %v2001_v26 = vpack.c.bf16 %v2000_v21, %v2000_v21 }
 0x4d2   :  { %2035 = vmatmul.mubr.bf16.vlgmr.msra.gmra.mrb[60].mxu0 %v2001_v26  ;;  %2076 = vmatmul.mubr.bf16.vlgmr.msra.gmra.mrb[60].mxu1 %v2001_v26 }
 0x4d3   :  { %2119 = vmatpush1.bf16.msra.mxu0 %v7428_v23  ;;  %2160 = vmatpush1.bf16.msra.mxu1 %v7434_v22  ;;  %v12445_v23 = vld [vmem:[#allocation34_spill] sm:$0xff]  ;;  %v12446_v22 = vld [vmem:[#allocation35_spill] sm:$0xff] }
 0x4d4   :  { %2120 = vmatprep.subr.bf16.mxu0 %v7440_v41  ;;  %2161 = vmatprep.subr.bf16.mxu1 %v7446_v39  ;;  %v12447_v41 = vld [vmem:[#allocation36_spill] sm:$0xff]  ;;  %v12448_v39 = vld [vmem:[#allocation37_spill] sm:$0xff] }
 0x4d5   :  { %2150 = vmatprep.mubr.bf16.mxu0 %v12254_v43  ;;  %2191 = vmatprep.mubr.bf16.mxu1 %v12254_v43 }
 0x4d7   :  { %2121 = vmatpush1.bf16.msra.mxu0 %v7454_v42  ;;  %2162 = vmatpush1.bf16.msra.mxu1 %v7460_v28  ;;  %v12449_v42 = vld [vmem:[#allocation38_spill] sm:$0xff]  ;;  %v12450_v28 = vld [vmem:[#allocation39_spill] sm:$0xff] }
 0x4d8   :  { %2122 = vmatprep.subr.bf16.mxu0 %v7466_v44  ;;  %2163 = vmatprep.subr.bf16.mxu1 %v7472_v45  ;;  %v12451_v44 = vld [vmem:[#allocation40_spill] sm:$0xff]  ;;  %v12452_v45 = vld [vmem:[#allocation41_spill] sm:$0xff] }
 0x4db   :  { %2123 = vmatpush1.bf16.msra.mxu0 %v7478_v36  ;;  %2164 = vmatpush1.bf16.msra.mxu1 %v7484_v47  ;;  %v12453_v36 = vld [vmem:[#allocation42_spill] sm:$0xff]  ;;  %v12454_v47 = vld [vmem:[#allocation43_spill] sm:$0xff] }
 0x4dc   :  { %2124 = vmatprep.subr.bf16.mxu0 %v7490_v50  ;;  %2165 = vmatprep.subr.bf16.mxu1 %v7496_v46  ;;  %v12455_v50 = vld [vmem:[#allocation44_spill] sm:$0xff]  ;;  %v12456_v46 = vld [vmem:[#allocation45_spill] sm:$0xff] }
 0x4df   :  { %2125 = vmatpush1.bf16.msra.mxu0 %v7502_v51  ;;  %2166 = vmatpush1.bf16.msra.mxu1 %v7508_v54  ;;  %v12457_v51 = vld [vmem:[#allocation46_spill] sm:$0xff]  ;;  %v12458_v54 = vld [vmem:[#allocation47_spill] sm:$0xff] }
 0x4e0   :  { %2126 = vmatprep.subr.bf16.mxu0 %v7514_v55  ;;  %2167 = vmatprep.subr.bf16.mxu1 %v7520_v56  ;;  %v12459_v55 = vld [vmem:[#allocation48_spill] sm:$0xff]  ;;  %v12460_v56 = vld [vmem:[#allocation49_spill] sm:$0xff] }
 0x4e3   :  { %2127 = vmatpush1.bf16.msra.mxu0 %v7526_v61  ;;  %2168 = vmatpush1.bf16.msra.mxu1 %v12369_v1  ;;  %v12461_v61 = vld [vmem:[#allocation50_spill] sm:$0xff]  ;;  %v12464_v1 = vld [vmem:[#allocation53_spill] sm:$0xff] }
 0x4e4   :  { %2128 = vmatprep.subr.bf16.mxu0 %v12370_v57  ;;  %2169 = vmatprep.subr.bf16.mxu1 %v12371_v58  ;;  %v12465_v57 = vld [vmem:[#allocation54_spill] sm:$0xff]  ;;  %v12466_v58 = vld [vmem:[#allocation55_spill] sm:$0xff] }
 0x4e7   :  { %2129 = vmatpush1.bf16.msra.mxu0 %v12372_v59  ;;  %2170 = vmatpush1.bf16.msra.mxu1 %v12373_v60  ;;  %v12467_v59 = vld [vmem:[#allocation56_spill] sm:$0xff]  ;;  %v12468_v60 = vld [vmem:[#allocation57_spill] sm:$0xff] }
 0x4e8   :  { %2130 = vmatprep.subr.bf16.mxu0 %v12374_v62  ;;  %2171 = vmatprep.subr.bf16.mxu1 %v12375_v63  ;;  %v12469_v62 = vld [vmem:[#allocation58_spill] sm:$0xff]  ;;  %v12470_v63 = vld [vmem:[#allocation59_spill] sm:$0xff] }
 0x4eb   :  { %2131 = vmatpush1.bf16.msra.mxu0 %v12376_v0  ;;  %2172 = vmatpush1.bf16.msra.mxu1 %v12377_v2  ;;  %v12471_v0 = vld [vmem:[#allocation60_spill] sm:$0xff]  ;;  %v12472_v2 = vld [vmem:[#allocation61_spill] sm:$0xff] }
 0x4ec   :  { %2132 = vmatprep.subr.bf16.mxu0 %v12378_v3  ;;  %2173 = vmatprep.subr.bf16.mxu1 %v12379_v4  ;;  %v12473_v3 = vld [vmem:[#allocation62_spill] sm:$0xff]  ;;  %v12474_v4 = vld [vmem:[#allocation63_spill] sm:$0xff] }
 0x4ef   :  { %2133 = vmatpush1.bf16.msra.mxu0 %v7598_v38  ;;  %2174 = vmatpush1.bf16.msra.mxu1 %v12380_v5  ;;  %v12462_v38 = vld [vmem:[#allocation51_spill] sm:$0xff]  ;;  %v12475_v5 = vld [vmem:[#allocation64_spill] sm:$0xff] }
 0x4f0   :  { %2229 = vmatprep.subr.bf16.mxu0 %v12381_v11  ;;  %2270 = vmatprep.subr.bf16.mxu1 %v12382_v12  ;;  %v12476_v11 = vld [vmem:[#allocation11_spill] sm:$0xff]  ;;  %v12477_v12 = vld [vmem:[#allocation65_spill] sm:$0xff] }
 0x4f2   :  { %2151 = vmatmul.mubr.bf16.vlgmr.msra.gmra.mrb[64].mxu0 %v2001_v26  ;;  %2192 = vmatmul.mubr.bf16.vlgmr.msra.gmra.mrb[64].mxu1 %v2001_v26 }
 0x4f3   :  { %2230 = vmatpush1.bf16.msra.mxu0 %v12383_v13  ;;  %2271 = vmatpush1.bf16.msra.mxu1 %v12384_v14  ;;  %v12478_v13 = vld [vmem:[#allocation66_spill] sm:$0xff]  ;;  %v12479_v14 = vld [vmem:[#allocation67_spill] sm:$0xff] }
 0x4f4   :  { %2231 = vmatprep.subr.bf16.mxu0 %v12385_v15  ;;  %2272 = vmatprep.subr.bf16.mxu1 %v12386_v16  ;;  %v12480_v15 = vld [vmem:[#allocation68_spill] sm:$0xff] }
 0x4f5   :  { %v12481_v16 = vld [vmem:[#allocation12_spill] sm:$0xff] }
 0x4f7   :  { %2232 = vmatpush1.bf16.msra.mxu0 %v12387_v17  ;;  %2273 = vmatpush1.bf16.msra.mxu1 %v12388_v18  ;;  %v12482_v17 = vld [vmem:[#allocation13_spill] sm:$0xff]  ;;  %v12483_v18 = vld [vmem:[#allocation14_spill] sm:$0xff] }
 0x4f8   :  { %2233 = vmatprep.subr.bf16.mxu0 %v12389_v19  ;;  %2274 = vmatprep.subr.bf16.mxu1 %v12390_v20  ;;  %v12484_v19 = vld [vmem:[#allocation15_spill] sm:$0xff]  ;;  %v12485_v20 = vld [vmem:[#allocation16_spill] sm:$0xff] }
 0x4fb   :  { %2234 = vmatpush1.bf16.msra.mxu0 %v12445_v23  ;;  %2275 = vmatpush1.bf16.msra.mxu1 %v12446_v22  ;;  %v12500_v22 = vld [vmem:[#allocation8_spill] sm:$0xff] }
 0x4fc   :  { %2235 = vmatprep.subr.bf16.mxu0 %v12447_v41  ;;  %2276 = vmatprep.subr.bf16.mxu1 %v12448_v39 }
 0x4ff   :  { %2236 = vmatpush1.bf16.msra.mxu0 %v12449_v42  ;;  %2277 = vmatpush1.bf16.msra.mxu1 %v12450_v28 }
 0x500   :  { %2237 = vmatprep.subr.bf16.mxu0 %v12451_v44  ;;  %2278 = vmatprep.subr.bf16.mxu1 %v12452_v45 }
 0x503   :  { %2238 = vmatpush1.bf16.msra.mxu0 %v12453_v36  ;;  %2279 = vmatpush1.bf16.msra.mxu1 %v12454_v47  ;;  %v12501_v47 = vld [vmem:[#allocation9_spill] sm:$0xff] }
 0x504   :  { %2239 = vmatprep.subr.bf16.mxu0 %v12455_v50  ;;  %2280 = vmatprep.subr.bf16.mxu1 %v12456_v46 }
 0x507   :  { %2240 = vmatpush1.bf16.msra.mxu0 %v12457_v51  ;;  %2281 = vmatpush1.bf16.msra.mxu1 %v12458_v54  ;;  %v12502_v51 = vld [vmem:[#allocation10_spill] sm:$0xff] }
 0x508   :  { %2241 = vmatprep.subr.bf16.mxu0 %v12459_v55  ;;  %2282 = vmatprep.subr.bf16.mxu1 %v12460_v56 }
 0x50b   :  { %2242 = vmatpush1.bf16.msra.mxu0 %v12461_v61  ;;  %2283 = vmatpush1.bf16.msra.mxu1 %v12462_v38 }
 0x50c   :  { %2243 = vmatprep.subr.bf16.mxu0 %v12463_v9  ;;  %2284 = vmatprep.subr.bf16.mxu1 %v12464_v1 }
 0x50f   :  { %2244 = vmatpush1.bf16.msra.mxu0 %v12465_v57  ;;  %2285 = vmatpush1.bf16.msra.mxu1 %v12466_v58 }
 0x510   :  { %2245 = vmatprep.subr.bf16.mxu0 %v12467_v59  ;;  %2286 = vmatprep.subr.bf16.mxu1 %v12468_v60 }
 0x513   :  { %2246 = vmatpush1.bf16.msra.mxu0 %v12469_v62  ;;  %2287 = vmatpush1.bf16.msra.mxu1 %v12470_v63 }
 0x514   :  { %2247 = vmatprep.subr.bf16.mxu0 %v12471_v0  ;;  %2288 = vmatprep.subr.bf16.mxu1 %v12472_v2 }
 0x517   :  { %2248 = vmatpush1.bf16.msra.mxu0 %v12473_v3  ;;  %2289 = vmatpush1.bf16.msra.mxu1 %v12474_v4 }
 0x518   :  { %2249 = vmatprep.subr.bf16.mxu0 %v12475_v5  ;;  %2290 = vmatprep.subr.bf16.mxu1 %v12476_v11 }
 0x51b   :  { %2250 = vmatpush1.bf16.msra.mxu0 %v12477_v12  ;;  %2291 = vmatpush1.bf16.msra.mxu1 %v12478_v13 }
 0x51c   :  { %2251 = vmatprep.subr.bf16.mxu0 %v12479_v14  ;;  %2292 = vmatprep.subr.bf16.mxu1 %v12480_v15 }
 0x51f   :  { %2252 = vmatpush1.bf16.msra.mxu0 %v12481_v16  ;;  %2293 = vmatpush1.bf16.msra.mxu1 %v12482_v17 }
 0x520   :  { %2253 = vmatprep.subr.bf16.mxu0 %v12483_v18  ;;  %2294 = vmatprep.subr.bf16.mxu1 %v12484_v19 }
 0x523   :  { %2254 = vmatpush1.bf16.msra.mxu0 %v12485_v20  ;;  %2295 = vmatpush1.bf16.msra.mxu1 %v12486_v8 }
 0x524   :  { %2255 = vmatprep.subr.bf16.mxu0 %v12487_v6  ;;  %2296 = vmatprep.subr.bf16.mxu1 %v12488_v32 }
 0x527   :  { %2256 = vmatpush1.bf16.msra.mxu0 %v12489_v34  ;;  %2297 = vmatpush1.bf16.msra.mxu1 %v12490_v27 }
 0x528   :  { %2257 = vmatprep.subr.bf16.mxu0 %v12491_v40  ;;  %2298 = vmatprep.subr.bf16.mxu1 %v12492_v7 }
 0x52b   :  { %2258 = vmatpush1.bf16.msra.mxu0 %v12493_v33  ;;  %2299 = vmatpush1.bf16.msra.mxu1 %v12494_v29 }
 0x52c   :  { %2259 = vmatprep.subr.bf16.mxu0 %v12495_v53  ;;  %2300 = vmatprep.subr.bf16.mxu1 %v12496_v35 }
 0x52f   :  { %2260 = vmatpush1.bf16.msra.mxu0 %v12497_v24  ;;  %2301 = vmatpush1.bf16.msra.mxu1 %v12498_v49 }
 0x530   :  { %2345 = vmatprep.subr.bf16.mxu0 %v8230_v31  ;;  %2386 = vmatprep.subr.bf16.mxu1 %v8236_v37 }
 0x5a5   :  { %v2036_v48 = vpop.f32.mrb[60].mxu0  ;;  %v2077_v30 = vpop.f32.mrb[60].mxu1 }
 0x5a6   :  { %v2037_v21 = vadd.f32 %v2036_v48, %v12499_v10  ;;  %v2038_v26 = vpop.f32.mrb[61].mxu0  ;;  %v2079_v23 = vpop.f32.mrb[61].mxu1  ;;  %v2078_v54 = vadd.f32 %v2077_v30, %v12502_v51  ;;  %v12503_v30 = vld [vmem:[#allocation73_spill] sm:$0xff] }
 0x5a7   :  { %v2039_v41 = vadd.f32 %v2038_v26, %v12500_v22  ;;  %v2040_v39 = vpop.f32.mrb[62].mxu0  ;;  %v2081_v42 = vpop.f32.mrb[62].mxu1  ;;  %v2080_v50 = vadd.f32 %v2079_v23, %v12501_v47 }
 0x5a8   :  { %v5017_v28 = vmul.f32 -1.442695, %v2037_v21  ;;  %v2041_v44 = vpop.f32.mrb[63].mxu0  ;;  %v2082_v45 = vpop.f32.mrb[63].mxu1 }
 0x5a9   :  { %v5018_v36 = vmul.f32 -1.442695, %v2039_v41  ;;  %v5019_v46 = vmul.f32 -1.442695, %v2080_v50  ;;  %v12504_v45 = vld [vmem:[#allocation74_spill] sm:$0xff] }
 0x5aa   :  { %5419 = vpow2.f32 %v5017_v28 }
 0x5ab   :  { %5421 = vpow2.f32 %v5018_v36 }
 0x5ac   :  { %5423 = vpow2.f32 %v5019_v46 }
 0x5ad   :  { %5425 = vtanh.f32 %v2078_v54  ;;  %v12505_v54 = vld [vmem:[#allocation75_spill] sm:$0xff] }
 0x5b4   :  { %v5420_v55 = vpop.eup %5419 }
 0x5b5   :  { %v5422_v56 = vpop.eup %5421  ;;  %v2087_v61 = vadd.f32 1.0, %v5420_v55 }
 0x5b6   :  { %v2093_v38 = vadd.f32 1.0, %v5422_v56  ;;  %v5424_v9 = vpop.eup %5423  ;;  %v12506_v56 = vld [vmem:[#allocation76_spill] sm:$0xff] }
 0x5b7   :  { %5427 = vrcp.f32 %v2087_v61  ;;  %v5426_v1 = vpop.eup %5425  ;;  %v2100_v41 = vadd.f32 1.0, %v5424_v9 }
 0x5b8   :  { %5429 = vrcp.f32 %v2093_v38 }
 0x5b9   :  { %5431 = vrcp.f32 %v2100_v41 }
 0x5c1   :  { %v5428_v48 = vpop.eup %5427 }
 0x5c2   :  { %v5430_v21 = vpop.eup %5429  ;;  %v2104_v26 = vmul.f32 %v5428_v48, %v5426_v1 }
 0x5c3   :  { %v2103_v39 = vmul.f32 %v5430_v21, %v8117_v25 }
 0x5c5   :  { %v2152_v23 = vpop.f32.mrb[64].mxu0  ;;  %v2193_v42 = vpop.f32.mrb[64].mxu1  ;;  %v8244_v28 = vadd.f32 %v2104_v26, %v2103_v39 }
 0x5c6   :  { %v2200_v44 = vadd.f32 %v2152_v23, %v12503_v30  ;;  %v2202_v36 = vadd.f32 %v2193_v42, %v12504_v45  ;;  %v2154_v50 = vpop.f32.mrb[65].mxu0  ;;  %v2195_v46 = vpop.f32.mrb[65].mxu1 }
 0x5c7   :  { %v2201_v55 = vadd.f32 %v2154_v50, %v12505_v54  ;;  %v2203_v61 = vadd.f32 %v2195_v46, %v12506_v56  ;;  %v2156_v38 = vpop.f32.mrb[66].mxu0  ;;  %v2197_v1 = vpop.f32.mrb[66].mxu1  ;;  %5433 = vtanh.f32 %v8244_v28 }
 0x5c8   :  { %v5021_v25 = vmul.f32 -1.442695, %v2200_v44  ;;  %v2157_v9 = vpop.f32.mrb[67].mxu0  ;;  %v2198_v48 = vpop.f32.mrb[67].mxu1 }
 0x5c9   :  { %v5022_v21 = vmul.f32 -1.442695, %v2201_v55  ;;  %v5432_v26 = vpop.eup %5431  ;;  %v5023_v39 = vmul.f32 -1.442695, %v2203_v61 }
 0x5ca   :  { %5435 = vpow2.f32 %v5021_v25 }
 0x5cb   :  { %5437 = vpow2.f32 %v5022_v21 }
 0x5cc   :  { %5439 = vpow2.f32 %v5023_v39  ;;  %v8283_v39 = vld [vmem:[%s11382_s2 + $0x2c] ss:$16 sps:$4 sm:$0xff]  }
 0x5cd   :  { %5441 = vtanh.f32 %v2202_v36 }
 0x5d1   :  { %v5434_v41 = vpop.eup %5433 }
 0x5d2   :  { %v2107_v23 = vmul.f32 %v5434_v41, %v5432_v26  ;;  %v8265_v26 = vld [vmem:[%s11382_s2] ss:$16 sps:$4 sm:$0xff]   ;;  %v8277_v41 = vld [vmem:[%s11382_s2 + $0x24] ss:$16 sps:$4 sm:$0xff]  }
 0x5d4   :  { %v5436_v42 = vpop.eup %5435  ;;  %v2108_v30 = vpack.c.bf16 %v2107_v23, %v2107_v23  ;;  %v8291_v23 = vld [vmem:[%s11382_s2 + $0x20] ss:$16 sps:$4 sm:$0xff]  }
 0x5d5   :  { %v5438_v45 = vpop.eup %5437  ;;  %v2207_v50 = vadd.f32 1.0, %v5436_v42  ;;  %v8297_v42 = vld [vmem:[%s11382_s2 + $0x28] ss:$16 sps:$4 sm:$0xff]  }
 0x5d6   :  { %v2213_v46 = vadd.f32 1.0, %v5438_v45  ;;  %5020 = vst [vmem:[%s11386_s6 + $0xc] sm:$0xf] %v2108_v30  ;;  %2261 = vmatprep.mubr.bf16.mxu0 %v2108_v30  ;;  %2302 = vmatprep.mubr.bf16.mxu1 %v2108_v30  ;;  %v5440_v44 = vpop.eup %5439  ;;  %v8303_v30 = vld [vmem:[%s11382_s2 + $0x44] ss:$16 sps:$4 sm:$0xff]  }
 0x5d7   :  { %5443 = vrcp.f32 %v2207_v50  ;;  %v5442_v54 = vpop.eup %5441  ;;  %v2220_v38 = vadd.f32 1.0, %v5440_v44  ;;  %v8309_v45 = vld [vmem:[%s11382_s2 + $0x4c] ss:$16 sps:$4 sm:$0xff]   ;;  %v8315_v50 = vld [vmem:[%s11382_s2 + $0x40] ss:$16 sps:$4 sm:$0xff]  }
 0x5d8   :  { %5445 = vrcp.f32 %v2213_v46  ;;  %v8321_v46 = vld [vmem:[%s11382_s2 + $0x48] ss:$16 sps:$4 sm:$0xff]   ;;  %v8327_v44 = vld [vmem:[%s11382_s2 + $0x64] ss:$16 sps:$4 sm:$0xff]  }
 0x5d9   :  { %5447 = vrcp.f32 %v2220_v38  ;;  %v8357_v38 = vld [vmem:[%s11382_s2 + $0x8c] ss:$16 sps:$4 sm:$0xff]  }
 0x5e1   :  { %v5444_v55 = vpop.eup %5443 }
 0x5e2   :  { %v5446_v56 = vpop.eup %5445  ;;  %v2224_v61 = vmul.f32 %v5444_v55, %v5442_v54  ;;  %v8333_v54 = vld [vmem:[%s11382_s2 + $0x6c] ss:$16 sps:$4 sm:$0xff]   ;;  %v8339_v55 = vld [vmem:[%s11382_s2 + $0x60] ss:$16 sps:$4 sm:$0xff]  }
 0x5e3   :  { %v2223_v1 = vmul.f32 %v5446_v56, %v8128_v52  ;;  %v5448_v36 = vpop.eup %5447  ;;  %v8271_v52 = vld [vmem:[%s11382_s2 + $0x8] ss:$16 sps:$4 sm:$0xff]  }
 0x5e4   :  { %v8345_v56 = vld [vmem:[%s11382_s2 + $0x68] ss:$16 sps:$4 sm:$0xff]  }
 0x5e5   :  { %v8255_v25 = vadd.f32 %v2224_v61, %v2223_v1  ;;  %v8351_v61 = vld [vmem:[%s11382_s2 + $0x84] ss:$16 sps:$4 sm:$0xff]   ;;  %v8363_v1 = vld [vmem:[%s11382_s2 + $0x80] ss:$16 sps:$4 sm:$0xff]  }
 0x5e6   :  { %12507 = vst [vmem:[#allocation30_spill] sm:$0xff] %v8363_v1 }
 0x5e7   :  { %5449 = vtanh.f32 %v8255_v25 }
 0x5f1   :  { %v5450_v9 = vpop.eup %5449 }
 0x5f2   :  { %v2227_v48 = vmul.f32 %v5450_v9, %v5448_v36  ;;  %v8369_v36 = vld [vmem:[%s11382_s2 + $0x88] ss:$16 sps:$4 sm:$0xff]   ;;  %v8375_v9 = vld [vmem:[%s11382_s2 + $0xa4] ss:$16 sps:$4 sm:$0xff]  }
 0x5f3   :  { %12508 = vst [vmem:[#allocation31_spill] sm:$0xff] %v8369_v36  ;;  %12509 = vst [vmem:[#allocation32_spill] sm:$0xff] %v8375_v9 }
 0x5f4   :  { %v8258_v21 = vpack.c.bf16 %v2227_v48, %v2227_v48  ;;  %v8381_v48 = vld [vmem:[%s11382_s2 + $0xac] ss:$16 sps:$4 sm:$0xff]  }
 0x5f5   :  { %12510 = vst [vmem:[#allocation33_spill] sm:$0xff] %v8381_v48 }
 0x5f6   :  { %2262 = vmatmul.mubr.bf16.vlgmr.msra.gmra.mrb[68].mxu0 %v8258_v21  ;;  %2303 = vmatmul.mubr.bf16.vlgmr.msra.gmra.mrb[68].mxu1 %v8258_v21 }
 0x5f7   :  { %2346 = vmatpush1.bf16.msra.mxu0 %v8265_v26  ;;  %2387 = vmatpush1.bf16.msra.mxu1 %v8271_v52 }
 0x5f8   :  { %2347 = vmatprep.subr.bf16.mxu0 %v8277_v41  ;;  %2388 = vmatprep.subr.bf16.mxu1 %v8283_v39 }
 0x5f9   :  { %2377 = vmatprep.mubr.bf16.mxu0 %v12254_v43  ;;  %2418 = vmatprep.mubr.bf16.mxu1 %v12254_v43 }
 0x5fb   :  { %2348 = vmatpush1.bf16.msra.mxu0 %v8291_v23  ;;  %2389 = vmatpush1.bf16.msra.mxu1 %v8297_v42 }
 0x5fc   :  { %2349 = vmatprep.subr.bf16.mxu0 %v8303_v30  ;;  %2390 = vmatprep.subr.bf16.mxu1 %v8309_v45 }
 0x5ff   :  { %2350 = vmatpush1.bf16.msra.mxu0 %v8315_v50  ;;  %2391 = vmatpush1.bf16.msra.mxu1 %v8321_v46 }
 0x600   :  { %2351 = vmatprep.subr.bf16.mxu0 %v8327_v44  ;;  %2392 = vmatprep.subr.bf16.mxu1 %v8333_v54 }
 0x603   :  { %2352 = vmatpush1.bf16.msra.mxu0 %v8339_v55  ;;  %2393 = vmatpush1.bf16.msra.mxu1 %v8345_v56 }
 0x604   :  { %2353 = vmatprep.subr.bf16.mxu0 %v8351_v61  ;;  %2394 = vmatprep.subr.bf16.mxu1 %v8357_v38 }
 0x607   :  { %2354 = vmatpush1.bf16.msra.mxu0 %v8363_v1  ;;  %2395 = vmatpush1.bf16.msra.mxu1 %v8369_v36  ;;  %v8387_v1 = vld [vmem:[%s11382_s2 + $0xa0] ss:$16 sps:$4 sm:$0xff]   ;;  %v8393_v36 = vld [vmem:[%s11382_s2 + $0xa8] ss:$16 sps:$4 sm:$0xff]  }
 0x608   :  { %2355 = vmatprep.subr.bf16.mxu0 %v8375_v9  ;;  %2396 = vmatprep.subr.bf16.mxu1 %v8381_v48  ;;  %12511 = vst [vmem:[#allocation69_spill] sm:$0xff] %v8387_v1  ;;  %12512 = vst [vmem:[#allocation70_spill] sm:$0xff] %v8393_v36  ;;  %v8399_v9 = vld [vmem:[%s11382_s2 + $0xc4] ss:$16 sps:$4 sm:$0xff]   ;;  %v8405_v48 = vld [vmem:[%s11382_s2 + $0xcc] ss:$16 sps:$4 sm:$0xff]  }
 0x609   :  { %12513 = vst [vmem:[#allocation71_spill] sm:$0xff] %v8399_v9  ;;  %12514 = vst [vmem:[#allocation72_spill] sm:$0xff] %v8405_v48 }
 0x60b   :  { %2356 = vmatpush1.bf16.msra.mxu0 %v8387_v1  ;;  %2397 = vmatpush1.bf16.msra.mxu1 %v8393_v36  ;;  %v8411_v1 = vld [vmem:[%s11382_s2 + $0xc0] ss:$16 sps:$4 sm:$0xff]   ;;  %v8417_v36 = vld [vmem:[%s11382_s2 + $0xc8] ss:$16 sps:$4 sm:$0xff]  }
 0x60c   :  { %2357 = vmatprep.subr.bf16.mxu0 %v8399_v9  ;;  %2398 = vmatprep.subr.bf16.mxu1 %v8405_v48  ;;  %12515 = vst [vmem:[#allocation34_spill] sm:$0xff] %v8411_v1  ;;  %12516 = vst [vmem:[#allocation35_spill] sm:$0xff] %v8417_v36  ;;  %v8423_v9 = vld [vmem:[%s11382_s2 + $0xe4] ss:$16 sps:$4 sm:$0xff]   ;;  %v8429_v48 = vld [vmem:[%s11382_s2 + $0xec] ss:$16 sps:$4 sm:$0xff]  }
 0x60d   :  { %12517 = vst [vmem:[#allocation36_spill] sm:$0xff] %v8423_v9  ;;  %12518 = vst [vmem:[#allocation37_spill] sm:$0xff] %v8429_v48 }
 0x60f   :  { %2358 = vmatpush1.bf16.msra.mxu0 %v8411_v1  ;;  %2399 = vmatpush1.bf16.msra.mxu1 %v8417_v36  ;;  %v8435_v1 = vld [vmem:[%s11382_s2 + $0xe0] ss:$16 sps:$4 sm:$0xff]   ;;  %v8441_v36 = vld [vmem:[%s11382_s2 + $0xe8] ss:$16 sps:$4 sm:$0xff]  }
 0x610   :  { %2359 = vmatprep.subr.bf16.mxu0 %v8423_v9  ;;  %2400 = vmatprep.subr.bf16.mxu1 %v8429_v48  ;;  %12519 = vst [vmem:[#allocation38_spill] sm:$0xff] %v8441_v36  ;;  %v8447_v9 = vld [vmem:[%s11383_s3 + $0x4] ss:$16 sps:$4 sm:$0xff]   ;;  %v8453_v48 = vld [vmem:[%s11383_s3 + $0xc] ss:$16 sps:$4 sm:$0xff]  }
 0x611   :  { %12520 = vst [vmem:[#allocation39_spill] sm:$0xff] %v8447_v9  ;;  %12521 = vst [vmem:[#allocation40_spill] sm:$0xff] %v8453_v48 }
 0x613   :  { %2360 = vmatpush1.bf16.msra.mxu0 %v8435_v1  ;;  %2401 = vmatpush1.bf16.msra.mxu1 %v8441_v36  ;;  %v8461_v36 = vld [vmem:[%s11383_s3] ss:$16 sps:$4 sm:$0xff]  }
 0x614   :  { %2456 = vmatprep.subr.bf16.mxu0 %v8447_v9  ;;  %2497 = vmatprep.subr.bf16.mxu1 %v8453_v48  ;;  %12522 = vst [vmem:[#allocation41_spill] sm:$0xff] %v8461_v36  ;;  %v8467_v9 = vld [vmem:[%s11383_s3 + $0x8] ss:$16 sps:$4 sm:$0xff]   ;;  %v8473_v48 = vld [vmem:[%s11383_s3 + $0x24] ss:$16 sps:$4 sm:$0xff]  }
 0x615   :  { %12523 = vst [vmem:[#allocation42_spill] sm:$0xff] %v8467_v9  ;;  %12524 = vst [vmem:[#allocation43_spill] sm:$0xff] %v8473_v48 }
 0x616   :  { %2378 = vmatmul.mubr.bf16.vlgmr.msra.gmra.mrb[72].mxu0 %v8258_v21  ;;  %2419 = vmatmul.mubr.bf16.vlgmr.msra.gmra.mrb[72].mxu1 %v8258_v21  ;;  %v8479_v21 = vld [vmem:[%s11383_s3 + $0x2c] ss:$16 sps:$4 sm:$0xff]  }
 0x617   :  { %2457 = vmatpush1.bf16.msra.mxu0 %v8461_v36  ;;  %2498 = vmatpush1.bf16.msra.mxu1 %v8467_v9  ;;  %12525 = vst [vmem:[#allocation44_spill] sm:$0xff] %v8479_v21  ;;  %v8485_v36 = vld [vmem:[%s11383_s3 + $0x20] ss:$16 sps:$4 sm:$0xff]   ;;  %v8491_v9 = vld [vmem:[%s11383_s3 + $0x28] ss:$16 sps:$4 sm:$0xff]  }
 0x618   :  { %2458 = vmatprep.subr.bf16.mxu0 %v8473_v48  ;;  %2499 = vmatprep.subr.bf16.mxu1 %v8479_v21  ;;  %12526 = vst [vmem:[#allocation45_spill] sm:$0xff] %v8485_v36  ;;  %12527 = vst [vmem:[#allocation46_spill] sm:$0xff] %v8491_v9  ;;  %v8497_v48 = vld [vmem:[%s11383_s3 + $0x44] ss:$16 sps:$4 sm:$0xff]   ;;  %v8503_v21 = vld [vmem:[%s11383_s3 + $0x4c] ss:$16 sps:$4 sm:$0xff]  }
 0x619   :  { %12528 = vst [vmem:[#allocation47_spill] sm:$0xff] %v8497_v48  ;;  %12529 = vst [vmem:[#allocation48_spill] sm:$0xff] %v8503_v21 }
 0x61b   :  { %2459 = vmatpush1.bf16.msra.mxu0 %v8485_v36  ;;  %2500 = vmatpush1.bf16.msra.mxu1 %v8491_v9  ;;  %v8509_v36 = vld [vmem:[%s11383_s3 + $0x40] ss:$16 sps:$4 sm:$0xff]   ;;  %v8515_v9 = vld [vmem:[%s11383_s3 + $0x48] ss:$16 sps:$4 sm:$0xff]  }
 0x61c   :  { %2460 = vmatprep.subr.bf16.mxu0 %v8497_v48  ;;  %2501 = vmatprep.subr.bf16.mxu1 %v8503_v21  ;;  %12530 = vst [vmem:[#allocation49_spill] sm:$0xff] %v8509_v36  ;;  %12531 = vst [vmem:[#allocation50_spill] sm:$0xff] %v8515_v9  ;;  %v8521_v48 = vld [vmem:[%s11383_s3 + $0x64] ss:$16 sps:$4 sm:$0xff]   ;;  %v8527_v21 = vld [vmem:[%s11383_s3 + $0x6c] ss:$16 sps:$4 sm:$0xff]  }
 0x61d   :  { %12532 = vst [vmem:[#allocation51_spill] sm:$0xff] %v8521_v48  ;;  %12533 = vst [vmem:[#allocation52_spill] sm:$0xff] %v8527_v21 }
 0x61f   :  { %2461 = vmatpush1.bf16.msra.mxu0 %v8509_v36  ;;  %2502 = vmatpush1.bf16.msra.mxu1 %v8515_v9  ;;  %v8533_v36 = vld [vmem:[%s11383_s3 + $0x60] ss:$16 sps:$4 sm:$0xff]   ;;  %v8539_v9 = vld [vmem:[%s11383_s3 + $0x68] ss:$16 sps:$4 sm:$0xff]  }
 0x620   :  { %2462 = vmatprep.subr.bf16.mxu0 %v8521_v48  ;;  %2503 = vmatprep.subr.bf16.mxu1 %v8527_v21  ;;  %12534 = vst [vmem:[#allocation53_spill] sm:$0xff] %v8533_v36  ;;  %12535 = vst [vmem:[#allocation54_spill] sm:$0xff] %v8539_v9  ;;  %v8545_v48 = vld [vmem:[%s11383_s3 + $0x84] ss:$16 sps:$4 sm:$0xff]   ;;  %v8551_v21 = vld [vmem:[%s11383_s3 + $0x8c] ss:$16 sps:$4 sm:$0xff]  }
 0x621   :  { %12536 = vst [vmem:[#allocation55_spill] sm:$0xff] %v8545_v48  ;;  %12537 = vst [vmem:[#allocation56_spill] sm:$0xff] %v8551_v21 }
 0x623   :  { %2463 = vmatpush1.bf16.msra.mxu0 %v8533_v36  ;;  %2504 = vmatpush1.bf16.msra.mxu1 %v8539_v9  ;;  %v8557_v36 = vld [vmem:[%s11383_s3 + $0x80] ss:$16 sps:$4 sm:$0xff]   ;;  %v8563_v9 = vld [vmem:[%s11383_s3 + $0x88] ss:$16 sps:$4 sm:$0xff]  }
 0x624   :  { %2464 = vmatprep.subr.bf16.mxu0 %v8545_v48  ;;  %2505 = vmatprep.subr.bf16.mxu1 %v8551_v21  ;;  %12538 = vst [vmem:[#allocation57_spill] sm:$0xff] %v8557_v36  ;;  %12539 = vst [vmem:[#allocation58_spill] sm:$0xff] %v8563_v9  ;;  %v8569_v48 = vld [vmem:[%s11383_s3 + $0xa4] ss:$16 sps:$4 sm:$0xff]   ;;  %v8575_v21 = vld [vmem:[%s11383_s3 + $0xac] ss:$16 sps:$4 sm:$0xff]  }
 0x625   :  { %12540 = vst [vmem:[#allocation59_spill] sm:$0xff] %v8569_v48  ;;  %12541 = vst [vmem:[#allocation60_spill] sm:$0xff] %v8575_v21 }
 0x627   :  { %2465 = vmatpush1.bf16.msra.mxu0 %v8557_v36  ;;  %2506 = vmatpush1.bf16.msra.mxu1 %v8563_v9  ;;  %v8581_v36 = vld [vmem:[%s11383_s3 + $0xa0] ss:$16 sps:$4 sm:$0xff]   ;;  %v8587_v9 = vld [vmem:[%s11383_s3 + $0xa8] ss:$16 sps:$4 sm:$0xff]  }
 0x628   :  { %2466 = vmatprep.subr.bf16.mxu0 %v8569_v48  ;;  %2507 = vmatprep.subr.bf16.mxu1 %v8575_v21  ;;  %12542 = vst [vmem:[#allocation61_spill] sm:$0xff] %v8581_v36  ;;  %12543 = vst [vmem:[#allocation62_spill] sm:$0xff] %v8587_v9  ;;  %v8593_v48 = vld [vmem:[%s11383_s3 + $0xc4] ss:$16 sps:$4 sm:$0xff]   ;;  %v8599_v21 = vld [vmem:[%s11383_s3 + $0xcc] ss:$16 sps:$4 sm:$0xff]  }
 0x629   :  { %12544 = vst [vmem:[#allocation63_spill] sm:$0xff] %v8593_v48  ;;  %12545 = vst [vmem:[#allocation64_spill] sm:$0xff] %v8599_v21 }
 0x62b   :  { %2467 = vmatpush1.bf16.msra.mxu0 %v8581_v36  ;;  %2508 = vmatpush1.bf16.msra.mxu1 %v8587_v9  ;;  %v8605_v36 = vld [vmem:[%s11383_s3 + $0xc0] ss:$16 sps:$4 sm:$0xff]   ;;  %v8611_v9 = vld [vmem:[%s11383_s3 + $0xc8] ss:$16 sps:$4 sm:$0xff]  }
 0x62c   :  { %2468 = vmatprep.subr.bf16.mxu0 %v8593_v48  ;;  %2509 = vmatprep.subr.bf16.mxu1 %v8599_v21  ;;  %12546 = vst [vmem:[#allocation11_spill] sm:$0xff] %v8605_v36  ;;  %12547 = vst [vmem:[#allocation65_spill] sm:$0xff] %v8611_v9  ;;  %v8617_v48 = vld [vmem:[%s11383_s3 + $0xe4] ss:$16 sps:$4 sm:$0xff]   ;;  %v8623_v21 = vld [vmem:[%s11383_s3 + $0xec] ss:$16 sps:$4 sm:$0xff]  }
 0x62d   :  { %12548 = vst [vmem:[#allocation66_spill] sm:$0xff] %v8617_v48  ;;  %12549 = vst [vmem:[#allocation67_spill] sm:$0xff] %v8623_v21 }
 0x62f   :  { %2469 = vmatpush1.bf16.msra.mxu0 %v8605_v36  ;;  %2510 = vmatpush1.bf16.msra.mxu1 %v8611_v9 }
 0x630   :  { %2470 = vmatprep.subr.bf16.mxu0 %v8617_v48  ;;  %2511 = vmatprep.subr.bf16.mxu1 %v8623_v21 }
 0x633   :  { %2471 = vmatpush1.bf16.msra.mxu0 %v12465_v57  ;;  %2512 = vmatpush1.bf16.msra.mxu1 %v12466_v58 }
 0x634   :  { %2472 = vmatprep.subr.bf16.mxu0 %v12467_v59  ;;  %2513 = vmatprep.subr.bf16.mxu1 %v12468_v60 }
 0x637   :  { %2473 = vmatpush1.bf16.msra.mxu0 %v12469_v62  ;;  %2514 = vmatpush1.bf16.msra.mxu1 %v12470_v63 }
 0x638   :  { %2474 = vmatprep.subr.bf16.mxu0 %v12471_v0  ;;  %2515 = vmatprep.subr.bf16.mxu1 %v12472_v2 }
 0x63b   :  { %2475 = vmatpush1.bf16.msra.mxu0 %v12473_v3  ;;  %2516 = vmatpush1.bf16.msra.mxu1 %v12474_v4 }
 0x63c   :  { %2476 = vmatprep.subr.bf16.mxu0 %v12475_v5  ;;  %2517 = vmatprep.subr.bf16.mxu1 %v12476_v11 }
 0x63f   :  { %2477 = vmatpush1.bf16.msra.mxu0 %v12477_v12  ;;  %2518 = vmatpush1.bf16.msra.mxu1 %v12478_v13 }
 0x640   :  { %2478 = vmatprep.subr.bf16.mxu0 %v12479_v14  ;;  %2519 = vmatprep.subr.bf16.mxu1 %v12480_v15 }
 0x643   :  { %2479 = vmatpush1.bf16.msra.mxu0 %v12481_v16  ;;  %2520 = vmatpush1.bf16.msra.mxu1 %v12482_v17 }
 0x644   :  { %2480 = vmatprep.subr.bf16.mxu0 %v12483_v18  ;;  %2521 = vmatprep.subr.bf16.mxu1 %v12484_v19 }
 0x647   :  { %2481 = vmatpush1.bf16.msra.mxu0 %v12485_v20  ;;  %2522 = vmatpush1.bf16.msra.mxu1 %v12486_v8 }
 0x648   :  { %2482 = vmatprep.subr.bf16.mxu0 %v12487_v6  ;;  %2523 = vmatprep.subr.bf16.mxu1 %v12488_v32 }
 0x64b   :  { %2483 = vmatpush1.bf16.msra.mxu0 %v12489_v34  ;;  %2524 = vmatpush1.bf16.msra.mxu1 %v12490_v27 }
 0x64c   :  { %2484 = vmatprep.subr.bf16.mxu0 %v12491_v40  ;;  %2525 = vmatprep.subr.bf16.mxu1 %v12492_v7 }
 0x64f   :  { %2485 = vmatpush1.bf16.msra.mxu0 %v12493_v33  ;;  %2526 = vmatpush1.bf16.msra.mxu1 %v12494_v29  ;;  %v12550_v29 = vld [vmem:[#allocation77_spill] sm:$0xff] }
 0x650   :  { %2486 = vmatprep.subr.bf16.mxu0 %v12495_v53  ;;  %2527 = vmatprep.subr.bf16.mxu1 %v12496_v35  ;;  %v12551_v35 = vld [vmem:[#allocation78_spill] sm:$0xff] }
 0x653   :  { %2487 = vmatpush1.bf16.msra.mxu0 %v12497_v24  ;;  %2528 = vmatpush1.bf16.msra.mxu1 %v12498_v49 }
 0x654   :  { %2572 = vmatprep.subr.bf16.mxu0 %v8230_v31  ;;  %2613 = vmatprep.subr.bf16.mxu1 %v8236_v37 }
 0x6c9   :  { %v2263_v57 = vpop.f32.mrb[68].mxu0  ;;  %v2304_v58 = vpop.f32.mrb[68].mxu1 }
 0x6ca   :  { %v2264_v59 = vadd.f32 %v2263_v57, %v12499_v10  ;;  %v2265_v60 = vpop.f32.mrb[69].mxu0  ;;  %v2306_v62 = vpop.f32.mrb[69].mxu1  ;;  %v2305_v14 = vadd.f32 %v2304_v58, %v12502_v51  ;;  %v12552_v58 = vld [vmem:[#allocation79_spill] sm:$0xff] }
 0x6cb   :  { %v2266_v63 = vadd.f32 %v2265_v60, %v12500_v22  ;;  %v2267_v0 = vpop.f32.mrb[70].mxu0  ;;  %v2308_v2 = vpop.f32.mrb[70].mxu1  ;;  %v2307_v12 = vadd.f32 %v2306_v62, %v12501_v47  ;;  %v12553_v60 = vld [vmem:[#allocation80_spill] sm:$0xff] }
 0x6cc   :  { %v5024_v3 = vmul.f32 -1.442695, %v2264_v59  ;;  %v2268_v4 = vpop.f32.mrb[71].mxu0  ;;  %v2309_v5 = vpop.f32.mrb[71].mxu1 }
 0x6cd   :  { %v5025_v11 = vmul.f32 -1.442695, %v2266_v63  ;;  %v5026_v13 = vmul.f32 -1.442695, %v2307_v12 }
 0x6ce   :  { %5451 = vpow2.f32 %v5024_v3 }
 0x6cf   :  { %5453 = vpow2.f32 %v5025_v11 }
 0x6d0   :  { %5455 = vpow2.f32 %v5026_v13 }
 0x6d1   :  { %5457 = vtanh.f32 %v2305_v14 }
 0x6d8   :  { %v5452_v15 = vpop.eup %5451 }
 0x6d9   :  { %v5454_v16 = vpop.eup %5453  ;;  %v2314_v17 = vadd.f32 1.0, %v5452_v15 }
 0x6da   :  { %v2320_v18 = vadd.f32 1.0, %v5454_v16  ;;  %v5456_v19 = vpop.eup %5455 }
 0x6db   :  { %5459 = vrcp.f32 %v2314_v17  ;;  %v5458_v20 = vpop.eup %5457  ;;  %v2327_v34 = vadd.f32 1.0, %v5456_v19 }
 0x6dc   :  { %5461 = vrcp.f32 %v2320_v18 }
 0x6dd   :  { %5463 = vrcp.f32 %v2327_v34 }
 0x6e5   :  { %v5460_v8 = vpop.eup %5459 }
 0x6e6   :  { %v5462_v6 = vpop.eup %5461  ;;  %v2331_v32 = vmul.f32 %v5460_v8, %v5458_v20 }
 0x6e7   :  { %v2330_v27 = vmul.f32 %v5462_v6, %v8244_v28  ;;  %v5464_v5 = vpop.eup %5463 }
 0x6e9   :  { %v2379_v40 = vpop.f32.mrb[72].mxu0  ;;  %v2420_v7 = vpop.f32.mrb[72].mxu1  ;;  %v8667_v33 = vadd.f32 %v2331_v32, %v2330_v27 }
 0x6ea   :  { %v2427_v53 = vadd.f32 %v2379_v40, %v12550_v29  ;;  %v2429_v24 = vadd.f32 %v2420_v7, %v12551_v35  ;;  %v2381_v49 = vpop.f32.mrb[73].mxu0  ;;  %v2422_v57 = vpop.f32.mrb[73].mxu1 }
 0x6eb   :  { %v2428_v59 = vadd.f32 %v2381_v49, %v12552_v58  ;;  %v2430_v62 = vadd.f32 %v2422_v57, %v12553_v60  ;;  %v2383_v63 = vpop.f32.mrb[74].mxu0  ;;  %v2424_v0 = vpop.f32.mrb[74].mxu1  ;;  %5465 = vtanh.f32 %v8667_v33  ;;  %v12556_v49 = vld [vmem:[#allocation32_spill] sm:$0xff]  ;;  %v12557_v57 = vld [vmem:[#allocation33_spill] sm:$0xff]  ;;  %v12560_v60 = vld [vmem:[#allocation71_spill] sm:$0xff] }
 0x6ec   :  { %v5028_v28 = vmul.f32 -1.442695, %v2427_v53  ;;  %v2384_v2 = vpop.f32.mrb[75].mxu0  ;;  %v2425_v3 = vpop.f32.mrb[75].mxu1  ;;  %v12558_v58 = vld [vmem:[#allocation69_spill] sm:$0xff]  ;;  %v12562_v63 = vld [vmem:[#allocation34_spill] sm:$0xff] }
 0x6ed   :  { %v5029_v4 = vmul.f32 -1.442695, %v2428_v59  ;;  %v5030_v12 = vmul.f32 -1.442695, %v2430_v62  ;;  %v12559_v59 = vld [vmem:[#allocation70_spill] sm:$0xff]  ;;  %v12561_v62 = vld [vmem:[#allocation72_spill] sm:$0xff] }
 0x6ee   :  { %5467 = vpow2.f32 %v5028_v28  ;;  %v12563_v0 = vld [vmem:[#allocation35_spill] sm:$0xff]  ;;  %v12564_v28 = vld [vmem:[#allocation36_spill] sm:$0xff]  ;;  %v12565_v2 = vld [vmem:[#allocation37_spill] sm:$0xff] }
 0x6ef   :  { %5469 = vpow2.f32 %v5029_v4  ;;  %v12566_v3 = vld [vmem:[#allocation38_spill] sm:$0xff]  ;;  %v12567_v4 = vld [vmem:[#allocation39_spill] sm:$0xff] }
 0x6f0   :  { %5471 = vpow2.f32 %v5030_v12  ;;  %v12570_v12 = vld [vmem:[#allocation42_spill] sm:$0xff] }
 0x6f1   :  { %5473 = vtanh.f32 %v2429_v24  ;;  %v12555_v24 = vld [vmem:[#allocation31_spill] sm:$0xff] }
 0x6f5   :  { %v5466_v11 = vpop.eup %5465 }
 0x6f6   :  { %v2334_v13 = vmul.f32 %v5466_v11, %v5464_v5  ;;  %v12568_v5 = vld [vmem:[#allocation40_spill] sm:$0xff]  ;;  %v12569_v11 = vld [vmem:[#allocation41_spill] sm:$0xff] }
 0x6f8   :  { %v5468_v14 = vpop.eup %5467  ;;  %v2335_v15 = vpack.c.bf16 %v2334_v13, %v2334_v13  ;;  %v12571_v13 = vld [vmem:[#allocation43_spill] sm:$0xff] }
 0x6f9   :  { %v5470_v16 = vpop.eup %5469  ;;  %v2434_v17 = vadd.f32 1.0, %v5468_v14  ;;  %v12572_v14 = vld [vmem:[#allocation44_spill] sm:$0xff] }
 0x6fa   :  { %v2440_v18 = vadd.f32 1.0, %v5470_v16  ;;  %5027 = vst [vmem:[%s11386_s6 + $0x10] sm:$0xf] %v2335_v15  ;;  %2488 = vmatprep.mubr.bf16.mxu0 %v2335_v15  ;;  %2529 = vmatprep.mubr.bf16.mxu1 %v2335_v15  ;;  %v5472_v19 = vpop.eup %5471  ;;  %v12573_v15 = vld [vmem:[#allocation45_spill] sm:$0xff]  ;;  %v12574_v16 = vld [vmem:[#allocation46_spill] sm:$0xff] }
 0x6fb   :  { %5475 = vrcp.f32 %v2434_v17  ;;  %v5474_v20 = vpop.eup %5473  ;;  %v2447_v34 = vadd.f32 1.0, %v5472_v19  ;;  %v12575_v17 = vld [vmem:[#allocation47_spill] sm:$0xff]  ;;  %v12577_v19 = vld [vmem:[#allocation49_spill] sm:$0xff] }
 0x6fc   :  { %5477 = vrcp.f32 %v2440_v18  ;;  %v12576_v18 = vld [vmem:[#allocation48_spill] sm:$0xff] }
 0x6fd   :  { %5479 = vrcp.f32 %v2447_v34  ;;  %v12582_v34 = vld [vmem:[#allocation54_spill] sm:$0xff] }
 0x705   :  { %v5476_v8 = vpop.eup %5475 }
 0x706   :  { %v5478_v6 = vpop.eup %5477  ;;  %v2451_v32 = vmul.f32 %v5476_v8, %v5474_v20  ;;  %v12578_v20 = vld [vmem:[#allocation50_spill] sm:$0xff]  ;;  %v12579_v8 = vld [vmem:[#allocation51_spill] sm:$0xff] }
 0x707   :  { %v2450_v27 = vmul.f32 %v5478_v6, %v8255_v25  ;;  %v5480_v7 = vpop.eup %5479  ;;  %v12554_v25 = vld [vmem:[#allocation30_spill] sm:$0xff]  ;;  %v12580_v6 = vld [vmem:[#allocation52_spill] sm:$0xff] }
 0x709   :  { %v8678_v40 = vadd.f32 %v2451_v32, %v2450_v27  ;;  %v12581_v32 = vld [vmem:[#allocation53_spill] sm:$0xff]  ;;  %v12583_v27 = vld [vmem:[#allocation55_spill] sm:$0xff] }
 0x70b   :  { %5481 = vtanh.f32 %v8678_v40 }
 0x715   :  { %v5482_v29 = vpop.eup %5481 }
 0x716   :  { %v2454_v53 = vmul.f32 %v5482_v29, %v5480_v7  ;;  %v12584_v7 = vld [vmem:[#allocation56_spill] sm:$0xff]  ;;  %v12585_v29 = vld [vmem:[#allocation57_spill] sm:$0xff] }
 0x718   :  { %v2455_v35 = vpack.c.bf16 %v2454_v53, %v2454_v53  ;;  %v12586_v53 = vld [vmem:[#allocation58_spill] sm:$0xff] }
 0x71a   :  { %2489 = vmatmul.mubr.bf16.vlgmr.msra.gmra.mrb[76].mxu0 %v2455_v35  ;;  %2530 = vmatmul.mubr.bf16.vlgmr.msra.gmra.mrb[76].mxu1 %v2455_v35 }
 0x71b   :  { %2573 = vmatpush1.bf16.msra.mxu0 %v8265_v26  ;;  %2614 = vmatpush1.bf16.msra.mxu1 %v8271_v52 }
 0x71c   :  { %2574 = vmatprep.subr.bf16.mxu0 %v8277_v41  ;;  %2615 = vmatprep.subr.bf16.mxu1 %v8283_v39 }
 0x71d   :  { %2604 = vmatprep.mubr.bf16.mxu0 %v12254_v43  ;;  %2645 = vmatprep.mubr.bf16.mxu1 %v12254_v43 }
 0x71f   :  { %2575 = vmatpush1.bf16.msra.mxu0 %v8291_v23  ;;  %2616 = vmatpush1.bf16.msra.mxu1 %v8297_v42 }
 0x720   :  { %2576 = vmatprep.subr.bf16.mxu0 %v8303_v30  ;;  %2617 = vmatprep.subr.bf16.mxu1 %v8309_v45 }
 0x723   :  { %2577 = vmatpush1.bf16.msra.mxu0 %v8315_v50  ;;  %2618 = vmatpush1.bf16.msra.mxu1 %v8321_v46 }
 0x724   :  { %2578 = vmatprep.subr.bf16.mxu0 %v8327_v44  ;;  %2619 = vmatprep.subr.bf16.mxu1 %v8333_v54 }
 0x727   :  { %2579 = vmatpush1.bf16.msra.mxu0 %v8339_v55  ;;  %2620 = vmatpush1.bf16.msra.mxu1 %v8345_v56 }
 0x728   :  { %2580 = vmatprep.subr.bf16.mxu0 %v8351_v61  ;;  %2621 = vmatprep.subr.bf16.mxu1 %v8357_v38 }
 0x72b   :  { %2581 = vmatpush1.bf16.msra.mxu0 %v12554_v25  ;;  %2622 = vmatpush1.bf16.msra.mxu1 %v12555_v24 }
 0x72c   :  { %2582 = vmatprep.subr.bf16.mxu0 %v12556_v49  ;;  %2623 = vmatprep.subr.bf16.mxu1 %v12557_v57 }
 0x72f   :  { %2583 = vmatpush1.bf16.msra.mxu0 %v12558_v58  ;;  %2624 = vmatpush1.bf16.msra.mxu1 %v12559_v59 }
 0x730   :  { %2584 = vmatprep.subr.bf16.mxu0 %v12560_v60  ;;  %2625 = vmatprep.subr.bf16.mxu1 %v12561_v62 }
 0x733   :  { %2585 = vmatpush1.bf16.msra.mxu0 %v12562_v63  ;;  %2626 = vmatpush1.bf16.msra.mxu1 %v12563_v0 }
 0x734   :  { %2586 = vmatprep.subr.bf16.mxu0 %v12564_v28  ;;  %2627 = vmatprep.subr.bf16.mxu1 %v12565_v2 }
 0x737   :  { %2587 = vmatpush1.bf16.msra.mxu0 %v8435_v1  ;;  %2628 = vmatpush1.bf16.msra.mxu1 %v12566_v3 }
 0x738   :  { %2683 = vmatprep.subr.bf16.mxu0 %v12567_v4  ;;  %2724 = vmatprep.subr.bf16.mxu1 %v12568_v5 }
 0x73a   :  { %2605 = vmatmul.mubr.bf16.vlgmr.msra.gmra.mrb[80].mxu0 %v2455_v35  ;;  %2646 = vmatmul.mubr.bf16.vlgmr.msra.gmra.mrb[80].mxu1 %v2455_v35  ;;  %v12587_v35 = vld [vmem:[#allocation59_spill] sm:$0xff] }
 0x73b   :  { %2684 = vmatpush1.bf16.msra.mxu0 %v12569_v11  ;;  %2725 = vmatpush1.bf16.msra.mxu1 %v12570_v12 }
 0x73c   :  { %2685 = vmatprep.subr.bf16.mxu0 %v12571_v13  ;;  %2726 = vmatprep.subr.bf16.mxu1 %v12572_v14 }
 0x73f   :  { %2686 = vmatpush1.bf16.msra.mxu0 %v12573_v15  ;;  %2727 = vmatpush1.bf16.msra.mxu1 %v12574_v16 }
 0x740   :  { %2687 = vmatprep.subr.bf16.mxu0 %v12575_v17  ;;  %2728 = vmatprep.subr.bf16.mxu1 %v12576_v18 }
 0x743   :  { %2688 = vmatpush1.bf16.msra.mxu0 %v12577_v19  ;;  %2729 = vmatpush1.bf16.msra.mxu1 %v12578_v20  ;;  %v12588_v19 = vld [vmem:[#allocation60_spill] sm:$0xff]  ;;  %v12589_v20 = vld [vmem:[#allocation61_spill] sm:$0xff] }
 0x744   :  { %2689 = vmatprep.subr.bf16.mxu0 %v12579_v8  ;;  %2730 = vmatprep.subr.bf16.mxu1 %v12580_v6  ;;  %v12590_v8 = vld [vmem:[#allocation62_spill] sm:$0xff]  ;;  %v12591_v6 = vld [vmem:[#allocation63_spill] sm:$0xff] }
 0x747   :  { %2690 = vmatpush1.bf16.msra.mxu0 %v12581_v32  ;;  %2731 = vmatpush1.bf16.msra.mxu1 %v12582_v34  ;;  %v12592_v32 = vld [vmem:[#allocation64_spill] sm:$0xff] }
 0x748   :  { %2691 = vmatprep.subr.bf16.mxu0 %v12583_v27  ;;  %2732 = vmatprep.subr.bf16.mxu1 %v12584_v7 }
 0x74b   :  { %2692 = vmatpush1.bf16.msra.mxu0 %v12585_v29  ;;  %2733 = vmatpush1.bf16.msra.mxu1 %v12586_v53 }
 0x74c   :  { %2693 = vmatprep.subr.bf16.mxu0 %v12587_v35  ;;  %2734 = vmatprep.subr.bf16.mxu1 %v12588_v19  ;;  %v8746_v19 = vld [vmem:[%s11383_s3 + $0xe0] ss:$16 sps:$4 sm:$0xff]  }
 0x74d   :  { %12593 = vst [vmem:[#allocation68_spill] sm:$0xff] %v8746_v19 }
 0x74f   :  { %2694 = vmatpush1.bf16.msra.mxu0 %v12589_v20  ;;  %2735 = vmatpush1.bf16.msra.mxu1 %v12590_v8 }
 0x750   :  { %2695 = vmatprep.subr.bf16.mxu0 %v12591_v6  ;;  %2736 = vmatprep.subr.bf16.mxu1 %v12592_v32  ;;  %v8752_v6 = vld [vmem:[%s11383_s3 + $0xe8] ss:$16 sps:$4 sm:$0xff]  }
 0x751   :  { %12594 = vst [vmem:[#allocation12_spill] sm:$0xff] %v8752_v6 }
 0x753   :  { %2696 = vmatpush1.bf16.msra.mxu0 %v8605_v36  ;;  %2737 = vmatpush1.bf16.msra.mxu1 %v8611_v9 }
 0x754   :  { %2697 = vmatprep.subr.bf16.mxu0 %v8617_v48  ;;  %2738 = vmatprep.subr.bf16.mxu1 %v8623_v21  ;;  %v8758_v48 = vld [vmem:[%s11383_s3 + $0x104] ss:$16 sps:$4 sm:$0xff]   ;;  %v8764_v21 = vld [vmem:[%s11383_s3 + $0x10c] ss:$16 sps:$4 sm:$0xff]  }
 0x755   :  { %12595 = vst [vmem:[#allocation13_spill] sm:$0xff] %v8758_v48  ;;  %12596 = vst [vmem:[#allocation14_spill] sm:$0xff] %v8764_v21 }
 0x757   :  { %2698 = vmatpush1.bf16.msra.mxu0 %v8746_v19  ;;  %2739 = vmatpush1.bf16.msra.mxu1 %v8752_v6  ;;  %v8770_v19 = vld [vmem:[%s11383_s3 + $0x100] ss:$16 sps:$4 sm:$0xff]   ;;  %v8776_v6 = vld [vmem:[%s11383_s3 + $0x108] ss:$16 sps:$4 sm:$0xff]  }
 0x758   :  { %2699 = vmatprep.subr.bf16.mxu0 %v8758_v48  ;;  %2740 = vmatprep.subr.bf16.mxu1 %v8764_v21  ;;  %12597 = vst [vmem:[#allocation15_spill] sm:$0xff] %v8770_v19  ;;  %12598 = vst [vmem:[#allocation16_spill] sm:$0xff] %v8776_v6  ;;  %v8782_v48 = vld [vmem:[%s11383_s3 + $0x124] ss:$16 sps:$4 sm:$0xff]   ;;  %v8788_v21 = vld [vmem:[%s11383_s3 + $0x12c] ss:$16 sps:$4 sm:$0xff]  }
 0x759   :  { %12599 = vst [vmem:[#allocation17_spill] sm:$0xff] %v8782_v48  ;;  %12600 = vst [vmem:[#allocation18_spill] sm:$0xff] %v8788_v21 }
 0x75b   :  { %2700 = vmatpush1.bf16.msra.mxu0 %v8770_v19  ;;  %2741 = vmatpush1.bf16.msra.mxu1 %v8776_v6  ;;  %v8794_v19 = vld [vmem:[%s11383_s3 + $0x120] ss:$16 sps:$4 sm:$0xff]   ;;  %v8800_v6 = vld [vmem:[%s11383_s3 + $0x128] ss:$16 sps:$4 sm:$0xff]  }
 0x75c   :  { %2701 = vmatprep.subr.bf16.mxu0 %v8782_v48  ;;  %2742 = vmatprep.subr.bf16.mxu1 %v8788_v21  ;;  %12601 = vst [vmem:[#allocation19_spill] sm:$0xff] %v8794_v19  ;;  %12602 = vst [vmem:[#allocation20_spill] sm:$0xff] %v8800_v6  ;;  %v8806_v48 = vld [vmem:[%s11383_s3 + $0x144] ss:$16 sps:$4 sm:$0xff]   ;;  %v8812_v21 = vld [vmem:[%s11383_s3 + $0x14c] ss:$16 sps:$4 sm:$0xff]  }
 0x75d   :  { %12603 = vst [vmem:[#allocation21_spill] sm:$0xff] %v8806_v48  ;;  %12604 = vst [vmem:[#allocation22_spill] sm:$0xff] %v8812_v21 }
 0x75f   :  { %2702 = vmatpush1.bf16.msra.mxu0 %v8794_v19  ;;  %2743 = vmatpush1.bf16.msra.mxu1 %v8800_v6  ;;  %v8818_v19 = vld [vmem:[%s11383_s3 + $0x140] ss:$16 sps:$4 sm:$0xff]   ;;  %v8824_v6 = vld [vmem:[%s11383_s3 + $0x148] ss:$16 sps:$4 sm:$0xff]  }
 0x760   :  { %2703 = vmatprep.subr.bf16.mxu0 %v8806_v48  ;;  %2744 = vmatprep.subr.bf16.mxu1 %v8812_v21  ;;  %12605 = vst [vmem:[#allocation23_spill] sm:$0xff] %v8818_v19  ;;  %12606 = vst [vmem:[#allocation24_spill] sm:$0xff] %v8824_v6  ;;  %v8830_v48 = vld [vmem:[%s11383_s3 + $0x164] ss:$16 sps:$4 sm:$0xff]   ;;  %v8836_v21 = vld [vmem:[%s11383_s3 + $0x16c] ss:$16 sps:$4 sm:$0xff]  }
 0x761   :  { %12607 = vst [vmem:[#allocation25_spill] sm:$0xff] %v8830_v48  ;;  %12608 = vst [vmem:[#allocation26_spill] sm:$0xff] %v8836_v21 }
 0x763   :  { %2704 = vmatpush1.bf16.msra.mxu0 %v8818_v19  ;;  %2745 = vmatpush1.bf16.msra.mxu1 %v8824_v6  ;;  %v8842_v19 = vld [vmem:[%s11383_s3 + $0x160] ss:$16 sps:$4 sm:$0xff]   ;;  %v8848_v6 = vld [vmem:[%s11383_s3 + $0x168] ss:$16 sps:$4 sm:$0xff]  }
 0x764   :  { %2705 = vmatprep.subr.bf16.mxu0 %v8830_v48  ;;  %2746 = vmatprep.subr.bf16.mxu1 %v8836_v21  ;;  %12609 = vst [vmem:[#allocation27_spill] sm:$0xff] %v8842_v19  ;;  %12610 = vst [vmem:[#allocation28_spill] sm:$0xff] %v8848_v6  ;;  %v8854_v48 = vld [vmem:[%s11383_s3 + $0x184] ss:$16 sps:$4 sm:$0xff]   ;;  %v8860_v21 = vld [vmem:[%s11383_s3 + $0x18c] ss:$16 sps:$4 sm:$0xff]  }
 0x765   :  { %12611 = vst [vmem:[#allocation29_spill] sm:$0xff] %v8854_v48  ;;  %12612 = vst [vmem:[#allocation73_spill] sm:$0xff] %v8860_v21 }
 0x767   :  { %2706 = vmatpush1.bf16.msra.mxu0 %v8842_v19  ;;  %2747 = vmatpush1.bf16.msra.mxu1 %v8848_v6  ;;  %v8866_v19 = vld [vmem:[%s11383_s3 + $0x180] ss:$16 sps:$4 sm:$0xff]   ;;  %v8872_v6 = vld [vmem:[%s11383_s3 + $0x188] ss:$16 sps:$4 sm:$0xff]  }
 0x768   :  { %2707 = vmatprep.subr.bf16.mxu0 %v8854_v48  ;;  %2748 = vmatprep.subr.bf16.mxu1 %v8860_v21  ;;  %12613 = vst [vmem:[#allocation74_spill] sm:$0xff] %v8866_v19  ;;  %12614 = vst [vmem:[#allocation75_spill] sm:$0xff] %v8872_v6  ;;  %v8878_v48 = vld [vmem:[%s11383_s3 + $0x1a4] ss:$16 sps:$4 sm:$0xff]   ;;  %v8884_v21 = vld [vmem:[%s11383_s3 + $0x1ac] ss:$16 sps:$4 sm:$0xff]  }
 0x769   :  { %12615 = vst [vmem:[#allocation76_spill] sm:$0xff] %v8878_v48  ;;  %12616 = vst [vmem:[#allocation77_spill] sm:$0xff] %v8884_v21 }
 0x76b   :  { %2708 = vmatpush1.bf16.msra.mxu0 %v8866_v19  ;;  %2749 = vmatpush1.bf16.msra.mxu1 %v8872_v6  ;;  %v8890_v19 = vld [vmem:[%s11383_s3 + $0x1a0] ss:$16 sps:$4 sm:$0xff]   ;;  %v8896_v6 = vld [vmem:[%s11383_s3 + $0x1a8] ss:$16 sps:$4 sm:$0xff]  }
 0x76c   :  { %2709 = vmatprep.subr.bf16.mxu0 %v8878_v48  ;;  %2750 = vmatprep.subr.bf16.mxu1 %v8884_v21  ;;  %12617 = vst [vmem:[#allocation78_spill] sm:$0xff] %v8890_v19  ;;  %12618 = vst [vmem:[#allocation79_spill] sm:$0xff] %v8896_v6  ;;  %v8902_v48 = vld [vmem:[%s11383_s3 + $0x1c4] ss:$16 sps:$4 sm:$0xff]   ;;  %v8908_v21 = vld [vmem:[%s11383_s3 + $0x1cc] ss:$16 sps:$4 sm:$0xff]  }
 0x76d   :  { %12619 = vst [vmem:[#allocation80_spill] sm:$0xff] %v8902_v48  ;;  %12620 = vst [vmem:[#allocation30_spill] sm:$0xff] %v8908_v21 }
 0x76f   :  { %2710 = vmatpush1.bf16.msra.mxu0 %v8890_v19  ;;  %2751 = vmatpush1.bf16.msra.mxu1 %v8896_v6  ;;  %v8914_v19 = vld [vmem:[%s11383_s3 + $0x1c0] ss:$16 sps:$4 sm:$0xff]   ;;  %v8920_v6 = vld [vmem:[%s11383_s3 + $0x1c8] ss:$16 sps:$4 sm:$0xff]  }
 0x770   :  { %2711 = vmatprep.subr.bf16.mxu0 %v8902_v48  ;;  %2752 = vmatprep.subr.bf16.mxu1 %v8908_v21  ;;  %12621 = vst [vmem:[#allocation31_spill] sm:$0xff] %v8914_v19  ;;  %12622 = vst [vmem:[#allocation32_spill] sm:$0xff] %v8920_v6  ;;  %v8926_v48 = vld [vmem:[%s11383_s3 + $0x1e4] ss:$16 sps:$4 sm:$0xff]   ;;  %v8932_v21 = vld [vmem:[%s11383_s3 + $0x1ec] ss:$16 sps:$4 sm:$0xff]  }
 0x771   :  { %12623 = vst [vmem:[#allocation33_spill] sm:$0xff] %v8926_v48  ;;  %12624 = vst [vmem:[#allocation69_spill] sm:$0xff] %v8932_v21 }
 0x773   :  { %2712 = vmatpush1.bf16.msra.mxu0 %v8914_v19  ;;  %2753 = vmatpush1.bf16.msra.mxu1 %v8920_v6  ;;  %v8938_v19 = vld [vmem:[%s11383_s3 + $0x1e0] ss:$16 sps:$4 sm:$0xff]   ;;  %v8944_v6 = vld [vmem:[%s11383_s3 + $0x1e8] ss:$16 sps:$4 sm:$0xff]  }
 0x774   :  { %2713 = vmatprep.subr.bf16.mxu0 %v8926_v48  ;;  %2754 = vmatprep.subr.bf16.mxu1 %v8932_v21  ;;  %12625 = vst [vmem:[#allocation70_spill] sm:$0xff] %v8938_v19  ;;  %12626 = vst [vmem:[#allocation71_spill] sm:$0xff] %v8944_v6 }
 0x777   :  { %2714 = vmatpush1.bf16.msra.mxu0 %v8938_v19  ;;  %2755 = vmatpush1.bf16.msra.mxu1 %v8944_v6 }
 0x778   :  { %2799 = vmatprep.subr.bf16.mxu0 %v8230_v31  ;;  %2840 = vmatprep.subr.bf16.mxu1 %v8236_v37 }
 0x7ed   :  { %v2490_v48 = vpop.f32.mrb[76].mxu0  ;;  %v2531_v21 = vpop.f32.mrb[76].mxu1 }
 0x7ee   :  { %v2491_v9 = vadd.f32 %v2490_v48, %v12499_v10  ;;  %v2492_v36 = vpop.f32.mrb[77].mxu0  ;;  %v2533_v32 = vpop.f32.mrb[77].mxu1  ;;  %v2532_v37 = vadd.f32 %v2531_v21, %v12502_v51  ;;  %v12627_v21 = vld [vmem:[#allocation81_spill] sm:$0xff]  ;;  %v12630_v51 = vld [vmem:[#allocation84_spill] sm:$0xff] }
 0x7ef   :  { %v2493_v8 = vadd.f32 %v2492_v36, %v12500_v22  ;;  %v2494_v19 = vpop.f32.mrb[78].mxu0  ;;  %v2535_v20 = vpop.f32.mrb[78].mxu1  ;;  %v2534_v31 = vadd.f32 %v2533_v32, %v12501_v47 }
 0x7f0   :  { %v5031_v35 = vmul.f32 -1.442695, %v2491_v9  ;;  %v2495_v53 = vpop.f32.mrb[79].mxu0  ;;  %v2536_v29 = vpop.f32.mrb[79].mxu1 }
 0x7f1   :  { %v5032_v7 = vmul.f32 -1.442695, %v2493_v8  ;;  %v5033_v6 = vmul.f32 -1.442695, %v2534_v31 }
 0x7f2   :  { %5483 = vpow2.f32 %v5031_v35 }
 0x7f3   :  { %5485 = vpow2.f32 %v5032_v7 }
 0x7f4   :  { %5487 = vpow2.f32 %v5033_v6  ;;  %v12628_v6 = vld [vmem:[#allocation82_spill] sm:$0xff] }
 0x7f5   :  { %5489 = vtanh.f32 %v2532_v37 }
 0x7fc   :  { %v5484_v27 = vpop.eup %5483 }
 0x7fd   :  { %v5486_v34 = vpop.eup %5485  ;;  %v2541_v48 = vadd.f32 1.0, %v5484_v27 }
 0x7fe   :  { %v2547_v10 = vadd.f32 1.0, %v5486_v34  ;;  %v5488_v36 = vpop.eup %5487 }
 0x7ff   :  { %5491 = vrcp.f32 %v2541_v48  ;;  %v5490_v9 = vpop.eup %5489  ;;  %v2554_v29 = vadd.f32 1.0, %v5488_v36 }
 0x800   :  { %5493 = vrcp.f32 %v2547_v10  ;;  %v12629_v10 = vld [vmem:[#allocation83_spill] sm:$0xff] }
 0x801   :  { %5495 = vrcp.f32 %v2554_v29 }
 0x809   :  { %v5492_v19 = vpop.eup %5491 }
 0x80a   :  { %v5494_v20 = vpop.eup %5493  ;;  %v2558_v8 = vmul.f32 %v5492_v19, %v5490_v9 }
 0x80b   :  { %v2557_v7 = vmul.f32 %v5494_v20, %v8667_v33 }
 0x80d   :  { %v2606_v32 = vpop.f32.mrb[80].mxu0  ;;  %v2647_v53 = vpop.f32.mrb[80].mxu1  ;;  %v8954_v35 = vadd.f32 %v2558_v8, %v2557_v7 }
 0x80e   :  { %v2654_v27 = vadd.f32 %v2606_v32, %v12627_v21  ;;  %v2656_v31 = vadd.f32 %v2647_v53, %v12628_v6  ;;  %v2608_v34 = vpop.f32.mrb[81].mxu0  ;;  %v2649_v37 = vpop.f32.mrb[81].mxu1 }
 0x80f   :  { %v2655_v48 = vadd.f32 %v2608_v34, %v12629_v10  ;;  %v2657_v47 = vadd.f32 %v2649_v37, %v12630_v51  ;;  %v2610_v22 = vpop.f32.mrb[82].mxu0  ;;  %v2651_v9 = vpop.f32.mrb[82].mxu1  ;;  %5497 = vtanh.f32 %v8954_v35 }
 0x810   :  { %v5035_v33 = vmul.f32 -1.442695, %v2654_v27  ;;  %v2611_v36 = vpop.f32.mrb[83].mxu0  ;;  %v2652_v19 = vpop.f32.mrb[83].mxu1 }
 0x811   :  { %v5036_v20 = vmul.f32 -1.442695, %v2655_v48  ;;  %v5496_v8 = vpop.eup %5495  ;;  %v5037_v7 = vmul.f32 -1.442695, %v2657_v47 }
 0x812   :  { %5499 = vpow2.f32 %v5035_v33 }
 0x813   :  { %5501 = vpow2.f32 %v5036_v20 }
 0x814   :  { %5503 = vpow2.f32 %v5037_v7  ;;  %v12674_v7 = vld [vmem:[#allocation77_spill] sm:$0xff] }
 0x815   :  { %5505 = vtanh.f32 %v2656_v31 }
 0x819   :  { %v5498_v29 = vpop.eup %5497 }
 0x81a   :  { %v2561_v32 = vmul.f32 %v5498_v29, %v5496_v8  ;;  %v12672_v8 = vld [vmem:[#allocation75_spill] sm:$0xff]  ;;  %v12673_v29 = vld [vmem:[#allocation76_spill] sm:$0xff] }
 0x81c   :  { %v5500_v53 = vpop.eup %5499  ;;  %v2562_v21 = vpack.c.bf16 %v2561_v32, %v2561_v32  ;;  %v12675_v32 = vld [vmem:[#allocation78_spill] sm:$0xff] }
 0x81d   :  { %v5502_v6 = vpop.eup %5501  ;;  %v2661_v34 = vadd.f32 1.0, %v5500_v53  ;;  %v12676_v53 = vld [vmem:[#allocation79_spill] sm:$0xff] }
 0x81e   :  { %v2667_v22 = vadd.f32 1.0, %v5502_v6  ;;  %5034 = vst [vmem:[%s11386_s6 + $0x14] sm:$0xf] %v2562_v21  ;;  %2715 = vmatprep.mubr.bf16.mxu0 %v2562_v21  ;;  %2756 = vmatprep.mubr.bf16.mxu1 %v2562_v21  ;;  %v5504_v51 = vpop.eup %5503  ;;  %v12677_v21 = vld [vmem:[#allocation80_spill] sm:$0xff]  ;;  %v12678_v6 = vld [vmem:[#allocation30_spill] sm:$0xff] }
 0x81f   :  { %5507 = vrcp.f32 %v2661_v34  ;;  %v5506_v27 = vpop.eup %5505  ;;  %v2674_v48 = vadd.f32 1.0, %v5504_v51  ;;  %v12679_v34 = vld [vmem:[#allocation31_spill] sm:$0xff]  ;;  %v12681_v51 = vld [vmem:[#allocation33_spill] sm:$0xff] }
 0x820   :  { %5509 = vrcp.f32 %v2667_v22  ;;  %v12680_v22 = vld [vmem:[#allocation32_spill] sm:$0xff] }
 0x821   :  { %5511 = vrcp.f32 %v2674_v48  ;;  %v9073_v48 = vld [vmem:[%s11382_s2 + $0xc] ss:$16 sps:$4 sm:$0xff]  }
 0x829   :  { %v5508_v37 = vpop.eup %5507 }
 0x82a   :  { %v5510_v47 = vpop.eup %5509  ;;  %v2678_v10 = vmul.f32 %v5508_v37, %v5506_v27  ;;  %v12682_v27 = vld [vmem:[#allocation69_spill] sm:$0xff]  ;;  %v12683_v37 = vld [vmem:[#allocation70_spill] sm:$0xff] }
 0x82b   :  { %v2677_v9 = vmul.f32 %v5510_v47, %v8678_v40  ;;  %v5512_v31 = vpop.eup %5511  ;;  %v12648_v40 = vld [vmem:[#allocation65_spill] sm:$0xff]  ;;  %v12684_v47 = vld [vmem:[#allocation71_spill] sm:$0xff] }
 0x82d   :  { %v8965_v33 = vadd.f32 %v2678_v10, %v2677_v9  ;;  %v9067_v10 = vld [vmem:[%s11382_s2 + $0x4] ss:$16 sps:$4 sm:$0xff]  }
 0x82f   :  { %5513 = vtanh.f32 %v8965_v33 }
 0x839   :  { %v5514_v36 = vpop.eup %5513 }
 0x83a   :  { %v2681_v19 = vmul.f32 %v5514_v36, %v5512_v31  ;;  %v12685_v36 = vld [vmem:[#allocation7_spill] sm:$0xff] }
 0x83c   :  { %v2682_v20 = vpack.c.bf16 %v2681_v19, %v2681_v19 }
 0x83e   :  { %2716 = vmatmul.mubr.bf16.vlgmr.msra.gmra.mrb[84].mxu0 %v2682_v20  ;;  %2757 = vmatmul.mubr.bf16.vlgmr.msra.gmra.mrb[84].mxu1 %v2682_v20 }
 0x83f   :  { %2800 = vmatpush1.bf16.msra.mxu0 %v8265_v26  ;;  %2841 = vmatpush1.bf16.msra.mxu1 %v8271_v52  ;;  %v12631_v26 = vld [vmem:[#allocation49_spill] sm:$0xff]  ;;  %v12632_v52 = vld [vmem:[#allocation50_spill] sm:$0xff] }
 0x840   :  { %2801 = vmatprep.subr.bf16.mxu0 %v8277_v41  ;;  %2842 = vmatprep.subr.bf16.mxu1 %v8283_v39  ;;  %v12633_v41 = vld [vmem:[#allocation51_spill] sm:$0xff]  ;;  %v12634_v39 = vld [vmem:[#allocation52_spill] sm:$0xff] }
 0x841   :  { %2831 = vmatprep.mubr.bf16.mxu0 %v12254_v43  ;;  %2872 = vmatprep.mubr.bf16.mxu1 %v12254_v43 }
 0x843   :  { %2802 = vmatpush1.bf16.msra.mxu0 %v8291_v23  ;;  %2843 = vmatpush1.bf16.msra.mxu1 %v8297_v42  ;;  %v12635_v23 = vld [vmem:[#allocation53_spill] sm:$0xff]  ;;  %v12636_v42 = vld [vmem:[#allocation54_spill] sm:$0xff] }
 0x844   :  { %2803 = vmatprep.subr.bf16.mxu0 %v8303_v30  ;;  %2844 = vmatprep.subr.bf16.mxu1 %v8309_v45  ;;  %v12637_v30 = vld [vmem:[#allocation55_spill] sm:$0xff]  ;;  %v12638_v45 = vld [vmem:[#allocation56_spill] sm:$0xff] }
 0x847   :  { %2804 = vmatpush1.bf16.msra.mxu0 %v8315_v50  ;;  %2845 = vmatpush1.bf16.msra.mxu1 %v8321_v46  ;;  %v12639_v50 = vld [vmem:[#allocation57_spill] sm:$0xff]  ;;  %v12640_v46 = vld [vmem:[#allocation58_spill] sm:$0xff] }
 0x848   :  { %2805 = vmatprep.subr.bf16.mxu0 %v8327_v44  ;;  %2846 = vmatprep.subr.bf16.mxu1 %v8333_v54  ;;  %v12641_v44 = vld [vmem:[#allocation59_spill] sm:$0xff]  ;;  %v12642_v54 = vld [vmem:[#allocation60_spill] sm:$0xff] }
 0x84b   :  { %2806 = vmatpush1.bf16.msra.mxu0 %v8339_v55  ;;  %2847 = vmatpush1.bf16.msra.mxu1 %v8345_v56  ;;  %v12643_v55 = vld [vmem:[#allocation61_spill] sm:$0xff]  ;;  %v12644_v56 = vld [vmem:[#allocation62_spill] sm:$0xff] }
 0x84c   :  { %2807 = vmatprep.subr.bf16.mxu0 %v8351_v61  ;;  %2848 = vmatprep.subr.bf16.mxu1 %v8357_v38  ;;  %v12645_v61 = vld [vmem:[#allocation63_spill] sm:$0xff]  ;;  %v12646_v38 = vld [vmem:[#allocation64_spill] sm:$0xff] }
 0x84f   :  { %2808 = vmatpush1.bf16.msra.mxu0 %v12554_v25  ;;  %2849 = vmatpush1.bf16.msra.mxu1 %v12555_v24  ;;  %v12649_v25 = vld [vmem:[#allocation66_spill] sm:$0xff]  ;;  %v12650_v24 = vld [vmem:[#allocation67_spill] sm:$0xff] }
 0x850   :  { %2809 = vmatprep.subr.bf16.mxu0 %v12556_v49  ;;  %2850 = vmatprep.subr.bf16.mxu1 %v12557_v57  ;;  %v12651_v49 = vld [vmem:[#allocation68_spill] sm:$0xff] }
 0x851   :  { %v12652_v57 = vld [vmem:[#allocation12_spill] sm:$0xff] }
 0x853   :  { %2810 = vmatpush1.bf16.msra.mxu0 %v12558_v58  ;;  %2851 = vmatpush1.bf16.msra.mxu1 %v12559_v59  ;;  %v12653_v58 = vld [vmem:[#allocation13_spill] sm:$0xff]  ;;  %v12654_v59 = vld [vmem:[#allocation14_spill] sm:$0xff] }
 0x854   :  { %2811 = vmatprep.subr.bf16.mxu0 %v12560_v60  ;;  %2852 = vmatprep.subr.bf16.mxu1 %v12561_v62  ;;  %v12655_v60 = vld [vmem:[#allocation15_spill] sm:$0xff]  ;;  %v12656_v62 = vld [vmem:[#allocation16_spill] sm:$0xff] }
 0x857   :  { %2812 = vmatpush1.bf16.msra.mxu0 %v12562_v63  ;;  %2853 = vmatpush1.bf16.msra.mxu1 %v12563_v0  ;;  %v12657_v63 = vld [vmem:[#allocation17_spill] sm:$0xff]  ;;  %v12658_v0 = vld [vmem:[#allocation18_spill] sm:$0xff] }
 0x858   :  { %2813 = vmatprep.subr.bf16.mxu0 %v12564_v28  ;;  %2854 = vmatprep.subr.bf16.mxu1 %v12565_v2  ;;  %v12659_v28 = vld [vmem:[#allocation19_spill] sm:$0xff]  ;;  %v12660_v2 = vld [vmem:[#allocation20_spill] sm:$0xff] }
 0x85b   :  { %2814 = vmatpush1.bf16.msra.mxu0 %v8435_v1  ;;  %2855 = vmatpush1.bf16.msra.mxu1 %v12566_v3  ;;  %v12647_v1 = vld [vmem:[#allocation11_spill] sm:$0xff]  ;;  %v12661_v3 = vld [vmem:[#allocation21_spill] sm:$0xff] }
 0x85c   :  { %2910 = vmatprep.subr.bf16.mxu0 %v12567_v4  ;;  %2951 = vmatprep.subr.bf16.mxu1 %v12568_v5  ;;  %v12662_v4 = vld [vmem:[#allocation22_spill] sm:$0xff]  ;;  %v12663_v5 = vld [vmem:[#allocation23_spill] sm:$0xff] }
 0x85e   :  { %2832 = vmatmul.mubr.bf16.vlgmr.msra.gmra.mrb[88].mxu0 %v2682_v20  ;;  %2873 = vmatmul.mubr.bf16.vlgmr.msra.gmra.mrb[88].mxu1 %v2682_v20 }
 0x85f   :  { %2911 = vmatpush1.bf16.msra.mxu0 %v12569_v11  ;;  %2952 = vmatpush1.bf16.msra.mxu1 %v12570_v12  ;;  %v12664_v11 = vld [vmem:[#allocation24_spill] sm:$0xff]  ;;  %v12665_v12 = vld [vmem:[#allocation25_spill] sm:$0xff] }
 0x860   :  { %2912 = vmatprep.subr.bf16.mxu0 %v12571_v13  ;;  %2953 = vmatprep.subr.bf16.mxu1 %v12572_v14  ;;  %v12666_v13 = vld [vmem:[#allocation26_spill] sm:$0xff]  ;;  %v12667_v14 = vld [vmem:[#allocation27_spill] sm:$0xff] }
 0x863   :  { %2913 = vmatpush1.bf16.msra.mxu0 %v12573_v15  ;;  %2954 = vmatpush1.bf16.msra.mxu1 %v12574_v16  ;;  %v12668_v15 = vld [vmem:[#allocation28_spill] sm:$0xff]  ;;  %v12669_v16 = vld [vmem:[#allocation29_spill] sm:$0xff] }
 0x864   :  { %2914 = vmatprep.subr.bf16.mxu0 %v12575_v17  ;;  %2955 = vmatprep.subr.bf16.mxu1 %v12576_v18  ;;  %v12670_v17 = vld [vmem:[#allocation73_spill] sm:$0xff]  ;;  %v12671_v18 = vld [vmem:[#allocation74_spill] sm:$0xff] }
 0x867   :  { %2915 = vmatpush1.bf16.msra.mxu0 %v12631_v26  ;;  %2956 = vmatpush1.bf16.msra.mxu1 %v12632_v52  ;;  %v12686_v52 = vld [vmem:[#allocation8_spill] sm:$0xff] }
 0x868   :  { %2916 = vmatprep.subr.bf16.mxu0 %v12633_v41  ;;  %2957 = vmatprep.subr.bf16.mxu1 %v12634_v39 }
 0x86b   :  { %2917 = vmatpush1.bf16.msra.mxu0 %v12635_v23  ;;  %2958 = vmatpush1.bf16.msra.mxu1 %v12636_v42 }
 0x86c   :  { %2918 = vmatprep.subr.bf16.mxu0 %v12637_v30  ;;  %2959 = vmatprep.subr.bf16.mxu1 %v12638_v45 }
 0x86f   :  { %2919 = vmatpush1.bf16.msra.mxu0 %v12639_v50  ;;  %2960 = vmatpush1.bf16.msra.mxu1 %v12640_v46  ;;  %v12687_v46 = vld [vmem:[#allocation9_spill] sm:$0xff] }
 0x870   :  { %2920 = vmatprep.subr.bf16.mxu0 %v12641_v44  ;;  %2961 = vmatprep.subr.bf16.mxu1 %v12642_v54 }
 0x873   :  { %2921 = vmatpush1.bf16.msra.mxu0 %v12643_v55  ;;  %2962 = vmatpush1.bf16.msra.mxu1 %v12644_v56  ;;  %v12688_v55 = vld [vmem:[#allocation10_spill] sm:$0xff] }
 0x874   :  { %2922 = vmatprep.subr.bf16.mxu0 %v12645_v61  ;;  %2963 = vmatprep.subr.bf16.mxu1 %v12646_v38 }
 0x877   :  { %2923 = vmatpush1.bf16.msra.mxu0 %v12647_v1  ;;  %2964 = vmatpush1.bf16.msra.mxu1 %v12648_v40 }
 0x878   :  { %2924 = vmatprep.subr.bf16.mxu0 %v12649_v25  ;;  %2965 = vmatprep.subr.bf16.mxu1 %v12650_v24 }
 0x87b   :  { %2925 = vmatpush1.bf16.msra.mxu0 %v12651_v49  ;;  %2966 = vmatpush1.bf16.msra.mxu1 %v12652_v57 }
 0x87c   :  { %2926 = vmatprep.subr.bf16.mxu0 %v12653_v58  ;;  %2967 = vmatprep.subr.bf16.mxu1 %v12654_v59 }
 0x87f   :  { %2927 = vmatpush1.bf16.msra.mxu0 %v12655_v60  ;;  %2968 = vmatpush1.bf16.msra.mxu1 %v12656_v62 }
 0x880   :  { %2928 = vmatprep.subr.bf16.mxu0 %v12657_v63  ;;  %2969 = vmatprep.subr.bf16.mxu1 %v12658_v0 }
 0x883   :  { %2929 = vmatpush1.bf16.msra.mxu0 %v12659_v28  ;;  %2970 = vmatpush1.bf16.msra.mxu1 %v12660_v2 }
 0x884   :  { %2930 = vmatprep.subr.bf16.mxu0 %v12661_v3  ;;  %2971 = vmatprep.subr.bf16.mxu1 %v12662_v4 }
 0x887   :  { %2931 = vmatpush1.bf16.msra.mxu0 %v12663_v5  ;;  %2972 = vmatpush1.bf16.msra.mxu1 %v12664_v11 }
 0x888   :  { %2932 = vmatprep.subr.bf16.mxu0 %v12665_v12  ;;  %2973 = vmatprep.subr.bf16.mxu1 %v12666_v13 }
 0x88b   :  { %2933 = vmatpush1.bf16.msra.mxu0 %v12667_v14  ;;  %2974 = vmatpush1.bf16.msra.mxu1 %v12668_v15 }
 0x88c   :  { %2934 = vmatprep.subr.bf16.mxu0 %v12669_v16  ;;  %2975 = vmatprep.subr.bf16.mxu1 %v12670_v17 }
 0x88f   :  { %2935 = vmatpush1.bf16.msra.mxu0 %v12671_v18  ;;  %2976 = vmatpush1.bf16.msra.mxu1 %v12672_v8 }
 0x890   :  { %2936 = vmatprep.subr.bf16.mxu0 %v12673_v29  ;;  %2977 = vmatprep.subr.bf16.mxu1 %v12674_v7 }
 0x893   :  { %2937 = vmatpush1.bf16.msra.mxu0 %v12675_v32  ;;  %2978 = vmatpush1.bf16.msra.mxu1 %v12676_v53 }
 0x894   :  { %2938 = vmatprep.subr.bf16.mxu0 %v12677_v21  ;;  %2979 = vmatprep.subr.bf16.mxu1 %v12678_v6 }
 0x897   :  { %2939 = vmatpush1.bf16.msra.mxu0 %v12679_v34  ;;  %2980 = vmatpush1.bf16.msra.mxu1 %v12680_v22 }
 0x898   :  { %2940 = vmatprep.subr.bf16.mxu0 %v12681_v51  ;;  %2981 = vmatprep.subr.bf16.mxu1 %v12682_v27 }
 0x89b   :  { %2941 = vmatpush1.bf16.msra.mxu0 %v12683_v37  ;;  %2982 = vmatpush1.bf16.msra.mxu1 %v12684_v47 }
 0x89c   :  { %3026 = vmatprep.subr.bf16.mxu0 %v9067_v10  ;;  %3067 = vmatprep.subr.bf16.mxu1 %v9073_v48 }
 0x911   :  { %v2717_v9 = vpop.f32.mrb[84].mxu0  ;;  %v2758_v31 = vpop.f32.mrb[84].mxu1 }
 0x912   :  { %v2718_v19 = vadd.f32 %v2717_v9, %v12685_v36  ;;  %v2719_v20 = vpop.f32.mrb[85].mxu0  ;;  %v2760_v26 = vpop.f32.mrb[85].mxu1  ;;  %v2759_v56 = vadd.f32 %v2758_v31, %v12688_v55  ;;  %v12689_v31 = vld [vmem:[#allocation85_spill] sm:$0xff] }
 0x913   :  { %v2720_v41 = vadd.f32 %v2719_v20, %v12686_v52  ;;  %v2721_v39 = vpop.f32.mrb[86].mxu0  ;;  %v2762_v23 = vpop.f32.mrb[86].mxu1  ;;  %v2761_v44 = vadd.f32 %v2760_v26, %v12687_v46 }
 0x914   :  { %v5038_v42 = vmul.f32 -1.442695, %v2718_v19  ;;  %v2722_v30 = vpop.f32.mrb[87].mxu0  ;;  %v2763_v45 = vpop.f32.mrb[87].mxu1 }
 0x915   :  { %v5039_v50 = vmul.f32 -1.442695, %v2720_v41  ;;  %v5040_v54 = vmul.f32 -1.442695, %v2761_v44  ;;  %v12690_v45 = vld [vmem:[#allocation86_spill] sm:$0xff] }
 0x916   :  { %5515 = vpow2.f32 %v5038_v42 }
 0x917   :  { %5517 = vpow2.f32 %v5039_v50 }
 0x918   :  { %5519 = vpow2.f32 %v5040_v54 }
 0x919   :  { %5521 = vtanh.f32 %v2759_v56  ;;  %v12691_v56 = vld [vmem:[#allocation87_spill] sm:$0xff] }
 0x920   :  { %v5516_v61 = vpop.eup %5515 }
 0x921   :  { %v5518_v38 = vpop.eup %5517  ;;  %v2768_v1 = vadd.f32 1.0, %v5516_v61 }
 0x922   :  { %v2774_v40 = vadd.f32 1.0, %v5518_v38  ;;  %v5520_v25 = vpop.eup %5519  ;;  %v12692_v38 = vld [vmem:[#allocation88_spill] sm:$0xff] }
 0x923   :  { %5523 = vrcp.f32 %v2768_v1  ;;  %v5522_v24 = vpop.eup %5521  ;;  %v2781_v41 = vadd.f32 1.0, %v5520_v25 }
 0x924   :  { %5525 = vrcp.f32 %v2774_v40 }
 0x925   :  { %5527 = vrcp.f32 %v2781_v41 }
 0x92d   :  { %v5524_v9 = vpop.eup %5523 }
 0x92e   :  { %v5526_v19 = vpop.eup %5525  ;;  %v2785_v20 = vmul.f32 %v5524_v9, %v5522_v24 }
 0x92f   :  { %v2784_v39 = vmul.f32 %v5526_v19, %v8954_v35 }
 0x931   :  { %v2833_v26 = vpop.f32.mrb[88].mxu0  ;;  %v2874_v23 = vpop.f32.mrb[88].mxu1  ;;  %v9081_v42 = vadd.f32 %v2785_v20, %v2784_v39 }
 0x932   :  { %v2881_v30 = vadd.f32 %v2833_v26, %v12689_v31  ;;  %v2883_v50 = vadd.f32 %v2874_v23, %v12690_v45  ;;  %v2835_v44 = vpop.f32.mrb[89].mxu0  ;;  %v2876_v54 = vpop.f32.mrb[89].mxu1 }
 0x933   :  { %v2882_v61 = vadd.f32 %v2835_v44, %v12691_v56  ;;  %v2884_v1 = vadd.f32 %v2876_v54, %v12692_v38  ;;  %v2837_v40 = vpop.f32.mrb[90].mxu0  ;;  %v2878_v24 = vpop.f32.mrb[90].mxu1  ;;  %5529 = vtanh.f32 %v9081_v42 }
 0x934   :  { %v5042_v35 = vmul.f32 -1.442695, %v2881_v30  ;;  %v2838_v25 = vpop.f32.mrb[91].mxu0  ;;  %v2879_v9 = vpop.f32.mrb[91].mxu1 }
 0x935   :  { %v5043_v19 = vmul.f32 -1.442695, %v2882_v61  ;;  %v5528_v20 = vpop.eup %5527  ;;  %v5044_v39 = vmul.f32 -1.442695, %v2884_v1 }
 0x936   :  { %5531 = vpow2.f32 %v5042_v35 }
 0x937   :  { %5533 = vpow2.f32 %v5043_v19 }
 0x938   :  { %5535 = vpow2.f32 %v5044_v39  ;;  %v9120_v39 = vld [vmem:[%s11382_s2 + $0x2c] ss:$16 sps:$4 sm:$0xff]  }
 0x939   :  { %5537 = vtanh.f32 %v2883_v50 }
 0x93d   :  { %v5530_v41 = vpop.eup %5529 }
 0x93e   :  { %v2788_v26 = vmul.f32 %v5530_v41, %v5528_v20  ;;  %v9102_v20 = vld [vmem:[%s11382_s2] ss:$16 sps:$4 sm:$0xff]   ;;  %v9114_v41 = vld [vmem:[%s11382_s2 + $0x24] ss:$16 sps:$4 sm:$0xff]  }
 0x940   :  { %v5532_v23 = vpop.eup %5531  ;;  %v2789_v31 = vpack.c.bf16 %v2788_v26, %v2788_v26  ;;  %v9128_v26 = vld [vmem:[%s11382_s2 + $0x20] ss:$16 sps:$4 sm:$0xff]  }
 0x941   :  { %v5534_v45 = vpop.eup %5533  ;;  %v2888_v44 = vadd.f32 1.0, %v5532_v23  ;;  %v9134_v23 = vld [vmem:[%s11382_s2 + $0x28] ss:$16 sps:$4 sm:$0xff]  }
 0x942   :  { %v2894_v54 = vadd.f32 1.0, %v5534_v45  ;;  %5041 = vst [vmem:[%s11386_s6 + $0x18] sm:$0xf] %v2789_v31  ;;  %2942 = vmatprep.mubr.bf16.mxu0 %v2789_v31  ;;  %2983 = vmatprep.mubr.bf16.mxu1 %v2789_v31  ;;  %v5536_v30 = vpop.eup %5535  ;;  %v9140_v31 = vld [vmem:[%s11382_s2 + $0x44] ss:$16 sps:$4 sm:$0xff]  }
 0x943   :  { %5539 = vrcp.f32 %v2888_v44  ;;  %v5538_v56 = vpop.eup %5537  ;;  %v2901_v40 = vadd.f32 1.0, %v5536_v30  ;;  %v9146_v45 = vld [vmem:[%s11382_s2 + $0x4c] ss:$16 sps:$4 sm:$0xff]   ;;  %v9152_v44 = vld [vmem:[%s11382_s2 + $0x40] ss:$16 sps:$4 sm:$0xff]  }
 0x944   :  { %5541 = vrcp.f32 %v2894_v54  ;;  %v9158_v54 = vld [vmem:[%s11382_s2 + $0x48] ss:$16 sps:$4 sm:$0xff]   ;;  %v9164_v30 = vld [vmem:[%s11382_s2 + $0x64] ss:$16 sps:$4 sm:$0xff]  }
 0x945   :  { %5543 = vrcp.f32 %v2901_v40  ;;  %v9194_v40 = vld [vmem:[%s11382_s2 + $0x8c] ss:$16 sps:$4 sm:$0xff]  }
 0x94d   :  { %v5540_v61 = vpop.eup %5539 }
 0x94e   :  { %v5542_v38 = vpop.eup %5541  ;;  %v2905_v1 = vmul.f32 %v5540_v61, %v5538_v56  ;;  %v9170_v56 = vld [vmem:[%s11382_s2 + $0x6c] ss:$16 sps:$4 sm:$0xff]   ;;  %v9176_v61 = vld [vmem:[%s11382_s2 + $0x60] ss:$16 sps:$4 sm:$0xff]  }
 0x94f   :  { %v2904_v24 = vmul.f32 %v5542_v38, %v8965_v33  ;;  %v5544_v50 = vpop.eup %5543  ;;  %v9108_v33 = vld [vmem:[%s11382_s2 + $0x8] ss:$16 sps:$4 sm:$0xff]  }
 0x950   :  { %v9182_v38 = vld [vmem:[%s11382_s2 + $0x68] ss:$16 sps:$4 sm:$0xff]  }
 0x951   :  { %v9092_v35 = vadd.f32 %v2905_v1, %v2904_v24  ;;  %v9188_v1 = vld [vmem:[%s11382_s2 + $0x84] ss:$16 sps:$4 sm:$0xff]   ;;  %v9200_v24 = vld [vmem:[%s11382_s2 + $0x80] ss:$16 sps:$4 sm:$0xff]  }
 0x952   :  { %12693 = vst [vmem:[#allocation72_spill] sm:$0xff] %v9200_v24 }
 0x953   :  { %5545 = vtanh.f32 %v9092_v35 }
 0x95d   :  { %v5546_v25 = vpop.eup %5545 }
 0x95e   :  { %v2908_v9 = vmul.f32 %v5546_v25, %v5544_v50  ;;  %v9206_v50 = vld [vmem:[%s11382_s2 + $0x88] ss:$16 sps:$4 sm:$0xff]   ;;  %v9212_v25 = vld [vmem:[%s11382_s2 + $0xa4] ss:$16 sps:$4 sm:$0xff]  }
 0x95f   :  { %12694 = vst [vmem:[#allocation34_spill] sm:$0xff] %v9206_v50  ;;  %12695 = vst [vmem:[#allocation35_spill] sm:$0xff] %v9212_v25 }
 0x960   :  { %v9095_v19 = vpack.c.bf16 %v2908_v9, %v2908_v9  ;;  %v9218_v9 = vld [vmem:[%s11382_s2 + $0xac] ss:$16 sps:$4 sm:$0xff]  }
 0x961   :  { %12696 = vst [vmem:[#allocation36_spill] sm:$0xff] %v9218_v9 }
 0x962   :  { %2943 = vmatmul.mubr.bf16.vlgmr.msra.gmra.mrb[92].mxu0 %v9095_v19  ;;  %2984 = vmatmul.mubr.bf16.vlgmr.msra.gmra.mrb[92].mxu1 %v9095_v19 }
 0x963   :  { %3027 = vmatpush1.bf16.msra.mxu0 %v9102_v20  ;;  %3068 = vmatpush1.bf16.msra.mxu1 %v9108_v33 }
 0x964   :  { %3028 = vmatprep.subr.bf16.mxu0 %v9114_v41  ;;  %3069 = vmatprep.subr.bf16.mxu1 %v9120_v39 }
 0x965   :  { %3058 = vmatprep.mubr.bf16.mxu0 %v12254_v43  ;;  %3099 = vmatprep.mubr.bf16.mxu1 %v12254_v43 }
 0x967   :  { %3029 = vmatpush1.bf16.msra.mxu0 %v9128_v26  ;;  %3070 = vmatpush1.bf16.msra.mxu1 %v9134_v23 }
 0x968   :  { %3030 = vmatprep.subr.bf16.mxu0 %v9140_v31  ;;  %3071 = vmatprep.subr.bf16.mxu1 %v9146_v45 }
 0x96b   :  { %3031 = vmatpush1.bf16.msra.mxu0 %v9152_v44  ;;  %3072 = vmatpush1.bf16.msra.mxu1 %v9158_v54 }
 0x96c   :  { %3032 = vmatprep.subr.bf16.mxu0 %v9164_v30  ;;  %3073 = vmatprep.subr.bf16.mxu1 %v9170_v56 }
 0x96f   :  { %3033 = vmatpush1.bf16.msra.mxu0 %v9176_v61  ;;  %3074 = vmatpush1.bf16.msra.mxu1 %v9182_v38 }
 0x970   :  { %3034 = vmatprep.subr.bf16.mxu0 %v9188_v1  ;;  %3075 = vmatprep.subr.bf16.mxu1 %v9194_v40 }
 0x973   :  { %3035 = vmatpush1.bf16.msra.mxu0 %v9200_v24  ;;  %3076 = vmatpush1.bf16.msra.mxu1 %v9206_v50  ;;  %v9224_v24 = vld [vmem:[%s11382_s2 + $0xa0] ss:$16 sps:$4 sm:$0xff]   ;;  %v9230_v50 = vld [vmem:[%s11382_s2 + $0xa8] ss:$16 sps:$4 sm:$0xff]  }
 0x974   :  { %3036 = vmatprep.subr.bf16.mxu0 %v9212_v25  ;;  %3077 = vmatprep.subr.bf16.mxu1 %v9218_v9  ;;  %12697 = vst [vmem:[#allocation37_spill] sm:$0xff] %v9224_v24  ;;  %12698 = vst [vmem:[#allocation38_spill] sm:$0xff] %v9230_v50  ;;  %v9236_v25 = vld [vmem:[%s11382_s2 + $0xc4] ss:$16 sps:$4 sm:$0xff]   ;;  %v9242_v9 = vld [vmem:[%s11382_s2 + $0xcc] ss:$16 sps:$4 sm:$0xff]  }
 0x975   :  { %12699 = vst [vmem:[#allocation39_spill] sm:$0xff] %v9236_v25  ;;  %12700 = vst [vmem:[#allocation40_spill] sm:$0xff] %v9242_v9 }
 0x977   :  { %3037 = vmatpush1.bf16.msra.mxu0 %v9224_v24  ;;  %3078 = vmatpush1.bf16.msra.mxu1 %v9230_v50  ;;  %v9248_v24 = vld [vmem:[%s11382_s2 + $0xc0] ss:$16 sps:$4 sm:$0xff]   ;;  %v9254_v50 = vld [vmem:[%s11382_s2 + $0xc8] ss:$16 sps:$4 sm:$0xff]  }
 0x978   :  { %3038 = vmatprep.subr.bf16.mxu0 %v9236_v25  ;;  %3079 = vmatprep.subr.bf16.mxu1 %v9242_v9  ;;  %12701 = vst [vmem:[#allocation41_spill] sm:$0xff] %v9248_v24  ;;  %12702 = vst [vmem:[#allocation42_spill] sm:$0xff] %v9254_v50  ;;  %v9260_v25 = vld [vmem:[%s11382_s2 + $0xe4] ss:$16 sps:$4 sm:$0xff]   ;;  %v9266_v9 = vld [vmem:[%s11382_s2 + $0xec] ss:$16 sps:$4 sm:$0xff]  }
 0x979   :  { %12703 = vst [vmem:[#allocation43_spill] sm:$0xff] %v9260_v25  ;;  %12704 = vst [vmem:[#allocation44_spill] sm:$0xff] %v9266_v9 }
 0x97b   :  { %3039 = vmatpush1.bf16.msra.mxu0 %v9248_v24  ;;  %3080 = vmatpush1.bf16.msra.mxu1 %v9254_v50  ;;  %v9272_v24 = vld [vmem:[%s11382_s2 + $0xe0] ss:$16 sps:$4 sm:$0xff]   ;;  %v9278_v50 = vld [vmem:[%s11382_s2 + $0xe8] ss:$16 sps:$4 sm:$0xff]  }
 0x97c   :  { %3040 = vmatprep.subr.bf16.mxu0 %v9260_v25  ;;  %3081 = vmatprep.subr.bf16.mxu1 %v9266_v9  ;;  %12705 = vst [vmem:[#allocation45_spill] sm:$0xff] %v9278_v50  ;;  %v9284_v25 = vld [vmem:[%s11383_s3 + $0x4] ss:$16 sps:$4 sm:$0xff]   ;;  %v9290_v9 = vld [vmem:[%s11383_s3 + $0xc] ss:$16 sps:$4 sm:$0xff]  }
 0x97d   :  { %12706 = vst [vmem:[#allocation46_spill] sm:$0xff] %v9284_v25  ;;  %12707 = vst [vmem:[#allocation47_spill] sm:$0xff] %v9290_v9 }
 0x97f   :  { %3041 = vmatpush1.bf16.msra.mxu0 %v9272_v24  ;;  %3082 = vmatpush1.bf16.msra.mxu1 %v9278_v50  ;;  %v9298_v50 = vld [vmem:[%s11383_s3] ss:$16 sps:$4 sm:$0xff]  }
 0x980   :  { %3137 = vmatprep.subr.bf16.mxu0 %v9284_v25  ;;  %3178 = vmatprep.subr.bf16.mxu1 %v9290_v9  ;;  %12708 = vst [vmem:[#allocation48_spill] sm:$0xff] %v9298_v50  ;;  %v9304_v25 = vld [vmem:[%s11383_s3 + $0x8] ss:$16 sps:$4 sm:$0xff]   ;;  %v9310_v9 = vld [vmem:[%s11383_s3 + $0x24] ss:$16 sps:$4 sm:$0xff]  }
 0x981   :  { %12709 = vst [vmem:[#allocation81_spill] sm:$0xff] %v9304_v25  ;;  %12710 = vst [vmem:[#allocation82_spill] sm:$0xff] %v9310_v9 }
 0x982   :  { %3059 = vmatmul.mubr.bf16.vlgmr.msra.gmra.mrb[96].mxu0 %v9095_v19  ;;  %3100 = vmatmul.mubr.bf16.vlgmr.msra.gmra.mrb[96].mxu1 %v9095_v19  ;;  %v9316_v19 = vld [vmem:[%s11383_s3 + $0x2c] ss:$16 sps:$4 sm:$0xff]  }
 0x983   :  { %3138 = vmatpush1.bf16.msra.mxu0 %v9298_v50  ;;  %3179 = vmatpush1.bf16.msra.mxu1 %v9304_v25  ;;  %12711 = vst [vmem:[#allocation83_spill] sm:$0xff] %v9316_v19  ;;  %v9322_v50 = vld [vmem:[%s11383_s3 + $0x20] ss:$16 sps:$4 sm:$0xff]   ;;  %v9328_v25 = vld [vmem:[%s11383_s3 + $0x28] ss:$16 sps:$4 sm:$0xff]  }
 0x984   :  { %3139 = vmatprep.subr.bf16.mxu0 %v9310_v9  ;;  %3180 = vmatprep.subr.bf16.mxu1 %v9316_v19  ;;  %12712 = vst [vmem:[#allocation84_spill] sm:$0xff] %v9322_v50  ;;  %12713 = vst [vmem:[#allocation49_spill] sm:$0xff] %v9328_v25  ;;  %v9334_v9 = vld [vmem:[%s11383_s3 + $0x44] ss:$16 sps:$4 sm:$0xff]   ;;  %v9340_v19 = vld [vmem:[%s11383_s3 + $0x4c] ss:$16 sps:$4 sm:$0xff]  }
 0x985   :  { %12714 = vst [vmem:[#allocation50_spill] sm:$0xff] %v9334_v9  ;;  %12715 = vst [vmem:[#allocation51_spill] sm:$0xff] %v9340_v19 }
 0x987   :  { %3140 = vmatpush1.bf16.msra.mxu0 %v9322_v50  ;;  %3181 = vmatpush1.bf16.msra.mxu1 %v9328_v25  ;;  %v9346_v50 = vld [vmem:[%s11383_s3 + $0x40] ss:$16 sps:$4 sm:$0xff]   ;;  %v9352_v25 = vld [vmem:[%s11383_s3 + $0x48] ss:$16 sps:$4 sm:$0xff]  }
 0x988   :  { %3141 = vmatprep.subr.bf16.mxu0 %v9334_v9  ;;  %3182 = vmatprep.subr.bf16.mxu1 %v9340_v19  ;;  %12716 = vst [vmem:[#allocation52_spill] sm:$0xff] %v9346_v50  ;;  %12717 = vst [vmem:[#allocation53_spill] sm:$0xff] %v9352_v25  ;;  %v9358_v9 = vld [vmem:[%s11383_s3 + $0x64] ss:$16 sps:$4 sm:$0xff]   ;;  %v9364_v19 = vld [vmem:[%s11383_s3 + $0x6c] ss:$16 sps:$4 sm:$0xff]  }
 0x989   :  { %12718 = vst [vmem:[#allocation54_spill] sm:$0xff] %v9358_v9  ;;  %12719 = vst [vmem:[#allocation55_spill] sm:$0xff] %v9364_v19 }
 0x98b   :  { %3142 = vmatpush1.bf16.msra.mxu0 %v9346_v50  ;;  %3183 = vmatpush1.bf16.msra.mxu1 %v9352_v25  ;;  %v9370_v50 = vld [vmem:[%s11383_s3 + $0x60] ss:$16 sps:$4 sm:$0xff]   ;;  %v9376_v25 = vld [vmem:[%s11383_s3 + $0x68] ss:$16 sps:$4 sm:$0xff]  }
 0x98c   :  { %3143 = vmatprep.subr.bf16.mxu0 %v9358_v9  ;;  %3184 = vmatprep.subr.bf16.mxu1 %v9364_v19  ;;  %12720 = vst [vmem:[#allocation56_spill] sm:$0xff] %v9370_v50  ;;  %12721 = vst [vmem:[#allocation57_spill] sm:$0xff] %v9376_v25  ;;  %v9382_v9 = vld [vmem:[%s11383_s3 + $0x84] ss:$16 sps:$4 sm:$0xff]   ;;  %v9388_v19 = vld [vmem:[%s11383_s3 + $0x8c] ss:$16 sps:$4 sm:$0xff]  }
 0x98d   :  { %12722 = vst [vmem:[#allocation58_spill] sm:$0xff] %v9382_v9  ;;  %12723 = vst [vmem:[#allocation59_spill] sm:$0xff] %v9388_v19 }
 0x98f   :  { %3144 = vmatpush1.bf16.msra.mxu0 %v9370_v50  ;;  %3185 = vmatpush1.bf16.msra.mxu1 %v9376_v25  ;;  %v9394_v50 = vld [vmem:[%s11383_s3 + $0x80] ss:$16 sps:$4 sm:$0xff]   ;;  %v9400_v25 = vld [vmem:[%s11383_s3 + $0x88] ss:$16 sps:$4 sm:$0xff]  }
 0x990   :  { %3145 = vmatprep.subr.bf16.mxu0 %v9382_v9  ;;  %3186 = vmatprep.subr.bf16.mxu1 %v9388_v19  ;;  %12724 = vst [vmem:[#allocation60_spill] sm:$0xff] %v9394_v50  ;;  %12725 = vst [vmem:[#allocation61_spill] sm:$0xff] %v9400_v25  ;;  %v9406_v9 = vld [vmem:[%s11383_s3 + $0xa4] ss:$16 sps:$4 sm:$0xff]   ;;  %v9412_v19 = vld [vmem:[%s11383_s3 + $0xac] ss:$16 sps:$4 sm:$0xff]  }
 0x991   :  { %12726 = vst [vmem:[#allocation62_spill] sm:$0xff] %v9406_v9  ;;  %12727 = vst [vmem:[#allocation63_spill] sm:$0xff] %v9412_v19 }
 0x993   :  { %3146 = vmatpush1.bf16.msra.mxu0 %v9394_v50  ;;  %3187 = vmatpush1.bf16.msra.mxu1 %v9400_v25  ;;  %v9418_v50 = vld [vmem:[%s11383_s3 + $0xa0] ss:$16 sps:$4 sm:$0xff]   ;;  %v9424_v25 = vld [vmem:[%s11383_s3 + $0xa8] ss:$16 sps:$4 sm:$0xff]  }
 0x994   :  { %3147 = vmatprep.subr.bf16.mxu0 %v9406_v9  ;;  %3188 = vmatprep.subr.bf16.mxu1 %v9412_v19  ;;  %12728 = vst [vmem:[#allocation64_spill] sm:$0xff] %v9418_v50  ;;  %12729 = vst [vmem:[#allocation11_spill] sm:$0xff] %v9424_v25  ;;  %v9430_v9 = vld [vmem:[%s11383_s3 + $0xc4] ss:$16 sps:$4 sm:$0xff]   ;;  %v9436_v19 = vld [vmem:[%s11383_s3 + $0xcc] ss:$16 sps:$4 sm:$0xff]  }
 0x995   :  { %12730 = vst [vmem:[#allocation65_spill] sm:$0xff] %v9430_v9  ;;  %12731 = vst [vmem:[#allocation66_spill] sm:$0xff] %v9436_v19 }
 0x997   :  { %3148 = vmatpush1.bf16.msra.mxu0 %v9418_v50  ;;  %3189 = vmatpush1.bf16.msra.mxu1 %v9424_v25  ;;  %v9442_v50 = vld [vmem:[%s11383_s3 + $0xc0] ss:$16 sps:$4 sm:$0xff]   ;;  %v9448_v25 = vld [vmem:[%s11383_s3 + $0xc8] ss:$16 sps:$4 sm:$0xff]  }
 0x998   :  { %3149 = vmatprep.subr.bf16.mxu0 %v9430_v9  ;;  %3190 = vmatprep.subr.bf16.mxu1 %v9436_v19  ;;  %12732 = vst [vmem:[#allocation67_spill] sm:$0xff] %v9442_v50  ;;  %12733 = vst [vmem:[#allocation68_spill] sm:$0xff] %v9448_v25  ;;  %v9454_v9 = vld [vmem:[%s11383_s3 + $0xe4] ss:$16 sps:$4 sm:$0xff]   ;;  %v9460_v19 = vld [vmem:[%s11383_s3 + $0xec] ss:$16 sps:$4 sm:$0xff]  }
 0x999   :  { %12734 = vst [vmem:[#allocation12_spill] sm:$0xff] %v9454_v9  ;;  %12735 = vst [vmem:[#allocation13_spill] sm:$0xff] %v9460_v19 }
 0x99b   :  { %3150 = vmatpush1.bf16.msra.mxu0 %v9442_v50  ;;  %3191 = vmatpush1.bf16.msra.mxu1 %v9448_v25 }
 0x99c   :  { %3151 = vmatprep.subr.bf16.mxu0 %v9454_v9  ;;  %3192 = vmatprep.subr.bf16.mxu1 %v9460_v19 }
 0x99f   :  { %3152 = vmatpush1.bf16.msra.mxu0 %v12651_v49  ;;  %3193 = vmatpush1.bf16.msra.mxu1 %v12652_v57 }
 0x9a0   :  { %3153 = vmatprep.subr.bf16.mxu0 %v12653_v58  ;;  %3194 = vmatprep.subr.bf16.mxu1 %v12654_v59 }
 0x9a3   :  { %3154 = vmatpush1.bf16.msra.mxu0 %v12655_v60  ;;  %3195 = vmatpush1.bf16.msra.mxu1 %v12656_v62 }
 0x9a4   :  { %3155 = vmatprep.subr.bf16.mxu0 %v12657_v63  ;;  %3196 = vmatprep.subr.bf16.mxu1 %v12658_v0 }
 0x9a7   :  { %3156 = vmatpush1.bf16.msra.mxu0 %v12659_v28  ;;  %3197 = vmatpush1.bf16.msra.mxu1 %v12660_v2 }
 0x9a8   :  { %3157 = vmatprep.subr.bf16.mxu0 %v12661_v3  ;;  %3198 = vmatprep.subr.bf16.mxu1 %v12662_v4 }
 0x9ab   :  { %3158 = vmatpush1.bf16.msra.mxu0 %v12663_v5  ;;  %3199 = vmatpush1.bf16.msra.mxu1 %v12664_v11 }
 0x9ac   :  { %3159 = vmatprep.subr.bf16.mxu0 %v12665_v12  ;;  %3200 = vmatprep.subr.bf16.mxu1 %v12666_v13 }
 0x9af   :  { %3160 = vmatpush1.bf16.msra.mxu0 %v12667_v14  ;;  %3201 = vmatpush1.bf16.msra.mxu1 %v12668_v15 }
 0x9b0   :  { %3161 = vmatprep.subr.bf16.mxu0 %v12669_v16  ;;  %3202 = vmatprep.subr.bf16.mxu1 %v12670_v17 }
 0x9b3   :  { %3162 = vmatpush1.bf16.msra.mxu0 %v12671_v18  ;;  %3203 = vmatpush1.bf16.msra.mxu1 %v12672_v8 }
 0x9b4   :  { %3163 = vmatprep.subr.bf16.mxu0 %v12673_v29  ;;  %3204 = vmatprep.subr.bf16.mxu1 %v12674_v7 }
 0x9b7   :  { %3164 = vmatpush1.bf16.msra.mxu0 %v12675_v32  ;;  %3205 = vmatpush1.bf16.msra.mxu1 %v12676_v53 }
 0x9b8   :  { %3165 = vmatprep.subr.bf16.mxu0 %v12677_v21  ;;  %3206 = vmatprep.subr.bf16.mxu1 %v12678_v6 }
 0x9bb   :  { %3166 = vmatpush1.bf16.msra.mxu0 %v12679_v34  ;;  %3207 = vmatpush1.bf16.msra.mxu1 %v12680_v22  ;;  %v12736_v22 = vld [vmem:[#allocation89_spill] sm:$0xff] }
 0x9bc   :  { %3167 = vmatprep.subr.bf16.mxu0 %v12681_v51  ;;  %3208 = vmatprep.subr.bf16.mxu1 %v12682_v27  ;;  %v12737_v27 = vld [vmem:[#allocation90_spill] sm:$0xff] }
 0x9bf   :  { %3168 = vmatpush1.bf16.msra.mxu0 %v12683_v37  ;;  %3209 = vmatpush1.bf16.msra.mxu1 %v12684_v47 }
 0x9c0   :  { %3253 = vmatprep.subr.bf16.mxu0 %v9067_v10  ;;  %3294 = vmatprep.subr.bf16.mxu1 %v9073_v48 }
 0xa35   :  { %v2944_v49 = vpop.f32.mrb[92].mxu0  ;;  %v2985_v57 = vpop.f32.mrb[92].mxu1 }
 0xa36   :  { %v2945_v58 = vadd.f32 %v2944_v49, %v12685_v36  ;;  %v2946_v59 = vpop.f32.mrb[93].mxu0  ;;  %v2987_v60 = vpop.f32.mrb[93].mxu1  ;;  %v2986_v12 = vadd.f32 %v2985_v57, %v12688_v55  ;;  %v12738_v57 = vld [vmem:[#allocation91_spill] sm:$0xff] }
 0xa37   :  { %v2947_v62 = vadd.f32 %v2946_v59, %v12686_v52  ;;  %v2948_v63 = vpop.f32.mrb[94].mxu0  ;;  %v2989_v0 = vpop.f32.mrb[94].mxu1  ;;  %v2988_v5 = vadd.f32 %v2987_v60, %v12687_v46  ;;  %v12739_v59 = vld [vmem:[#allocation92_spill] sm:$0xff] }
 0xa38   :  { %v5045_v28 = vmul.f32 -1.442695, %v2945_v58  ;;  %v2949_v2 = vpop.f32.mrb[95].mxu0  ;;  %v2990_v3 = vpop.f32.mrb[95].mxu1 }
 0xa39   :  { %v5046_v4 = vmul.f32 -1.442695, %v2947_v62  ;;  %v5047_v11 = vmul.f32 -1.442695, %v2988_v5 }
 0xa3a   :  { %5547 = vpow2.f32 %v5045_v28 }
 0xa3b   :  { %5549 = vpow2.f32 %v5046_v4 }
 0xa3c   :  { %5551 = vpow2.f32 %v5047_v11 }
 0xa3d   :  { %5553 = vtanh.f32 %v2986_v12 }
 0xa44   :  { %v5548_v13 = vpop.eup %5547 }
 0xa45   :  { %v5550_v14 = vpop.eup %5549  ;;  %v2995_v15 = vadd.f32 1.0, %v5548_v13 }
 0xa46   :  { %v3001_v16 = vadd.f32 1.0, %v5550_v14  ;;  %v5552_v17 = vpop.eup %5551 }
 0xa47   :  { %5555 = vrcp.f32 %v2995_v15  ;;  %v5554_v18 = vpop.eup %5553  ;;  %v3008_v32 = vadd.f32 1.0, %v5552_v17 }
 0xa48   :  { %5557 = vrcp.f32 %v3001_v16 }
 0xa49   :  { %5559 = vrcp.f32 %v3008_v32 }
 0xa51   :  { %v5556_v8 = vpop.eup %5555 }
 0xa52   :  { %v5558_v29 = vpop.eup %5557  ;;  %v3012_v7 = vmul.f32 %v5556_v8, %v5554_v18 }
 0xa53   :  { %v3011_v53 = vmul.f32 %v5558_v29, %v9081_v42  ;;  %v5560_v3 = vpop.eup %5559 }
 0xa55   :  { %v3060_v21 = vpop.f32.mrb[96].mxu0  ;;  %v3101_v6 = vpop.f32.mrb[96].mxu1  ;;  %v9504_v34 = vadd.f32 %v3012_v7, %v3011_v53 }
 0xa56   :  { %v3108_v51 = vadd.f32 %v3060_v21, %v12736_v22  ;;  %v3110_v37 = vadd.f32 %v3101_v6, %v12737_v27  ;;  %v3062_v47 = vpop.f32.mrb[97].mxu0  ;;  %v3103_v49 = vpop.f32.mrb[97].mxu1 }
 0xa57   :  { %v3109_v58 = vadd.f32 %v3062_v47, %v12738_v57  ;;  %v3111_v60 = vadd.f32 %v3103_v49, %v12739_v59  ;;  %v3064_v62 = vpop.f32.mrb[98].mxu0  ;;  %v3105_v63 = vpop.f32.mrb[98].mxu1  ;;  %5561 = vtanh.f32 %v9504_v34  ;;  %v12742_v47 = vld [vmem:[#allocation35_spill] sm:$0xff]  ;;  %v12743_v49 = vld [vmem:[#allocation36_spill] sm:$0xff]  ;;  %v12744_v57 = vld [vmem:[#allocation37_spill] sm:$0xff] }
 0xa58   :  { %v5049_v42 = vmul.f32 -1.442695, %v3108_v51  ;;  %v3065_v0 = vpop.f32.mrb[99].mxu0  ;;  %v3106_v28 = vpop.f32.mrb[99].mxu1  ;;  %v12746_v59 = vld [vmem:[#allocation39_spill] sm:$0xff]  ;;  %v12748_v62 = vld [vmem:[#allocation41_spill] sm:$0xff] }
 0xa59   :  { %v5050_v2 = vmul.f32 -1.442695, %v3109_v58  ;;  %v5051_v5 = vmul.f32 -1.442695, %v3111_v60  ;;  %v12745_v58 = vld [vmem:[#allocation38_spill] sm:$0xff]  ;;  %v12747_v60 = vld [vmem:[#allocation40_spill] sm:$0xff] }
 0xa5a   :  { %5563 = vpow2.f32 %v5049_v42  ;;  %v12749_v63 = vld [vmem:[#allocation42_spill] sm:$0xff]  ;;  %v12750_v42 = vld [vmem:[#allocation43_spill] sm:$0xff]  ;;  %v12751_v0 = vld [vmem:[#allocation44_spill] sm:$0xff] }
 0xa5b   :  { %5565 = vpow2.f32 %v5050_v2  ;;  %v12752_v28 = vld [vmem:[#allocation45_spill] sm:$0xff]  ;;  %v12753_v2 = vld [vmem:[#allocation46_spill] sm:$0xff] }
 0xa5c   :  { %5567 = vpow2.f32 %v5051_v5  ;;  %v12756_v5 = vld [vmem:[#allocation81_spill] sm:$0xff] }
 0xa5d   :  { %5569 = vtanh.f32 %v3110_v37  ;;  %v12741_v37 = vld [vmem:[#allocation34_spill] sm:$0xff] }
 0xa61   :  { %v5562_v4 = vpop.eup %5561 }
 0xa62   :  { %v3015_v11 = vmul.f32 %v5562_v4, %v5560_v3  ;;  %v12754_v3 = vld [vmem:[#allocation47_spill] sm:$0xff]  ;;  %v12755_v4 = vld [vmem:[#allocation48_spill] sm:$0xff] }
 0xa64   :  { %v5564_v12 = vpop.eup %5563  ;;  %v3016_v13 = vpack.c.bf16 %v3015_v11, %v3015_v11  ;;  %v12757_v11 = vld [vmem:[#allocation82_spill] sm:$0xff] }
 0xa65   :  { %v5566_v14 = vpop.eup %5565  ;;  %v3115_v15 = vadd.f32 1.0, %v5564_v12  ;;  %v12758_v12 = vld [vmem:[#allocation83_spill] sm:$0xff] }
 0xa66   :  { %v3121_v16 = vadd.f32 1.0, %v5566_v14  ;;  %5048 = vst [vmem:[%s11386_s6 + $0x1c] sm:$0xf] %v3016_v13  ;;  %3169 = vmatprep.mubr.bf16.mxu0 %v3016_v13  ;;  %3210 = vmatprep.mubr.bf16.mxu1 %v3016_v13  ;;  %v5568_v17 = vpop.eup %5567  ;;  %v12759_v13 = vld [vmem:[#allocation84_spill] sm:$0xff]  ;;  %v12760_v14 = vld [vmem:[#allocation49_spill] sm:$0xff] }
 0xa67   :  { %5571 = vrcp.f32 %v3115_v15  ;;  %v5570_v18 = vpop.eup %5569  ;;  %v3128_v32 = vadd.f32 1.0, %v5568_v17  ;;  %v12761_v15 = vld [vmem:[#allocation50_spill] sm:$0xff]  ;;  %v12763_v17 = vld [vmem:[#allocation52_spill] sm:$0xff] }
 0xa68   :  { %5573 = vrcp.f32 %v3121_v16  ;;  %v12762_v16 = vld [vmem:[#allocation51_spill] sm:$0xff] }
 0xa69   :  { %5575 = vrcp.f32 %v3128_v32  ;;  %v12768_v32 = vld [vmem:[#allocation57_spill] sm:$0xff] }
 0xa71   :  { %v5572_v8 = vpop.eup %5571 }
 0xa72   :  { %v5574_v29 = vpop.eup %5573  ;;  %v3132_v7 = vmul.f32 %v5572_v8, %v5570_v18  ;;  %v12764_v18 = vld [vmem:[#allocation53_spill] sm:$0xff]  ;;  %v12765_v8 = vld [vmem:[#allocation54_spill] sm:$0xff] }
 0xa73   :  { %v3131_v53 = vmul.f32 %v5574_v29, %v9092_v35  ;;  %v5576_v6 = vpop.eup %5575  ;;  %v12740_v35 = vld [vmem:[#allocation72_spill] sm:$0xff]  ;;  %v12766_v29 = vld [vmem:[#allocation55_spill] sm:$0xff] }
 0xa75   :  { %v9515_v21 = vadd.f32 %v3132_v7, %v3131_v53  ;;  %v12767_v7 = vld [vmem:[#allocation56_spill] sm:$0xff]  ;;  %v12769_v53 = vld [vmem:[#allocation58_spill] sm:$0xff] }
 0xa77   :  { %5577 = vtanh.f32 %v9515_v21 }
 0xa81   :  { %v5578_v22 = vpop.eup %5577 }
 0xa82   :  { %v3135_v51 = vmul.f32 %v5578_v22, %v5576_v6  ;;  %v12770_v6 = vld [vmem:[#allocation59_spill] sm:$0xff]  ;;  %v12771_v22 = vld [vmem:[#allocation60_spill] sm:$0xff] }
 0xa84   :  { %v3136_v27 = vpack.c.bf16 %v3135_v51, %v3135_v51  ;;  %v12772_v51 = vld [vmem:[#allocation61_spill] sm:$0xff] }
 0xa86   :  { %3170 = vmatmul.mubr.bf16.vlgmr.msra.gmra.mrb[100].mxu0 %v3136_v27  ;;  %3211 = vmatmul.mubr.bf16.vlgmr.msra.gmra.mrb[100].mxu1 %v3136_v27 }
 0xa87   :  { %3254 = vmatpush1.bf16.msra.mxu0 %v9102_v20  ;;  %3295 = vmatpush1.bf16.msra.mxu1 %v9108_v33 }
 0xa88   :  { %3255 = vmatprep.subr.bf16.mxu0 %v9114_v41  ;;  %3296 = vmatprep.subr.bf16.mxu1 %v9120_v39 }
 0xa89   :  { %3285 = vmatprep.mubr.bf16.mxu0 %v12254_v43  ;;  %3326 = vmatprep.mubr.bf16.mxu1 %v12254_v43 }
 0xa8b   :  { %3256 = vmatpush1.bf16.msra.mxu0 %v9128_v26  ;;  %3297 = vmatpush1.bf16.msra.mxu1 %v9134_v23 }
 0xa8c   :  { %3257 = vmatprep.subr.bf16.mxu0 %v9140_v31  ;;  %3298 = vmatprep.subr.bf16.mxu1 %v9146_v45 }
 0xa8f   :  { %3258 = vmatpush1.bf16.msra.mxu0 %v9152_v44  ;;  %3299 = vmatpush1.bf16.msra.mxu1 %v9158_v54 }
 0xa90   :  { %3259 = vmatprep.subr.bf16.mxu0 %v9164_v30  ;;  %3300 = vmatprep.subr.bf16.mxu1 %v9170_v56 }
 0xa93   :  { %3260 = vmatpush1.bf16.msra.mxu0 %v9176_v61  ;;  %3301 = vmatpush1.bf16.msra.mxu1 %v9182_v38 }
 0xa94   :  { %3261 = vmatprep.subr.bf16.mxu0 %v9188_v1  ;;  %3302 = vmatprep.subr.bf16.mxu1 %v9194_v40 }
 0xa97   :  { %3262 = vmatpush1.bf16.msra.mxu0 %v12740_v35  ;;  %3303 = vmatpush1.bf16.msra.mxu1 %v12741_v37 }
 0xa98   :  { %3263 = vmatprep.subr.bf16.mxu0 %v12742_v47  ;;  %3304 = vmatprep.subr.bf16.mxu1 %v12743_v49 }
 0xa9b   :  { %3264 = vmatpush1.bf16.msra.mxu0 %v12744_v57  ;;  %3305 = vmatpush1.bf16.msra.mxu1 %v12745_v58 }
 0xa9c   :  { %3265 = vmatprep.subr.bf16.mxu0 %v12746_v59  ;;  %3306 = vmatprep.subr.bf16.mxu1 %v12747_v60 }
 0xa9f   :  { %3266 = vmatpush1.bf16.msra.mxu0 %v12748_v62  ;;  %3307 = vmatpush1.bf16.msra.mxu1 %v12749_v63 }
 0xaa0   :  { %3267 = vmatprep.subr.bf16.mxu0 %v12750_v42  ;;  %3308 = vmatprep.subr.bf16.mxu1 %v12751_v0 }
 0xaa3   :  { %3268 = vmatpush1.bf16.msra.mxu0 %v9272_v24  ;;  %3309 = vmatpush1.bf16.msra.mxu1 %v12752_v28 }
 0xaa4   :  { %3364 = vmatprep.subr.bf16.mxu0 %v12753_v2  ;;  %3405 = vmatprep.subr.bf16.mxu1 %v12754_v3 }
 0xaa6   :  { %3286 = vmatmul.mubr.bf16.vlgmr.msra.gmra.mrb[104].mxu0 %v3136_v27  ;;  %3327 = vmatmul.mubr.bf16.vlgmr.msra.gmra.mrb[104].mxu1 %v3136_v27  ;;  %v12773_v27 = vld [vmem:[#allocation62_spill] sm:$0xff] }
 0xaa7   :  { %3365 = vmatpush1.bf16.msra.mxu0 %v12755_v4  ;;  %3406 = vmatpush1.bf16.msra.mxu1 %v12756_v5 }
 0xaa8   :  { %3366 = vmatprep.subr.bf16.mxu0 %v12757_v11  ;;  %3407 = vmatprep.subr.bf16.mxu1 %v12758_v12 }
 0xaab   :  { %3367 = vmatpush1.bf16.msra.mxu0 %v12759_v13  ;;  %3408 = vmatpush1.bf16.msra.mxu1 %v12760_v14 }
 0xaac   :  { %3368 = vmatprep.subr.bf16.mxu0 %v12761_v15  ;;  %3409 = vmatprep.subr.bf16.mxu1 %v12762_v16 }
 0xaaf   :  { %3369 = vmatpush1.bf16.msra.mxu0 %v12763_v17  ;;  %3410 = vmatpush1.bf16.msra.mxu1 %v12764_v18  ;;  %v12774_v17 = vld [vmem:[#allocation63_spill] sm:$0xff]  ;;  %v12775_v18 = vld [vmem:[#allocation64_spill] sm:$0xff] }
 0xab0   :  { %3370 = vmatprep.subr.bf16.mxu0 %v12765_v8  ;;  %3411 = vmatprep.subr.bf16.mxu1 %v12766_v29  ;;  %v12776_v8 = vld [vmem:[#allocation11_spill] sm:$0xff]  ;;  %v12777_v29 = vld [vmem:[#allocation65_spill] sm:$0xff] }
 0xab3   :  { %3371 = vmatpush1.bf16.msra.mxu0 %v12767_v7  ;;  %3412 = vmatpush1.bf16.msra.mxu1 %v12768_v32  ;;  %v12778_v7 = vld [vmem:[#allocation66_spill] sm:$0xff] }
 0xab4   :  { %3372 = vmatprep.subr.bf16.mxu0 %v12769_v53  ;;  %3413 = vmatprep.subr.bf16.mxu1 %v12770_v6 }
 0xab7   :  { %3373 = vmatpush1.bf16.msra.mxu0 %v12771_v22  ;;  %3414 = vmatpush1.bf16.msra.mxu1 %v12772_v51 }
 0xab8   :  { %3374 = vmatprep.subr.bf16.mxu0 %v12773_v27  ;;  %3415 = vmatprep.subr.bf16.mxu1 %v12774_v17  ;;  %v9583_v17 = vld [vmem:[%s11383_s3 + $0xe0] ss:$16 sps:$4 sm:$0xff]  }
 0xab9   :  { %12779 = vst [vmem:[#allocation14_spill] sm:$0xff] %v9583_v17 }
 0xabb   :  { %3375 = vmatpush1.bf16.msra.mxu0 %v12775_v18  ;;  %3416 = vmatpush1.bf16.msra.mxu1 %v12776_v8 }
 0xabc   :  { %3376 = vmatprep.subr.bf16.mxu0 %v12777_v29  ;;  %3417 = vmatprep.subr.bf16.mxu1 %v12778_v7  ;;  %v9589_v29 = vld [vmem:[%s11383_s3 + $0xe8] ss:$16 sps:$4 sm:$0xff]  }
 0xabd   :  { %12780 = vst [vmem:[#allocation15_spill] sm:$0xff] %v9589_v29 }
 0xabf   :  { %3377 = vmatpush1.bf16.msra.mxu0 %v9442_v50  ;;  %3418 = vmatpush1.bf16.msra.mxu1 %v9448_v25 }
 0xac0   :  { %3378 = vmatprep.subr.bf16.mxu0 %v9454_v9  ;;  %3419 = vmatprep.subr.bf16.mxu1 %v9460_v19  ;;  %v9595_v9 = vld [vmem:[%s11383_s3 + $0x104] ss:$16 sps:$4 sm:$0xff]   ;;  %v9601_v19 = vld [vmem:[%s11383_s3 + $0x10c] ss:$16 sps:$4 sm:$0xff]  }
 0xac1   :  { %12781 = vst [vmem:[#allocation16_spill] sm:$0xff] %v9595_v9  ;;  %12782 = vst [vmem:[#allocation17_spill] sm:$0xff] %v9601_v19 }
 0xac3   :  { %3379 = vmatpush1.bf16.msra.mxu0 %v9583_v17  ;;  %3420 = vmatpush1.bf16.msra.mxu1 %v9589_v29  ;;  %v9607_v17 = vld [vmem:[%s11383_s3 + $0x100] ss:$16 sps:$4 sm:$0xff]   ;;  %v9613_v29 = vld [vmem:[%s11383_s3 + $0x108] ss:$16 sps:$4 sm:$0xff]  }
 0xac4   :  { %3380 = vmatprep.subr.bf16.mxu0 %v9595_v9  ;;  %3421 = vmatprep.subr.bf16.mxu1 %v9601_v19  ;;  %12783 = vst [vmem:[#allocation18_spill] sm:$0xff] %v9607_v17  ;;  %12784 = vst [vmem:[#allocation19_spill] sm:$0xff] %v9613_v29  ;;  %v9619_v9 = vld [vmem:[%s11383_s3 + $0x124] ss:$16 sps:$4 sm:$0xff]   ;;  %v9625_v19 = vld [vmem:[%s11383_s3 + $0x12c] ss:$16 sps:$4 sm:$0xff]  }
 0xac5   :  { %12785 = vst [vmem:[#allocation20_spill] sm:$0xff] %v9619_v9  ;;  %12786 = vst [vmem:[#allocation21_spill] sm:$0xff] %v9625_v19 }
 0xac7   :  { %3381 = vmatpush1.bf16.msra.mxu0 %v9607_v17  ;;  %3422 = vmatpush1.bf16.msra.mxu1 %v9613_v29  ;;  %v9631_v17 = vld [vmem:[%s11383_s3 + $0x120] ss:$16 sps:$4 sm:$0xff]   ;;  %v9637_v29 = vld [vmem:[%s11383_s3 + $0x128] ss:$16 sps:$4 sm:$0xff]  }
 0xac8   :  { %3382 = vmatprep.subr.bf16.mxu0 %v9619_v9  ;;  %3423 = vmatprep.subr.bf16.mxu1 %v9625_v19  ;;  %12787 = vst [vmem:[#allocation22_spill] sm:$0xff] %v9631_v17  ;;  %12788 = vst [vmem:[#allocation23_spill] sm:$0xff] %v9637_v29  ;;  %v9643_v9 = vld [vmem:[%s11383_s3 + $0x144] ss:$16 sps:$4 sm:$0xff]   ;;  %v9649_v19 = vld [vmem:[%s11383_s3 + $0x14c] ss:$16 sps:$4 sm:$0xff]  }
 0xac9   :  { %12789 = vst [vmem:[#allocation24_spill] sm:$0xff] %v9643_v9  ;;  %12790 = vst [vmem:[#allocation25_spill] sm:$0xff] %v9649_v19 }
 0xacb   :  { %3383 = vmatpush1.bf16.msra.mxu0 %v9631_v17  ;;  %3424 = vmatpush1.bf16.msra.mxu1 %v9637_v29  ;;  %v9655_v17 = vld [vmem:[%s11383_s3 + $0x140] ss:$16 sps:$4 sm:$0xff]   ;;  %v9661_v29 = vld [vmem:[%s11383_s3 + $0x148] ss:$16 sps:$4 sm:$0xff]  }
 0xacc   :  { %3384 = vmatprep.subr.bf16.mxu0 %v9643_v9  ;;  %3425 = vmatprep.subr.bf16.mxu1 %v9649_v19  ;;  %12791 = vst [vmem:[#allocation26_spill] sm:$0xff] %v9655_v17  ;;  %12792 = vst [vmem:[#allocation27_spill] sm:$0xff] %v9661_v29  ;;  %v9667_v9 = vld [vmem:[%s11383_s3 + $0x164] ss:$16 sps:$4 sm:$0xff]   ;;  %v9673_v19 = vld [vmem:[%s11383_s3 + $0x16c] ss:$16 sps:$4 sm:$0xff]  }
 0xacd   :  { %12793 = vst [vmem:[#allocation28_spill] sm:$0xff] %v9667_v9  ;;  %12794 = vst [vmem:[#allocation29_spill] sm:$0xff] %v9673_v19 }
 0xacf   :  { %3385 = vmatpush1.bf16.msra.mxu0 %v9655_v17  ;;  %3426 = vmatpush1.bf16.msra.mxu1 %v9661_v29  ;;  %v9679_v17 = vld [vmem:[%s11383_s3 + $0x160] ss:$16 sps:$4 sm:$0xff]   ;;  %v9685_v29 = vld [vmem:[%s11383_s3 + $0x168] ss:$16 sps:$4 sm:$0xff]  }
 0xad0   :  { %3386 = vmatprep.subr.bf16.mxu0 %v9667_v9  ;;  %3427 = vmatprep.subr.bf16.mxu1 %v9673_v19  ;;  %12795 = vst [vmem:[#allocation73_spill] sm:$0xff] %v9679_v17  ;;  %12796 = vst [vmem:[#allocation74_spill] sm:$0xff] %v9685_v29  ;;  %v9691_v9 = vld [vmem:[%s11383_s3 + $0x184] ss:$16 sps:$4 sm:$0xff]   ;;  %v9697_v19 = vld [vmem:[%s11383_s3 + $0x18c] ss:$16 sps:$4 sm:$0xff]  }
 0xad1   :  { %12797 = vst [vmem:[#allocation75_spill] sm:$0xff] %v9691_v9  ;;  %12798 = vst [vmem:[#allocation76_spill] sm:$0xff] %v9697_v19 }
 0xad3   :  { %3387 = vmatpush1.bf16.msra.mxu0 %v9679_v17  ;;  %3428 = vmatpush1.bf16.msra.mxu1 %v9685_v29  ;;  %v9703_v17 = vld [vmem:[%s11383_s3 + $0x180] ss:$16 sps:$4 sm:$0xff]   ;;  %v9709_v29 = vld [vmem:[%s11383_s3 + $0x188] ss:$16 sps:$4 sm:$0xff]  }
 0xad4   :  { %3388 = vmatprep.subr.bf16.mxu0 %v9691_v9  ;;  %3429 = vmatprep.subr.bf16.mxu1 %v9697_v19  ;;  %12799 = vst [vmem:[#allocation77_spill] sm:$0xff] %v9703_v17  ;;  %12800 = vst [vmem:[#allocation78_spill] sm:$0xff] %v9709_v29  ;;  %v9715_v9 = vld [vmem:[%s11383_s3 + $0x1a4] ss:$16 sps:$4 sm:$0xff]   ;;  %v9721_v19 = vld [vmem:[%s11383_s3 + $0x1ac] ss:$16 sps:$4 sm:$0xff]  }
 0xad5   :  { %12801 = vst [vmem:[#allocation79_spill] sm:$0xff] %v9715_v9  ;;  %12802 = vst [vmem:[#allocation80_spill] sm:$0xff] %v9721_v19 }
 0xad7   :  { %3389 = vmatpush1.bf16.msra.mxu0 %v9703_v17  ;;  %3430 = vmatpush1.bf16.msra.mxu1 %v9709_v29  ;;  %v9727_v17 = vld [vmem:[%s11383_s3 + $0x1a0] ss:$16 sps:$4 sm:$0xff]   ;;  %v9733_v29 = vld [vmem:[%s11383_s3 + $0x1a8] ss:$16 sps:$4 sm:$0xff]  }
 0xad8   :  { %3390 = vmatprep.subr.bf16.mxu0 %v9715_v9  ;;  %3431 = vmatprep.subr.bf16.mxu1 %v9721_v19  ;;  %12803 = vst [vmem:[#allocation30_spill] sm:$0xff] %v9727_v17  ;;  %12804 = vst [vmem:[#allocation31_spill] sm:$0xff] %v9733_v29  ;;  %v9739_v9 = vld [vmem:[%s11383_s3 + $0x1c4] ss:$16 sps:$4 sm:$0xff]   ;;  %v9745_v19 = vld [vmem:[%s11383_s3 + $0x1cc] ss:$16 sps:$4 sm:$0xff]  }
 0xad9   :  { %12805 = vst [vmem:[#allocation32_spill] sm:$0xff] %v9739_v9  ;;  %12806 = vst [vmem:[#allocation33_spill] sm:$0xff] %v9745_v19 }
 0xadb   :  { %3391 = vmatpush1.bf16.msra.mxu0 %v9727_v17  ;;  %3432 = vmatpush1.bf16.msra.mxu1 %v9733_v29  ;;  %v9751_v17 = vld [vmem:[%s11383_s3 + $0x1c0] ss:$16 sps:$4 sm:$0xff]   ;;  %v9757_v29 = vld [vmem:[%s11383_s3 + $0x1c8] ss:$16 sps:$4 sm:$0xff]  }
 0xadc   :  { %3392 = vmatprep.subr.bf16.mxu0 %v9739_v9  ;;  %3433 = vmatprep.subr.bf16.mxu1 %v9745_v19  ;;  %12807 = vst [vmem:[#allocation69_spill] sm:$0xff] %v9751_v17  ;;  %12808 = vst [vmem:[#allocation70_spill] sm:$0xff] %v9757_v29  ;;  %v9763_v9 = vld [vmem:[%s11383_s3 + $0x1e4] ss:$16 sps:$4 sm:$0xff]   ;;  %v9769_v19 = vld [vmem:[%s11383_s3 + $0x1ec] ss:$16 sps:$4 sm:$0xff]  }
 0xadd   :  { %12809 = vst [vmem:[#allocation71_spill] sm:$0xff] %v9763_v9  ;;  %12810 = vst [vmem:[#allocation85_spill] sm:$0xff] %v9769_v19 }
 0xadf   :  { %3393 = vmatpush1.bf16.msra.mxu0 %v9751_v17  ;;  %3434 = vmatpush1.bf16.msra.mxu1 %v9757_v29  ;;  %v9775_v17 = vld [vmem:[%s11383_s3 + $0x1e0] ss:$16 sps:$4 sm:$0xff]   ;;  %v9781_v29 = vld [vmem:[%s11383_s3 + $0x1e8] ss:$16 sps:$4 sm:$0xff]  }
 0xae0   :  { %3394 = vmatprep.subr.bf16.mxu0 %v9763_v9  ;;  %3435 = vmatprep.subr.bf16.mxu1 %v9769_v19  ;;  %12811 = vst [vmem:[#allocation86_spill] sm:$0xff] %v9775_v17  ;;  %12812 = vst [vmem:[#allocation87_spill] sm:$0xff] %v9781_v29 }
 0xae3   :  { %3395 = vmatpush1.bf16.msra.mxu0 %v9775_v17  ;;  %3436 = vmatpush1.bf16.msra.mxu1 %v9781_v29 }
 0xae4   :  { %3480 = vmatprep.subr.bf16.mxu0 %v9067_v10  ;;  %3521 = vmatprep.subr.bf16.mxu1 %v9073_v48 }
 0xb59   :  { %v3171_v9 = vpop.f32.mrb[100].mxu0  ;;  %v3212_v19 = vpop.f32.mrb[100].mxu1 }
 0xb5a   :  { %v3172_v25 = vadd.f32 %v3171_v9, %v12685_v36  ;;  %v3173_v50 = vpop.f32.mrb[101].mxu0  ;;  %v3214_v7 = vpop.f32.mrb[101].mxu1  ;;  %v3213_v48 = vadd.f32 %v3212_v19, %v12688_v55  ;;  %v12813_v19 = vld [vmem:[#allocation93_spill] sm:$0xff]  ;;  %v12816_v55 = vld [vmem:[#allocation96_spill] sm:$0xff] }
 0xb5b   :  { %v3174_v8 = vadd.f32 %v3173_v50, %v12686_v52  ;;  %v3175_v17 = vpop.f32.mrb[102].mxu0  ;;  %v3216_v18 = vpop.f32.mrb[102].mxu1  ;;  %v3215_v10 = vadd.f32 %v3214_v7, %v12687_v46 }
 0xb5c   :  { %v5052_v27 = vmul.f32 -1.442695, %v3172_v25  ;;  %v3176_v51 = vpop.f32.mrb[103].mxu0  ;;  %v3217_v22 = vpop.f32.mrb[103].mxu1 }
 0xb5d   :  { %v5053_v6 = vmul.f32 -1.442695, %v3174_v8  ;;  %v5054_v29 = vmul.f32 -1.442695, %v3215_v10 }
 0xb5e   :  { %5579 = vpow2.f32 %v5052_v27 }
 0xb5f   :  { %5581 = vpow2.f32 %v5053_v6 }
 0xb60   :  { %5583 = vpow2.f32 %v5054_v29  ;;  %v12814_v29 = vld [vmem:[#allocation94_spill] sm:$0xff] }
 0xb61   :  { %5585 = vtanh.f32 %v3213_v48 }
 0xb68   :  { %v5580_v53 = vpop.eup %5579 }
 0xb69   :  { %v5582_v32 = vpop.eup %5581  ;;  %v3222_v9 = vadd.f32 1.0, %v5580_v53 }
 0xb6a   :  { %v3228_v36 = vadd.f32 1.0, %v5582_v32  ;;  %v5584_v50 = vpop.eup %5583 }
 0xb6b   :  { %5587 = vrcp.f32 %v3222_v9  ;;  %v5586_v25 = vpop.eup %5585  ;;  %v3235_v22 = vadd.f32 1.0, %v5584_v50 }
 0xb6c   :  { %5589 = vrcp.f32 %v3228_v36  ;;  %v12815_v36 = vld [vmem:[#allocation95_spill] sm:$0xff] }
 0xb6d   :  { %5591 = vrcp.f32 %v3235_v22 }
 0xb75   :  { %v5588_v17 = vpop.eup %5587 }
 0xb76   :  { %v5590_v18 = vpop.eup %5589  ;;  %v3239_v8 = vmul.f32 %v5588_v17, %v5586_v25 }
 0xb77   :  { %v3238_v6 = vmul.f32 %v5590_v18, %v9504_v34 }
 0xb79   :  { %v3287_v7 = vpop.f32.mrb[104].mxu0  ;;  %v3328_v51 = vpop.f32.mrb[104].mxu1  ;;  %v9791_v27 = vadd.f32 %v3239_v8, %v3238_v6 }
 0xb7a   :  { %v3335_v53 = vadd.f32 %v3287_v7, %v12813_v19  ;;  %v3337_v10 = vadd.f32 %v3328_v51, %v12814_v29  ;;  %v3289_v32 = vpop.f32.mrb[105].mxu0  ;;  %v3330_v48 = vpop.f32.mrb[105].mxu1 }
 0xb7b   :  { %v3336_v9 = vadd.f32 %v3289_v32, %v12815_v36  ;;  %v3338_v46 = vadd.f32 %v3330_v48, %v12816_v55  ;;  %v3291_v52 = vpop.f32.mrb[106].mxu0  ;;  %v3332_v25 = vpop.f32.mrb[106].mxu1  ;;  %5593 = vtanh.f32 %v9791_v27 }
 0xb7c   :  { %v5056_v34 = vmul.f32 -1.442695, %v3335_v53  ;;  %v3292_v50 = vpop.f32.mrb[107].mxu0  ;;  %v3333_v17 = vpop.f32.mrb[107].mxu1 }
 0xb7d   :  { %v5057_v18 = vmul.f32 -1.442695, %v3336_v9  ;;  %v5592_v8 = vpop.eup %5591  ;;  %v5058_v6 = vmul.f32 -1.442695, %v3338_v46 }
 0xb7e   :  { %5595 = vpow2.f32 %v5056_v34 }
 0xb7f   :  { %5597 = vpow2.f32 %v5057_v18 }
 0xb80   :  { %5599 = vpow2.f32 %v5058_v6  ;;  %v12860_v6 = vld [vmem:[#allocation80_spill] sm:$0xff] }
 0xb81   :  { %5601 = vtanh.f32 %v3337_v10 }
 0xb85   :  { %v5594_v22 = vpop.eup %5593 }
 0xb86   :  { %v3242_v7 = vmul.f32 %v5594_v22, %v5592_v8  ;;  %v12858_v8 = vld [vmem:[#allocation78_spill] sm:$0xff]  ;;  %v12859_v22 = vld [vmem:[#allocation79_spill] sm:$0xff] }
 0xb88   :  { %v5596_v51 = vpop.eup %5595  ;;  %v3243_v19 = vpack.c.bf16 %v3242_v7, %v3242_v7  ;;  %v12861_v7 = vld [vmem:[#allocation30_spill] sm:$0xff] }
 0xb89   :  { %v5598_v29 = vpop.eup %5597  ;;  %v3342_v32 = vadd.f32 1.0, %v5596_v51  ;;  %v12862_v51 = vld [vmem:[#allocation31_spill] sm:$0xff] }
 0xb8a   :  { %v3348_v52 = vadd.f32 1.0, %v5598_v29  ;;  %5055 = vst [vmem:[%s11386_s6 + $0x20] sm:$0xf] %v3243_v19  ;;  %3396 = vmatprep.mubr.bf16.mxu0 %v3243_v19  ;;  %3437 = vmatprep.mubr.bf16.mxu1 %v3243_v19  ;;  %v5600_v55 = vpop.eup %5599  ;;  %v12863_v19 = vld [vmem:[#allocation32_spill] sm:$0xff]  ;;  %v12864_v29 = vld [vmem:[#allocation33_spill] sm:$0xff] }
 0xb8b   :  { %5603 = vrcp.f32 %v3342_v32  ;;  %v5602_v53 = vpop.eup %5601  ;;  %v3355_v9 = vadd.f32 1.0, %v5600_v55  ;;  %v12865_v32 = vld [vmem:[#allocation69_spill] sm:$0xff]  ;;  %v12867_v55 = vld [vmem:[#allocation71_spill] sm:$0xff] }
 0xb8c   :  { %5605 = vrcp.f32 %v3348_v52  ;;  %v12866_v52 = vld [vmem:[#allocation70_spill] sm:$0xff] }
 0xb8d   :  { %5607 = vrcp.f32 %v3355_v9  ;;  %v9910_v9 = vld [vmem:[%s11382_s2 + $0xc] ss:$16 sps:$4 sm:$0xff]  }
 0xb95   :  { %v5604_v48 = vpop.eup %5603 }
 0xb96   :  { %v5606_v46 = vpop.eup %5605  ;;  %v3359_v36 = vmul.f32 %v5604_v48, %v5602_v53  ;;  %v12868_v53 = vld [vmem:[#allocation85_spill] sm:$0xff]  ;;  %v12869_v48 = vld [vmem:[#allocation86_spill] sm:$0xff] }
 0xb97   :  { %v3358_v25 = vmul.f32 %v5606_v46, %v9515_v21  ;;  %v5608_v10 = vpop.eup %5607  ;;  %v12834_v21 = vld [vmem:[#allocation68_spill] sm:$0xff]  ;;  %v12870_v46 = vld [vmem:[#allocation87_spill] sm:$0xff] }
 0xb99   :  { %v9802_v34 = vadd.f32 %v3359_v36, %v3358_v25  ;;  %v9904_v36 = vld [vmem:[%s11382_s2 + $0x4] ss:$16 sps:$4 sm:$0xff]  }
 0xb9b   :  { %5609 = vtanh.f32 %v9802_v34 }
 0xba5   :  { %v5610_v50 = vpop.eup %5609 }
 0xba6   :  { %v3362_v17 = vmul.f32 %v5610_v50, %v5608_v10  ;;  %v12871_v50 = vld [vmem:[#allocation7_spill] sm:$0xff] }
 0xba8   :  { %v3363_v18 = vpack.c.bf16 %v3362_v17, %v3362_v17 }
 0xbaa   :  { %3397 = vmatmul.mubr.bf16.vlgmr.msra.gmra.mrb[108].mxu0 %v3363_v18  ;;  %3438 = vmatmul.mubr.bf16.vlgmr.msra.gmra.mrb[108].mxu1 %v3363_v18 }
 0xbab   :  { %3481 = vmatpush1.bf16.msra.mxu0 %v9102_v20  ;;  %3522 = vmatpush1.bf16.msra.mxu1 %v9108_v33  ;;  %v12817_v20 = vld [vmem:[#allocation52_spill] sm:$0xff]  ;;  %v12818_v33 = vld [vmem:[#allocation53_spill] sm:$0xff] }
 0xbac   :  { %3482 = vmatprep.subr.bf16.mxu0 %v9114_v41  ;;  %3523 = vmatprep.subr.bf16.mxu1 %v9120_v39  ;;  %v12819_v41 = vld [vmem:[#allocation54_spill] sm:$0xff]  ;;  %v12820_v39 = vld [vmem:[#allocation55_spill] sm:$0xff] }
 0xbad   :  { %3512 = vmatprep.mubr.bf16.mxu0 %v12254_v43  ;;  %3553 = vmatprep.mubr.bf16.mxu1 %v12254_v43 }
 0xbaf   :  { %3483 = vmatpush1.bf16.msra.mxu0 %v9128_v26  ;;  %3524 = vmatpush1.bf16.msra.mxu1 %v9134_v23  ;;  %v12821_v26 = vld [vmem:[#allocation56_spill] sm:$0xff]  ;;  %v12822_v23 = vld [vmem:[#allocation57_spill] sm:$0xff] }
 0xbb0   :  { %3484 = vmatprep.subr.bf16.mxu0 %v9140_v31  ;;  %3525 = vmatprep.subr.bf16.mxu1 %v9146_v45  ;;  %v12823_v31 = vld [vmem:[#allocation58_spill] sm:$0xff]  ;;  %v12824_v45 = vld [vmem:[#allocation59_spill] sm:$0xff] }
 0xbb3   :  { %3485 = vmatpush1.bf16.msra.mxu0 %v9152_v44  ;;  %3526 = vmatpush1.bf16.msra.mxu1 %v9158_v54  ;;  %v12825_v44 = vld [vmem:[#allocation60_spill] sm:$0xff]  ;;  %v12826_v54 = vld [vmem:[#allocation61_spill] sm:$0xff] }
 0xbb4   :  { %3486 = vmatprep.subr.bf16.mxu0 %v9164_v30  ;;  %3527 = vmatprep.subr.bf16.mxu1 %v9170_v56  ;;  %v12827_v30 = vld [vmem:[#allocation62_spill] sm:$0xff]  ;;  %v12828_v56 = vld [vmem:[#allocation63_spill] sm:$0xff] }
 0xbb7   :  { %3487 = vmatpush1.bf16.msra.mxu0 %v9176_v61  ;;  %3528 = vmatpush1.bf16.msra.mxu1 %v9182_v38  ;;  %v12829_v61 = vld [vmem:[#allocation64_spill] sm:$0xff]  ;;  %v12830_v38 = vld [vmem:[#allocation11_spill] sm:$0xff] }
 0xbb8   :  { %3488 = vmatprep.subr.bf16.mxu0 %v9188_v1  ;;  %3529 = vmatprep.subr.bf16.mxu1 %v9194_v40  ;;  %v12831_v1 = vld [vmem:[#allocation65_spill] sm:$0xff]  ;;  %v12832_v40 = vld [vmem:[#allocation66_spill] sm:$0xff] }
 0xbbb   :  { %3489 = vmatpush1.bf16.msra.mxu0 %v12740_v35  ;;  %3530 = vmatpush1.bf16.msra.mxu1 %v12741_v37  ;;  %v12835_v35 = vld [vmem:[#allocation12_spill] sm:$0xff]  ;;  %v12836_v37 = vld [vmem:[#allocation13_spill] sm:$0xff] }
 0xbbc   :  { %3490 = vmatprep.subr.bf16.mxu0 %v12742_v47  ;;  %3531 = vmatprep.subr.bf16.mxu1 %v12743_v49  ;;  %v12837_v47 = vld [vmem:[#allocation14_spill] sm:$0xff]  ;;  %v12838_v49 = vld [vmem:[#allocation15_spill] sm:$0xff] }
 0xbbf   :  { %3491 = vmatpush1.bf16.msra.mxu0 %v12744_v57  ;;  %3532 = vmatpush1.bf16.msra.mxu1 %v12745_v58  ;;  %v12839_v57 = vld [vmem:[#allocation16_spill] sm:$0xff]  ;;  %v12840_v58 = vld [vmem:[#allocation17_spill] sm:$0xff] }
 0xbc0   :  { %3492 = vmatprep.subr.bf16.mxu0 %v12746_v59  ;;  %3533 = vmatprep.subr.bf16.mxu1 %v12747_v60  ;;  %v12841_v59 = vld [vmem:[#allocation18_spill] sm:$0xff]  ;;  %v12842_v60 = vld [vmem:[#allocation19_spill] sm:$0xff] }
 0xbc3   :  { %3493 = vmatpush1.bf16.msra.mxu0 %v12748_v62  ;;  %3534 = vmatpush1.bf16.msra.mxu1 %v12749_v63  ;;  %v12843_v62 = vld [vmem:[#allocation20_spill] sm:$0xff]  ;;  %v12844_v63 = vld [vmem:[#allocation21_spill] sm:$0xff] }
 0xbc4   :  { %3494 = vmatprep.subr.bf16.mxu0 %v12750_v42  ;;  %3535 = vmatprep.subr.bf16.mxu1 %v12751_v0  ;;  %v12845_v42 = vld [vmem:[#allocation22_spill] sm:$0xff]  ;;  %v12846_v0 = vld [vmem:[#allocation23_spill] sm:$0xff] }
 0xbc7   :  { %3495 = vmatpush1.bf16.msra.mxu0 %v9272_v24  ;;  %3536 = vmatpush1.bf16.msra.mxu1 %v12752_v28  ;;  %v12833_v24 = vld [vmem:[#allocation67_spill] sm:$0xff]  ;;  %v12847_v28 = vld [vmem:[#allocation24_spill] sm:$0xff] }
 0xbc8   :  { %3591 = vmatprep.subr.bf16.mxu0 %v12753_v2  ;;  %3632 = vmatprep.subr.bf16.mxu1 %v12754_v3  ;;  %v12848_v2 = vld [vmem:[#allocation25_spill] sm:$0xff]  ;;  %v12849_v3 = vld [vmem:[#allocation26_spill] sm:$0xff] }
 0xbca   :  { %3513 = vmatmul.mubr.bf16.vlgmr.msra.gmra.mrb[112].mxu0 %v3363_v18  ;;  %3554 = vmatmul.mubr.bf16.vlgmr.msra.gmra.mrb[112].mxu1 %v3363_v18 }
 0xbcb   :  { %3592 = vmatpush1.bf16.msra.mxu0 %v12755_v4  ;;  %3633 = vmatpush1.bf16.msra.mxu1 %v12756_v5  ;;  %v12850_v4 = vld [vmem:[#allocation27_spill] sm:$0xff]  ;;  %v12851_v5 = vld [vmem:[#allocation28_spill] sm:$0xff] }
 0xbcc   :  { %3593 = vmatprep.subr.bf16.mxu0 %v12757_v11  ;;  %3634 = vmatprep.subr.bf16.mxu1 %v12758_v12  ;;  %v12852_v11 = vld [vmem:[#allocation29_spill] sm:$0xff] }
 0xbcd   :  { %v12853_v12 = vld [vmem:[#allocation73_spill] sm:$0xff] }
 0xbcf   :  { %3594 = vmatpush1.bf16.msra.mxu0 %v12759_v13  ;;  %3635 = vmatpush1.bf16.msra.mxu1 %v12760_v14  ;;  %v12854_v13 = vld [vmem:[#allocation74_spill] sm:$0xff]  ;;  %v12855_v14 = vld [vmem:[#allocation75_spill] sm:$0xff] }
 0xbd0   :  { %3595 = vmatprep.subr.bf16.mxu0 %v12761_v15  ;;  %3636 = vmatprep.subr.bf16.mxu1 %v12762_v16  ;;  %v12856_v15 = vld [vmem:[#allocation76_spill] sm:$0xff]  ;;  %v12857_v16 = vld [vmem:[#allocation77_spill] sm:$0xff] }
 0xbd3   :  { %3596 = vmatpush1.bf16.msra.mxu0 %v12817_v20  ;;  %3637 = vmatpush1.bf16.msra.mxu1 %v12818_v33  ;;  %v12872_v33 = vld [vmem:[#allocation8_spill] sm:$0xff] }
 0xbd4   :  { %3597 = vmatprep.subr.bf16.mxu0 %v12819_v41  ;;  %3638 = vmatprep.subr.bf16.mxu1 %v12820_v39 }
 0xbd7   :  { %3598 = vmatpush1.bf16.msra.mxu0 %v12821_v26  ;;  %3639 = vmatpush1.bf16.msra.mxu1 %v12822_v23 }
 0xbd8   :  { %3599 = vmatprep.subr.bf16.mxu0 %v12823_v31  ;;  %3640 = vmatprep.subr.bf16.mxu1 %v12824_v45 }
 0xbdb   :  { %3600 = vmatpush1.bf16.msra.mxu0 %v12825_v44  ;;  %3641 = vmatpush1.bf16.msra.mxu1 %v12826_v54  ;;  %v12873_v54 = vld [vmem:[#allocation9_spill] sm:$0xff] }
 0xbdc   :  { %3601 = vmatprep.subr.bf16.mxu0 %v12827_v30  ;;  %3642 = vmatprep.subr.bf16.mxu1 %v12828_v56 }
 0xbdf   :  { %3602 = vmatpush1.bf16.msra.mxu0 %v12829_v61  ;;  %3643 = vmatpush1.bf16.msra.mxu1 %v12830_v38  ;;  %v12874_v61 = vld [vmem:[#allocation10_spill] sm:$0xff] }
 0xbe0   :  { %3603 = vmatprep.subr.bf16.mxu0 %v12831_v1  ;;  %3644 = vmatprep.subr.bf16.mxu1 %v12832_v40 }
 0xbe3   :  { %3604 = vmatpush1.bf16.msra.mxu0 %v12833_v24  ;;  %3645 = vmatpush1.bf16.msra.mxu1 %v12834_v21 }
 0xbe4   :  { %3605 = vmatprep.subr.bf16.mxu0 %v12835_v35  ;;  %3646 = vmatprep.subr.bf16.mxu1 %v12836_v37 }
 0xbe7   :  { %3606 = vmatpush1.bf16.msra.mxu0 %v12837_v47  ;;  %3647 = vmatpush1.bf16.msra.mxu1 %v12838_v49 }
 0xbe8   :  { %3607 = vmatprep.subr.bf16.mxu0 %v12839_v57  ;;  %3648 = vmatprep.subr.bf16.mxu1 %v12840_v58 }
 0xbeb   :  { %3608 = vmatpush1.bf16.msra.mxu0 %v12841_v59  ;;  %3649 = vmatpush1.bf16.msra.mxu1 %v12842_v60 }
 0xbec   :  { %3609 = vmatprep.subr.bf16.mxu0 %v12843_v62  ;;  %3650 = vmatprep.subr.bf16.mxu1 %v12844_v63 }
 0xbef   :  { %3610 = vmatpush1.bf16.msra.mxu0 %v12845_v42  ;;  %3651 = vmatpush1.bf16.msra.mxu1 %v12846_v0 }
 0xbf0   :  { %3611 = vmatprep.subr.bf16.mxu0 %v12847_v28  ;;  %3652 = vmatprep.subr.bf16.mxu1 %v12848_v2 }
 0xbf3   :  { %3612 = vmatpush1.bf16.msra.mxu0 %v12849_v3  ;;  %3653 = vmatpush1.bf16.msra.mxu1 %v12850_v4 }
 0xbf4   :  { %3613 = vmatprep.subr.bf16.mxu0 %v12851_v5  ;;  %3654 = vmatprep.subr.bf16.mxu1 %v12852_v11 }
 0xbf7   :  { %3614 = vmatpush1.bf16.msra.mxu0 %v12853_v12  ;;  %3655 = vmatpush1.bf16.msra.mxu1 %v12854_v13 }
 0xbf8   :  { %3615 = vmatprep.subr.bf16.mxu0 %v12855_v14  ;;  %3656 = vmatprep.subr.bf16.mxu1 %v12856_v15 }
 0xbfb   :  { %3616 = vmatpush1.bf16.msra.mxu0 %v12857_v16  ;;  %3657 = vmatpush1.bf16.msra.mxu1 %v12858_v8 }
 0xbfc   :  { %3617 = vmatprep.subr.bf16.mxu0 %v12859_v22  ;;  %3658 = vmatprep.subr.bf16.mxu1 %v12860_v6 }
 0xbff   :  { %3618 = vmatpush1.bf16.msra.mxu0 %v12861_v7  ;;  %3659 = vmatpush1.bf16.msra.mxu1 %v12862_v51 }
 0xc00   :  { %3619 = vmatprep.subr.bf16.mxu0 %v12863_v19  ;;  %3660 = vmatprep.subr.bf16.mxu1 %v12864_v29 }
 0xc03   :  { %3620 = vmatpush1.bf16.msra.mxu0 %v12865_v32  ;;  %3661 = vmatpush1.bf16.msra.mxu1 %v12866_v52 }
 0xc04   :  { %3621 = vmatprep.subr.bf16.mxu0 %v12867_v55  ;;  %3662 = vmatprep.subr.bf16.mxu1 %v12868_v53 }
 0xc07   :  { %3622 = vmatpush1.bf16.msra.mxu0 %v12869_v48  ;;  %3663 = vmatpush1.bf16.msra.mxu1 %v12870_v46 }
 0xc08   :  { %3707 = vmatprep.subr.bf16.mxu0 %v9904_v36  ;;  %3748 = vmatprep.subr.bf16.mxu1 %v9910_v9 }
 0xc7d   :  { %v3398_v25 = vpop.f32.mrb[108].mxu0  ;;  %v3439_v10 = vpop.f32.mrb[108].mxu1 }
 0xc7e   :  { %v3399_v17 = vadd.f32 %v3398_v25, %v12871_v50  ;;  %v3400_v18 = vpop.f32.mrb[109].mxu0  ;;  %v3441_v20 = vpop.f32.mrb[109].mxu1  ;;  %v3440_v38 = vadd.f32 %v3439_v10, %v12874_v61  ;;  %v12875_v10 = vld [vmem:[#allocation97_spill] sm:$0xff] }
 0xc7f   :  { %v3401_v41 = vadd.f32 %v3400_v18, %v12872_v33  ;;  %v3402_v39 = vpop.f32.mrb[110].mxu0  ;;  %v3443_v26 = vpop.f32.mrb[110].mxu1  ;;  %v3442_v30 = vadd.f32 %v3441_v20, %v12873_v54 }
 0xc80   :  { %v5059_v23 = vmul.f32 -1.442695, %v3399_v17  ;;  %v3403_v31 = vpop.f32.mrb[111].mxu0  ;;  %v3444_v45 = vpop.f32.mrb[111].mxu1 }
 0xc81   :  { %v5060_v44 = vmul.f32 -1.442695, %v3401_v41  ;;  %v5061_v56 = vmul.f32 -1.442695, %v3442_v30  ;;  %v12876_v45 = vld [vmem:[#allocation98_spill] sm:$0xff] }
 0xc82   :  { %5611 = vpow2.f32 %v5059_v23 }
 0xc83   :  { %5613 = vpow2.f32 %v5060_v44 }
 0xc84   :  { %5615 = vpow2.f32 %v5061_v56 }
 0xc85   :  { %5617 = vtanh.f32 %v3440_v38  ;;  %v12877_v38 = vld [vmem:[#allocation99_spill] sm:$0xff] }
 0xc8c   :  { %v5612_v1 = vpop.eup %5611 }
 0xc8d   :  { %v5614_v40 = vpop.eup %5613  ;;  %v3449_v24 = vadd.f32 1.0, %v5612_v1 }
 0xc8e   :  { %v3455_v21 = vadd.f32 1.0, %v5614_v40  ;;  %v5616_v35 = vpop.eup %5615  ;;  %v12878_v40 = vld [vmem:[#allocation100_spill] sm:$0xff] }
 0xc8f   :  { %5619 = vrcp.f32 %v3449_v24  ;;  %v5618_v37 = vpop.eup %5617  ;;  %v3462_v41 = vadd.f32 1.0, %v5616_v35 }
 0xc90   :  { %5621 = vrcp.f32 %v3455_v21 }
 0xc91   :  { %5623 = vrcp.f32 %v3462_v41 }
 0xc99   :  { %v5620_v25 = vpop.eup %5619 }
 0xc9a   :  { %v5622_v17 = vpop.eup %5621  ;;  %v3466_v18 = vmul.f32 %v5620_v25, %v5618_v37 }
 0xc9b   :  { %v3465_v39 = vmul.f32 %v5622_v17, %v9791_v27 }
 0xc9d   :  { %v3514_v20 = vpop.f32.mrb[112].mxu0  ;;  %v3555_v26 = vpop.f32.mrb[112].mxu1  ;;  %v9918_v23 = vadd.f32 %v3466_v18, %v3465_v39 }
 0xc9e   :  { %v3562_v31 = vadd.f32 %v3514_v20, %v12875_v10  ;;  %v3564_v44 = vadd.f32 %v3555_v26, %v12876_v45  ;;  %v3516_v30 = vpop.f32.mrb[113].mxu0  ;;  %v3557_v56 = vpop.f32.mrb[113].mxu1 }
 0xc9f   :  { %v3563_v1 = vadd.f32 %v3516_v30, %v12877_v38  ;;  %v3565_v24 = vadd.f32 %v3557_v56, %v12878_v40  ;;  %v3518_v21 = vpop.f32.mrb[114].mxu0  ;;  %v3559_v37 = vpop.f32.mrb[114].mxu1  ;;  %5625 = vtanh.f32 %v9918_v23 }
 0xca0   :  { %v5063_v27 = vmul.f32 -1.442695, %v3562_v31  ;;  %v3519_v35 = vpop.f32.mrb[115].mxu0  ;;  %v3560_v25 = vpop.f32.mrb[115].mxu1 }
 0xca1   :  { %v5064_v17 = vmul.f32 -1.442695, %v3563_v1  ;;  %v5624_v18 = vpop.eup %5623  ;;  %v5065_v39 = vmul.f32 -1.442695, %v3565_v24 }
 0xca2   :  { %5627 = vpow2.f32 %v5063_v27 }
 0xca3   :  { %5629 = vpow2.f32 %v5064_v17 }
 0xca4   :  { %5631 = vpow2.f32 %v5065_v39  ;;  %v9957_v39 = vld [vmem:[%s11382_s2 + $0x2c] ss:$16 sps:$4 sm:$0xff]  }
 0xca5   :  { %5633 = vtanh.f32 %v3564_v44 }
 0xca9   :  { %v5626_v41 = vpop.eup %5625 }
 0xcaa   :  { %v3469_v20 = vmul.f32 %v5626_v41, %v5624_v18  ;;  %v9939_v18 = vld [vmem:[%s11382_s2] ss:$16 sps:$4 sm:$0xff]   ;;  %v9951_v41 = vld [vmem:[%s11382_s2 + $0x24] ss:$16 sps:$4 sm:$0xff]  }
 0xcac   :  { %v5628_v26 = vpop.eup %5627  ;;  %v3470_v10 = vpack.c.bf16 %v3469_v20, %v3469_v20  ;;  %v9965_v20 = vld [vmem:[%s11382_s2 + $0x20] ss:$16 sps:$4 sm:$0xff]  }
 0xcad   :  { %v5630_v45 = vpop.eup %5629  ;;  %v3569_v30 = vadd.f32 1.0, %v5628_v26  ;;  %v9971_v26 = vld [vmem:[%s11382_s2 + $0x28] ss:$16 sps:$4 sm:$0xff]  }
 0xcae   :  { %v3575_v56 = vadd.f32 1.0, %v5630_v45  ;;  %5062 = vst [vmem:[%s11386_s6 + $0x24] sm:$0xf] %v3470_v10  ;;  %3623 = vmatprep.mubr.bf16.mxu0 %v3470_v10  ;;  %3664 = vmatprep.mubr.bf16.mxu1 %v3470_v10  ;;  %v5632_v31 = vpop.eup %5631  ;;  %v9977_v10 = vld [vmem:[%s11382_s2 + $0x44] ss:$16 sps:$4 sm:$0xff]  }
 0xcaf   :  { %5635 = vrcp.f32 %v3569_v30  ;;  %v5634_v38 = vpop.eup %5633  ;;  %v3582_v21 = vadd.f32 1.0, %v5632_v31  ;;  %v9983_v45 = vld [vmem:[%s11382_s2 + $0x4c] ss:$16 sps:$4 sm:$0xff]   ;;  %v9989_v30 = vld [vmem:[%s11382_s2 + $0x40] ss:$16 sps:$4 sm:$0xff]  }
 0xcb0   :  { %5637 = vrcp.f32 %v3575_v56  ;;  %v9995_v56 = vld [vmem:[%s11382_s2 + $0x48] ss:$16 sps:$4 sm:$0xff]   ;;  %v10001_v31 = vld [vmem:[%s11382_s2 + $0x64] ss:$16 sps:$4 sm:$0xff]  }
 0xcb1   :  { %5639 = vrcp.f32 %v3582_v21  ;;  %v10031_v21 = vld [vmem:[%s11382_s2 + $0x8c] ss:$16 sps:$4 sm:$0xff]  }
 0xcb9   :  { %v5636_v1 = vpop.eup %5635 }
 0xcba   :  { %v5638_v40 = vpop.eup %5637  ;;  %v3586_v24 = vmul.f32 %v5636_v1, %v5634_v38  ;;  %v10007_v38 = vld [vmem:[%s11382_s2 + $0x6c] ss:$16 sps:$4 sm:$0xff]   ;;  %v10013_v1 = vld [vmem:[%s11382_s2 + $0x60] ss:$16 sps:$4 sm:$0xff]  }
 0xcbb   :  { %v3585_v37 = vmul.f32 %v5638_v40, %v9802_v34  ;;  %v5640_v44 = vpop.eup %5639  ;;  %v9945_v34 = vld [vmem:[%s11382_s2 + $0x8] ss:$16 sps:$4 sm:$0xff]  }
 0xcbc   :  { %v10019_v40 = vld [vmem:[%s11382_s2 + $0x68] ss:$16 sps:$4 sm:$0xff]  }
 0xcbd   :  { %v9929_v27 = vadd.f32 %v3586_v24, %v3585_v37  ;;  %v10025_v24 = vld [vmem:[%s11382_s2 + $0x84] ss:$16 sps:$4 sm:$0xff]   ;;  %v10037_v37 = vld [vmem:[%s11382_s2 + $0x80] ss:$16 sps:$4 sm:$0xff]  }
 0xcbe   :  { %12879 = vst [vmem:[#allocation88_spill] sm:$0xff] %v10037_v37 }
 0xcbf   :  { %5641 = vtanh.f32 %v9929_v27 }
 0xcc9   :  { %v5642_v35 = vpop.eup %5641 }
 0xcca   :  { %v3589_v25 = vmul.f32 %v5642_v35, %v5640_v44  ;;  %v10043_v44 = vld [vmem:[%s11382_s2 + $0x88] ss:$16 sps:$4 sm:$0xff]   ;;  %v10049_v35 = vld [vmem:[%s11382_s2 + $0xa4] ss:$16 sps:$4 sm:$0xff]  }
 0xccb   :  { %12880 = vst [vmem:[#allocation89_spill] sm:$0xff] %v10043_v44  ;;  %12881 = vst [vmem:[#allocation90_spill] sm:$0xff] %v10049_v35 }
 0xccc   :  { %v9932_v17 = vpack.c.bf16 %v3589_v25, %v3589_v25  ;;  %v10055_v25 = vld [vmem:[%s11382_s2 + $0xac] ss:$16 sps:$4 sm:$0xff]  }
 0xccd   :  { %12882 = vst [vmem:[#allocation91_spill] sm:$0xff] %v10055_v25 }
 0xcce   :  { %3624 = vmatmul.mubr.bf16.vlgmr.msra.gmra.mrb[116].mxu0 %v9932_v17  ;;  %3665 = vmatmul.mubr.bf16.vlgmr.msra.gmra.mrb[116].mxu1 %v9932_v17 }
 0xccf   :  { %3708 = vmatpush1.bf16.msra.mxu0 %v9939_v18  ;;  %3749 = vmatpush1.bf16.msra.mxu1 %v9945_v34 }
 0xcd0   :  { %3709 = vmatprep.subr.bf16.mxu0 %v9951_v41  ;;  %3750 = vmatprep.subr.bf16.mxu1 %v9957_v39 }
 0xcd1   :  { %3739 = vmatprep.mubr.bf16.mxu0 %v12254_v43  ;;  %3780 = vmatprep.mubr.bf16.mxu1 %v12254_v43 }
 0xcd3   :  { %3710 = vmatpush1.bf16.msra.mxu0 %v9965_v20  ;;  %3751 = vmatpush1.bf16.msra.mxu1 %v9971_v26 }
 0xcd4   :  { %3711 = vmatprep.subr.bf16.mxu0 %v9977_v10  ;;  %3752 = vmatprep.subr.bf16.mxu1 %v9983_v45 }
 0xcd7   :  { %3712 = vmatpush1.bf16.msra.mxu0 %v9989_v30  ;;  %3753 = vmatpush1.bf16.msra.mxu1 %v9995_v56 }
 0xcd8   :  { %3713 = vmatprep.subr.bf16.mxu0 %v10001_v31  ;;  %3754 = vmatprep.subr.bf16.mxu1 %v10007_v38 }
 0xcdb   :  { %3714 = vmatpush1.bf16.msra.mxu0 %v10013_v1  ;;  %3755 = vmatpush1.bf16.msra.mxu1 %v10019_v40 }
 0xcdc   :  { %3715 = vmatprep.subr.bf16.mxu0 %v10025_v24  ;;  %3756 = vmatprep.subr.bf16.mxu1 %v10031_v21 }
 0xcdf   :  { %3716 = vmatpush1.bf16.msra.mxu0 %v10037_v37  ;;  %3757 = vmatpush1.bf16.msra.mxu1 %v10043_v44  ;;  %v10061_v37 = vld [vmem:[%s11382_s2 + $0xa0] ss:$16 sps:$4 sm:$0xff]   ;;  %v10067_v44 = vld [vmem:[%s11382_s2 + $0xa8] ss:$16 sps:$4 sm:$0xff]  }
 0xce0   :  { %3717 = vmatprep.subr.bf16.mxu0 %v10049_v35  ;;  %3758 = vmatprep.subr.bf16.mxu1 %v10055_v25  ;;  %12883 = vst [vmem:[#allocation92_spill] sm:$0xff] %v10061_v37  ;;  %12884 = vst [vmem:[#allocation72_spill] sm:$0xff] %v10067_v44  ;;  %v10073_v35 = vld [vmem:[%s11382_s2 + $0xc4] ss:$16 sps:$4 sm:$0xff]   ;;  %v10079_v25 = vld [vmem:[%s11382_s2 + $0xcc] ss:$16 sps:$4 sm:$0xff]  }
 0xce1   :  { %12885 = vst [vmem:[#allocation34_spill] sm:$0xff] %v10073_v35  ;;  %12886 = vst [vmem:[#allocation35_spill] sm:$0xff] %v10079_v25 }
 0xce3   :  { %3718 = vmatpush1.bf16.msra.mxu0 %v10061_v37  ;;  %3759 = vmatpush1.bf16.msra.mxu1 %v10067_v44  ;;  %v10085_v37 = vld [vmem:[%s11382_s2 + $0xc0] ss:$16 sps:$4 sm:$0xff]   ;;  %v10091_v44 = vld [vmem:[%s11382_s2 + $0xc8] ss:$16 sps:$4 sm:$0xff]  }
 0xce4   :  { %3719 = vmatprep.subr.bf16.mxu0 %v10073_v35  ;;  %3760 = vmatprep.subr.bf16.mxu1 %v10079_v25  ;;  %12887 = vst [vmem:[#allocation36_spill] sm:$0xff] %v10085_v37  ;;  %12888 = vst [vmem:[#allocation37_spill] sm:$0xff] %v10091_v44  ;;  %v10097_v35 = vld [vmem:[%s11382_s2 + $0xe4] ss:$16 sps:$4 sm:$0xff]   ;;  %v10103_v25 = vld [vmem:[%s11382_s2 + $0xec] ss:$16 sps:$4 sm:$0xff]  }
 0xce5   :  { %12889 = vst [vmem:[#allocation38_spill] sm:$0xff] %v10097_v35  ;;  %12890 = vst [vmem:[#allocation39_spill] sm:$0xff] %v10103_v25 }
 0xce7   :  { %3720 = vmatpush1.bf16.msra.mxu0 %v10085_v37  ;;  %3761 = vmatpush1.bf16.msra.mxu1 %v10091_v44  ;;  %v10109_v37 = vld [vmem:[%s11382_s2 + $0xe0] ss:$16 sps:$4 sm:$0xff]   ;;  %v10115_v44 = vld [vmem:[%s11382_s2 + $0xe8] ss:$16 sps:$4 sm:$0xff]  }
 0xce8   :  { %3721 = vmatprep.subr.bf16.mxu0 %v10097_v35  ;;  %3762 = vmatprep.subr.bf16.mxu1 %v10103_v25  ;;  %12891 = vst [vmem:[#allocation40_spill] sm:$0xff] %v10115_v44  ;;  %v10121_v35 = vld [vmem:[%s11383_s3 + $0x4] ss:$16 sps:$4 sm:$0xff]   ;;  %v10127_v25 = vld [vmem:[%s11383_s3 + $0xc] ss:$16 sps:$4 sm:$0xff]  }
 0xce9   :  { %12892 = vst [vmem:[#allocation41_spill] sm:$0xff] %v10121_v35  ;;  %12893 = vst [vmem:[#allocation42_spill] sm:$0xff] %v10127_v25 }
 0xceb   :  { %3722 = vmatpush1.bf16.msra.mxu0 %v10109_v37  ;;  %3763 = vmatpush1.bf16.msra.mxu1 %v10115_v44  ;;  %v10135_v44 = vld [vmem:[%s11383_s3] ss:$16 sps:$4 sm:$0xff]  }
 0xcec   :  { %3818 = vmatprep.subr.bf16.mxu0 %v10121_v35  ;;  %3859 = vmatprep.subr.bf16.mxu1 %v10127_v25  ;;  %12894 = vst [vmem:[#allocation43_spill] sm:$0xff] %v10135_v44  ;;  %v10141_v35 = vld [vmem:[%s11383_s3 + $0x8] ss:$16 sps:$4 sm:$0xff]   ;;  %v10147_v25 = vld [vmem:[%s11383_s3 + $0x24] ss:$16 sps:$4 sm:$0xff]  }
 0xced   :  { %12895 = vst [vmem:[#allocation44_spill] sm:$0xff] %v10141_v35  ;;  %12896 = vst [vmem:[#allocation45_spill] sm:$0xff] %v10147_v25 }
 0xcee   :  { %3740 = vmatmul.mubr.bf16.vlgmr.msra.gmra.mrb[120].mxu0 %v9932_v17  ;;  %3781 = vmatmul.mubr.bf16.vlgmr.msra.gmra.mrb[120].mxu1 %v9932_v17  ;;  %v10153_v17 = vld [vmem:[%s11383_s3 + $0x2c] ss:$16 sps:$4 sm:$0xff]  }
 0xcef   :  { %3819 = vmatpush1.bf16.msra.mxu0 %v10135_v44  ;;  %3860 = vmatpush1.bf16.msra.mxu1 %v10141_v35  ;;  %12897 = vst [vmem:[#allocation46_spill] sm:$0xff] %v10153_v17  ;;  %v10159_v44 = vld [vmem:[%s11383_s3 + $0x20] ss:$16 sps:$4 sm:$0xff]   ;;  %v10165_v35 = vld [vmem:[%s11383_s3 + $0x28] ss:$16 sps:$4 sm:$0xff]  }
 0xcf0   :  { %3820 = vmatprep.subr.bf16.mxu0 %v10147_v25  ;;  %3861 = vmatprep.subr.bf16.mxu1 %v10153_v17  ;;  %12898 = vst [vmem:[#allocation47_spill] sm:$0xff] %v10159_v44  ;;  %12899 = vst [vmem:[#allocation48_spill] sm:$0xff] %v10165_v35  ;;  %v10171_v25 = vld [vmem:[%s11383_s3 + $0x44] ss:$16 sps:$4 sm:$0xff]   ;;  %v10177_v17 = vld [vmem:[%s11383_s3 + $0x4c] ss:$16 sps:$4 sm:$0xff]  }
 0xcf1   :  { %12900 = vst [vmem:[#allocation81_spill] sm:$0xff] %v10171_v25  ;;  %12901 = vst [vmem:[#allocation82_spill] sm:$0xff] %v10177_v17 }
 0xcf3   :  { %3821 = vmatpush1.bf16.msra.mxu0 %v10159_v44  ;;  %3862 = vmatpush1.bf16.msra.mxu1 %v10165_v35  ;;  %v10183_v44 = vld [vmem:[%s11383_s3 + $0x40] ss:$16 sps:$4 sm:$0xff]   ;;  %v10189_v35 = vld [vmem:[%s11383_s3 + $0x48] ss:$16 sps:$4 sm:$0xff]  }
 0xcf4   :  { %3822 = vmatprep.subr.bf16.mxu0 %v10171_v25  ;;  %3863 = vmatprep.subr.bf16.mxu1 %v10177_v17  ;;  %12902 = vst [vmem:[#allocation83_spill] sm:$0xff] %v10183_v44  ;;  %12903 = vst [vmem:[#allocation84_spill] sm:$0xff] %v10189_v35  ;;  %v10195_v25 = vld [vmem:[%s11383_s3 + $0x64] ss:$16 sps:$4 sm:$0xff]   ;;  %v10201_v17 = vld [vmem:[%s11383_s3 + $0x6c] ss:$16 sps:$4 sm:$0xff]  }
 0xcf5   :  { %12904 = vst [vmem:[#allocation49_spill] sm:$0xff] %v10195_v25  ;;  %12905 = vst [vmem:[#allocation50_spill] sm:$0xff] %v10201_v17 }
 0xcf7   :  { %3823 = vmatpush1.bf16.msra.mxu0 %v10183_v44  ;;  %3864 = vmatpush1.bf16.msra.mxu1 %v10189_v35  ;;  %v10207_v44 = vld [vmem:[%s11383_s3 + $0x60] ss:$16 sps:$4 sm:$0xff]   ;;  %v10213_v35 = vld [vmem:[%s11383_s3 + $0x68] ss:$16 sps:$4 sm:$0xff]  }
 0xcf8   :  { %3824 = vmatprep.subr.bf16.mxu0 %v10195_v25  ;;  %3865 = vmatprep.subr.bf16.mxu1 %v10201_v17  ;;  %12906 = vst [vmem:[#allocation51_spill] sm:$0xff] %v10207_v44  ;;  %12907 = vst [vmem:[#allocation93_spill] sm:$0xff] %v10213_v35  ;;  %v10219_v25 = vld [vmem:[%s11383_s3 + $0x84] ss:$16 sps:$4 sm:$0xff]   ;;  %v10225_v17 = vld [vmem:[%s11383_s3 + $0x8c] ss:$16 sps:$4 sm:$0xff]  }
 0xcf9   :  { %12908 = vst [vmem:[#allocation94_spill] sm:$0xff] %v10219_v25  ;;  %12909 = vst [vmem:[#allocation95_spill] sm:$0xff] %v10225_v17 }
 0xcfb   :  { %3825 = vmatpush1.bf16.msra.mxu0 %v10207_v44  ;;  %3866 = vmatpush1.bf16.msra.mxu1 %v10213_v35  ;;  %v10231_v44 = vld [vmem:[%s11383_s3 + $0x80] ss:$16 sps:$4 sm:$0xff]   ;;  %v10237_v35 = vld [vmem:[%s11383_s3 + $0x88] ss:$16 sps:$4 sm:$0xff]  }
 0xcfc   :  { %3826 = vmatprep.subr.bf16.mxu0 %v10219_v25  ;;  %3867 = vmatprep.subr.bf16.mxu1 %v10225_v17  ;;  %12910 = vst [vmem:[#allocation96_spill] sm:$0xff] %v10231_v44  ;;  %12911 = vst [vmem:[#allocation52_spill] sm:$0xff] %v10237_v35  ;;  %v10243_v25 = vld [vmem:[%s11383_s3 + $0xa4] ss:$16 sps:$4 sm:$0xff]   ;;  %v10249_v17 = vld [vmem:[%s11383_s3 + $0xac] ss:$16 sps:$4 sm:$0xff]  }
 0xcfd   :  { %12912 = vst [vmem:[#allocation53_spill] sm:$0xff] %v10243_v25  ;;  %12913 = vst [vmem:[#allocation54_spill] sm:$0xff] %v10249_v17 }
 0xcff   :  { %3827 = vmatpush1.bf16.msra.mxu0 %v10231_v44  ;;  %3868 = vmatpush1.bf16.msra.mxu1 %v10237_v35  ;;  %v10255_v44 = vld [vmem:[%s11383_s3 + $0xa0] ss:$16 sps:$4 sm:$0xff]   ;;  %v10261_v35 = vld [vmem:[%s11383_s3 + $0xa8] ss:$16 sps:$4 sm:$0xff]  }
 0xd00   :  { %3828 = vmatprep.subr.bf16.mxu0 %v10243_v25  ;;  %3869 = vmatprep.subr.bf16.mxu1 %v10249_v17  ;;  %12914 = vst [vmem:[#allocation55_spill] sm:$0xff] %v10255_v44  ;;  %12915 = vst [vmem:[#allocation56_spill] sm:$0xff] %v10261_v35  ;;  %v10267_v25 = vld [vmem:[%s11383_s3 + $0xc4] ss:$16 sps:$4 sm:$0xff]   ;;  %v10273_v17 = vld [vmem:[%s11383_s3 + $0xcc] ss:$16 sps:$4 sm:$0xff]  }
 0xd01   :  { %12916 = vst [vmem:[#allocation57_spill] sm:$0xff] %v10267_v25  ;;  %12917 = vst [vmem:[#allocation58_spill] sm:$0xff] %v10273_v17 }
 0xd03   :  { %3829 = vmatpush1.bf16.msra.mxu0 %v10255_v44  ;;  %3870 = vmatpush1.bf16.msra.mxu1 %v10261_v35  ;;  %v10279_v44 = vld [vmem:[%s11383_s3 + $0xc0] ss:$16 sps:$4 sm:$0xff]   ;;  %v10285_v35 = vld [vmem:[%s11383_s3 + $0xc8] ss:$16 sps:$4 sm:$0xff]  }
 0xd04   :  { %3830 = vmatprep.subr.bf16.mxu0 %v10267_v25  ;;  %3871 = vmatprep.subr.bf16.mxu1 %v10273_v17  ;;  %12918 = vst [vmem:[#allocation59_spill] sm:$0xff] %v10279_v44  ;;  %12919 = vst [vmem:[#allocation60_spill] sm:$0xff] %v10285_v35  ;;  %v10291_v25 = vld [vmem:[%s11383_s3 + $0xe4] ss:$16 sps:$4 sm:$0xff]   ;;  %v10297_v17 = vld [vmem:[%s11383_s3 + $0xec] ss:$16 sps:$4 sm:$0xff]  }
 0xd05   :  { %12920 = vst [vmem:[#allocation61_spill] sm:$0xff] %v10291_v25  ;;  %12921 = vst [vmem:[#allocation62_spill] sm:$0xff] %v10297_v17 }
 0xd07   :  { %3831 = vmatpush1.bf16.msra.mxu0 %v10279_v44  ;;  %3872 = vmatpush1.bf16.msra.mxu1 %v10285_v35 }
 0xd08   :  { %3832 = vmatprep.subr.bf16.mxu0 %v10291_v25  ;;  %3873 = vmatprep.subr.bf16.mxu1 %v10297_v17 }
 0xd0b   :  { %3833 = vmatpush1.bf16.msra.mxu0 %v12837_v47  ;;  %3874 = vmatpush1.bf16.msra.mxu1 %v12838_v49 }
 0xd0c   :  { %3834 = vmatprep.subr.bf16.mxu0 %v12839_v57  ;;  %3875 = vmatprep.subr.bf16.mxu1 %v12840_v58 }
 0xd0f   :  { %3835 = vmatpush1.bf16.msra.mxu0 %v12841_v59  ;;  %3876 = vmatpush1.bf16.msra.mxu1 %v12842_v60 }
 0xd10   :  { %3836 = vmatprep.subr.bf16.mxu0 %v12843_v62  ;;  %3877 = vmatprep.subr.bf16.mxu1 %v12844_v63 }
 0xd13   :  { %3837 = vmatpush1.bf16.msra.mxu0 %v12845_v42  ;;  %3878 = vmatpush1.bf16.msra.mxu1 %v12846_v0 }
 0xd14   :  { %3838 = vmatprep.subr.bf16.mxu0 %v12847_v28  ;;  %3879 = vmatprep.subr.bf16.mxu1 %v12848_v2 }
 0xd17   :  { %3839 = vmatpush1.bf16.msra.mxu0 %v12849_v3  ;;  %3880 = vmatpush1.bf16.msra.mxu1 %v12850_v4 }
 0xd18   :  { %3840 = vmatprep.subr.bf16.mxu0 %v12851_v5  ;;  %3881 = vmatprep.subr.bf16.mxu1 %v12852_v11 }
 0xd1b   :  { %3841 = vmatpush1.bf16.msra.mxu0 %v12853_v12  ;;  %3882 = vmatpush1.bf16.msra.mxu1 %v12854_v13 }
 0xd1c   :  { %3842 = vmatprep.subr.bf16.mxu0 %v12855_v14  ;;  %3883 = vmatprep.subr.bf16.mxu1 %v12856_v15 }
 0xd1f   :  { %3843 = vmatpush1.bf16.msra.mxu0 %v12857_v16  ;;  %3884 = vmatpush1.bf16.msra.mxu1 %v12858_v8 }
 0xd20   :  { %3844 = vmatprep.subr.bf16.mxu0 %v12859_v22  ;;  %3885 = vmatprep.subr.bf16.mxu1 %v12860_v6 }
 0xd23   :  { %3845 = vmatpush1.bf16.msra.mxu0 %v12861_v7  ;;  %3886 = vmatpush1.bf16.msra.mxu1 %v12862_v51 }
 0xd24   :  { %3846 = vmatprep.subr.bf16.mxu0 %v12863_v19  ;;  %3887 = vmatprep.subr.bf16.mxu1 %v12864_v29 }
 0xd27   :  { %3847 = vmatpush1.bf16.msra.mxu0 %v12865_v32  ;;  %3888 = vmatpush1.bf16.msra.mxu1 %v12866_v52  ;;  %v12922_v52 = vld [vmem:[#allocation101_spill] sm:$0xff] }
 0xd28   :  { %3848 = vmatprep.subr.bf16.mxu0 %v12867_v55  ;;  %3889 = vmatprep.subr.bf16.mxu1 %v12868_v53  ;;  %v12923_v53 = vld [vmem:[#allocation102_spill] sm:$0xff] }
 0xd2b   :  { %3849 = vmatpush1.bf16.msra.mxu0 %v12869_v48  ;;  %3890 = vmatpush1.bf16.msra.mxu1 %v12870_v46 }
 0xd2c   :  { %3934 = vmatprep.subr.bf16.mxu0 %v9904_v36  ;;  %3975 = vmatprep.subr.bf16.mxu1 %v9910_v9 }
 0xda1   :  { %v3625_v47 = vpop.f32.mrb[116].mxu0  ;;  %v3666_v49 = vpop.f32.mrb[116].mxu1 }
 0xda2   :  { %v3626_v57 = vadd.f32 %v3625_v47, %v12871_v50  ;;  %v3627_v58 = vpop.f32.mrb[117].mxu0  ;;  %v3668_v59 = vpop.f32.mrb[117].mxu1  ;;  %v3667_v5 = vadd.f32 %v3666_v49, %v12874_v61  ;;  %v12924_v49 = vld [vmem:[#allocation103_spill] sm:$0xff] }
 0xda3   :  { %v3628_v60 = vadd.f32 %v3627_v58, %v12872_v33  ;;  %v3629_v62 = vpop.f32.mrb[118].mxu0  ;;  %v3670_v63 = vpop.f32.mrb[118].mxu1  ;;  %v3669_v3 = vadd.f32 %v3668_v59, %v12873_v54  ;;  %v12925_v58 = vld [vmem:[#allocation104_spill] sm:$0xff] }
 0xda4   :  { %v5066_v42 = vmul.f32 -1.442695, %v3626_v57  ;;  %v3630_v0 = vpop.f32.mrb[119].mxu0  ;;  %v3671_v28 = vpop.f32.mrb[119].mxu1 }
 0xda5   :  { %v5067_v2 = vmul.f32 -1.442695, %v3628_v60  ;;  %v5068_v4 = vmul.f32 -1.442695, %v3669_v3 }
 0xda6   :  { %5643 = vpow2.f32 %v5066_v42 }
 0xda7   :  { %5645 = vpow2.f32 %v5067_v2 }
 0xda8   :  { %5647 = vpow2.f32 %v5068_v4 }
 0xda9   :  { %5649 = vtanh.f32 %v3667_v5 }
 0xdb0   :  { %v5644_v11 = vpop.eup %5643 }
 0xdb1   :  { %v5646_v12 = vpop.eup %5645  ;;  %v3676_v13 = vadd.f32 1.0, %v5644_v11 }
 0xdb2   :  { %v3682_v14 = vadd.f32 1.0, %v5646_v12  ;;  %v5648_v15 = vpop.eup %5647 }
 0xdb3   :  { %5651 = vrcp.f32 %v3676_v13  ;;  %v5650_v16 = vpop.eup %5649  ;;  %v3689_v7 = vadd.f32 1.0, %v5648_v15 }
 0xdb4   :  { %5653 = vrcp.f32 %v3682_v14 }
 0xdb5   :  { %5655 = vrcp.f32 %v3689_v7 }
 0xdbd   :  { %v5652_v8 = vpop.eup %5651 }
 0xdbe   :  { %v5654_v22 = vpop.eup %5653  ;;  %v3693_v6 = vmul.f32 %v5652_v8, %v5650_v16 }
 0xdbf   :  { %v3692_v51 = vmul.f32 %v5654_v22, %v9918_v23  ;;  %v5656_v28 = vpop.eup %5655 }
 0xdc1   :  { %v3741_v19 = vpop.f32.mrb[120].mxu0  ;;  %v3782_v29 = vpop.f32.mrb[120].mxu1  ;;  %v10341_v32 = vadd.f32 %v3693_v6, %v3692_v51 }
 0xdc2   :  { %v3789_v55 = vadd.f32 %v3741_v19, %v12922_v52  ;;  %v3791_v48 = vadd.f32 %v3782_v29, %v12923_v53  ;;  %v3743_v46 = vpop.f32.mrb[121].mxu0  ;;  %v3784_v47 = vpop.f32.mrb[121].mxu1 }
 0xdc3   :  { %v3790_v57 = vadd.f32 %v3743_v46, %v12924_v49  ;;  %v3792_v59 = vadd.f32 %v3784_v47, %v12925_v58  ;;  %v3745_v60 = vpop.f32.mrb[122].mxu0  ;;  %v3786_v62 = vpop.f32.mrb[122].mxu1  ;;  %5657 = vtanh.f32 %v10341_v32  ;;  %v12928_v46 = vld [vmem:[#allocation90_spill] sm:$0xff]  ;;  %v12929_v47 = vld [vmem:[#allocation91_spill] sm:$0xff]  ;;  %v12930_v49 = vld [vmem:[#allocation92_spill] sm:$0xff] }
 0xdc4   :  { %v5070_v23 = vmul.f32 -1.442695, %v3789_v55  ;;  %v3746_v63 = vpop.f32.mrb[123].mxu0  ;;  %v3787_v42 = vpop.f32.mrb[123].mxu1  ;;  %v12932_v58 = vld [vmem:[#allocation34_spill] sm:$0xff]  ;;  %v12934_v60 = vld [vmem:[#allocation36_spill] sm:$0xff] }
 0xdc5   :  { %v5071_v0 = vmul.f32 -1.442695, %v3790_v57  ;;  %v5072_v3 = vmul.f32 -1.442695, %v3792_v59  ;;  %v12931_v57 = vld [vmem:[#allocation72_spill] sm:$0xff]  ;;  %v12933_v59 = vld [vmem:[#allocation35_spill] sm:$0xff] }
 0xdc6   :  { %5659 = vpow2.f32 %v5070_v23  ;;  %v12935_v62 = vld [vmem:[#allocation37_spill] sm:$0xff]  ;;  %v12936_v23 = vld [vmem:[#allocation38_spill] sm:$0xff]  ;;  %v12937_v63 = vld [vmem:[#allocation39_spill] sm:$0xff] }
 0xdc7   :  { %5661 = vpow2.f32 %v5071_v0  ;;  %v12938_v42 = vld [vmem:[#allocation40_spill] sm:$0xff]  ;;  %v12939_v0 = vld [vmem:[#allocation41_spill] sm:$0xff] }
 0xdc8   :  { %5663 = vpow2.f32 %v5072_v3  ;;  %v12942_v3 = vld [vmem:[#allocation44_spill] sm:$0xff] }
 0xdc9   :  { %5665 = vtanh.f32 %v3791_v48  ;;  %v12927_v48 = vld [vmem:[#allocation89_spill] sm:$0xff] }
 0xdcd   :  { %v5658_v2 = vpop.eup %5657 }
 0xdce   :  { %v3696_v4 = vmul.f32 %v5658_v2, %v5656_v28  ;;  %v12940_v28 = vld [vmem:[#allocation42_spill] sm:$0xff]  ;;  %v12941_v2 = vld [vmem:[#allocation43_spill] sm:$0xff] }
 0xdd0   :  { %v5660_v5 = vpop.eup %5659  ;;  %v3697_v11 = vpack.c.bf16 %v3696_v4, %v3696_v4  ;;  %v12943_v4 = vld [vmem:[#allocation45_spill] sm:$0xff] }
 0xdd1   :  { %v5662_v12 = vpop.eup %5661  ;;  %v3796_v13 = vadd.f32 1.0, %v5660_v5  ;;  %v12944_v5 = vld [vmem:[#allocation46_spill] sm:$0xff] }
 0xdd2   :  { %v3802_v14 = vadd.f32 1.0, %v5662_v12  ;;  %5069 = vst [vmem:[%s11386_s6 + $0x28] sm:$0xf] %v3697_v11  ;;  %3850 = vmatprep.mubr.bf16.mxu0 %v3697_v11  ;;  %3891 = vmatprep.mubr.bf16.mxu1 %v3697_v11  ;;  %v5664_v15 = vpop.eup %5663  ;;  %v12945_v11 = vld [vmem:[#allocation47_spill] sm:$0xff]  ;;  %v12946_v12 = vld [vmem:[#allocation48_spill] sm:$0xff] }
 0xdd3   :  { %5667 = vrcp.f32 %v3796_v13  ;;  %v5666_v16 = vpop.eup %5665  ;;  %v3809_v7 = vadd.f32 1.0, %v5664_v15  ;;  %v12947_v13 = vld [vmem:[#allocation81_spill] sm:$0xff]  ;;  %v12949_v15 = vld [vmem:[#allocation83_spill] sm:$0xff] }
 0xdd4   :  { %5669 = vrcp.f32 %v3802_v14  ;;  %v12948_v14 = vld [vmem:[#allocation82_spill] sm:$0xff] }
 0xdd5   :  { %5671 = vrcp.f32 %v3809_v7  ;;  %v12954_v7 = vld [vmem:[#allocation93_spill] sm:$0xff] }
 0xddd   :  { %v5668_v8 = vpop.eup %5667 }
 0xdde   :  { %v5670_v22 = vpop.eup %5669  ;;  %v3813_v6 = vmul.f32 %v5668_v8, %v5666_v16  ;;  %v12950_v16 = vld [vmem:[#allocation84_spill] sm:$0xff]  ;;  %v12951_v8 = vld [vmem:[#allocation49_spill] sm:$0xff] }
 0xddf   :  { %v3812_v51 = vmul.f32 %v5670_v22, %v9929_v27  ;;  %v5672_v29 = vpop.eup %5671  ;;  %v12926_v27 = vld [vmem:[#allocation88_spill] sm:$0xff]  ;;  %v12952_v22 = vld [vmem:[#allocation50_spill] sm:$0xff] }
 0xde1   :  { %v10352_v19 = vadd.f32 %v3813_v6, %v3812_v51  ;;  %v12953_v6 = vld [vmem:[#allocation51_spill] sm:$0xff]  ;;  %v12955_v51 = vld [vmem:[#allocation94_spill] sm:$0xff] }
 0xde3   :  { %5673 = vtanh.f32 %v10352_v19 }
 0xded   :  { %v5674_v52 = vpop.eup %5673 }
 0xdee   :  { %v3816_v55 = vmul.f32 %v5674_v52, %v5672_v29  ;;  %v12956_v29 = vld [vmem:[#allocation95_spill] sm:$0xff]  ;;  %v12957_v52 = vld [vmem:[#allocation96_spill] sm:$0xff] }
 0xdf0   :  { %v3817_v53 = vpack.c.bf16 %v3816_v55, %v3816_v55  ;;  %v12958_v55 = vld [vmem:[#allocation52_spill] sm:$0xff] }
 0xdf2   :  { %3851 = vmatmul.mubr.bf16.vlgmr.msra.gmra.mrb[124].mxu0 %v3817_v53  ;;  %3892 = vmatmul.mubr.bf16.vlgmr.msra.gmra.mrb[124].mxu1 %v3817_v53 }
 0xdf3   :  { %3935 = vmatpush1.bf16.msra.mxu0 %v9939_v18  ;;  %3976 = vmatpush1.bf16.msra.mxu1 %v9945_v34 }
 0xdf4   :  { %3936 = vmatprep.subr.bf16.mxu0 %v9951_v41  ;;  %3977 = vmatprep.subr.bf16.mxu1 %v9957_v39 }
 0xdf5   :  { %3966 = vmatprep.mubr.bf16.mxu0 %v12254_v43  ;;  %4007 = vmatprep.mubr.bf16.mxu1 %v12254_v43 }
 0xdf7   :  { %3937 = vmatpush1.bf16.msra.mxu0 %v9965_v20  ;;  %3978 = vmatpush1.bf16.msra.mxu1 %v9971_v26 }
 0xdf8   :  { %3938 = vmatprep.subr.bf16.mxu0 %v9977_v10  ;;  %3979 = vmatprep.subr.bf16.mxu1 %v9983_v45 }
 0xdfb   :  { %3939 = vmatpush1.bf16.msra.mxu0 %v9989_v30  ;;  %3980 = vmatpush1.bf16.msra.mxu1 %v9995_v56 }
 0xdfc   :  { %3940 = vmatprep.subr.bf16.mxu0 %v10001_v31  ;;  %3981 = vmatprep.subr.bf16.mxu1 %v10007_v38 }
 0xdff   :  { %3941 = vmatpush1.bf16.msra.mxu0 %v10013_v1  ;;  %3982 = vmatpush1.bf16.msra.mxu1 %v10019_v40 }
 0xe00   :  { %3942 = vmatprep.subr.bf16.mxu0 %v10025_v24  ;;  %3983 = vmatprep.subr.bf16.mxu1 %v10031_v21 }
 0xe03   :  { %3943 = vmatpush1.bf16.msra.mxu0 %v12926_v27  ;;  %3984 = vmatpush1.bf16.msra.mxu1 %v12927_v48 }
 0xe04   :  { %3944 = vmatprep.subr.bf16.mxu0 %v12928_v46  ;;  %3985 = vmatprep.subr.bf16.mxu1 %v12929_v47 }
 0xe07   :  { %3945 = vmatpush1.bf16.msra.mxu0 %v12930_v49  ;;  %3986 = vmatpush1.bf16.msra.mxu1 %v12931_v57 }
 0xe08   :  { %3946 = vmatprep.subr.bf16.mxu0 %v12932_v58  ;;  %3987 = vmatprep.subr.bf16.mxu1 %v12933_v59 }
 0xe0b   :  { %3947 = vmatpush1.bf16.msra.mxu0 %v12934_v60  ;;  %3988 = vmatpush1.bf16.msra.mxu1 %v12935_v62 }
 0xe0c   :  { %3948 = vmatprep.subr.bf16.mxu0 %v12936_v23  ;;  %3989 = vmatprep.subr.bf16.mxu1 %v12937_v63 }
 0xe0f   :  { %3949 = vmatpush1.bf16.msra.mxu0 %v10109_v37  ;;  %3990 = vmatpush1.bf16.msra.mxu1 %v12938_v42 }
 0xe10   :  { %4045 = vmatprep.subr.bf16.mxu0 %v12939_v0  ;;  %4086 = vmatprep.subr.bf16.mxu1 %v12940_v28 }
 0xe12   :  { %3967 = vmatmul.mubr.bf16.vlgmr.msra.gmra.mrb[128].mxu0 %v3817_v53  ;;  %4008 = vmatmul.mubr.bf16.vlgmr.msra.gmra.mrb[128].mxu1 %v3817_v53  ;;  %v12959_v53 = vld [vmem:[#allocation53_spill] sm:$0xff] }
 0xe13   :  { %4046 = vmatpush1.bf16.msra.mxu0 %v12941_v2  ;;  %4087 = vmatpush1.bf16.msra.mxu1 %v12942_v3 }
 0xe14   :  { %4047 = vmatprep.subr.bf16.mxu0 %v12943_v4  ;;  %4088 = vmatprep.subr.bf16.mxu1 %v12944_v5 }
 0xe17   :  { %4048 = vmatpush1.bf16.msra.mxu0 %v12945_v11  ;;  %4089 = vmatpush1.bf16.msra.mxu1 %v12946_v12 }
 0xe18   :  { %4049 = vmatprep.subr.bf16.mxu0 %v12947_v13  ;;  %4090 = vmatprep.subr.bf16.mxu1 %v12948_v14 }
 0xe1b   :  { %4050 = vmatpush1.bf16.msra.mxu0 %v12949_v15  ;;  %4091 = vmatpush1.bf16.msra.mxu1 %v12950_v16  ;;  %v12960_v15 = vld [vmem:[#allocation54_spill] sm:$0xff]  ;;  %v12961_v16 = vld [vmem:[#allocation55_spill] sm:$0xff] }
 0xe1c   :  { %4051 = vmatprep.subr.bf16.mxu0 %v12951_v8  ;;  %4092 = vmatprep.subr.bf16.mxu1 %v12952_v22  ;;  %v12962_v8 = vld [vmem:[#allocation56_spill] sm:$0xff]  ;;  %v12963_v22 = vld [vmem:[#allocation57_spill] sm:$0xff] }
 0xe1f   :  { %4052 = vmatpush1.bf16.msra.mxu0 %v12953_v6  ;;  %4093 = vmatpush1.bf16.msra.mxu1 %v12954_v7  ;;  %v12964_v6 = vld [vmem:[#allocation58_spill] sm:$0xff] }
 0xe20   :  { %4053 = vmatprep.subr.bf16.mxu0 %v12955_v51  ;;  %4094 = vmatprep.subr.bf16.mxu1 %v12956_v29 }
 0xe23   :  { %4054 = vmatpush1.bf16.msra.mxu0 %v12957_v52  ;;  %4095 = vmatpush1.bf16.msra.mxu1 %v12958_v55 }
 0xe24   :  { %4055 = vmatprep.subr.bf16.mxu0 %v12959_v53  ;;  %4096 = vmatprep.subr.bf16.mxu1 %v12960_v15  ;;  %v10420_v15 = vld [vmem:[%s11383_s3 + $0xe0] ss:$16 sps:$4 sm:$0xff]  }
 0xe25   :  { %12965 = vst [vmem:[#allocation63_spill] sm:$0xff] %v10420_v15 }
 0xe27   :  { %4056 = vmatpush1.bf16.msra.mxu0 %v12961_v16  ;;  %4097 = vmatpush1.bf16.msra.mxu1 %v12962_v8 }
 0xe28   :  { %4057 = vmatprep.subr.bf16.mxu0 %v12963_v22  ;;  %4098 = vmatprep.subr.bf16.mxu1 %v12964_v6  ;;  %v10426_v22 = vld [vmem:[%s11383_s3 + $0xe8] ss:$16 sps:$4 sm:$0xff]  }
 0xe29   :  { %12966 = vst [vmem:[#allocation64_spill] sm:$0xff] %v10426_v22 }
 0xe2b   :  { %4058 = vmatpush1.bf16.msra.mxu0 %v10279_v44  ;;  %4099 = vmatpush1.bf16.msra.mxu1 %v10285_v35 }
 0xe2c   :  { %4059 = vmatprep.subr.bf16.mxu0 %v10291_v25  ;;  %4100 = vmatprep.subr.bf16.mxu1 %v10297_v17  ;;  %v10432_v25 = vld [vmem:[%s11383_s3 + $0x104] ss:$16 sps:$4 sm:$0xff]   ;;  %v10438_v17 = vld [vmem:[%s11383_s3 + $0x10c] ss:$16 sps:$4 sm:$0xff]  }
 0xe2d   :  { %12967 = vst [vmem:[#allocation11_spill] sm:$0xff] %v10432_v25  ;;  %12968 = vst [vmem:[#allocation65_spill] sm:$0xff] %v10438_v17 }
 0xe2f   :  { %4060 = vmatpush1.bf16.msra.mxu0 %v10420_v15  ;;  %4101 = vmatpush1.bf16.msra.mxu1 %v10426_v22  ;;  %v10444_v15 = vld [vmem:[%s11383_s3 + $0x100] ss:$16 sps:$4 sm:$0xff]   ;;  %v10450_v22 = vld [vmem:[%s11383_s3 + $0x108] ss:$16 sps:$4 sm:$0xff]  }
 0xe30   :  { %4061 = vmatprep.subr.bf16.mxu0 %v10432_v25  ;;  %4102 = vmatprep.subr.bf16.mxu1 %v10438_v17  ;;  %12969 = vst [vmem:[#allocation66_spill] sm:$0xff] %v10444_v15  ;;  %12970 = vst [vmem:[#allocation67_spill] sm:$0xff] %v10450_v22  ;;  %v10456_v25 = vld [vmem:[%s11383_s3 + $0x124] ss:$16 sps:$4 sm:$0xff]   ;;  %v10462_v17 = vld [vmem:[%s11383_s3 + $0x12c] ss:$16 sps:$4 sm:$0xff]  }
 0xe31   :  { %12971 = vst [vmem:[#allocation68_spill] sm:$0xff] %v10456_v25  ;;  %12972 = vst [vmem:[#allocation12_spill] sm:$0xff] %v10462_v17 }
 0xe33   :  { %4062 = vmatpush1.bf16.msra.mxu0 %v10444_v15  ;;  %4103 = vmatpush1.bf16.msra.mxu1 %v10450_v22  ;;  %v10468_v15 = vld [vmem:[%s11383_s3 + $0x120] ss:$16 sps:$4 sm:$0xff]   ;;  %v10474_v22 = vld [vmem:[%s11383_s3 + $0x128] ss:$16 sps:$4 sm:$0xff]  }
 0xe34   :  { %4063 = vmatprep.subr.bf16.mxu0 %v10456_v25  ;;  %4104 = vmatprep.subr.bf16.mxu1 %v10462_v17  ;;  %12973 = vst [vmem:[#allocation13_spill] sm:$0xff] %v10468_v15  ;;  %12974 = vst [vmem:[#allocation14_spill] sm:$0xff] %v10474_v22  ;;  %v10480_v25 = vld [vmem:[%s11383_s3 + $0x144] ss:$16 sps:$4 sm:$0xff]   ;;  %v10486_v17 = vld [vmem:[%s11383_s3 + $0x14c] ss:$16 sps:$4 sm:$0xff]  }
 0xe35   :  { %12975 = vst [vmem:[#allocation15_spill] sm:$0xff] %v10480_v25  ;;  %12976 = vst [vmem:[#allocation16_spill] sm:$0xff] %v10486_v17 }
 0xe37   :  { %4064 = vmatpush1.bf16.msra.mxu0 %v10468_v15  ;;  %4105 = vmatpush1.bf16.msra.mxu1 %v10474_v22  ;;  %v10492_v15 = vld [vmem:[%s11383_s3 + $0x140] ss:$16 sps:$4 sm:$0xff]   ;;  %v10498_v22 = vld [vmem:[%s11383_s3 + $0x148] ss:$16 sps:$4 sm:$0xff]  }
 0xe38   :  { %4065 = vmatprep.subr.bf16.mxu0 %v10480_v25  ;;  %4106 = vmatprep.subr.bf16.mxu1 %v10486_v17  ;;  %12977 = vst [vmem:[#allocation17_spill] sm:$0xff] %v10492_v15  ;;  %12978 = vst [vmem:[#allocation18_spill] sm:$0xff] %v10498_v22  ;;  %v10504_v25 = vld [vmem:[%s11383_s3 + $0x164] ss:$16 sps:$4 sm:$0xff]   ;;  %v10510_v17 = vld [vmem:[%s11383_s3 + $0x16c] ss:$16 sps:$4 sm:$0xff]  }
 0xe39   :  { %12979 = vst [vmem:[#allocation19_spill] sm:$0xff] %v10504_v25  ;;  %12980 = vst [vmem:[#allocation20_spill] sm:$0xff] %v10510_v17 }
 0xe3b   :  { %4066 = vmatpush1.bf16.msra.mxu0 %v10492_v15  ;;  %4107 = vmatpush1.bf16.msra.mxu1 %v10498_v22  ;;  %v10516_v15 = vld [vmem:[%s11383_s3 + $0x160] ss:$16 sps:$4 sm:$0xff]   ;;  %v10522_v22 = vld [vmem:[%s11383_s3 + $0x168] ss:$16 sps:$4 sm:$0xff]  }
 0xe3c   :  { %4067 = vmatprep.subr.bf16.mxu0 %v10504_v25  ;;  %4108 = vmatprep.subr.bf16.mxu1 %v10510_v17  ;;  %12981 = vst [vmem:[#allocation21_spill] sm:$0xff] %v10516_v15  ;;  %12982 = vst [vmem:[#allocation22_spill] sm:$0xff] %v10522_v22  ;;  %v10528_v25 = vld [vmem:[%s11383_s3 + $0x184] ss:$16 sps:$4 sm:$0xff]   ;;  %v10534_v17 = vld [vmem:[%s11383_s3 + $0x18c] ss:$16 sps:$4 sm:$0xff]  }
 0xe3d   :  { %12983 = vst [vmem:[#allocation23_spill] sm:$0xff] %v10528_v25  ;;  %12984 = vst [vmem:[#allocation24_spill] sm:$0xff] %v10534_v17 }
 0xe3f   :  { %4068 = vmatpush1.bf16.msra.mxu0 %v10516_v15  ;;  %4109 = vmatpush1.bf16.msra.mxu1 %v10522_v22  ;;  %v10540_v15 = vld [vmem:[%s11383_s3 + $0x180] ss:$16 sps:$4 sm:$0xff]   ;;  %v10546_v22 = vld [vmem:[%s11383_s3 + $0x188] ss:$16 sps:$4 sm:$0xff]  }
 0xe40   :  { %4069 = vmatprep.subr.bf16.mxu0 %v10528_v25  ;;  %4110 = vmatprep.subr.bf16.mxu1 %v10534_v17  ;;  %12985 = vst [vmem:[#allocation25_spill] sm:$0xff] %v10540_v15  ;;  %12986 = vst [vmem:[#allocation26_spill] sm:$0xff] %v10546_v22  ;;  %v10552_v25 = vld [vmem:[%s11383_s3 + $0x1a4] ss:$16 sps:$4 sm:$0xff]   ;;  %v10558_v17 = vld [vmem:[%s11383_s3 + $0x1ac] ss:$16 sps:$4 sm:$0xff]  }
 0xe41   :  { %12987 = vst [vmem:[#allocation27_spill] sm:$0xff] %v10552_v25  ;;  %12988 = vst [vmem:[#allocation28_spill] sm:$0xff] %v10558_v17 }
 0xe43   :  { %4070 = vmatpush1.bf16.msra.mxu0 %v10540_v15  ;;  %4111 = vmatpush1.bf16.msra.mxu1 %v10546_v22  ;;  %v10564_v15 = vld [vmem:[%s11383_s3 + $0x1a0] ss:$16 sps:$4 sm:$0xff]   ;;  %v10570_v22 = vld [vmem:[%s11383_s3 + $0x1a8] ss:$16 sps:$4 sm:$0xff]  }
 0xe44   :  { %4071 = vmatprep.subr.bf16.mxu0 %v10552_v25  ;;  %4112 = vmatprep.subr.bf16.mxu1 %v10558_v17  ;;  %12989 = vst [vmem:[#allocation29_spill] sm:$0xff] %v10564_v15  ;;  %12990 = vst [vmem:[#allocation73_spill] sm:$0xff] %v10570_v22  ;;  %v10576_v25 = vld [vmem:[%s11383_s3 + $0x1c4] ss:$16 sps:$4 sm:$0xff]   ;;  %v10582_v17 = vld [vmem:[%s11383_s3 + $0x1cc] ss:$16 sps:$4 sm:$0xff]  }
 0xe45   :  { %12991 = vst [vmem:[#allocation74_spill] sm:$0xff] %v10576_v25  ;;  %12992 = vst [vmem:[#allocation75_spill] sm:$0xff] %v10582_v17 }
 0xe47   :  { %4072 = vmatpush1.bf16.msra.mxu0 %v10564_v15  ;;  %4113 = vmatpush1.bf16.msra.mxu1 %v10570_v22  ;;  %v10588_v15 = vld [vmem:[%s11383_s3 + $0x1c0] ss:$16 sps:$4 sm:$0xff]   ;;  %v10594_v22 = vld [vmem:[%s11383_s3 + $0x1c8] ss:$16 sps:$4 sm:$0xff]  }
 0xe48   :  { %4073 = vmatprep.subr.bf16.mxu0 %v10576_v25  ;;  %4114 = vmatprep.subr.bf16.mxu1 %v10582_v17  ;;  %12993 = vst [vmem:[#allocation76_spill] sm:$0xff] %v10588_v15  ;;  %12994 = vst [vmem:[#allocation77_spill] sm:$0xff] %v10594_v22  ;;  %v10600_v25 = vld [vmem:[%s11383_s3 + $0x1e4] ss:$16 sps:$4 sm:$0xff]   ;;  %v10606_v17 = vld [vmem:[%s11383_s3 + $0x1ec] ss:$16 sps:$4 sm:$0xff]  }
 0xe49   :  { %12995 = vst [vmem:[#allocation78_spill] sm:$0xff] %v10600_v25  ;;  %12996 = vst [vmem:[#allocation79_spill] sm:$0xff] %v10606_v17 }
 0xe4b   :  { %4074 = vmatpush1.bf16.msra.mxu0 %v10588_v15  ;;  %4115 = vmatpush1.bf16.msra.mxu1 %v10594_v22  ;;  %v10612_v15 = vld [vmem:[%s11383_s3 + $0x1e0] ss:$16 sps:$4 sm:$0xff]   ;;  %v10618_v22 = vld [vmem:[%s11383_s3 + $0x1e8] ss:$16 sps:$4 sm:$0xff]  }
 0xe4c   :  { %4075 = vmatprep.subr.bf16.mxu0 %v10600_v25  ;;  %4116 = vmatprep.subr.bf16.mxu1 %v10606_v17  ;;  %12997 = vst [vmem:[#allocation80_spill] sm:$0xff] %v10612_v15  ;;  %12998 = vst [vmem:[#allocation30_spill] sm:$0xff] %v10618_v22 }
 0xe4f   :  { %4076 = vmatpush1.bf16.msra.mxu0 %v10612_v15  ;;  %4117 = vmatpush1.bf16.msra.mxu1 %v10618_v22 }
 0xe50   :  { %4161 = vmatprep.subr.bf16.mxu0 %v9904_v36  ;;  %4202 = vmatprep.subr.bf16.mxu1 %v9910_v9 }
 0xec5   :  { %v3852_v25 = vpop.f32.mrb[124].mxu0  ;;  %v3893_v17 = vpop.f32.mrb[124].mxu1 }
 0xec6   :  { %v3853_v35 = vadd.f32 %v3852_v25, %v12871_v50  ;;  %v3854_v44 = vpop.f32.mrb[125].mxu0  ;;  %v3895_v6 = vpop.f32.mrb[125].mxu1  ;;  %v3894_v9 = vadd.f32 %v3893_v17, %v12874_v61  ;;  %v12999_v17 = vld [vmem:[#allocation105_spill] sm:$0xff]  ;;  %v13002_v61 = vld [vmem:[#allocation108_spill] sm:$0xff] }
 0xec7   :  { %v3855_v8 = vadd.f32 %v3854_v44, %v12872_v33  ;;  %v3856_v15 = vpop.f32.mrb[126].mxu0  ;;  %v3897_v16 = vpop.f32.mrb[126].mxu1  ;;  %v3896_v36 = vadd.f32 %v3895_v6, %v12873_v54 }
 0xec8   :  { %v5073_v53 = vmul.f32 -1.442695, %v3853_v35  ;;  %v3857_v55 = vpop.f32.mrb[127].mxu0  ;;  %v3898_v52 = vpop.f32.mrb[127].mxu1 }
 0xec9   :  { %v5074_v29 = vmul.f32 -1.442695, %v3855_v8  ;;  %v5075_v22 = vmul.f32 -1.442695, %v3896_v36 }
 0xeca   :  { %5675 = vpow2.f32 %v5073_v53 }
 0xecb   :  { %5677 = vpow2.f32 %v5074_v29 }
 0xecc   :  { %5679 = vpow2.f32 %v5075_v22  ;;  %v13000_v22 = vld [vmem:[#allocation106_spill] sm:$0xff] }
 0xecd   :  { %5681 = vtanh.f32 %v3894_v9 }
 0xed4   :  { %v5676_v51 = vpop.eup %5675 }
 0xed5   :  { %v5678_v7 = vpop.eup %5677  ;;  %v3903_v25 = vadd.f32 1.0, %v5676_v51 }
 0xed6   :  { %v3909_v50 = vadd.f32 1.0, %v5678_v7  ;;  %v5680_v44 = vpop.eup %5679 }
 0xed7   :  { %5683 = vrcp.f32 %v3903_v25  ;;  %v5682_v35 = vpop.eup %5681  ;;  %v3916_v52 = vadd.f32 1.0, %v5680_v44 }
 0xed8   :  { %5685 = vrcp.f32 %v3909_v50  ;;  %v13001_v50 = vld [vmem:[#allocation107_spill] sm:$0xff] }
 0xed9   :  { %5687 = vrcp.f32 %v3916_v52 }
 0xee1   :  { %v5684_v15 = vpop.eup %5683 }
 0xee2   :  { %v5686_v16 = vpop.eup %5685  ;;  %v3920_v8 = vmul.f32 %v5684_v15, %v5682_v35 }
 0xee3   :  { %v3919_v29 = vmul.f32 %v5686_v16, %v10341_v32 }
 0xee5   :  { %v3968_v6 = vpop.f32.mrb[128].mxu0  ;;  %v4009_v55 = vpop.f32.mrb[128].mxu1  ;;  %v10628_v53 = vadd.f32 %v3920_v8, %v3919_v29 }
 0xee6   :  { %v4016_v51 = vadd.f32 %v3968_v6, %v12999_v17  ;;  %v4018_v36 = vadd.f32 %v4009_v55, %v13000_v22  ;;  %v3970_v7 = vpop.f32.mrb[129].mxu0  ;;  %v4011_v9 = vpop.f32.mrb[129].mxu1 }
 0xee7   :  { %v4017_v25 = vadd.f32 %v3970_v7, %v13001_v50  ;;  %v4019_v54 = vadd.f32 %v4011_v9, %v13002_v61  ;;  %v3972_v33 = vpop.f32.mrb[130].mxu0  ;;  %v4013_v35 = vpop.f32.mrb[130].mxu1  ;;  %5689 = vtanh.f32 %v10628_v53 }
 0xee8   :  { %v5077_v32 = vmul.f32 -1.442695, %v4016_v51  ;;  %v3973_v44 = vpop.f32.mrb[131].mxu0  ;;  %v4014_v15 = vpop.f32.mrb[131].mxu1 }
 0xee9   :  { %v5078_v16 = vmul.f32 -1.442695, %v4017_v25  ;;  %v5688_v8 = vpop.eup %5687  ;;  %v5079_v29 = vmul.f32 -1.442695, %v4019_v54 }
 0xeea   :  { %5691 = vpow2.f32 %v5077_v32 }
 0xeeb   :  { %5693 = vpow2.f32 %v5078_v16 }
 0xeec   :  { %5695 = vpow2.f32 %v5079_v29  ;;  %v13046_v29 = vld [vmem:[#allocation28_spill] sm:$0xff] }
 0xeed   :  { %5697 = vtanh.f32 %v4018_v36 }
 0xef1   :  { %v5690_v52 = vpop.eup %5689 }
 0xef2   :  { %v3923_v6 = vmul.f32 %v5690_v52, %v5688_v8  ;;  %v13044_v8 = vld [vmem:[#allocation26_spill] sm:$0xff]  ;;  %v13045_v52 = vld [vmem:[#allocation27_spill] sm:$0xff] }
 0xef4   :  { %v5692_v55 = vpop.eup %5691  ;;  %v3924_v17 = vpack.c.bf16 %v3923_v6, %v3923_v6  ;;  %v13047_v6 = vld [vmem:[#allocation29_spill] sm:$0xff] }
 0xef5   :  { %v5694_v22 = vpop.eup %5693  ;;  %v4023_v7 = vadd.f32 1.0, %v5692_v55  ;;  %v13048_v55 = vld [vmem:[#allocation73_spill] sm:$0xff] }
 0xef6   :  { %v4029_v33 = vadd.f32 1.0, %v5694_v22  ;;  %5076 = vst [vmem:[%s11386_s6 + $0x2c] sm:$0xf] %v3924_v17  ;;  %4077 = vmatprep.mubr.bf16.mxu0 %v3924_v17  ;;  %4118 = vmatprep.mubr.bf16.mxu1 %v3924_v17  ;;  %v5696_v61 = vpop.eup %5695  ;;  %v13049_v17 = vld [vmem:[#allocation74_spill] sm:$0xff]  ;;  %v13050_v22 = vld [vmem:[#allocation75_spill] sm:$0xff] }
 0xef7   :  { %5699 = vrcp.f32 %v4023_v7  ;;  %v5698_v51 = vpop.eup %5697  ;;  %v4036_v25 = vadd.f32 1.0, %v5696_v61  ;;  %v13051_v7 = vld [vmem:[#allocation76_spill] sm:$0xff]  ;;  %v13053_v61 = vld [vmem:[#allocation78_spill] sm:$0xff] }
 0xef8   :  { %5701 = vrcp.f32 %v4029_v33  ;;  %v13052_v33 = vld [vmem:[#allocation77_spill] sm:$0xff] }
 0xef9   :  { %5703 = vrcp.f32 %v4036_v25  ;;  %v10747_v25 = vld [vmem:[%s11382_s2 + $0xc] ss:$16 sps:$4 sm:$0xff]  }
 0xf01   :  { %v5700_v9 = vpop.eup %5699 }
 0xf02   :  { %v5702_v54 = vpop.eup %5701  ;;  %v4040_v50 = vmul.f32 %v5700_v9, %v5698_v51  ;;  %v13054_v51 = vld [vmem:[#allocation79_spill] sm:$0xff]  ;;  %v13055_v9 = vld [vmem:[#allocation80_spill] sm:$0xff] }
 0xf03   :  { %v4039_v35 = vmul.f32 %v5702_v54, %v10352_v19  ;;  %v5704_v36 = vpop.eup %5703  ;;  %v13020_v19 = vld [vmem:[#allocation60_spill] sm:$0xff]  ;;  %v13056_v54 = vld [vmem:[#allocation30_spill] sm:$0xff] }
 0xf05   :  { %v10639_v32 = vadd.f32 %v4040_v50, %v4039_v35  ;;  %v10741_v50 = vld [vmem:[%s11382_s2 + $0x4] ss:$16 sps:$4 sm:$0xff]  }
 0xf07   :  { %5705 = vtanh.f32 %v10639_v32 }
 0xf11   :  { %v5706_v44 = vpop.eup %5705 }
 0xf12   :  { %v4043_v15 = vmul.f32 %v5706_v44, %v5704_v36  ;;  %v13057_v44 = vld [vmem:[#allocation7_spill] sm:$0xff] }
 0xf14   :  { %v4044_v16 = vpack.c.bf16 %v4043_v15, %v4043_v15 }
 0xf16   :  { %4078 = vmatmul.mubr.bf16.vlgmr.msra.gmra.mrb[132].mxu0 %v4044_v16  ;;  %4119 = vmatmul.mubr.bf16.vlgmr.msra.gmra.mrb[132].mxu1 %v4044_v16 }
 0xf17   :  { %4162 = vmatpush1.bf16.msra.mxu0 %v9939_v18  ;;  %4203 = vmatpush1.bf16.msra.mxu1 %v9945_v34  ;;  %v13003_v18 = vld [vmem:[#allocation83_spill] sm:$0xff]  ;;  %v13004_v34 = vld [vmem:[#allocation84_spill] sm:$0xff] }
 0xf18   :  { %4163 = vmatprep.subr.bf16.mxu0 %v9951_v41  ;;  %4204 = vmatprep.subr.bf16.mxu1 %v9957_v39  ;;  %v13005_v41 = vld [vmem:[#allocation49_spill] sm:$0xff]  ;;  %v13006_v39 = vld [vmem:[#allocation50_spill] sm:$0xff] }
 0xf19   :  { %4193 = vmatprep.mubr.bf16.mxu0 %v12254_v43  ;;  %4234 = vmatprep.mubr.bf16.mxu1 %v12254_v43 }
 0xf1b   :  { %4164 = vmatpush1.bf16.msra.mxu0 %v9965_v20  ;;  %4205 = vmatpush1.bf16.msra.mxu1 %v9971_v26  ;;  %v13007_v20 = vld [vmem:[#allocation51_spill] sm:$0xff]  ;;  %v13008_v26 = vld [vmem:[#allocation93_spill] sm:$0xff] }
 0xf1c   :  { %4165 = vmatprep.subr.bf16.mxu0 %v9977_v10  ;;  %4206 = vmatprep.subr.bf16.mxu1 %v9983_v45  ;;  %v13009_v10 = vld [vmem:[#allocation94_spill] sm:$0xff]  ;;  %v13010_v45 = vld [vmem:[#allocation95_spill] sm:$0xff] }
 0xf1f   :  { %4166 = vmatpush1.bf16.msra.mxu0 %v9989_v30  ;;  %4207 = vmatpush1.bf16.msra.mxu1 %v9995_v56  ;;  %v13011_v30 = vld [vmem:[#allocation96_spill] sm:$0xff] }
 0xf20   :  { %4167 = vmatprep.subr.bf16.mxu0 %v10001_v31  ;;  %4208 = vmatprep.subr.bf16.mxu1 %v10007_v38  ;;  %v13012_v56 = vld [vmem:[#allocation52_spill] sm:$0xff]  ;;  %v13013_v31 = vld [vmem:[#allocation53_spill] sm:$0xff]  ;;  %v13014_v38 = vld [vmem:[#allocation54_spill] sm:$0xff] }
 0xf23   :  { %4168 = vmatpush1.bf16.msra.mxu0 %v10013_v1  ;;  %4209 = vmatpush1.bf16.msra.mxu1 %v10019_v40  ;;  %v13015_v1 = vld [vmem:[#allocation55_spill] sm:$0xff]  ;;  %v13016_v40 = vld [vmem:[#allocation56_spill] sm:$0xff] }
 0xf24   :  { %4169 = vmatprep.subr.bf16.mxu0 %v10025_v24  ;;  %4210 = vmatprep.subr.bf16.mxu1 %v10031_v21  ;;  %v13017_v24 = vld [vmem:[#allocation57_spill] sm:$0xff]  ;;  %v13018_v21 = vld [vmem:[#allocation58_spill] sm:$0xff] }
 0xf27   :  { %4170 = vmatpush1.bf16.msra.mxu0 %v12926_v27  ;;  %4211 = vmatpush1.bf16.msra.mxu1 %v12927_v48  ;;  %v13021_v27 = vld [vmem:[#allocation61_spill] sm:$0xff]  ;;  %v13022_v48 = vld [vmem:[#allocation62_spill] sm:$0xff] }
 0xf28   :  { %4171 = vmatprep.subr.bf16.mxu0 %v12928_v46  ;;  %4212 = vmatprep.subr.bf16.mxu1 %v12929_v47  ;;  %v13023_v46 = vld [vmem:[#allocation63_spill] sm:$0xff]  ;;  %v13024_v47 = vld [vmem:[#allocation64_spill] sm:$0xff] }
 0xf2b   :  { %4172 = vmatpush1.bf16.msra.mxu0 %v12930_v49  ;;  %4213 = vmatpush1.bf16.msra.mxu1 %v12931_v57  ;;  %v13025_v49 = vld [vmem:[#allocation11_spill] sm:$0xff]  ;;  %v13026_v57 = vld [vmem:[#allocation65_spill] sm:$0xff] }
 0xf2c   :  { %4173 = vmatprep.subr.bf16.mxu0 %v12932_v58  ;;  %4214 = vmatprep.subr.bf16.mxu1 %v12933_v59  ;;  %v13027_v58 = vld [vmem:[#allocation66_spill] sm:$0xff]  ;;  %v13028_v59 = vld [vmem:[#allocation67_spill] sm:$0xff] }
 0xf2f   :  { %4174 = vmatpush1.bf16.msra.mxu0 %v12934_v60  ;;  %4215 = vmatpush1.bf16.msra.mxu1 %v12935_v62  ;;  %v13029_v60 = vld [vmem:[#allocation68_spill] sm:$0xff] }
 0xf30   :  { %4175 = vmatprep.subr.bf16.mxu0 %v12936_v23  ;;  %4216 = vmatprep.subr.bf16.mxu1 %v12937_v63  ;;  %v13030_v62 = vld [vmem:[#allocation12_spill] sm:$0xff]  ;;  %v13031_v23 = vld [vmem:[#allocation13_spill] sm:$0xff]  ;;  %v13032_v63 = vld [vmem:[#allocation14_spill] sm:$0xff] }
 0xf33   :  { %4176 = vmatpush1.bf16.msra.mxu0 %v10109_v37  ;;  %4217 = vmatpush1.bf16.msra.mxu1 %v12938_v42  ;;  %v13019_v37 = vld [vmem:[#allocation59_spill] sm:$0xff] }
 0xf34   :  { %4272 = vmatprep.subr.bf16.mxu0 %v12939_v0  ;;  %4313 = vmatprep.subr.bf16.mxu1 %v12940_v28  ;;  %v13033_v42 = vld [vmem:[#allocation15_spill] sm:$0xff]  ;;  %v13034_v0 = vld [vmem:[#allocation16_spill] sm:$0xff]  ;;  %v13035_v28 = vld [vmem:[#allocation17_spill] sm:$0xff] }
 0xf36   :  { %4194 = vmatmul.mubr.bf16.vlgmr.msra.gmra.mrb[136].mxu0 %v4044_v16  ;;  %4235 = vmatmul.mubr.bf16.vlgmr.msra.gmra.mrb[136].mxu1 %v4044_v16 }
 0xf37   :  { %4273 = vmatpush1.bf16.msra.mxu0 %v12941_v2  ;;  %4314 = vmatpush1.bf16.msra.mxu1 %v12942_v3  ;;  %v13036_v2 = vld [vmem:[#allocation18_spill] sm:$0xff]  ;;  %v13037_v3 = vld [vmem:[#allocation19_spill] sm:$0xff] }
 0xf38   :  { %4274 = vmatprep.subr.bf16.mxu0 %v12943_v4  ;;  %4315 = vmatprep.subr.bf16.mxu1 %v12944_v5  ;;  %v13038_v4 = vld [vmem:[#allocation20_spill] sm:$0xff]  ;;  %v13039_v5 = vld [vmem:[#allocation21_spill] sm:$0xff] }
 0xf3b   :  { %4275 = vmatpush1.bf16.msra.mxu0 %v12945_v11  ;;  %4316 = vmatpush1.bf16.msra.mxu1 %v12946_v12  ;;  %v13040_v11 = vld [vmem:[#allocation22_spill] sm:$0xff]  ;;  %v13041_v12 = vld [vmem:[#allocation23_spill] sm:$0xff] }
 0xf3c   :  { %4276 = vmatprep.subr.bf16.mxu0 %v12947_v13  ;;  %4317 = vmatprep.subr.bf16.mxu1 %v12948_v14  ;;  %v13042_v13 = vld [vmem:[#allocation24_spill] sm:$0xff]  ;;  %v13043_v14 = vld [vmem:[#allocation25_spill] sm:$0xff] }
 0xf3f   :  { %4277 = vmatpush1.bf16.msra.mxu0 %v13003_v18  ;;  %4318 = vmatpush1.bf16.msra.mxu1 %v13004_v34  ;;  %v13058_v34 = vld [vmem:[#allocation8_spill] sm:$0xff] }
 0xf40   :  { %4278 = vmatprep.subr.bf16.mxu0 %v13005_v41  ;;  %4319 = vmatprep.subr.bf16.mxu1 %v13006_v39 }
 0xf43   :  { %4279 = vmatpush1.bf16.msra.mxu0 %v13007_v20  ;;  %4320 = vmatpush1.bf16.msra.mxu1 %v13008_v26 }
 0xf44   :  { %4280 = vmatprep.subr.bf16.mxu0 %v13009_v10  ;;  %4321 = vmatprep.subr.bf16.mxu1 %v13010_v45 }
 0xf47   :  { %4281 = vmatpush1.bf16.msra.mxu0 %v13011_v30  ;;  %4322 = vmatpush1.bf16.msra.mxu1 %v13012_v56  ;;  %v13059_v56 = vld [vmem:[#allocation9_spill] sm:$0xff] }
 0xf48   :  { %4282 = vmatprep.subr.bf16.mxu0 %v13013_v31  ;;  %4323 = vmatprep.subr.bf16.mxu1 %v13014_v38 }
 0xf4b   :  { %4283 = vmatpush1.bf16.msra.mxu0 %v13015_v1  ;;  %4324 = vmatpush1.bf16.msra.mxu1 %v13016_v40  ;;  %v13060_v1 = vld [vmem:[#allocation10_spill] sm:$0xff] }
 0xf4c   :  { %4284 = vmatprep.subr.bf16.mxu0 %v13017_v24  ;;  %4325 = vmatprep.subr.bf16.mxu1 %v13018_v21 }
 0xf4f   :  { %4285 = vmatpush1.bf16.msra.mxu0 %v13019_v37  ;;  %4326 = vmatpush1.bf16.msra.mxu1 %v13020_v19 }
 0xf50   :  { %4286 = vmatprep.subr.bf16.mxu0 %v13021_v27  ;;  %4327 = vmatprep.subr.bf16.mxu1 %v13022_v48 }
 0xf53   :  { %4287 = vmatpush1.bf16.msra.mxu0 %v13023_v46  ;;  %4328 = vmatpush1.bf16.msra.mxu1 %v13024_v47 }
 0xf54   :  { %4288 = vmatprep.subr.bf16.mxu0 %v13025_v49  ;;  %4329 = vmatprep.subr.bf16.mxu1 %v13026_v57 }
 0xf57   :  { %4289 = vmatpush1.bf16.msra.mxu0 %v13027_v58  ;;  %4330 = vmatpush1.bf16.msra.mxu1 %v13028_v59 }
 0xf58   :  { %4290 = vmatprep.subr.bf16.mxu0 %v13029_v60  ;;  %4331 = vmatprep.subr.bf16.mxu1 %v13030_v62 }
 0xf5b   :  { %4291 = vmatpush1.bf16.msra.mxu0 %v13031_v23  ;;  %4332 = vmatpush1.bf16.msra.mxu1 %v13032_v63 }
 0xf5c   :  { %4292 = vmatprep.subr.bf16.mxu0 %v13033_v42  ;;  %4333 = vmatprep.subr.bf16.mxu1 %v13034_v0 }
 0xf5f   :  { %4293 = vmatpush1.bf16.msra.mxu0 %v13035_v28  ;;  %4334 = vmatpush1.bf16.msra.mxu1 %v13036_v2 }
 0xf60   :  { %4294 = vmatprep.subr.bf16.mxu0 %v13037_v3  ;;  %4335 = vmatprep.subr.bf16.mxu1 %v13038_v4 }
 0xf63   :  { %4295 = vmatpush1.bf16.msra.mxu0 %v13039_v5  ;;  %4336 = vmatpush1.bf16.msra.mxu1 %v13040_v11 }
 0xf64   :  { %4296 = vmatprep.subr.bf16.mxu0 %v13041_v12  ;;  %4337 = vmatprep.subr.bf16.mxu1 %v13042_v13 }
 0xf67   :  { %4297 = vmatpush1.bf16.msra.mxu0 %v13043_v14  ;;  %4338 = vmatpush1.bf16.msra.mxu1 %v13044_v8 }
 0xf68   :  { %4298 = vmatprep.subr.bf16.mxu0 %v13045_v52  ;;  %4339 = vmatprep.subr.bf16.mxu1 %v13046_v29 }
 0xf6b   :  { %4299 = vmatpush1.bf16.msra.mxu0 %v13047_v6  ;;  %4340 = vmatpush1.bf16.msra.mxu1 %v13048_v55 }
 0xf6c   :  { %4300 = vmatprep.subr.bf16.mxu0 %v13049_v17  ;;  %4341 = vmatprep.subr.bf16.mxu1 %v13050_v22 }
 0xf6f   :  { %4301 = vmatpush1.bf16.msra.mxu0 %v13051_v7  ;;  %4342 = vmatpush1.bf16.msra.mxu1 %v13052_v33 }
 0xf70   :  { %4302 = vmatprep.subr.bf16.mxu0 %v13053_v61  ;;  %4343 = vmatprep.subr.bf16.mxu1 %v13054_v51 }
 0xf73   :  { %4303 = vmatpush1.bf16.msra.mxu0 %v13055_v9  ;;  %4344 = vmatpush1.bf16.msra.mxu1 %v13056_v54 }
 0xf74   :  { %4388 = vmatprep.subr.bf16.mxu0 %v10741_v50  ;;  %4429 = vmatprep.subr.bf16.mxu1 %v10747_v25 }
 0xfe9   :  { %v4079_v35 = vpop.f32.mrb[132].mxu0  ;;  %v4120_v36 = vpop.f32.mrb[132].mxu1 }
 0xfea   :  { %v4080_v15 = vadd.f32 %v4079_v35, %v13057_v44  ;;  %v4081_v16 = vpop.f32.mrb[133].mxu0  ;;  %v4122_v18 = vpop.f32.mrb[133].mxu1  ;;  %v4121_v40 = vadd.f32 %v4120_v36, %v13060_v1  ;;  %v13061_v36 = vld [vmem:[#allocation109_spill] sm:$0xff] }
 0xfeb   :  { %v4082_v41 = vadd.f32 %v4081_v16, %v13058_v34  ;;  %v4083_v39 = vpop.f32.mrb[134].mxu0  ;;  %v4124_v20 = vpop.f32.mrb[134].mxu1  ;;  %v4123_v31 = vadd.f32 %v4122_v18, %v13059_v56 }
 0xfec   :  { %v5080_v26 = vmul.f32 -1.442695, %v4080_v15  ;;  %v4084_v10 = vpop.f32.mrb[135].mxu0  ;;  %v4125_v45 = vpop.f32.mrb[135].mxu1 }
 0xfed   :  { %v5081_v30 = vmul.f32 -1.442695, %v4082_v41  ;;  %v5082_v38 = vmul.f32 -1.442695, %v4123_v31  ;;  %v13062_v45 = vld [vmem:[#allocation110_spill] sm:$0xff] }
 0xfee   :  { %5707 = vpow2.f32 %v5080_v26 }
 0xfef   :  { %5709 = vpow2.f32 %v5081_v30 }
 0xff0   :  { %5711 = vpow2.f32 %v5082_v38 }
 0xff1   :  { %5713 = vtanh.f32 %v4121_v40  ;;  %v13063_v40 = vld [vmem:[#allocation111_spill] sm:$0xff] }
 0xff8   :  { %v5708_v24 = vpop.eup %5707 }
 0xff9   :  { %v5710_v21 = vpop.eup %5709  ;;  %v4130_v37 = vadd.f32 1.0, %v5708_v24 }
 0xffa   :  { %v4136_v19 = vadd.f32 1.0, %v5710_v21  ;;  %v5712_v27 = vpop.eup %5711  ;;  %v13064_v21 = vld [vmem:[#allocation112_spill] sm:$0xff] }
 0xffb   :  { %5715 = vrcp.f32 %v4130_v37  ;;  %v5714_v48 = vpop.eup %5713  ;;  %v4143_v41 = vadd.f32 1.0, %v5712_v27 }
 0xffc   :  { %5717 = vrcp.f32 %v4136_v19 }
 0xffd   :  { %5719 = vrcp.f32 %v4143_v41 }
0x1005   :  { %v5716_v35 = vpop.eup %5715 }
0x1006   :  { %v5718_v15 = vpop.eup %5717  ;;  %v4147_v16 = vmul.f32 %v5716_v35, %v5714_v48 }
0x1007   :  { %v4146_v39 = vmul.f32 %v5718_v15, %v10628_v53 }
0x1009   :  { %v4195_v18 = vpop.f32.mrb[136].mxu0  ;;  %v4236_v20 = vpop.f32.mrb[136].mxu1  ;;  %v10755_v26 = vadd.f32 %v4147_v16, %v4146_v39 }
0x100a   :  { %v4243_v10 = vadd.f32 %v4195_v18, %v13061_v36  ;;  %v4245_v30 = vadd.f32 %v4236_v20, %v13062_v45  ;;  %v4197_v31 = vpop.f32.mrb[137].mxu0  ;;  %v4238_v38 = vpop.f32.mrb[137].mxu1 }
0x100b   :  { %v4244_v24 = vadd.f32 %v4197_v31, %v13063_v40  ;;  %v4246_v37 = vadd.f32 %v4238_v38, %v13064_v21  ;;  %v4199_v19 = vpop.f32.mrb[138].mxu0  ;;  %v4240_v48 = vpop.f32.mrb[138].mxu1  ;;  %5721 = vtanh.f32 %v10755_v26 }
0x100c   :  { %v5084_v53 = vmul.f32 -1.442695, %v4243_v10  ;;  %v4200_v27 = vpop.f32.mrb[139].mxu0  ;;  %v4241_v35 = vpop.f32.mrb[139].mxu1 }
0x100d   :  { %v5085_v15 = vmul.f32 -1.442695, %v4244_v24  ;;  %v5720_v16 = vpop.eup %5719  ;;  %v5086_v39 = vmul.f32 -1.442695, %v4246_v37 }
0x100e   :  { %5723 = vpow2.f32 %v5084_v53 }
0x100f   :  { %5725 = vpow2.f32 %v5085_v15 }
0x1010   :  { %5727 = vpow2.f32 %v5086_v39  ;;  %v10794_v39 = vld [vmem:[%s11382_s2 + $0x2c] ss:$16 sps:$4 sm:$0xff]  }
0x1011   :  { %5729 = vtanh.f32 %v4245_v30 }
0x1015   :  { %v5722_v41 = vpop.eup %5721 }
0x1016   :  { %v4150_v18 = vmul.f32 %v5722_v41, %v5720_v16  ;;  %v10776_v16 = vld [vmem:[%s11382_s2] ss:$16 sps:$4 sm:$0xff]   ;;  %v10788_v41 = vld [vmem:[%s11382_s2 + $0x24] ss:$16 sps:$4 sm:$0xff]  }
0x1018   :  { %v5724_v20 = vpop.eup %5723  ;;  %v4151_v36 = vpack.c.bf16 %v4150_v18, %v4150_v18  ;;  %v10802_v18 = vld [vmem:[%s11382_s2 + $0x20] ss:$16 sps:$4 sm:$0xff]  }
0x1019   :  { %v5726_v45 = vpop.eup %5725  ;;  %v4250_v31 = vadd.f32 1.0, %v5724_v20  ;;  %v10808_v20 = vld [vmem:[%s11382_s2 + $0x28] ss:$16 sps:$4 sm:$0xff]  }
0x101a   :  { %v4256_v38 = vadd.f32 1.0, %v5726_v45  ;;  %5083 = vst [vmem:[%s11386_s6 + $0x30] sm:$0xf] %v4151_v36  ;;  %4304 = vmatprep.mubr.bf16.mxu0 %v4151_v36  ;;  %4345 = vmatprep.mubr.bf16.mxu1 %v4151_v36  ;;  %v5728_v10 = vpop.eup %5727  ;;  %v10814_v36 = vld [vmem:[%s11382_s2 + $0x44] ss:$16 sps:$4 sm:$0xff]  }
0x101b   :  { %5731 = vrcp.f32 %v4250_v31  ;;  %v5730_v40 = vpop.eup %5729  ;;  %v4263_v19 = vadd.f32 1.0, %v5728_v10  ;;  %v10820_v45 = vld [vmem:[%s11382_s2 + $0x4c] ss:$16 sps:$4 sm:$0xff]   ;;  %v10826_v31 = vld [vmem:[%s11382_s2 + $0x40] ss:$16 sps:$4 sm:$0xff]  }
0x101c   :  { %5733 = vrcp.f32 %v4256_v38  ;;  %v10832_v38 = vld [vmem:[%s11382_s2 + $0x48] ss:$16 sps:$4 sm:$0xff]   ;;  %v10838_v10 = vld [vmem:[%s11382_s2 + $0x64] ss:$16 sps:$4 sm:$0xff]  }
0x101d   :  { %5735 = vrcp.f32 %v4263_v19  ;;  %v10868_v19 = vld [vmem:[%s11382_s2 + $0x8c] ss:$16 sps:$4 sm:$0xff]  }
0x1025   :  { %v5732_v24 = vpop.eup %5731 }
0x1026   :  { %v5734_v21 = vpop.eup %5733  ;;  %v4267_v37 = vmul.f32 %v5732_v24, %v5730_v40  ;;  %v10844_v40 = vld [vmem:[%s11382_s2 + $0x6c] ss:$16 sps:$4 sm:$0xff]   ;;  %v10850_v24 = vld [vmem:[%s11382_s2 + $0x60] ss:$16 sps:$4 sm:$0xff]  }
0x1027   :  { %v4266_v48 = vmul.f32 %v5734_v21, %v10639_v32  ;;  %v5736_v30 = vpop.eup %5735  ;;  %v10782_v32 = vld [vmem:[%s11382_s2 + $0x8] ss:$16 sps:$4 sm:$0xff]  }
0x1028   :  { %v10856_v21 = vld [vmem:[%s11382_s2 + $0x68] ss:$16 sps:$4 sm:$0xff]  }
0x1029   :  { %v10766_v53 = vadd.f32 %v4267_v37, %v4266_v48  ;;  %v10862_v37 = vld [vmem:[%s11382_s2 + $0x84] ss:$16 sps:$4 sm:$0xff]   ;;  %v10874_v48 = vld [vmem:[%s11382_s2 + $0x80] ss:$16 sps:$4 sm:$0xff]  }
0x102a   :  { %13065 = vst [vmem:[#allocation31_spill] sm:$0xff] %v10874_v48 }
0x102b   :  { %5737 = vtanh.f32 %v10766_v53 }
0x1035   :  { %v5738_v27 = vpop.eup %5737 }
0x1036   :  { %v4270_v35 = vmul.f32 %v5738_v27, %v5736_v30  ;;  %v10880_v30 = vld [vmem:[%s11382_s2 + $0x88] ss:$16 sps:$4 sm:$0xff]   ;;  %v10886_v27 = vld [vmem:[%s11382_s2 + $0xa4] ss:$16 sps:$4 sm:$0xff]  }
0x1037   :  { %13066 = vst [vmem:[#allocation32_spill] sm:$0xff] %v10880_v30  ;;  %13067 = vst [vmem:[#allocation33_spill] sm:$0xff] %v10886_v27 }
0x1038   :  { %v10769_v15 = vpack.c.bf16 %v4270_v35, %v4270_v35  ;;  %v10892_v35 = vld [vmem:[%s11382_s2 + $0xac] ss:$16 sps:$4 sm:$0xff]  }
0x1039   :  { %13068 = vst [vmem:[#allocation69_spill] sm:$0xff] %v10892_v35 }
0x103a   :  { %4305 = vmatmul.mubr.bf16.vlgmr.msra.gmra.mrb[140].mxu0 %v10769_v15  ;;  %4346 = vmatmul.mubr.bf16.vlgmr.msra.gmra.mrb[140].mxu1 %v10769_v15 }
0x103b   :  { %4389 = vmatpush1.bf16.msra.mxu0 %v10776_v16  ;;  %4430 = vmatpush1.bf16.msra.mxu1 %v10782_v32 }
0x103c   :  { %4390 = vmatprep.subr.bf16.mxu0 %v10788_v41  ;;  %4431 = vmatprep.subr.bf16.mxu1 %v10794_v39 }
0x103d   :  { %4420 = vmatprep.mubr.bf16.mxu0 %v12254_v43  ;;  %4461 = vmatprep.mubr.bf16.mxu1 %v12254_v43 }
0x103f   :  { %4391 = vmatpush1.bf16.msra.mxu0 %v10802_v18  ;;  %4432 = vmatpush1.bf16.msra.mxu1 %v10808_v20 }
0x1040   :  { %4392 = vmatprep.subr.bf16.mxu0 %v10814_v36  ;;  %4433 = vmatprep.subr.bf16.mxu1 %v10820_v45 }
0x1043   :  { %4393 = vmatpush1.bf16.msra.mxu0 %v10826_v31  ;;  %4434 = vmatpush1.bf16.msra.mxu1 %v10832_v38 }
0x1044   :  { %4394 = vmatprep.subr.bf16.mxu0 %v10838_v10  ;;  %4435 = vmatprep.subr.bf16.mxu1 %v10844_v40 }
0x1047   :  { %4395 = vmatpush1.bf16.msra.mxu0 %v10850_v24  ;;  %4436 = vmatpush1.bf16.msra.mxu1 %v10856_v21 }
0x1048   :  { %4396 = vmatprep.subr.bf16.mxu0 %v10862_v37  ;;  %4437 = vmatprep.subr.bf16.mxu1 %v10868_v19 }
0x104b   :  { %4397 = vmatpush1.bf16.msra.mxu0 %v10874_v48  ;;  %4438 = vmatpush1.bf16.msra.mxu1 %v10880_v30  ;;  %v10898_v48 = vld [vmem:[%s11382_s2 + $0xa0] ss:$16 sps:$4 sm:$0xff]   ;;  %v10904_v30 = vld [vmem:[%s11382_s2 + $0xa8] ss:$16 sps:$4 sm:$0xff]  }
0x104c   :  { %4398 = vmatprep.subr.bf16.mxu0 %v10886_v27  ;;  %4439 = vmatprep.subr.bf16.mxu1 %v10892_v35  ;;  %13069 = vst [vmem:[#allocation70_spill] sm:$0xff] %v10898_v48  ;;  %13070 = vst [vmem:[#allocation71_spill] sm:$0xff] %v10904_v30  ;;  %v10910_v27 = vld [vmem:[%s11382_s2 + $0xc4] ss:$16 sps:$4 sm:$0xff]   ;;  %v10916_v35 = vld [vmem:[%s11382_s2 + $0xcc] ss:$16 sps:$4 sm:$0xff]  }
0x104d   :  { %13071 = vst [vmem:[#allocation85_spill] sm:$0xff] %v10910_v27  ;;  %13072 = vst [vmem:[#allocation86_spill] sm:$0xff] %v10916_v35 }
0x104f   :  { %4399 = vmatpush1.bf16.msra.mxu0 %v10898_v48  ;;  %4440 = vmatpush1.bf16.msra.mxu1 %v10904_v30  ;;  %v10922_v48 = vld [vmem:[%s11382_s2 + $0xc0] ss:$16 sps:$4 sm:$0xff]   ;;  %v10928_v30 = vld [vmem:[%s11382_s2 + $0xc8] ss:$16 sps:$4 sm:$0xff]  }
0x1050   :  { %4400 = vmatprep.subr.bf16.mxu0 %v10910_v27  ;;  %4441 = vmatprep.subr.bf16.mxu1 %v10916_v35  ;;  %13073 = vst [vmem:[#allocation87_spill] sm:$0xff] %v10922_v48  ;;  %13074 = vst [vmem:[#allocation97_spill] sm:$0xff] %v10928_v30  ;;  %v10934_v27 = vld [vmem:[%s11382_s2 + $0xe4] ss:$16 sps:$4 sm:$0xff]   ;;  %v10940_v35 = vld [vmem:[%s11382_s2 + $0xec] ss:$16 sps:$4 sm:$0xff]  }
0x1051   :  { %13075 = vst [vmem:[#allocation98_spill] sm:$0xff] %v10934_v27  ;;  %13076 = vst [vmem:[#allocation99_spill] sm:$0xff] %v10940_v35 }
0x1053   :  { %4401 = vmatpush1.bf16.msra.mxu0 %v10922_v48  ;;  %4442 = vmatpush1.bf16.msra.mxu1 %v10928_v30  ;;  %v10946_v48 = vld [vmem:[%s11382_s2 + $0xe0] ss:$16 sps:$4 sm:$0xff]   ;;  %v10952_v30 = vld [vmem:[%s11382_s2 + $0xe8] ss:$16 sps:$4 sm:$0xff]  }
0x1054   :  { %4402 = vmatprep.subr.bf16.mxu0 %v10934_v27  ;;  %4443 = vmatprep.subr.bf16.mxu1 %v10940_v35  ;;  %13077 = vst [vmem:[#allocation100_spill] sm:$0xff] %v10952_v30  ;;  %v10958_v27 = vld [vmem:[%s11383_s3 + $0x4] ss:$16 sps:$4 sm:$0xff]   ;;  %v10964_v35 = vld [vmem:[%s11383_s3 + $0xc] ss:$16 sps:$4 sm:$0xff]  }
0x1055   :  { %13078 = vst [vmem:[#allocation101_spill] sm:$0xff] %v10958_v27  ;;  %13079 = vst [vmem:[#allocation102_spill] sm:$0xff] %v10964_v35 }
0x1057   :  { %4403 = vmatpush1.bf16.msra.mxu0 %v10946_v48  ;;  %4444 = vmatpush1.bf16.msra.mxu1 %v10952_v30  ;;  %v10972_v30 = vld [vmem:[%s11383_s3] ss:$16 sps:$4 sm:$0xff]  }
0x1058   :  { %4499 = vmatprep.subr.bf16.mxu0 %v10958_v27  ;;  %4540 = vmatprep.subr.bf16.mxu1 %v10964_v35  ;;  %13080 = vst [vmem:[#allocation103_spill] sm:$0xff] %v10972_v30  ;;  %v10978_v27 = vld [vmem:[%s11383_s3 + $0x8] ss:$16 sps:$4 sm:$0xff]   ;;  %v10984_v35 = vld [vmem:[%s11383_s3 + $0x24] ss:$16 sps:$4 sm:$0xff]  }
0x1059   :  { %13081 = vst [vmem:[#allocation104_spill] sm:$0xff] %v10978_v27  ;;  %13082 = vst [vmem:[#allocation88_spill] sm:$0xff] %v10984_v35 }
0x105a   :  { %4421 = vmatmul.mubr.bf16.vlgmr.msra.gmra.mrb[144].mxu0 %v10769_v15  ;;  %4462 = vmatmul.mubr.bf16.vlgmr.msra.gmra.mrb[144].mxu1 %v10769_v15  ;;  %v10990_v15 = vld [vmem:[%s11383_s3 + $0x2c] ss:$16 sps:$4 sm:$0xff]  }
0x105b   :  { %4500 = vmatpush1.bf16.msra.mxu0 %v10972_v30  ;;  %4541 = vmatpush1.bf16.msra.mxu1 %v10978_v27  ;;  %13083 = vst [vmem:[#allocation89_spill] sm:$0xff] %v10990_v15  ;;  %v10996_v30 = vld [vmem:[%s11383_s3 + $0x20] ss:$16 sps:$4 sm:$0xff]   ;;  %v11002_v27 = vld [vmem:[%s11383_s3 + $0x28] ss:$16 sps:$4 sm:$0xff]  }
0x105c   :  { %4501 = vmatprep.subr.bf16.mxu0 %v10984_v35  ;;  %4542 = vmatprep.subr.bf16.mxu1 %v10990_v15  ;;  %13084 = vst [vmem:[#allocation90_spill] sm:$0xff] %v10996_v30  ;;  %13085 = vst [vmem:[#allocation91_spill] sm:$0xff] %v11002_v27  ;;  %v11008_v35 = vld [vmem:[%s11383_s3 + $0x44] ss:$16 sps:$4 sm:$0xff]   ;;  %v11014_v15 = vld [vmem:[%s11383_s3 + $0x4c] ss:$16 sps:$4 sm:$0xff]  }
0x105d   :  { %13086 = vst [vmem:[#allocation92_spill] sm:$0xff] %v11008_v35  ;;  %13087 = vst [vmem:[#allocation72_spill] sm:$0xff] %v11014_v15 }
0x105f   :  { %4502 = vmatpush1.bf16.msra.mxu0 %v10996_v30  ;;  %4543 = vmatpush1.bf16.msra.mxu1 %v11002_v27  ;;  %v11020_v30 = vld [vmem:[%s11383_s3 + $0x40] ss:$16 sps:$4 sm:$0xff]   ;;  %v11026_v27 = vld [vmem:[%s11383_s3 + $0x48] ss:$16 sps:$4 sm:$0xff]  }
0x1060   :  { %4503 = vmatprep.subr.bf16.mxu0 %v11008_v35  ;;  %4544 = vmatprep.subr.bf16.mxu1 %v11014_v15  ;;  %13088 = vst [vmem:[#allocation34_spill] sm:$0xff] %v11020_v30  ;;  %13089 = vst [vmem:[#allocation35_spill] sm:$0xff] %v11026_v27  ;;  %v11032_v35 = vld [vmem:[%s11383_s3 + $0x64] ss:$16 sps:$4 sm:$0xff]   ;;  %v11038_v15 = vld [vmem:[%s11383_s3 + $0x6c] ss:$16 sps:$4 sm:$0xff]  }
0x1061   :  { %13090 = vst [vmem:[#allocation36_spill] sm:$0xff] %v11032_v35  ;;  %13091 = vst [vmem:[#allocation37_spill] sm:$0xff] %v11038_v15 }
0x1063   :  { %4504 = vmatpush1.bf16.msra.mxu0 %v11020_v30  ;;  %4545 = vmatpush1.bf16.msra.mxu1 %v11026_v27  ;;  %v11044_v30 = vld [vmem:[%s11383_s3 + $0x60] ss:$16 sps:$4 sm:$0xff]   ;;  %v11050_v27 = vld [vmem:[%s11383_s3 + $0x68] ss:$16 sps:$4 sm:$0xff]  }
0x1064   :  { %4505 = vmatprep.subr.bf16.mxu0 %v11032_v35  ;;  %4546 = vmatprep.subr.bf16.mxu1 %v11038_v15  ;;  %13092 = vst [vmem:[#allocation38_spill] sm:$0xff] %v11044_v30  ;;  %13093 = vst [vmem:[#allocation39_spill] sm:$0xff] %v11050_v27  ;;  %v11056_v35 = vld [vmem:[%s11383_s3 + $0x84] ss:$16 sps:$4 sm:$0xff]   ;;  %v11062_v15 = vld [vmem:[%s11383_s3 + $0x8c] ss:$16 sps:$4 sm:$0xff]  }
0x1065   :  { %13094 = vst [vmem:[#allocation40_spill] sm:$0xff] %v11056_v35  ;;  %13095 = vst [vmem:[#allocation41_spill] sm:$0xff] %v11062_v15 }
0x1067   :  { %4506 = vmatpush1.bf16.msra.mxu0 %v11044_v30  ;;  %4547 = vmatpush1.bf16.msra.mxu1 %v11050_v27  ;;  %v11068_v30 = vld [vmem:[%s11383_s3 + $0x80] ss:$16 sps:$4 sm:$0xff]   ;;  %v11074_v27 = vld [vmem:[%s11383_s3 + $0x88] ss:$16 sps:$4 sm:$0xff]  }
0x1068   :  { %4507 = vmatprep.subr.bf16.mxu0 %v11056_v35  ;;  %4548 = vmatprep.subr.bf16.mxu1 %v11062_v15  ;;  %13096 = vst [vmem:[#allocation42_spill] sm:$0xff] %v11068_v30  ;;  %13097 = vst [vmem:[#allocation43_spill] sm:$0xff] %v11074_v27  ;;  %v11080_v35 = vld [vmem:[%s11383_s3 + $0xa4] ss:$16 sps:$4 sm:$0xff]   ;;  %v11086_v15 = vld [vmem:[%s11383_s3 + $0xac] ss:$16 sps:$4 sm:$0xff]  }
0x1069   :  { %13098 = vst [vmem:[#allocation44_spill] sm:$0xff] %v11080_v35  ;;  %13099 = vst [vmem:[#allocation45_spill] sm:$0xff] %v11086_v15 }
0x106b   :  { %4508 = vmatpush1.bf16.msra.mxu0 %v11068_v30  ;;  %4549 = vmatpush1.bf16.msra.mxu1 %v11074_v27  ;;  %v11092_v30 = vld [vmem:[%s11383_s3 + $0xa0] ss:$16 sps:$4 sm:$0xff]   ;;  %v11098_v27 = vld [vmem:[%s11383_s3 + $0xa8] ss:$16 sps:$4 sm:$0xff]  }
0x106c   :  { %4509 = vmatprep.subr.bf16.mxu0 %v11080_v35  ;;  %4550 = vmatprep.subr.bf16.mxu1 %v11086_v15  ;;  %13100 = vst [vmem:[#allocation46_spill] sm:$0xff] %v11092_v30  ;;  %13101 = vst [vmem:[#allocation47_spill] sm:$0xff] %v11098_v27  ;;  %v11104_v35 = vld [vmem:[%s11383_s3 + $0xc4] ss:$16 sps:$4 sm:$0xff]   ;;  %v11110_v15 = vld [vmem:[%s11383_s3 + $0xcc] ss:$16 sps:$4 sm:$0xff]  }
0x106d   :  { %13102 = vst [vmem:[#allocation48_spill] sm:$0xff] %v11104_v35  ;;  %13103 = vst [vmem:[#allocation81_spill] sm:$0xff] %v11110_v15 }
0x106f   :  { %4510 = vmatpush1.bf16.msra.mxu0 %v11092_v30  ;;  %4551 = vmatpush1.bf16.msra.mxu1 %v11098_v27  ;;  %v11116_v30 = vld [vmem:[%s11383_s3 + $0xc0] ss:$16 sps:$4 sm:$0xff]   ;;  %v11122_v27 = vld [vmem:[%s11383_s3 + $0xc8] ss:$16 sps:$4 sm:$0xff]  }
0x1070   :  { %4511 = vmatprep.subr.bf16.mxu0 %v11104_v35  ;;  %4552 = vmatprep.subr.bf16.mxu1 %v11110_v15  ;;  %v11128_v35 = vld [vmem:[%s11383_s3 + $0xe4] ss:$16 sps:$4 sm:$0xff]   ;;  %v11134_v15 = vld [vmem:[%s11383_s3 + $0xec] ss:$16 sps:$4 sm:$0xff]  }
0x1073   :  { %4512 = vmatpush1.bf16.msra.mxu0 %v11116_v30  ;;  %4553 = vmatpush1.bf16.msra.mxu1 %v11122_v27 }
0x1074   :  { %4513 = vmatprep.subr.bf16.mxu0 %v11128_v35  ;;  %4554 = vmatprep.subr.bf16.mxu1 %v11134_v15 }
0x1077   :  { %4514 = vmatpush1.bf16.msra.mxu0 %v13023_v46  ;;  %4555 = vmatpush1.bf16.msra.mxu1 %v13024_v47 }
0x1078   :  { %4515 = vmatprep.subr.bf16.mxu0 %v13025_v49  ;;  %4556 = vmatprep.subr.bf16.mxu1 %v13026_v57 }
0x107b   :  { %4516 = vmatpush1.bf16.msra.mxu0 %v13027_v58  ;;  %4557 = vmatpush1.bf16.msra.mxu1 %v13028_v59 }
0x107c   :  { %4517 = vmatprep.subr.bf16.mxu0 %v13029_v60  ;;  %4558 = vmatprep.subr.bf16.mxu1 %v13030_v62 }
0x107f   :  { %4518 = vmatpush1.bf16.msra.mxu0 %v13031_v23  ;;  %4559 = vmatpush1.bf16.msra.mxu1 %v13032_v63 }
0x1080   :  { %4519 = vmatprep.subr.bf16.mxu0 %v13033_v42  ;;  %4560 = vmatprep.subr.bf16.mxu1 %v13034_v0 }
0x1083   :  { %4520 = vmatpush1.bf16.msra.mxu0 %v13035_v28  ;;  %4561 = vmatpush1.bf16.msra.mxu1 %v13036_v2 }
0x1084   :  { %4521 = vmatprep.subr.bf16.mxu0 %v13037_v3  ;;  %4562 = vmatprep.subr.bf16.mxu1 %v13038_v4 }
0x1087   :  { %4522 = vmatpush1.bf16.msra.mxu0 %v13039_v5  ;;  %4563 = vmatpush1.bf16.msra.mxu1 %v13040_v11 }
0x1088   :  { %4523 = vmatprep.subr.bf16.mxu0 %v13041_v12  ;;  %4564 = vmatprep.subr.bf16.mxu1 %v13042_v13 }
0x108b   :  { %4524 = vmatpush1.bf16.msra.mxu0 %v13043_v14  ;;  %4565 = vmatpush1.bf16.msra.mxu1 %v13044_v8 }
0x108c   :  { %4525 = vmatprep.subr.bf16.mxu0 %v13045_v52  ;;  %4566 = vmatprep.subr.bf16.mxu1 %v13046_v29 }
0x108f   :  { %4526 = vmatpush1.bf16.msra.mxu0 %v13047_v6  ;;  %4567 = vmatpush1.bf16.msra.mxu1 %v13048_v55 }
0x1090   :  { %4527 = vmatprep.subr.bf16.mxu0 %v13049_v17  ;;  %4568 = vmatprep.subr.bf16.mxu1 %v13050_v22 }
0x1093   :  { %4528 = vmatpush1.bf16.msra.mxu0 %v13051_v7  ;;  %4569 = vmatpush1.bf16.msra.mxu1 %v13052_v33  ;;  %v13104_v33 = vld [vmem:[#allocation113_spill] sm:$0xff] }
0x1094   :  { %4529 = vmatprep.subr.bf16.mxu0 %v13053_v61  ;;  %4570 = vmatprep.subr.bf16.mxu1 %v13054_v51  ;;  %v13105_v51 = vld [vmem:[#allocation114_spill] sm:$0xff] }
0x1097   :  { %4530 = vmatpush1.bf16.msra.mxu0 %v13055_v9  ;;  %4571 = vmatpush1.bf16.msra.mxu1 %v13056_v54 }
0x1098   :  { %4615 = vmatprep.subr.bf16.mxu0 %v10741_v50  ;;  %4656 = vmatprep.subr.bf16.mxu1 %v10747_v25  ;;  %v13106_v25 = vld [vmem:[#allocation115_spill] sm:$0xff] }
0x110d   :  { %v4306_v46 = vpop.f32.mrb[140].mxu0  ;;  %v4347_v47 = vpop.f32.mrb[140].mxu1 }
0x110e   :  { %v4307_v49 = vadd.f32 %v4306_v46, %v13057_v44  ;;  %v4308_v57 = vpop.f32.mrb[141].mxu0  ;;  %v4349_v58 = vpop.f32.mrb[141].mxu1  ;;  %v4348_v3 = vadd.f32 %v4347_v47, %v13060_v1  ;;  %v13107_v47 = vld [vmem:[#allocation116_spill] sm:$0xff] }
0x110f   :  { %v4309_v59 = vadd.f32 %v4308_v57, %v13058_v34  ;;  %v4310_v60 = vpop.f32.mrb[142].mxu0  ;;  %v4351_v62 = vpop.f32.mrb[142].mxu1  ;;  %v4350_v28 = vadd.f32 %v4349_v58, %v13059_v56 }
0x1110   :  { %v5087_v23 = vmul.f32 -1.442695, %v4307_v49  ;;  %v4311_v63 = vpop.f32.mrb[143].mxu0  ;;  %v4352_v42 = vpop.f32.mrb[143].mxu1 }
0x1111   :  { %v5088_v0 = vmul.f32 -1.442695, %v4309_v59  ;;  %v5089_v2 = vmul.f32 -1.442695, %v4350_v28 }
0x1112   :  { %5739 = vpow2.f32 %v5087_v23 }
0x1113   :  { %5741 = vpow2.f32 %v5088_v0 }
0x1114   :  { %5743 = vpow2.f32 %v5089_v2 }
0x1115   :  { %5745 = vtanh.f32 %v4348_v3 }
0x111c   :  { %v5740_v4 = vpop.eup %5739 }
0x111d   :  { %v5742_v5 = vpop.eup %5741  ;;  %v4357_v11 = vadd.f32 1.0, %v5740_v4 }
0x111e   :  { %v4363_v12 = vadd.f32 1.0, %v5742_v5  ;;  %v5744_v13 = vpop.eup %5743 }
0x111f   :  { %5747 = vrcp.f32 %v4357_v11  ;;  %v5746_v14 = vpop.eup %5745  ;;  %v4370_v6 = vadd.f32 1.0, %v5744_v13 }
0x1120   :  { %5749 = vrcp.f32 %v4363_v12 }
0x1121   :  { %5751 = vrcp.f32 %v4370_v6 }
0x1129   :  { %v5748_v8 = vpop.eup %5747 }
0x112a   :  { %v5750_v52 = vpop.eup %5749  ;;  %v4374_v29 = vmul.f32 %v5748_v8, %v5746_v14 }
0x112b   :  { %v4373_v55 = vmul.f32 %v5750_v52, %v10755_v26  ;;  %v5752_v23 = vpop.eup %5751 }
0x112d   :  { %v4422_v17 = vpop.f32.mrb[144].mxu0  ;;  %v4463_v22 = vpop.f32.mrb[144].mxu1  ;;  %v11178_v7 = vadd.f32 %v4374_v29, %v4373_v55 }
0x112e   :  { %v4470_v61 = vadd.f32 %v4422_v17, %v13104_v33  ;;  %v4472_v9 = vadd.f32 %v4463_v22, %v13105_v51  ;;  %v4424_v54 = vpop.f32.mrb[145].mxu0  ;;  %v4465_v50 = vpop.f32.mrb[145].mxu1  ;;  %v13127_v51 = vld [vmem:[#allocation90_spill] sm:$0xff] }
0x112f   :  { %v4471_v46 = vadd.f32 %v4424_v54, %v13106_v25  ;;  %v4473_v49 = vadd.f32 %v4465_v50, %v13107_v47  ;;  %v4426_v57 = vpop.f32.mrb[146].mxu0  ;;  %v4467_v58 = vpop.f32.mrb[146].mxu1  ;;  %5753 = vtanh.f32 %v11178_v7  ;;  %v13130_v54 = vld [vmem:[#allocation72_spill] sm:$0xff]  ;;  %v13131_v50 = vld [vmem:[#allocation34_spill] sm:$0xff]  ;;  %v13132_v25 = vld [vmem:[#allocation35_spill] sm:$0xff] }
0x1130   :  { %v5091_v26 = vmul.f32 -1.442695, %v4470_v61  ;;  %v4427_v59 = vpop.f32.mrb[147].mxu0  ;;  %v4468_v60 = vpop.f32.mrb[147].mxu1  ;;  %v13126_v61 = vld [vmem:[#allocation89_spill] sm:$0xff]  ;;  %v13136_v57 = vld [vmem:[#allocation39_spill] sm:$0xff] }
0x1131   :  { %v5092_v62 = vmul.f32 -1.442695, %v4471_v46  ;;  %v5093_v42 = vmul.f32 -1.442695, %v4473_v49  ;;  %v13133_v46 = vld [vmem:[#allocation36_spill] sm:$0xff]  ;;  %v13134_v47 = vld [vmem:[#allocation37_spill] sm:$0xff] }
0x1132   :  { %5755 = vpow2.f32 %v5091_v26  ;;  %v13135_v49 = vld [vmem:[#allocation38_spill] sm:$0xff]  ;;  %v13137_v58 = vld [vmem:[#allocation40_spill] sm:$0xff]  ;;  %v13138_v26 = vld [vmem:[#allocation41_spill] sm:$0xff] }
0x1133   :  { %5757 = vpow2.f32 %v5092_v62  ;;  %v13139_v59 = vld [vmem:[#allocation42_spill] sm:$0xff]  ;;  %v13140_v60 = vld [vmem:[#allocation43_spill] sm:$0xff]  ;;  %v13141_v62 = vld [vmem:[#allocation44_spill] sm:$0xff] }
0x1134   :  { %5759 = vpow2.f32 %v5093_v42  ;;  %v13144_v42 = vld [vmem:[#allocation47_spill] sm:$0xff] }
0x1135   :  { %5761 = vtanh.f32 %v4472_v9  ;;  %v13128_v9 = vld [vmem:[#allocation91_spill] sm:$0xff] }
0x1139   :  { %v5754_v63 = vpop.eup %5753 }
0x113a   :  { %v4377_v0 = vmul.f32 %v5754_v63, %v5752_v23  ;;  %v13142_v23 = vld [vmem:[#allocation45_spill] sm:$0xff]  ;;  %v13143_v63 = vld [vmem:[#allocation46_spill] sm:$0xff] }
0x113c   :  { %v5756_v28 = vpop.eup %5755  ;;  %v4378_v2 = vpack.c.bf16 %v4377_v0, %v4377_v0  ;;  %v13145_v0 = vld [vmem:[#allocation48_spill] sm:$0xff] }
0x113d   :  { %v5758_v3 = vpop.eup %5757  ;;  %v4477_v4 = vadd.f32 1.0, %v5756_v28  ;;  %v13146_v28 = vld [vmem:[#allocation81_spill] sm:$0xff] }
0x113e   :  { %v4483_v5 = vadd.f32 1.0, %v5758_v3  ;;  %5090 = vst [vmem:[%s11386_s6 + $0x34] sm:$0xf] %v4378_v2  ;;  %4531 = vmatprep.mubr.bf16.mxu0 %v4378_v2  ;;  %4572 = vmatprep.mubr.bf16.mxu1 %v4378_v2  ;;  %v5760_v11 = vpop.eup %5759  ;;  %v6265_v2 = vld [vmem:[%s11383_s3 + $0xe0] ss:$16 sps:$4 sm:$0xff]  }
0x113f   :  { %5763 = vrcp.f32 %v4477_v4  ;;  %v5762_v12 = vpop.eup %5761  ;;  %v4490_v52 = vadd.f32 1.0, %v5760_v11  ;;  %v6266_v3 = vld [vmem:[%s11383_s3 + $0xe8] ss:$16 sps:$4 sm:$0xff]   ;;  %v6271_v4 = vld [vmem:[%s11383_s3 + $0x124] ss:$16 sps:$4 sm:$0xff]  }
0x1140   :  { %5765 = vrcp.f32 %v4483_v5  ;;  %v6272_v5 = vld [vmem:[%s11383_s3 + $0x12c] ss:$16 sps:$4 sm:$0xff]   ;;  %v6273_v11 = vld [vmem:[%s11383_s3 + $0x120] ss:$16 sps:$4 sm:$0xff]  }
0x1141   :  { %5767 = vrcp.f32 %v4490_v52  ;;  %v6278_v52 = vld [vmem:[%s11383_s3 + $0x148] ss:$16 sps:$4 sm:$0xff]  }
0x1149   :  { %v5764_v13 = vpop.eup %5763 }
0x114a   :  { %v5766_v14 = vpop.eup %5765  ;;  %v4494_v8 = vmul.f32 %v5764_v13, %v5762_v12  ;;  %v6274_v12 = vld [vmem:[%s11383_s3 + $0x128] ss:$16 sps:$4 sm:$0xff]   ;;  %v6275_v13 = vld [vmem:[%s11383_s3 + $0x144] ss:$16 sps:$4 sm:$0xff]  }
0x114b   :  { %v4493_v29 = vmul.f32 %v5766_v14, %v10766_v53  ;;  %v5768_v55 = vpop.eup %5767  ;;  %v13109_v53 = vld [vmem:[#allocation32_spill] sm:$0xff] }
0x114c   :  { %v6276_v14 = vld [vmem:[%s11383_s3 + $0x14c] ss:$16 sps:$4 sm:$0xff]  }
0x114d   :  { %v11189_v6 = vadd.f32 %v4494_v8, %v4493_v29  ;;  %v6277_v8 = vld [vmem:[%s11383_s3 + $0x140] ss:$16 sps:$4 sm:$0xff]   ;;  %v6279_v29 = vld [vmem:[%s11383_s3 + $0x164] ss:$16 sps:$4 sm:$0xff]  }
0x114f   :  { %5769 = vtanh.f32 %v11189_v6 }
0x1159   :  { %v5770_v17 = vpop.eup %5769 }
0x115a   :  { %v4497_v22 = vmul.f32 %v5770_v17, %v5768_v55  ;;  %v6280_v55 = vld [vmem:[%s11383_s3 + $0x16c] ss:$16 sps:$4 sm:$0xff]   ;;  %v6281_v17 = vld [vmem:[%s11383_s3 + $0x160] ss:$16 sps:$4 sm:$0xff]  }
0x115c   :  { %v4498_v33 = vpack.c.bf16 %v4497_v22, %v4497_v22  ;;  %v6282_v22 = vld [vmem:[%s11383_s3 + $0x168] ss:$16 sps:$4 sm:$0xff]  }
0x115e   :  { %4532 = vmatmul.mubr.bf16.vlgmr.msra.gmra.mrb[148].mxu0 %v4498_v33  ;;  %4573 = vmatmul.mubr.bf16.vlgmr.msra.gmra.mrb[148].mxu1 %v4498_v33 }
0x115f   :  { %4616 = vmatpush1.bf16.msra.mxu0 %v10776_v16  ;;  %4657 = vmatpush1.bf16.msra.mxu1 %v10782_v32  ;;  %v13110_v16 = vld [vmem:[#allocation33_spill] sm:$0xff] }
0x1160   :  { %4617 = vmatprep.subr.bf16.mxu0 %v10788_v41  ;;  %4658 = vmatprep.subr.bf16.mxu1 %v10794_v39  ;;  %v13111_v32 = vld [vmem:[#allocation69_spill] sm:$0xff]  ;;  %v13112_v41 = vld [vmem:[#allocation70_spill] sm:$0xff]  ;;  %v13113_v39 = vld [vmem:[#allocation71_spill] sm:$0xff] }
0x1161   :  { %4647 = vmatprep.mubr.bf16.mxu0 %v12254_v43  ;;  %4688 = vmatprep.mubr.bf16.mxu1 %v12254_v43  ;;  %v13108_v43 = vld [vmem:[#allocation31_spill] sm:$0xff] }
0x1163   :  { %4618 = vmatpush1.bf16.msra.mxu0 %v10802_v18  ;;  %4659 = vmatpush1.bf16.msra.mxu1 %v10808_v20  ;;  %v13114_v18 = vld [vmem:[#allocation85_spill] sm:$0xff]  ;;  %v13115_v20 = vld [vmem:[#allocation86_spill] sm:$0xff] }
0x1164   :  { %4619 = vmatprep.subr.bf16.mxu0 %v10814_v36  ;;  %4660 = vmatprep.subr.bf16.mxu1 %v10820_v45  ;;  %v13116_v36 = vld [vmem:[#allocation87_spill] sm:$0xff]  ;;  %v13117_v45 = vld [vmem:[#allocation97_spill] sm:$0xff] }
0x1167   :  { %4620 = vmatpush1.bf16.msra.mxu0 %v10826_v31  ;;  %4661 = vmatpush1.bf16.msra.mxu1 %v10832_v38  ;;  %v13118_v31 = vld [vmem:[#allocation98_spill] sm:$0xff]  ;;  %v13119_v38 = vld [vmem:[#allocation99_spill] sm:$0xff] }
0x1168   :  { %4621 = vmatprep.subr.bf16.mxu0 %v10838_v10  ;;  %4662 = vmatprep.subr.bf16.mxu1 %v10844_v40  ;;  %v13120_v10 = vld [vmem:[#allocation100_spill] sm:$0xff]  ;;  %v13121_v40 = vld [vmem:[#allocation101_spill] sm:$0xff] }
0x116b   :  { %4622 = vmatpush1.bf16.msra.mxu0 %v10850_v24  ;;  %4663 = vmatpush1.bf16.msra.mxu1 %v10856_v21  ;;  %v13122_v24 = vld [vmem:[#allocation102_spill] sm:$0xff]  ;;  %v13123_v21 = vld [vmem:[#allocation103_spill] sm:$0xff] }
0x116c   :  { %4623 = vmatprep.subr.bf16.mxu0 %v10862_v37  ;;  %4664 = vmatprep.subr.bf16.mxu1 %v10868_v19  ;;  %v13124_v37 = vld [vmem:[#allocation104_spill] sm:$0xff] }
0x116d   :  { %v13125_v19 = vld [vmem:[#allocation88_spill] sm:$0xff] }
0x116f   :  { %4624 = vmatpush1.bf16.msra.mxu0 %v13108_v43  ;;  %4665 = vmatpush1.bf16.msra.mxu1 %v13109_v53  ;;  %v6284_v43 = vld [vmem:[%s11383_s3 + $0x18c] ss:$16 sps:$4 sm:$0xff]   ;;  %v6285_v53 = vld [vmem:[%s11383_s3 + $0x180] ss:$16 sps:$4 sm:$0xff]  }
0x1170   :  { %4625 = vmatprep.subr.bf16.mxu0 %v13110_v16  ;;  %4666 = vmatprep.subr.bf16.mxu1 %v13111_v32  ;;  %v6286_v16 = vld [vmem:[%s11383_s3 + $0x188] ss:$16 sps:$4 sm:$0xff]   ;;  %v6287_v32 = vld [vmem:[%s11383_s3 + $0x1a4] ss:$16 sps:$4 sm:$0xff]  }
0x1173   :  { %4626 = vmatpush1.bf16.msra.mxu0 %v13112_v41  ;;  %4667 = vmatpush1.bf16.msra.mxu1 %v13113_v39  ;;  %v6288_v41 = vld [vmem:[%s11383_s3 + $0x1ac] ss:$16 sps:$4 sm:$0xff]   ;;  %v6289_v39 = vld [vmem:[%s11383_s3 + $0x1a0] ss:$16 sps:$4 sm:$0xff]  }
0x1174   :  { %4627 = vmatprep.subr.bf16.mxu0 %v13114_v18  ;;  %4668 = vmatprep.subr.bf16.mxu1 %v13115_v20  ;;  %v6290_v18 = vld [vmem:[%s11383_s3 + $0x1a8] ss:$16 sps:$4 sm:$0xff]   ;;  %v6291_v20 = vld [vmem:[%s11383_s3 + $0x1c4] ss:$16 sps:$4 sm:$0xff]  }
0x1177   :  { %4628 = vmatpush1.bf16.msra.mxu0 %v13116_v36  ;;  %4669 = vmatpush1.bf16.msra.mxu1 %v13117_v45  ;;  %v6292_v36 = vld [vmem:[%s11383_s3 + $0x1cc] ss:$16 sps:$4 sm:$0xff]   ;;  %v6293_v45 = vld [vmem:[%s11383_s3 + $0x1c0] ss:$16 sps:$4 sm:$0xff]  }
0x1178   :  { %4629 = vmatprep.subr.bf16.mxu0 %v13118_v31  ;;  %4670 = vmatprep.subr.bf16.mxu1 %v13119_v38  ;;  %v6294_v31 = vld [vmem:[%s11383_s3 + $0x1c8] ss:$16 sps:$4 sm:$0xff]   ;;  %v6295_v38 = vld [vmem:[%s11383_s3 + $0x1e4] ss:$16 sps:$4 sm:$0xff]  }
0x117b   :  { %4630 = vmatpush1.bf16.msra.mxu0 %v10946_v48  ;;  %4671 = vmatpush1.bf16.msra.mxu1 %v13120_v10  ;;  %v13129_v48 = vld [vmem:[#allocation92_spill] sm:$0xff] }
0x117c   :  { %4726 = vmatprep.subr.bf16.mxu0 %v13121_v40  ;;  %4767 = vmatprep.subr.bf16.mxu1 %v13122_v24  ;;  %v6296_v10 = vld [vmem:[%s11383_s3 + $0x1ec] ss:$16 sps:$4 sm:$0xff]   ;;  %v6297_v40 = vld [vmem:[%s11383_s3 + $0x1e0] ss:$16 sps:$4 sm:$0xff]   ;;  %v6298_v24 = vld [vmem:[%s11383_s3 + $0x1e8] ss:$16 sps:$4 sm:$0xff]  }
0x117e   :  { %4648 = vmatmul.mubr.bf16.vlgmr.msra.gmra.mrb[152].mxu0 %v4498_v33  ;;  %4689 = vmatmul.mubr.bf16.vlgmr.msra.gmra.mrb[152].mxu1 %v4498_v33  ;;  %v6283_v33 = vld [vmem:[%s11383_s3 + $0x184] ss:$16 sps:$4 sm:$0xff]  }
0x117f   :  { %4727 = vmatpush1.bf16.msra.mxu0 %v13123_v21  ;;  %4768 = vmatpush1.bf16.msra.mxu1 %v13124_v37 }
0x1180   :  { %4728 = vmatprep.subr.bf16.mxu0 %v13125_v19  ;;  %4769 = vmatprep.subr.bf16.mxu1 %v13126_v61 }
0x1183   :  { %4729 = vmatpush1.bf16.msra.mxu0 %v13127_v51  ;;  %4770 = vmatpush1.bf16.msra.mxu1 %v13128_v9 }
0x1184   :  { %4730 = vmatprep.subr.bf16.mxu0 %v13129_v48  ;;  %4771 = vmatprep.subr.bf16.mxu1 %v13130_v54 }
0x1187   :  { %4731 = vmatpush1.bf16.msra.mxu0 %v13131_v50  ;;  %4772 = vmatpush1.bf16.msra.mxu1 %v13132_v25 }
0x1188   :  { %4732 = vmatprep.subr.bf16.mxu0 %v13133_v46  ;;  %4773 = vmatprep.subr.bf16.mxu1 %v13134_v47 }
0x118b   :  { %4733 = vmatpush1.bf16.msra.mxu0 %v13135_v49  ;;  %4774 = vmatpush1.bf16.msra.mxu1 %v13136_v57 }
0x118c   :  { %4734 = vmatprep.subr.bf16.mxu0 %v13137_v58  ;;  %4775 = vmatprep.subr.bf16.mxu1 %v13138_v26 }
0x118f   :  { %4735 = vmatpush1.bf16.msra.mxu0 %v13139_v59  ;;  %4776 = vmatpush1.bf16.msra.mxu1 %v13140_v60 }
0x1190   :  { %4736 = vmatprep.subr.bf16.mxu0 %v13141_v62  ;;  %4777 = vmatprep.subr.bf16.mxu1 %v13142_v23 }
0x1193   :  { %4737 = vmatpush1.bf16.msra.mxu0 %v13143_v63  ;;  %4778 = vmatpush1.bf16.msra.mxu1 %v13144_v42 }
0x1194   :  { %4738 = vmatprep.subr.bf16.mxu0 %v13145_v0  ;;  %4779 = vmatprep.subr.bf16.mxu1 %v13146_v28 }
0x1197   :  { %4739 = vmatpush1.bf16.msra.mxu0 %v11116_v30  ;;  %4780 = vmatpush1.bf16.msra.mxu1 %v11122_v27  ;;  %v6267_v30 = vld [vmem:[%s11383_s3 + $0x104] ss:$16 sps:$4 sm:$0xff]   ;;  %v6268_v27 = vld [vmem:[%s11383_s3 + $0x10c] ss:$16 sps:$4 sm:$0xff]  }
0x1198   :  { %4740 = vmatprep.subr.bf16.mxu0 %v11128_v35  ;;  %4781 = vmatprep.subr.bf16.mxu1 %v11134_v15  ;;  %v6269_v35 = vld [vmem:[%s11383_s3 + $0x100] ss:$16 sps:$4 sm:$0xff]   ;;  %v6270_v15 = vld [vmem:[%s11383_s3 + $0x108] ss:$16 sps:$4 sm:$0xff]  }
0x119b   :  { %4741 = vmatpush1.bf16.msra.mxu0 %v6265_v2  ;;  %4782 = vmatpush1.bf16.msra.mxu1 %v6266_v3 }
0x119c   :  { %4742 = vmatprep.subr.bf16.mxu0 %v6267_v30  ;;  %4783 = vmatprep.subr.bf16.mxu1 %v6268_v27 }
0x119f   :  { %4743 = vmatpush1.bf16.msra.mxu0 %v6269_v35  ;;  %4784 = vmatpush1.bf16.msra.mxu1 %v6270_v15  ;;  %v13147_v15 = vld [vmem:[#allocation117_spill] sm:$0xff] }
0x11a0   :  { %4744 = vmatprep.subr.bf16.mxu0 %v6271_v4  ;;  %4785 = vmatprep.subr.bf16.mxu1 %v6272_v5  ;;  %v13148_v5 = vld [vmem:[#allocation118_spill] sm:$0xff] }
0x11a3   :  { %4745 = vmatpush1.bf16.msra.mxu0 %v6273_v11  ;;  %4786 = vmatpush1.bf16.msra.mxu1 %v6274_v12 }
0x11a4   :  { %4746 = vmatprep.subr.bf16.mxu0 %v6275_v13  ;;  %4787 = vmatprep.subr.bf16.mxu1 %v6276_v14  ;;  %v13149_v14 = vld [vmem:[#allocation119_spill] sm:$0xff] }
0x11a7   :  { %4747 = vmatpush1.bf16.msra.mxu0 %v6277_v8  ;;  %4788 = vmatpush1.bf16.msra.mxu1 %v6278_v52  ;;  %v13150_v52 = vld [vmem:[#allocation120_spill] sm:$0xff] }
0x11a8   :  { %4748 = vmatprep.subr.bf16.mxu0 %v6279_v29  ;;  %4789 = vmatprep.subr.bf16.mxu1 %v6280_v55 }
0x11ab   :  { %4749 = vmatpush1.bf16.msra.mxu0 %v6281_v17  ;;  %4790 = vmatpush1.bf16.msra.mxu1 %v6282_v22 }
0x11ac   :  { %4750 = vmatprep.subr.bf16.mxu0 %v6283_v33  ;;  %4791 = vmatprep.subr.bf16.mxu1 %v6284_v43 }
0x11af   :  { %4751 = vmatpush1.bf16.msra.mxu0 %v6285_v53  ;;  %4792 = vmatpush1.bf16.msra.mxu1 %v6286_v16 }
0x11b0   :  { %4752 = vmatprep.subr.bf16.mxu0 %v6287_v32  ;;  %4793 = vmatprep.subr.bf16.mxu1 %v6288_v41 }
0x11b3   :  { %4753 = vmatpush1.bf16.msra.mxu0 %v6289_v39  ;;  %4794 = vmatpush1.bf16.msra.mxu1 %v6290_v18 }
0x11b4   :  { %4754 = vmatprep.subr.bf16.mxu0 %v6291_v20  ;;  %4795 = vmatprep.subr.bf16.mxu1 %v6292_v36 }
0x11b7   :  { %4755 = vmatpush1.bf16.msra.mxu0 %v6293_v45  ;;  %4796 = vmatpush1.bf16.msra.mxu1 %v6294_v31 }
0x11b8   :  { %4756 = vmatprep.subr.bf16.mxu0 %v6295_v38  ;;  %4797 = vmatprep.subr.bf16.mxu1 %v6296_v10 }
0x11bb   :  { %4757 = vmatpush1.bf16.msra.mxu0 %v6297_v40  ;;  %4798 = vmatpush1.bf16.msra.mxu1 %v6298_v24 }
0x1231   :  { %v4533_v21 = vpop.f32.mrb[148].mxu0  ;;  %v4574_v37 = vpop.f32.mrb[148].mxu1 }
0x1232   :  { %v4534_v19 = vadd.f32 %v4533_v21, %v13057_v44  ;;  %v4535_v61 = vpop.f32.mrb[149].mxu0  ;;  %v4576_v51 = vpop.f32.mrb[149].mxu1  ;;  %v4575_v58 = vadd.f32 %v4574_v37, %v13060_v1 }
0x1233   :  { %v4536_v9 = vadd.f32 %v4535_v61, %v13058_v34  ;;  %v4537_v48 = vpop.f32.mrb[150].mxu0  ;;  %v4578_v54 = vpop.f32.mrb[150].mxu1  ;;  %v4577_v49 = vadd.f32 %v4576_v51, %v13059_v56 }
0x1234   :  { %v5094_v50 = vmul.f32 -1.442695, %v4534_v19  ;;  %v4538_v25 = vpop.f32.mrb[151].mxu0  ;;  %v4579_v46 = vpop.f32.mrb[151].mxu1 }
0x1235   :  { %v5095_v47 = vmul.f32 -1.442695, %v4536_v9  ;;  %v5096_v57 = vmul.f32 -1.442695, %v4577_v49 }
0x1236   :  { %5771 = vpow2.f32 %v5094_v50 }
0x1237   :  { %5773 = vpow2.f32 %v5095_v47 }
0x1238   :  { %5775 = vpow2.f32 %v5096_v57 }
0x1239   :  { %5777 = vtanh.f32 %v4575_v58 }
0x1240   :  { %v5772_v26 = vpop.eup %5771 }
0x1241   :  { %v5774_v59 = vpop.eup %5773  ;;  %v4584_v60 = vadd.f32 1.0, %v5772_v26 }
0x1242   :  { %v4590_v62 = vadd.f32 1.0, %v5774_v59  ;;  %v5776_v23 = vpop.eup %5775 }
0x1243   :  { %5779 = vrcp.f32 %v4584_v60  ;;  %v5778_v63 = vpop.eup %5777  ;;  %v4597_v2 = vadd.f32 1.0, %v5776_v23 }
0x1244   :  { %5781 = vrcp.f32 %v4590_v62 }
0x1245   :  { %5783 = vrcp.f32 %v4597_v2 }
0x124d   :  { %v5780_v42 = vpop.eup %5779 }
0x124e   :  { %v5782_v0 = vpop.eup %5781  ;;  %v4601_v28 = vmul.f32 %v5780_v42, %v5778_v63 }
0x124f   :  { %v4600_v3 = vmul.f32 %v5782_v0, %v11178_v7  ;;  %v5784_v53 = vpop.eup %5783 }
0x1251   :  { %v4649_v30 = vpop.f32.mrb[152].mxu0  ;;  %v4690_v27 = vpop.f32.mrb[152].mxu1  ;;  %v11361_v35 = vadd.f32 %v4601_v28, %v4600_v3 }
0x1252   :  { %v4697_v4 = vadd.f32 %v4649_v30, %v13147_v15  ;;  %v4699_v11 = vadd.f32 %v4690_v27, %v13148_v5  ;;  %v4651_v12 = vpop.f32.mrb[153].mxu0  ;;  %v4692_v13 = vpop.f32.mrb[153].mxu1 }
0x1253   :  { %v4698_v8 = vadd.f32 %v4651_v12, %v13149_v14  ;;  %v4700_v29 = vadd.f32 %v4692_v13, %v13150_v52  ;;  %v4653_v55 = vpop.f32.mrb[154].mxu0  ;;  %v4694_v17 = vpop.f32.mrb[154].mxu1  ;;  %5785 = vtanh.f32 %v11361_v35 }
0x1254   :  { %v5098_v7 = vmul.f32 -1.442695, %v4697_v4  ;;  %v4654_v22 = vpop.f32.mrb[155].mxu0  ;;  %v4695_v33 = vpop.f32.mrb[155].mxu1 }
0x1255   :  { %v5099_v43 = vmul.f32 -1.442695, %v4698_v8  ;;  %v5100_v32 = vmul.f32 -1.442695, %v4700_v29 }
0x1256   :  { %5787 = vpow2.f32 %v5098_v7 }
0x1257   :  { %5789 = vpow2.f32 %v5099_v43 }
0x1258   :  { %5791 = vpow2.f32 %v5100_v32 }
0x1259   :  { %5793 = vtanh.f32 %v4699_v11 }
0x125d   :  { %v5786_v16 = vpop.eup %5785 }
0x125e   :  { %v4604_v41 = vmul.f32 %v5786_v16, %v5784_v53 }
0x1260   :  { %v5788_v39 = vpop.eup %5787  ;;  %v4605_v18 = vpack.c.bf16 %v4604_v41, %v4604_v41 }
0x1261   :  { %v5790_v20 = vpop.eup %5789  ;;  %v4704_v36 = vadd.f32 1.0, %v5788_v39 }
0x1262   :  { %v4710_v45 = vadd.f32 1.0, %v5790_v20  ;;  %5097 = vst [vmem:[%s11386_s6 + $0x38] sm:$0xf] %v4605_v18  ;;  %4758 = vmatprep.mubr.bf16.mxu0 %v4605_v18  ;;  %4799 = vmatprep.mubr.bf16.mxu1 %v4605_v18  ;;  %v5792_v31 = vpop.eup %5791 }
0x1263   :  { %5795 = vrcp.f32 %v4704_v36  ;;  %v5794_v38 = vpop.eup %5793  ;;  %v4717_v21 = vadd.f32 1.0, %v5792_v31 }
0x1264   :  { %5797 = vrcp.f32 %v4710_v45 }
0x1265   :  { %5799 = vrcp.f32 %v4717_v21 }
0x126d   :  { %v5796_v10 = vpop.eup %5795 }
0x126e   :  { %v5798_v40 = vpop.eup %5797  ;;  %v4721_v24 = vmul.f32 %v5796_v10, %v5794_v38 }
0x126f   :  { %v4720_v37 = vmul.f32 %v5798_v40, %v11189_v6  ;;  %v5800_v61 = vpop.eup %5799 }
0x1271   :  { %v4722_v19 = vadd.f32 %v4721_v24, %v4720_v37 }
0x1273   :  { %5801 = vtanh.f32 %v4722_v19 }
0x127d   :  { %v5802_v51 = vpop.eup %5801 }
0x127e   :  { %v4724_v9 = vmul.f32 %v5802_v51, %v5800_v61 }
0x1280   :  { %v4725_v48 = vpack.c.bf16 %v4724_v9, %v4724_v9 }
0x1282   :  { %4759 = vmatmul.mubr.bf16.vlgmr.msra.gmra.mrb[156].mxu0 %v4725_v48  ;;  %4800 = vmatmul.mubr.bf16.vlgmr.msra.gmra.mrb[156].mxu1 %v4725_v48 }
0x1355   :  { %v4760_v54 = vpop.f32.mrb[156].mxu0  ;;  %v4801_v50 = vpop.f32.mrb[156].mxu1 }
0x1356   :  { %v4761_v25 = vadd.f32 %v4760_v54, %v13057_v44  ;;  %v4762_v46 = vpop.f32.mrb[157].mxu0  ;;  %v4803_v47 = vpop.f32.mrb[157].mxu1  ;;  %v4802_v63 = vadd.f32 %v4801_v50, %v13060_v1 }
0x1357   :  { %v4763_v49 = vadd.f32 %v4762_v46, %v13058_v34  ;;  %v4764_v57 = vpop.f32.mrb[158].mxu0  ;;  %v4805_v58 = vpop.f32.mrb[158].mxu1  ;;  %v4804_v62 = vadd.f32 %v4803_v47, %v13059_v56 }
0x1358   :  { %v5101_v6 = vmul.f32 -1.442695, %v4761_v25  ;;  %v4765_v26 = vpop.f32.mrb[159].mxu0  ;;  %v4806_v59 = vpop.f32.mrb[159].mxu1 }
0x1359   :  { %v5102_v60 = vmul.f32 -1.442695, %v4763_v49  ;;  %v5103_v23 = vmul.f32 -1.442695, %v4804_v62 }
0x135a   :  { %5803 = vpow2.f32 %v5101_v6 }
0x135b   :  { %5805 = vpow2.f32 %v5102_v60 }
0x135c   :  { %5807 = vpow2.f32 %v5103_v23 }
0x135d   :  { %5809 = vtanh.f32 %v4802_v63 }
0x1364   :  { %v5804_v42 = vpop.eup %5803 }
0x1365   :  { %v5806_v0 = vpop.eup %5805  ;;  %v4811_v44 = vadd.f32 1.0, %v5804_v42 }
0x1366   :  { %v4817_v28 = vadd.f32 1.0, %v5806_v0  ;;  %v5808_v34 = vpop.eup %5807 }
0x1367   :  { %5811 = vrcp.f32 %v4811_v44  ;;  %v5810_v2 = vpop.eup %5809  ;;  %v4824_v15 = vadd.f32 1.0, %v5808_v34 }
0x1368   :  { %5813 = vrcp.f32 %v4817_v28 }
0x1369   :  { %5815 = vrcp.f32 %v4824_v15 }
0x1371   :  { %v5812_v3 = vpop.eup %5811 }
0x1372   :  { %v5814_v30 = vpop.eup %5813  ;;  %v4828_v27 = vmul.f32 %v5812_v3, %v5810_v2 }
0x1373   :  { %v4827_v4 = vmul.f32 %v5814_v30, %v11361_v35  ;;  %v5816_v1 = vpop.eup %5815 }
0x1375   :  { %v4829_v56 = vadd.f32 %v4828_v27, %v4827_v4 }
0x1377   :  { %5817 = vtanh.f32 %v4829_v56 }
0x1381   :  { %v5818_v5 = vpop.eup %5817 }
0x1382   :  { %v4831_v11 = vmul.f32 %v5818_v5, %v5816_v1 }
0x1384   :  { %v4832_v12 = vpack.c.bf16 %v4831_v11, %v4831_v11 }
0x1386   :  { %5104 = vst [vmem:[%s11386_s6 + $0x3c] sm:$0xf] %v4832_v12 }

</bundles_post_ra>
